<compile_context>
chip_gen: v6e
topology: v6e:2x2x1
jax: 0.10.0
libtpu: 0.0.40
codegen_flags: <defaults>
</compile_context>

<pallas_src>
import functools

import jax
import jax.numpy as jnp
from jax import lax
from jax.experimental import pallas as pl
from jax.experimental.pallas import tpu as pltpu

NSTEPS = 8                  # fixed RK4 steps over t in [0, 1]
LANE = 128                  # TPU lane width
NCHUNKS = 2                 # independent RK4 chains interleaved per grid step
TB_LANES = NCHUNKS * LANE   # batch columns per grid step (lane-dense tile)


def _cnf_rk4_kernel(xT_ref, w1t_ref, b1_ref, w2t_ref, b2_ref, m_ref,
                    yT_ref, nld_ref, *, nsteps, nchunks, matmul_dtype):
    """Integrate the augmented CNF ODE (fixed-step RK4) for one batch tile.

    All tensors are transposed: batch on lanes, feature/hidden dims on sublanes.
    """
    H = w1t_ref.shape[0]
    D = w2t_ref.shape[0]
    TB = xT_ref.shape[1]
    chunk = TB // nchunks

    # Weights / constants, hoisted once per grid step (JAX does not CSE
    # broadcast_in_dim, so broadcast exactly once).
    w1t = w1t_ref[...].astype(matmul_dtype)            # [H, D]
    w2t = w2t_ref[...].astype(matmul_dtype)            # [D, H]
    b1b = jnp.broadcast_to(b1_ref[...], (H, chunk))    # [H, chunk]
    b2b = jnp.broadcast_to(b2_ref[...], (D, chunk))    # [D, chunk]
    mb = jnp.broadcast_to(m_ref[...], (H, chunk))      # [H, chunk] = diag(W2 @ W1)

    def vector_field(z):
        # z: [D, chunk] float32, batch on lanes.
        # NOTE: with K=16/32 contractions the MXU is under-filled; a VPU
        # broadcast-multiply formulation is a possible further tuning step.
        h = jnp.dot(w1t, z.astype(matmul_dtype),
                    preferred_element_type=jnp.float32) + b1b       # [H, chunk]
        th = jnp.tanh(h)                                            # EUP
        f = jnp.dot(w2t, th.astype(matmul_dtype),
                    preferred_element_type=jnp.float32) + b2b       # [D, chunk]
        s = 1.0 - th * th                                           # tanh'(h)
        trace = jnp.sum(s * mb, axis=0, keepdims=True)              # [1, chunk]
        return f, trace

    dt = jnp.float32(1.0 / nsteps)
    hdt = jnp.float32(0.5 / nsteps)
    dt6 = jnp.float32(1.0 / (6.0 * nsteps))

    xT = xT_ref[...].astype(jnp.float32)                            # [D, TB]
    zs0 = tuple(xT[:, c * chunk:(c + 1) * chunk] for c in range(nchunks))
    trs0 = tuple(jnp.zeros((1, chunk), jnp.float32) for _ in range(nchunks))

    def rk4_step(_, carry):
        zs, trs = carry
        # Stage-major over independent 128-lane chunks -> independent MXU/EUP
        # chains the scheduler can interleave.
        k1 = [vector_field(zs[c]) for c in range(nchunks)]
        k2 = [vector_field(zs[c] + hdt * k1[c][0]) for c in range(nchunks)]
        k3 = [vector_field(zs[c] + hdt * k2[c][0]) for c in range(nchunks)]
        k4 = [vector_field(zs[c] + dt * k3[c][0]) for c in range(nchunks)]
        zs_new = tuple(
            zs[c] + dt6 * (k1[c][0] + 2.0 * k2[c][0] + 2.0 * k3[c][0] + k4[c][0])
            for c in range(nchunks))
        trs_new = tuple(
            trs[c] + dt6 * (k1[c][1] + 2.0 * k2[c][1] + 2.0 * k3[c][1] + k4[c][1])
            for c in range(nchunks))
        return zs_new, trs_new

    # Short fixed trip count: fully unroll so the scheduler sees all stages.
    zs_f, trs_f = lax.fori_loop(0, nsteps, rk4_step, (zs0, trs0), unroll=True)

    for c in range(nchunks):
        sl = slice(c * chunk, (c + 1) * chunk)      # 128-aligned, 128-wide stores
        yT_ref[:, sl] = zs_f[c].astype(yT_ref.dtype)
        # forward() returns -log_abs_det_dx_dy = -integrated trace
        nld_ref[:, sl] = (-trs_f[c]).astype(nld_ref.dtype)


def nde_transform_forward(x, w1, b1, w2, b2, *, keepdim=False, nsteps=NSTEPS,
                          matmul_dtype=jnp.float32):
    """JAX wrapper mirroring NDETransform.forward(x, keepdim)."""
    B, D = x.shape
    H = w1.shape[1]

    num_tiles = pl.cdiv(B, TB_LANES)
    B_pad = num_tiles * TB_LANES

    # Glue (plain JAX): transposed / padded layout + diag(W2 @ W1).
    xT = jnp.transpose(x.astype(jnp.float32))                       # [D, B]
    if B_pad != B:
        xT = jnp.pad(xT, ((0, 0), (0, B_pad - B)))
    w1t = jnp.transpose(w1).astype(jnp.float32)                     # [H, D]
    w2t = jnp.transpose(w2).astype(jnp.float32)                     # [D, H]
    b1c = b1.reshape(H, 1).astype(jnp.float32)
    b2c = b2.reshape(D, 1).astype(jnp.float32)
    mc = jnp.sum(w2 * w1.T, axis=-1).reshape(H, 1).astype(jnp.float32)

    kernel = functools.partial(_cnf_rk4_kernel, nsteps=nsteps,
                               nchunks=NCHUNKS, matmul_dtype=matmul_dtype)

    cost = pl.CostEstimate(
        flops=int(16 * nsteps * D * H * B_pad),          # 4 stages x 2 matmuls
        transcendentals=int(4 * nsteps * H * B_pad),     # tanh
        bytes_accessed=int(4 * (2 * D * B_pad + B_pad + 2 * D * H + 2 * H + D)),
    )

    yT, nldT = pl.pallas_call(
        kernel,
        out_shape=(
            jax.ShapeDtypeStruct((D, B_pad), jnp.float32),
            jax.ShapeDtypeStruct((1, B_pad), jnp.float32),
        ),
        grid_spec=pltpu.PrefetchScalarGridSpec(
            num_scalar_prefetch=0,
            grid=(num_tiles,),
            in_specs=[
                pl.BlockSpec((D, TB_LANES), lambda i: (0, i)),   # x^T (batch tile)
                pl.BlockSpec((H, D), lambda i: (0, 0)),          # W1^T (resident)
                pl.BlockSpec((H, 1), lambda i: (0, 0)),          # b1
                pl.BlockSpec((D, H), lambda i: (0, 0)),          # W2^T (resident)
                pl.BlockSpec((D, 1), lambda i: (0, 0)),          # b2
                pl.BlockSpec((H, 1), lambda i: (0, 0)),          # diag(W2 @ W1)
            ],
            out_specs=[
                pl.BlockSpec((D, TB_LANES), lambda i: (0, i)),   # y^T
                pl.BlockSpec((1, TB_LANES), lambda i: (0, i)),   # lane-dense -logdet
            ],
        ),
        compiler_params=pltpu.CompilerParams(
            dimension_semantics=("parallel",)),
        cost_estimate=cost,
    )(xT, w1t, b1c, w2t, b2c, mc)

    y = jnp.transpose(yT[:, :B])                                    # [B, D]
    neg_logdet = nldT[0, :B]                                        # [B]
    if keepdim:
        return y, neg_logdet[:, None]            # ([B, D], [B, 1])
    return y, neg_logdet                         # ([B, D], [B])


def _reference_forward(x, w1, b1, w2, b2, nsteps=NSTEPS):
    """Pure-JAX reference (same fixed-step RK4, batch-major layout)."""
    m = jnp.sum(w2 * w1.T, axis=-1)

    def vf(z):
        h = z @ w1 + b1
        th = jnp.tanh(h)
        return th @ w2 + b2, jnp.sum((1.0 - th * th) * m, axis=-1, keepdims=True)

    dt = 1.0 / nsteps
    z, tr = x, jnp.zeros((x.shape[0], 1), jnp.float32)
    for _ in range(nsteps):
        k1f, k1t = vf(z)
        k2f, k2t = vf(z + 0.5 * dt * k1f)
        k3f, k3t = vf(z + 0.5 * dt * k2f)
        k4f, k4t = vf(z + dt * k3f)
        z = z + (dt / 6.0) * (k1f + 2 * k2f + 2 * k3f + k4f)
        tr = tr + (dt / 6.0) * (k1t + 2 * k2t + 2 * k3t + k4t)
    return z, -tr[:, 0]


if __name__ == "__main__":
    B, D, H = 512, 16, 32   # batch (2 x 256-lane tiles), event dim, hidden

    key = jax.random.PRNGKey(0)
    kx, k1, k2, k3, k4 = jax.random.split(key, 5)
    x = jax.random.normal(kx, (B, D), dtype=jnp.float32)
    # Deterministic synthetic "get_net" parameters (1-hidden-layer tanh MLP).
    w1 = jax.random.normal(k1, (D, H), dtype=jnp.float32) * 0.3
    b1 = jax.random.normal(k2, (H,), dtype=jnp.float32) * 0.1
    w2 = jax.random.normal(k3, (H, D), dtype=jnp.float32) * 0.3
    b2 = jax.random.normal(k4, (D,), dtype=jnp.float32) * 0.1

    y, neg_logdet = nde_transform_forward(x, w1, b1, w2, b2, keepdim=False)
    jax.block_until_ready((y, neg_logdet))

    y_ref, nl_ref = _reference_forward(x, w1, b1, w2, b2)
    assert y.shape == (B, D) and neg_logdet.shape == (B,)
    assert jnp.allclose(y, y_ref, atol=1e-4, rtol=1e-4)
    assert jnp.allclose(neg_logdet, nl_ref, atol=1e-4, rtol=1e-4)

    # keepdim=True path (shape check).
    yk, nlk = nde_transform_forward(x, w1, b1, w2, b2, keepdim=True)
    assert yk.shape == (B, D) and nlk.shape == (B, 1)

    # Ragged batch (B not a multiple of the 256-lane tile) exercises the
    # pl.cdiv + zero-pad path.
    Bs = 40
    ys, nls = nde_transform_forward(x[:Bs], w1, b1, w2, b2, keepdim=False)
    ys_ref, nls_ref = _reference_forward(x[:Bs], w1, b1, w2, b2)
    assert ys.shape == (Bs, D) and nls.shape == (Bs,)
    assert jnp.allclose(ys, ys_ref, atol=1e-4, rtol=1e-4)
    assert jnp.allclose(nls, nls_ref, atol=1e-4, rtol=1e-4)

    print("KERNEL_OK")
</pallas_src>

<mosaic_0001>
module attributes {stable_mosaic.version = 11 : i64} {
  func.func @_cnf_rk4_kernel(%arg0: i32, %arg1: memref<16x256xf32, #tpu.memory_space<vmem>>, %arg2: memref<32x16xf32, #tpu.memory_space<vmem>>, %arg3: memref<32x1xf32, #tpu.memory_space<vmem>>, %arg4: memref<16x32xf32, #tpu.memory_space<vmem>>, %arg5: memref<16x1xf32, #tpu.memory_space<vmem>>, %arg6: memref<32x1xf32, #tpu.memory_space<vmem>>, %arg7: memref<16x256xf32, #tpu.memory_space<vmem>>, %arg8: memref<1x256xf32, #tpu.memory_space<vmem>>) attributes {dimension_semantics = [#tpu.dimension_semantics<parallel>], iteration_bounds = array<i64: 2>, scalar_prefetch = 0 : i64, scratch_operands = 0 : i64, tpu.core_type = #tpu.core_type<tc>, window_params = [{transform_indices = @transform_0, window_bounds = array<i64: 16, 256>}, {pipeline_mode = #tpu.pipeline_mode<synchronous>, transform_indices = @transform_1, window_bounds = array<i64: 32, 16>}, {pipeline_mode = #tpu.pipeline_mode<synchronous>, transform_indices = @transform_2, window_bounds = array<i64: 32, 1>}, {pipeline_mode = #tpu.pipeline_mode<synchronous>, transform_indices = @transform_3, window_bounds = array<i64: 16, 32>}, {pipeline_mode = #tpu.pipeline_mode<synchronous>, transform_indices = @transform_4, window_bounds = array<i64: 16, 1>}, {pipeline_mode = #tpu.pipeline_mode<synchronous>, transform_indices = @transform_5, window_bounds = array<i64: 32, 1>}, {transform_indices = @transform_6, window_bounds = array<i64: 16, 256>}, {transform_indices = @transform_7, window_bounds = array<i64: 1, 256>}]} {
    %c0 = arith.constant 0 : index
    %c0_0 = arith.constant 0 : index
    %0 = vector.load %arg2[%c0, %c0_0] : memref<32x16xf32, #tpu.memory_space<vmem>>, vector<32x16xf32>
    %c0_1 = arith.constant 0 : index
    %c0_2 = arith.constant 0 : index
    %1 = vector.load %arg4[%c0_1, %c0_2] : memref<16x32xf32, #tpu.memory_space<vmem>>, vector<16x32xf32>
    %c0_3 = arith.constant 0 : index
    %c0_4 = arith.constant 0 : index
    %2 = vector.load %arg3[%c0_3, %c0_4] : memref<32x1xf32, #tpu.memory_space<vmem>>, vector<32x1xf32>
    %3 = vector.shape_cast %2 : vector<32x1xf32> to vector<32x1xf32>
    %4 = vector.broadcast %3 : vector<32x1xf32> to vector<32x128xf32>
    %c0_5 = arith.constant 0 : index
    %c0_6 = arith.constant 0 : index
    %5 = vector.load %arg5[%c0_5, %c0_6] : memref<16x1xf32, #tpu.memory_space<vmem>>, vector<16x1xf32>
    %6 = vector.shape_cast %5 : vector<16x1xf32> to vector<16x1xf32>
    %7 = vector.broadcast %6 : vector<16x1xf32> to vector<16x128xf32>
    %c0_7 = arith.constant 0 : index
    %c0_8 = arith.constant 0 : index
    %8 = vector.load %arg6[%c0_7, %c0_8] : memref<32x1xf32, #tpu.memory_space<vmem>>, vector<32x1xf32>
    %9 = vector.shape_cast %8 : vector<32x1xf32> to vector<32x1xf32>
    %10 = vector.broadcast %9 : vector<32x1xf32> to vector<32x128xf32>
    %c0_9 = arith.constant 0 : index
    %c0_10 = arith.constant 0 : index
    %11 = vector.load %arg1[%c0_9, %c0_10] : memref<16x256xf32, #tpu.memory_space<vmem>>, vector<16x256xf32>
    %12 = vector.extract_strided_slice %11 {offsets = [0, 0], sizes = [16, 128], strides = [1, 1]} : vector<16x256xf32> to vector<16x128xf32>
    %13 = vector.extract_strided_slice %11 {offsets = [0, 128], sizes = [16, 128], strides = [1, 1]} : vector<16x256xf32> to vector<16x128xf32>
    %cst = arith.constant 0.000000e+00 : f32
    %14 = vector.broadcast %cst : f32 to vector<1x128xf32>
    %cst_11 = arith.constant 0.000000e+00 : f32
    %15 = vector.broadcast %cst_11 : f32 to vector<1x128xf32>
    %cst_12 = arith.constant 6.250000e-02 : f32
    %cst_13 = arith.constant 1.250000e-01 : f32
    %cst_14 = arith.constant 0.020833334 : f32
    %c0_i32 = arith.constant 0 : i32
    %cst_15 = arith.constant dense<0.000000e+00> : vector<32x128xf32>
    %16 = tpu.matmul %0, %12, %cst_15 {dimension_numbers = #tpu.dot_dimension_numbers<[1], [0], [0], [1], [0, 0, 1, 1], [], []>} : vector<32x16xf32>, vector<16x128xf32>, vector<32x128xf32> -> vector<32x128xf32>
    %17 = arith.addf %16, %4 : vector<32x128xf32>
    %18 = math.tanh %17 : vector<32x128xf32>
    %cst_16 = arith.constant dense<0.000000e+00> : vector<16x128xf32>
    %19 = tpu.matmul %1, %18, %cst_16 {dimension_numbers = #tpu.dot_dimension_numbers<[1], [0], [0], [1], [0, 0, 1, 1], [], []>} : vector<16x32xf32>, vector<32x128xf32>, vector<16x128xf32> -> vector<16x128xf32>
    %20 = arith.addf %19, %7 : vector<16x128xf32>
    %21 = arith.mulf %18, %18 : vector<32x128xf32>
    %cst_17 = arith.constant 1.000000e+00 : f32
    %22 = vector.broadcast %cst_17 : f32 to vector<32x128xf32>
    %23 = arith.subf %22, %21 : vector<32x128xf32>
    %24 = arith.mulf %23, %10 : vector<32x128xf32>
    %cst_18 = arith.constant dense<0.000000e+00> : vector<128xf32>
    %25 = vector.multi_reduction <add>, %24, %cst_18 [0] : vector<32x128xf32> to vector<128xf32>
    %26 = vector.shape_cast %25 : vector<128xf32> to vector<1x128xf32>
    %cst_19 = arith.constant dense<0.000000e+00> : vector<32x128xf32>
    %27 = tpu.matmul %0, %13, %cst_19 {dimension_numbers = #tpu.dot_dimension_numbers<[1], [0], [0], [1], [0, 0, 1, 1], [], []>} : vector<32x16xf32>, vector<16x128xf32>, vector<32x128xf32> -> vector<32x128xf32>
    %28 = arith.addf %27, %4 : vector<32x128xf32>
    %29 = math.tanh %28 : vector<32x128xf32>
    %cst_20 = arith.constant dense<0.000000e+00> : vector<16x128xf32>
    %30 = tpu.matmul %1, %29, %cst_20 {dimension_numbers = #tpu.dot_dimension_numbers<[1], [0], [0], [1], [0, 0, 1, 1], [], []>} : vector<16x32xf32>, vector<32x128xf32>, vector<16x128xf32> -> vector<16x128xf32>
    %31 = arith.addf %30, %7 : vector<16x128xf32>
    %32 = arith.mulf %29, %29 : vector<32x128xf32>
    %cst_21 = arith.constant 1.000000e+00 : f32
    %33 = vector.broadcast %cst_21 : f32 to vector<32x128xf32>
    %34 = arith.subf %33, %32 : vector<32x128xf32>
    %35 = arith.mulf %34, %10 : vector<32x128xf32>
    %cst_22 = arith.constant dense<0.000000e+00> : vector<128xf32>
    %36 = vector.multi_reduction <add>, %35, %cst_22 [0] : vector<32x128xf32> to vector<128xf32>
    %37 = vector.shape_cast %36 : vector<128xf32> to vector<1x128xf32>
    %38 = vector.broadcast %cst_12 : f32 to vector<16x128xf32>
    %39 = arith.mulf %38, %20 : vector<16x128xf32>
    %40 = arith.addf %12, %39 : vector<16x128xf32>
    %cst_23 = arith.constant dense<0.000000e+00> : vector<32x128xf32>
    %41 = tpu.matmul %0, %40, %cst_23 {dimension_numbers = #tpu.dot_dimension_numbers<[1], [0], [0], [1], [0, 0, 1, 1], [], []>} : vector<32x16xf32>, vector<16x128xf32>, vector<32x128xf32> -> vector<32x128xf32>
    %42 = arith.addf %41, %4 : vector<32x128xf32>
    %43 = math.tanh %42 : vector<32x128xf32>
    %cst_24 = arith.constant dense<0.000000e+00> : vector<16x128xf32>
    %44 = tpu.matmul %1, %43, %cst_24 {dimension_numbers = #tpu.dot_dimension_numbers<[1], [0], [0], [1], [0, 0, 1, 1], [], []>} : vector<16x32xf32>, vector<32x128xf32>, vector<16x128xf32> -> vector<16x128xf32>
    %45 = arith.addf %44, %7 : vector<16x128xf32>
    %46 = arith.mulf %43, %43 : vector<32x128xf32>
    %cst_25 = arith.constant 1.000000e+00 : f32
    %47 = vector.broadcast %cst_25 : f32 to vector<32x128xf32>
    %48 = arith.subf %47, %46 : vector<32x128xf32>
    %49 = arith.mulf %48, %10 : vector<32x128xf32>
    %cst_26 = arith.constant dense<0.000000e+00> : vector<128xf32>
    %50 = vector.multi_reduction <add>, %49, %cst_26 [0] : vector<32x128xf32> to vector<128xf32>
    %51 = vector.shape_cast %50 : vector<128xf32> to vector<1x128xf32>
    %52 = vector.broadcast %cst_12 : f32 to vector<16x128xf32>
    %53 = arith.mulf %52, %31 : vector<16x128xf32>
    %54 = arith.addf %13, %53 : vector<16x128xf32>
    %cst_27 = arith.constant dense<0.000000e+00> : vector<32x128xf32>
    %55 = tpu.matmul %0, %54, %cst_27 {dimension_numbers = #tpu.dot_dimension_numbers<[1], [0], [0], [1], [0, 0, 1, 1], [], []>} : vector<32x16xf32>, vector<16x128xf32>, vector<32x128xf32> -> vector<32x128xf32>
    %56 = arith.addf %55, %4 : vector<32x128xf32>
    %57 = math.tanh %56 : vector<32x128xf32>
    %cst_28 = arith.constant dense<0.000000e+00> : vector<16x128xf32>
    %58 = tpu.matmul %1, %57, %cst_28 {dimension_numbers = #tpu.dot_dimension_numbers<[1], [0], [0], [1], [0, 0, 1, 1], [], []>} : vector<16x32xf32>, vector<32x128xf32>, vector<16x128xf32> -> vector<16x128xf32>
    %59 = arith.addf %58, %7 : vector<16x128xf32>
    %60 = arith.mulf %57, %57 : vector<32x128xf32>
    %cst_29 = arith.constant 1.000000e+00 : f32
    %61 = vector.broadcast %cst_29 : f32 to vector<32x128xf32>
    %62 = arith.subf %61, %60 : vector<32x128xf32>
    %63 = arith.mulf %62, %10 : vector<32x128xf32>
    %cst_30 = arith.constant dense<0.000000e+00> : vector<128xf32>
    %64 = vector.multi_reduction <add>, %63, %cst_30 [0] : vector<32x128xf32> to vector<128xf32>
    %65 = vector.shape_cast %64 : vector<128xf32> to vector<1x128xf32>
    %66 = vector.broadcast %cst_12 : f32 to vector<16x128xf32>
    %67 = arith.mulf %66, %45 : vector<16x128xf32>
    %68 = arith.addf %12, %67 : vector<16x128xf32>
    %cst_31 = arith.constant dense<0.000000e+00> : vector<32x128xf32>
    %69 = tpu.matmul %0, %68, %cst_31 {dimension_numbers = #tpu.dot_dimension_numbers<[1], [0], [0], [1], [0, 0, 1, 1], [], []>} : vector<32x16xf32>, vector<16x128xf32>, vector<32x128xf32> -> vector<32x128xf32>
    %70 = arith.addf %69, %4 : vector<32x128xf32>
    %71 = math.tanh %70 : vector<32x128xf32>
    %cst_32 = arith.constant dense<0.000000e+00> : vector<16x128xf32>
    %72 = tpu.matmul %1, %71, %cst_32 {dimension_numbers = #tpu.dot_dimension_numbers<[1], [0], [0], [1], [0, 0, 1, 1], [], []>} : vector<16x32xf32>, vector<32x128xf32>, vector<16x128xf32> -> vector<16x128xf32>
    %73 = arith.addf %72, %7 : vector<16x128xf32>
    %74 = arith.mulf %71, %71 : vector<32x128xf32>
    %cst_33 = arith.constant 1.000000e+00 : f32
    %75 = vector.broadcast %cst_33 : f32 to vector<32x128xf32>
    %76 = arith.subf %75, %74 : vector<32x128xf32>
    %77 = arith.mulf %76, %10 : vector<32x128xf32>
    %cst_34 = arith.constant dense<0.000000e+00> : vector<128xf32>
    %78 = vector.multi_reduction <add>, %77, %cst_34 [0] : vector<32x128xf32> to vector<128xf32>
    %79 = vector.shape_cast %78 : vector<128xf32> to vector<1x128xf32>
    %80 = vector.broadcast %cst_12 : f32 to vector<16x128xf32>
    %81 = arith.mulf %80, %59 : vector<16x128xf32>
    %82 = arith.addf %13, %81 : vector<16x128xf32>
    %cst_35 = arith.constant dense<0.000000e+00> : vector<32x128xf32>
    %83 = tpu.matmul %0, %82, %cst_35 {dimension_numbers = #tpu.dot_dimension_numbers<[1], [0], [0], [1], [0, 0, 1, 1], [], []>} : vector<32x16xf32>, vector<16x128xf32>, vector<32x128xf32> -> vector<32x128xf32>
    %84 = arith.addf %83, %4 : vector<32x128xf32>
    %85 = math.tanh %84 : vector<32x128xf32>
    %cst_36 = arith.constant dense<0.000000e+00> : vector<16x128xf32>
    %86 = tpu.matmul %1, %85, %cst_36 {dimension_numbers = #tpu.dot_dimension_numbers<[1], [0], [0], [1], [0, 0, 1, 1], [], []>} : vector<16x32xf32>, vector<32x128xf32>, vector<16x128xf32> -> vector<16x128xf32>
    %87 = arith.addf %86, %7 : vector<16x128xf32>
    %88 = arith.mulf %85, %85 : vector<32x128xf32>
    %cst_37 = arith.constant 1.000000e+00 : f32
    %89 = vector.broadcast %cst_37 : f32 to vector<32x128xf32>
    %90 = arith.subf %89, %88 : vector<32x128xf32>
    %91 = arith.mulf %90, %10 : vector<32x128xf32>
    %cst_38 = arith.constant dense<0.000000e+00> : vector<128xf32>
    %92 = vector.multi_reduction <add>, %91, %cst_38 [0] : vector<32x128xf32> to vector<128xf32>
    %93 = vector.shape_cast %92 : vector<128xf32> to vector<1x128xf32>
    %94 = vector.broadcast %cst_13 : f32 to vector<16x128xf32>
    %95 = arith.mulf %94, %73 : vector<16x128xf32>
    %96 = arith.addf %12, %95 : vector<16x128xf32>
    %cst_39 = arith.constant dense<0.000000e+00> : vector<32x128xf32>
    %97 = tpu.matmul %0, %96, %cst_39 {dimension_numbers = #tpu.dot_dimension_numbers<[1], [0], [0], [1], [0, 0, 1, 1], [], []>} : vector<32x16xf32>, vector<16x128xf32>, vector<32x128xf32> -> vector<32x128xf32>
    %98 = arith.addf %97, %4 : vector<32x128xf32>
    %99 = math.tanh %98 : vector<32x128xf32>
    %cst_40 = arith.constant dense<0.000000e+00> : vector<16x128xf32>
    %100 = tpu.matmul %1, %99, %cst_40 {dimension_numbers = #tpu.dot_dimension_numbers<[1], [0], [0], [1], [0, 0, 1, 1], [], []>} : vector<16x32xf32>, vector<32x128xf32>, vector<16x128xf32> -> vector<16x128xf32>
    %101 = arith.addf %100, %7 : vector<16x128xf32>
    %102 = arith.mulf %99, %99 : vector<32x128xf32>
    %cst_41 = arith.constant 1.000000e+00 : f32
    %103 = vector.broadcast %cst_41 : f32 to vector<32x128xf32>
    %104 = arith.subf %103, %102 : vector<32x128xf32>
    %105 = arith.mulf %104, %10 : vector<32x128xf32>
    %cst_42 = arith.constant dense<0.000000e+00> : vector<128xf32>
    %106 = vector.multi_reduction <add>, %105, %cst_42 [0] : vector<32x128xf32> to vector<128xf32>
    %107 = vector.shape_cast %106 : vector<128xf32> to vector<1x128xf32>
    %108 = vector.broadcast %cst_13 : f32 to vector<16x128xf32>
    %109 = arith.mulf %108, %87 : vector<16x128xf32>
    %110 = arith.addf %13, %109 : vector<16x128xf32>
    %cst_43 = arith.constant dense<0.000000e+00> : vector<32x128xf32>
    %111 = tpu.matmul %0, %110, %cst_43 {dimension_numbers = #tpu.dot_dimension_numbers<[1], [0], [0], [1], [0, 0, 1, 1], [], []>} : vector<32x16xf32>, vector<16x128xf32>, vector<32x128xf32> -> vector<32x128xf32>
    %112 = arith.addf %111, %4 : vector<32x128xf32>
    %113 = math.tanh %112 : vector<32x128xf32>
    %cst_44 = arith.constant dense<0.000000e+00> : vector<16x128xf32>
    %114 = tpu.matmul %1, %113, %cst_44 {dimension_numbers = #tpu.dot_dimension_numbers<[1], [0], [0], [1], [0, 0, 1, 1], [], []>} : vector<16x32xf32>, vector<32x128xf32>, vector<16x128xf32> -> vector<16x128xf32>
    %115 = arith.addf %114, %7 : vector<16x128xf32>
    %116 = arith.mulf %113, %113 : vector<32x128xf32>
    %cst_45 = arith.constant 1.000000e+00 : f32
    %117 = vector.broadcast %cst_45 : f32 to vector<32x128xf32>
    %118 = arith.subf %117, %116 : vector<32x128xf32>
    %119 = arith.mulf %118, %10 : vector<32x128xf32>
    %cst_46 = arith.constant dense<0.000000e+00> : vector<128xf32>
    %120 = vector.multi_reduction <add>, %119, %cst_46 [0] : vector<32x128xf32> to vector<128xf32>
    %121 = vector.shape_cast %120 : vector<128xf32> to vector<1x128xf32>
    %cst_47 = arith.constant 2.000000e+00 : f32
    %122 = vector.broadcast %cst_47 : f32 to vector<16x128xf32>
    %123 = arith.mulf %122, %45 : vector<16x128xf32>
    %124 = arith.addf %20, %123 : vector<16x128xf32>
    %cst_48 = arith.constant 2.000000e+00 : f32
    %125 = vector.broadcast %cst_48 : f32 to vector<16x128xf32>
    %126 = arith.mulf %125, %73 : vector<16x128xf32>
    %127 = arith.addf %124, %126 : vector<16x128xf32>
    %128 = arith.addf %127, %101 : vector<16x128xf32>
    %129 = vector.broadcast %cst_14 : f32 to vector<16x128xf32>
    %130 = arith.mulf %129, %128 : vector<16x128xf32>
    %131 = arith.addf %12, %130 : vector<16x128xf32>
    %cst_49 = arith.constant 2.000000e+00 : f32
    %132 = vector.broadcast %cst_49 : f32 to vector<16x128xf32>
    %133 = arith.mulf %132, %59 : vector<16x128xf32>
    %134 = arith.addf %31, %133 : vector<16x128xf32>
    %cst_50 = arith.constant 2.000000e+00 : f32
    %135 = vector.broadcast %cst_50 : f32 to vector<16x128xf32>
    %136 = arith.mulf %135, %87 : vector<16x128xf32>
    %137 = arith.addf %134, %136 : vector<16x128xf32>
    %138 = arith.addf %137, %115 : vector<16x128xf32>
    %139 = vector.broadcast %cst_14 : f32 to vector<16x128xf32>
    %140 = arith.mulf %139, %138 : vector<16x128xf32>
    %141 = arith.addf %13, %140 : vector<16x128xf32>
    %cst_51 = arith.constant 2.000000e+00 : f32
    %142 = vector.broadcast %cst_51 : f32 to vector<1x128xf32>
    %143 = arith.mulf %142, %51 : vector<1x128xf32>
    %144 = arith.addf %26, %143 : vector<1x128xf32>
    %cst_52 = arith.constant 2.000000e+00 : f32
    %145 = vector.broadcast %cst_52 : f32 to vector<1x128xf32>
    %146 = arith.mulf %145, %79 : vector<1x128xf32>
    %147 = arith.addf %144, %146 : vector<1x128xf32>
    %148 = arith.addf %147, %107 : vector<1x128xf32>
    %149 = vector.broadcast %cst_14 : f32 to vector<1x128xf32>
    %150 = arith.mulf %149, %148 : vector<1x128xf32>
    %151 = arith.addf %14, %150 : vector<1x128xf32>
    %cst_53 = arith.constant 2.000000e+00 : f32
    %152 = vector.broadcast %cst_53 : f32 to vector<1x128xf32>
    %153 = arith.mulf %152, %65 : vector<1x128xf32>
    %154 = arith.addf %37, %153 : vector<1x128xf32>
    %cst_54 = arith.constant 2.000000e+00 : f32
    %155 = vector.broadcast %cst_54 : f32 to vector<1x128xf32>
    %156 = arith.mulf %155, %93 : vector<1x128xf32>
    %157 = arith.addf %154, %156 : vector<1x128xf32>
    %158 = arith.addf %157, %121 : vector<1x128xf32>
    %159 = vector.broadcast %cst_14 : f32 to vector<1x128xf32>
    %160 = arith.mulf %159, %158 : vector<1x128xf32>
    %161 = arith.addf %15, %160 : vector<1x128xf32>
    %c1_i32 = arith.constant 1 : i32
    %cst_55 = arith.constant dense<0.000000e+00> : vector<32x128xf32>
    %162 = tpu.matmul %0, %131, %cst_55 {dimension_numbers = #tpu.dot_dimension_numbers<[1], [0], [0], [1], [0, 0, 1, 1], [], []>} : vector<32x16xf32>, vector<16x128xf32>, vector<32x128xf32> -> vector<32x128xf32>
    %163 = arith.addf %162, %4 : vector<32x128xf32>
    %164 = math.tanh %163 : vector<32x128xf32>
    %cst_56 = arith.constant dense<0.000000e+00> : vector<16x128xf32>
    %165 = tpu.matmul %1, %164, %cst_56 {dimension_numbers = #tpu.dot_dimension_numbers<[1], [0], [0], [1], [0, 0, 1, 1], [], []>} : vector<16x32xf32>, vector<32x128xf32>, vector<16x128xf32> -> vector<16x128xf32>
    %166 = arith.addf %165, %7 : vector<16x128xf32>
    %167 = arith.mulf %164, %164 : vector<32x128xf32>
    %cst_57 = arith.constant 1.000000e+00 : f32
    %168 = vector.broadcast %cst_57 : f32 to vector<32x128xf32>
    %169 = arith.subf %168, %167 : vector<32x128xf32>
    %170 = arith.mulf %169, %10 : vector<32x128xf32>
    %cst_58 = arith.constant dense<0.000000e+00> : vector<128xf32>
    %171 = vector.multi_reduction <add>, %170, %cst_58 [0] : vector<32x128xf32> to vector<128xf32>
    %172 = vector.shape_cast %171 : vector<128xf32> to vector<1x128xf32>
    %cst_59 = arith.constant dense<0.000000e+00> : vector<32x128xf32>
    %173 = tpu.matmul %0, %141, %cst_59 {dimension_numbers = #tpu.dot_dimension_numbers<[1], [0], [0], [1], [0, 0, 1, 1], [], []>} : vector<32x16xf32>, vector<16x128xf32>, vector<32x128xf32> -> vector<32x128xf32>
    %174 = arith.addf %173, %4 : vector<32x128xf32>
    %175 = math.tanh %174 : vector<32x128xf32>
    %cst_60 = arith.constant dense<0.000000e+00> : vector<16x128xf32>
    %176 = tpu.matmul %1, %175, %cst_60 {dimension_numbers = #tpu.dot_dimension_numbers<[1], [0], [0], [1], [0, 0, 1, 1], [], []>} : vector<16x32xf32>, vector<32x128xf32>, vector<16x128xf32> -> vector<16x128xf32>
    %177 = arith.addf %176, %7 : vector<16x128xf32>
    %178 = arith.mulf %175, %175 : vector<32x128xf32>
    %cst_61 = arith.constant 1.000000e+00 : f32
    %179 = vector.broadcast %cst_61 : f32 to vector<32x128xf32>
    %180 = arith.subf %179, %178 : vector<32x128xf32>
    %181 = arith.mulf %180, %10 : vector<32x128xf32>
    %cst_62 = arith.constant dense<0.000000e+00> : vector<128xf32>
    %182 = vector.multi_reduction <add>, %181, %cst_62 [0] : vector<32x128xf32> to vector<128xf32>
    %183 = vector.shape_cast %182 : vector<128xf32> to vector<1x128xf32>
    %184 = vector.broadcast %cst_12 : f32 to vector<16x128xf32>
    %185 = arith.mulf %184, %166 : vector<16x128xf32>
    %186 = arith.addf %131, %185 : vector<16x128xf32>
    %cst_63 = arith.constant dense<0.000000e+00> : vector<32x128xf32>
    %187 = tpu.matmul %0, %186, %cst_63 {dimension_numbers = #tpu.dot_dimension_numbers<[1], [0], [0], [1], [0, 0, 1, 1], [], []>} : vector<32x16xf32>, vector<16x128xf32>, vector<32x128xf32> -> vector<32x128xf32>
    %188 = arith.addf %187, %4 : vector<32x128xf32>
    %189 = math.tanh %188 : vector<32x128xf32>
    %cst_64 = arith.constant dense<0.000000e+00> : vector<16x128xf32>
    %190 = tpu.matmul %1, %189, %cst_64 {dimension_numbers = #tpu.dot_dimension_numbers<[1], [0], [0], [1], [0, 0, 1, 1], [], []>} : vector<16x32xf32>, vector<32x128xf32>, vector<16x128xf32> -> vector<16x128xf32>
    %191 = arith.addf %190, %7 : vector<16x128xf32>
    %192 = arith.mulf %189, %189 : vector<32x128xf32>
    %cst_65 = arith.constant 1.000000e+00 : f32
    %193 = vector.broadcast %cst_65 : f32 to vector<32x128xf32>
    %194 = arith.subf %193, %192 : vector<32x128xf32>
    %195 = arith.mulf %194, %10 : vector<32x128xf32>
    %cst_66 = arith.constant dense<0.000000e+00> : vector<128xf32>
    %196 = vector.multi_reduction <add>, %195, %cst_66 [0] : vector<32x128xf32> to vector<128xf32>
    %197 = vector.shape_cast %196 : vector<128xf32> to vector<1x128xf32>
    %198 = vector.broadcast %cst_12 : f32 to vector<16x128xf32>
    %199 = arith.mulf %198, %177 : vector<16x128xf32>
    %200 = arith.addf %141, %199 : vector<16x128xf32>
    %cst_67 = arith.constant dense<0.000000e+00> : vector<32x128xf32>
    %201 = tpu.matmul %0, %200, %cst_67 {dimension_numbers = #tpu.dot_dimension_numbers<[1], [0], [0], [1], [0, 0, 1, 1], [], []>} : vector<32x16xf32>, vector<16x128xf32>, vector<32x128xf32> -> vector<32x128xf32>
    %202 = arith.addf %201, %4 : vector<32x128xf32>
    %203 = math.tanh %202 : vector<32x128xf32>
    %cst_68 = arith.constant dense<0.000000e+00> : vector<16x128xf32>
    %204 = tpu.matmul %1, %203, %cst_68 {dimension_numbers = #tpu.dot_dimension_numbers<[1], [0], [0], [1], [0, 0, 1, 1], [], []>} : vector<16x32xf32>, vector<32x128xf32>, vector<16x128xf32> -> vector<16x128xf32>
    %205 = arith.addf %204, %7 : vector<16x128xf32>
    %206 = arith.mulf %203, %203 : vector<32x128xf32>
    %cst_69 = arith.constant 1.000000e+00 : f32
    %207 = vector.broadcast %cst_69 : f32 to vector<32x128xf32>
    %208 = arith.subf %207, %206 : vector<32x128xf32>
    %209 = arith.mulf %208, %10 : vector<32x128xf32>
    %cst_70 = arith.constant dense<0.000000e+00> : vector<128xf32>
    %210 = vector.multi_reduction <add>, %209, %cst_70 [0] : vector<32x128xf32> to vector<128xf32>
    %211 = vector.shape_cast %210 : vector<128xf32> to vector<1x128xf32>
    %212 = vector.broadcast %cst_12 : f32 to vector<16x128xf32>
    %213 = arith.mulf %212, %191 : vector<16x128xf32>
    %214 = arith.addf %131, %213 : vector<16x128xf32>
    %cst_71 = arith.constant dense<0.000000e+00> : vector<32x128xf32>
    %215 = tpu.matmul %0, %214, %cst_71 {dimension_numbers = #tpu.dot_dimension_numbers<[1], [0], [0], [1], [0, 0, 1, 1], [], []>} : vector<32x16xf32>, vector<16x128xf32>, vector<32x128xf32> -> vector<32x128xf32>
    %216 = arith.addf %215, %4 : vector<32x128xf32>
    %217 = math.tanh %216 : vector<32x128xf32>
    %cst_72 = arith.constant dense<0.000000e+00> : vector<16x128xf32>
    %218 = tpu.matmul %1, %217, %cst_72 {dimension_numbers = #tpu.dot_dimension_numbers<[1], [0], [0], [1], [0, 0, 1, 1], [], []>} : vector<16x32xf32>, vector<32x128xf32>, vector<16x128xf32> -> vector<16x128xf32>
    %219 = arith.addf %218, %7 : vector<16x128xf32>
    %220 = arith.mulf %217, %217 : vector<32x128xf32>
    %cst_73 = arith.constant 1.000000e+00 : f32
    %221 = vector.broadcast %cst_73 : f32 to vector<32x128xf32>
    %222 = arith.subf %221, %220 : vector<32x128xf32>
    %223 = arith.mulf %222, %10 : vector<32x128xf32>
    %cst_74 = arith.constant dense<0.000000e+00> : vector<128xf32>
    %224 = vector.multi_reduction <add>, %223, %cst_74 [0] : vector<32x128xf32> to vector<128xf32>
    %225 = vector.shape_cast %224 : vector<128xf32> to vector<1x128xf32>
    %226 = vector.broadcast %cst_12 : f32 to vector<16x128xf32>
    %227 = arith.mulf %226, %205 : vector<16x128xf32>
    %228 = arith.addf %141, %227 : vector<16x128xf32>
    %cst_75 = arith.constant dense<0.000000e+00> : vector<32x128xf32>
    %229 = tpu.matmul %0, %228, %cst_75 {dimension_numbers = #tpu.dot_dimension_numbers<[1], [0], [0], [1], [0, 0, 1, 1], [], []>} : vector<32x16xf32>, vector<16x128xf32>, vector<32x128xf32> -> vector<32x128xf32>
    %230 = arith.addf %229, %4 : vector<32x128xf32>
    %231 = math.tanh %230 : vector<32x128xf32>
    %cst_76 = arith.constant dense<0.000000e+00> : vector<16x128xf32>
    %232 = tpu.matmul %1, %231, %cst_76 {dimension_numbers = #tpu.dot_dimension_numbers<[1], [0], [0], [1], [0, 0, 1, 1], [], []>} : vector<16x32xf32>, vector<32x128xf32>, vector<16x128xf32> -> vector<16x128xf32>
    %233 = arith.addf %232, %7 : vector<16x128xf32>
    %234 = arith.mulf %231, %231 : vector<32x128xf32>
    %cst_77 = arith.constant 1.000000e+00 : f32
    %235 = vector.broadcast %cst_77 : f32 to vector<32x128xf32>
    %236 = arith.subf %235, %234 : vector<32x128xf32>
    %237 = arith.mulf %236, %10 : vector<32x128xf32>
    %cst_78 = arith.constant dense<0.000000e+00> : vector<128xf32>
    %238 = vector.multi_reduction <add>, %237, %cst_78 [0] : vector<32x128xf32> to vector<128xf32>
    %239 = vector.shape_cast %238 : vector<128xf32> to vector<1x128xf32>
    %240 = vector.broadcast %cst_13 : f32 to vector<16x128xf32>
    %241 = arith.mulf %240, %219 : vector<16x128xf32>
    %242 = arith.addf %131, %241 : vector<16x128xf32>
    %cst_79 = arith.constant dense<0.000000e+00> : vector<32x128xf32>
    %243 = tpu.matmul %0, %242, %cst_79 {dimension_numbers = #tpu.dot_dimension_numbers<[1], [0], [0], [1], [0, 0, 1, 1], [], []>} : vector<32x16xf32>, vector<16x128xf32>, vector<32x128xf32> -> vector<32x128xf32>
    %244 = arith.addf %243, %4 : vector<32x128xf32>
    %245 = math.tanh %244 : vector<32x128xf32>
    %cst_80 = arith.constant dense<0.000000e+00> : vector<16x128xf32>
    %246 = tpu.matmul %1, %245, %cst_80 {dimension_numbers = #tpu.dot_dimension_numbers<[1], [0], [0], [1], [0, 0, 1, 1], [], []>} : vector<16x32xf32>, vector<32x128xf32>, vector<16x128xf32> -> vector<16x128xf32>
    %247 = arith.addf %246, %7 : vector<16x128xf32>
    %248 = arith.mulf %245, %245 : vector<32x128xf32>
    %cst_81 = arith.constant 1.000000e+00 : f32
    %249 = vector.broadcast %cst_81 : f32 to vector<32x128xf32>
    %250 = arith.subf %249, %248 : vector<32x128xf32>
    %251 = arith.mulf %250, %10 : vector<32x128xf32>
    %cst_82 = arith.constant dense<0.000000e+00> : vector<128xf32>
    %252 = vector.multi_reduction <add>, %251, %cst_82 [0] : vector<32x128xf32> to vector<128xf32>
    %253 = vector.shape_cast %252 : vector<128xf32> to vector<1x128xf32>
    %254 = vector.broadcast %cst_13 : f32 to vector<16x128xf32>
    %255 = arith.mulf %254, %233 : vector<16x128xf32>
    %256 = arith.addf %141, %255 : vector<16x128xf32>
    %cst_83 = arith.constant dense<0.000000e+00> : vector<32x128xf32>
    %257 = tpu.matmul %0, %256, %cst_83 {dimension_numbers = #tpu.dot_dimension_numbers<[1], [0], [0], [1], [0, 0, 1, 1], [], []>} : vector<32x16xf32>, vector<16x128xf32>, vector<32x128xf32> -> vector<32x128xf32>
    %258 = arith.addf %257, %4 : vector<32x128xf32>
    %259 = math.tanh %258 : vector<32x128xf32>
    %cst_84 = arith.constant dense<0.000000e+00> : vector<16x128xf32>
    %260 = tpu.matmul %1, %259, %cst_84 {dimension_numbers = #tpu.dot_dimension_numbers<[1], [0], [0], [1], [0, 0, 1, 1], [], []>} : vector<16x32xf32>, vector<32x128xf32>, vector<16x128xf32> -> vector<16x128xf32>
    %261 = arith.addf %260, %7 : vector<16x128xf32>
    %262 = arith.mulf %259, %259 : vector<32x128xf32>
    %cst_85 = arith.constant 1.000000e+00 : f32
    %263 = vector.broadcast %cst_85 : f32 to vector<32x128xf32>
    %264 = arith.subf %263, %262 : vector<32x128xf32>
    %265 = arith.mulf %264, %10 : vector<32x128xf32>
    %cst_86 = arith.constant dense<0.000000e+00> : vector<128xf32>
    %266 = vector.multi_reduction <add>, %265, %cst_86 [0] : vector<32x128xf32> to vector<128xf32>
    %267 = vector.shape_cast %266 : vector<128xf32> to vector<1x128xf32>
    %cst_87 = arith.constant 2.000000e+00 : f32
    %268 = vector.broadcast %cst_87 : f32 to vector<16x128xf32>
    %269 = arith.mulf %268, %191 : vector<16x128xf32>
    %270 = arith.addf %166, %269 : vector<16x128xf32>
    %cst_88 = arith.constant 2.000000e+00 : f32
    %271 = vector.broadcast %cst_88 : f32 to vector<16x128xf32>
    %272 = arith.mulf %271, %219 : vector<16x128xf32>
    %273 = arith.addf %270, %272 : vector<16x128xf32>
    %274 = arith.addf %273, %247 : vector<16x128xf32>
    %275 = vector.broadcast %cst_14 : f32 to vector<16x128xf32>
    %276 = arith.mulf %275, %274 : vector<16x128xf32>
    %277 = arith.addf %131, %276 : vector<16x128xf32>
    %cst_89 = arith.constant 2.000000e+00 : f32
    %278 = vector.broadcast %cst_89 : f32 to vector<16x128xf32>
    %279 = arith.mulf %278, %205 : vector<16x128xf32>
    %280 = arith.addf %177, %279 : vector<16x128xf32>
    %cst_90 = arith.constant 2.000000e+00 : f32
    %281 = vector.broadcast %cst_90 : f32 to vector<16x128xf32>
    %282 = arith.mulf %281, %233 : vector<16x128xf32>
    %283 = arith.addf %280, %282 : vector<16x128xf32>
    %284 = arith.addf %283, %261 : vector<16x128xf32>
    %285 = vector.broadcast %cst_14 : f32 to vector<16x128xf32>
    %286 = arith.mulf %285, %284 : vector<16x128xf32>
    %287 = arith.addf %141, %286 : vector<16x128xf32>
    %cst_91 = arith.constant 2.000000e+00 : f32
    %288 = vector.broadcast %cst_91 : f32 to vector<1x128xf32>
    %289 = arith.mulf %288, %197 : vector<1x128xf32>
    %290 = arith.addf %172, %289 : vector<1x128xf32>
    %cst_92 = arith.constant 2.000000e+00 : f32
    %291 = vector.broadcast %cst_92 : f32 to vector<1x128xf32>
    %292 = arith.mulf %291, %225 : vector<1x128xf32>
    %293 = arith.addf %290, %292 : vector<1x128xf32>
    %294 = arith.addf %293, %253 : vector<1x128xf32>
    %295 = vector.broadcast %cst_14 : f32 to vector<1x128xf32>
    %296 = arith.mulf %295, %294 : vector<1x128xf32>
    %297 = arith.addf %151, %296 : vector<1x128xf32>
    %cst_93 = arith.constant 2.000000e+00 : f32
    %298 = vector.broadcast %cst_93 : f32 to vector<1x128xf32>
    %299 = arith.mulf %298, %211 : vector<1x128xf32>
    %300 = arith.addf %183, %299 : vector<1x128xf32>
    %cst_94 = arith.constant 2.000000e+00 : f32
    %301 = vector.broadcast %cst_94 : f32 to vector<1x128xf32>
    %302 = arith.mulf %301, %239 : vector<1x128xf32>
    %303 = arith.addf %300, %302 : vector<1x128xf32>
    %304 = arith.addf %303, %267 : vector<1x128xf32>
    %305 = vector.broadcast %cst_14 : f32 to vector<1x128xf32>
    %306 = arith.mulf %305, %304 : vector<1x128xf32>
    %307 = arith.addf %161, %306 : vector<1x128xf32>
    %c2_i32 = arith.constant 2 : i32
    %cst_95 = arith.constant dense<0.000000e+00> : vector<32x128xf32>
    %308 = tpu.matmul %0, %277, %cst_95 {dimension_numbers = #tpu.dot_dimension_numbers<[1], [0], [0], [1], [0, 0, 1, 1], [], []>} : vector<32x16xf32>, vector<16x128xf32>, vector<32x128xf32> -> vector<32x128xf32>
    %309 = arith.addf %308, %4 : vector<32x128xf32>
    %310 = math.tanh %309 : vector<32x128xf32>
    %cst_96 = arith.constant dense<0.000000e+00> : vector<16x128xf32>
    %311 = tpu.matmul %1, %310, %cst_96 {dimension_numbers = #tpu.dot_dimension_numbers<[1], [0], [0], [1], [0, 0, 1, 1], [], []>} : vector<16x32xf32>, vector<32x128xf32>, vector<16x128xf32> -> vector<16x128xf32>
    %312 = arith.addf %311, %7 : vector<16x128xf32>
    %313 = arith.mulf %310, %310 : vector<32x128xf32>
    %cst_97 = arith.constant 1.000000e+00 : f32
    %314 = vector.broadcast %cst_97 : f32 to vector<32x128xf32>
    %315 = arith.subf %314, %313 : vector<32x128xf32>
    %316 = arith.mulf %315, %10 : vector<32x128xf32>
    %cst_98 = arith.constant dense<0.000000e+00> : vector<128xf32>
    %317 = vector.multi_reduction <add>, %316, %cst_98 [0] : vector<32x128xf32> to vector<128xf32>
    %318 = vector.shape_cast %317 : vector<128xf32> to vector<1x128xf32>
    %cst_99 = arith.constant dense<0.000000e+00> : vector<32x128xf32>
    %319 = tpu.matmul %0, %287, %cst_99 {dimension_numbers = #tpu.dot_dimension_numbers<[1], [0], [0], [1], [0, 0, 1, 1], [], []>} : vector<32x16xf32>, vector<16x128xf32>, vector<32x128xf32> -> vector<32x128xf32>
    %320 = arith.addf %319, %4 : vector<32x128xf32>
    %321 = math.tanh %320 : vector<32x128xf32>
    %cst_100 = arith.constant dense<0.000000e+00> : vector<16x128xf32>
    %322 = tpu.matmul %1, %321, %cst_100 {dimension_numbers = #tpu.dot_dimension_numbers<[1], [0], [0], [1], [0, 0, 1, 1], [], []>} : vector<16x32xf32>, vector<32x128xf32>, vector<16x128xf32> -> vector<16x128xf32>
    %323 = arith.addf %322, %7 : vector<16x128xf32>
    %324 = arith.mulf %321, %321 : vector<32x128xf32>
    %cst_101 = arith.constant 1.000000e+00 : f32
    %325 = vector.broadcast %cst_101 : f32 to vector<32x128xf32>
    %326 = arith.subf %325, %324 : vector<32x128xf32>
    %327 = arith.mulf %326, %10 : vector<32x128xf32>
    %cst_102 = arith.constant dense<0.000000e+00> : vector<128xf32>
    %328 = vector.multi_reduction <add>, %327, %cst_102 [0] : vector<32x128xf32> to vector<128xf32>
    %329 = vector.shape_cast %328 : vector<128xf32> to vector<1x128xf32>
    %330 = vector.broadcast %cst_12 : f32 to vector<16x128xf32>
    %331 = arith.mulf %330, %312 : vector<16x128xf32>
    %332 = arith.addf %277, %331 : vector<16x128xf32>
    %cst_103 = arith.constant dense<0.000000e+00> : vector<32x128xf32>
    %333 = tpu.matmul %0, %332, %cst_103 {dimension_numbers = #tpu.dot_dimension_numbers<[1], [0], [0], [1], [0, 0, 1, 1], [], []>} : vector<32x16xf32>, vector<16x128xf32>, vector<32x128xf32> -> vector<32x128xf32>
    %334 = arith.addf %333, %4 : vector<32x128xf32>
    %335 = math.tanh %334 : vector<32x128xf32>
    %cst_104 = arith.constant dense<0.000000e+00> : vector<16x128xf32>
    %336 = tpu.matmul %1, %335, %cst_104 {dimension_numbers = #tpu.dot_dimension_numbers<[1], [0], [0], [1], [0, 0, 1, 1], [], []>} : vector<16x32xf32>, vector<32x128xf32>, vector<16x128xf32> -> vector<16x128xf32>
    %337 = arith.addf %336, %7 : vector<16x128xf32>
    %338 = arith.mulf %335, %335 : vector<32x128xf32>
    %cst_105 = arith.constant 1.000000e+00 : f32
    %339 = vector.broadcast %cst_105 : f32 to vector<32x128xf32>
    %340 = arith.subf %339, %338 : vector<32x128xf32>
    %341 = arith.mulf %340, %10 : vector<32x128xf32>
    %cst_106 = arith.constant dense<0.000000e+00> : vector<128xf32>
    %342 = vector.multi_reduction <add>, %341, %cst_106 [0] : vector<32x128xf32> to vector<128xf32>
    %343 = vector.shape_cast %342 : vector<128xf32> to vector<1x128xf32>
    %344 = vector.broadcast %cst_12 : f32 to vector<16x128xf32>
    %345 = arith.mulf %344, %323 : vector<16x128xf32>
    %346 = arith.addf %287, %345 : vector<16x128xf32>
    %cst_107 = arith.constant dense<0.000000e+00> : vector<32x128xf32>
    %347 = tpu.matmul %0, %346, %cst_107 {dimension_numbers = #tpu.dot_dimension_numbers<[1], [0], [0], [1], [0, 0, 1, 1], [], []>} : vector<32x16xf32>, vector<16x128xf32>, vector<32x128xf32> -> vector<32x128xf32>
    %348 = arith.addf %347, %4 : vector<32x128xf32>
    %349 = math.tanh %348 : vector<32x128xf32>
    %cst_108 = arith.constant dense<0.000000e+00> : vector<16x128xf32>
    %350 = tpu.matmul %1, %349, %cst_108 {dimension_numbers = #tpu.dot_dimension_numbers<[1], [0], [0], [1], [0, 0, 1, 1], [], []>} : vector<16x32xf32>, vector<32x128xf32>, vector<16x128xf32> -> vector<16x128xf32>
    %351 = arith.addf %350, %7 : vector<16x128xf32>
    %352 = arith.mulf %349, %349 : vector<32x128xf32>
    %cst_109 = arith.constant 1.000000e+00 : f32
    %353 = vector.broadcast %cst_109 : f32 to vector<32x128xf32>
    %354 = arith.subf %353, %352 : vector<32x128xf32>
    %355 = arith.mulf %354, %10 : vector<32x128xf32>
    %cst_110 = arith.constant dense<0.000000e+00> : vector<128xf32>
    %356 = vector.multi_reduction <add>, %355, %cst_110 [0] : vector<32x128xf32> to vector<128xf32>
    %357 = vector.shape_cast %356 : vector<128xf32> to vector<1x128xf32>
    %358 = vector.broadcast %cst_12 : f32 to vector<16x128xf32>
    %359 = arith.mulf %358, %337 : vector<16x128xf32>
    %360 = arith.addf %277, %359 : vector<16x128xf32>
    %cst_111 = arith.constant dense<0.000000e+00> : vector<32x128xf32>
    %361 = tpu.matmul %0, %360, %cst_111 {dimension_numbers = #tpu.dot_dimension_numbers<[1], [0], [0], [1], [0, 0, 1, 1], [], []>} : vector<32x16xf32>, vector<16x128xf32>, vector<32x128xf32> -> vector<32x128xf32>
    %362 = arith.addf %361, %4 : vector<32x128xf32>
    %363 = math.tanh %362 : vector<32x128xf32>
    %cst_112 = arith.constant dense<0.000000e+00> : vector<16x128xf32>
    %364 = tpu.matmul %1, %363, %cst_112 {dimension_numbers = #tpu.dot_dimension_numbers<[1], [0], [0], [1], [0, 0, 1, 1], [], []>} : vector<16x32xf32>, vector<32x128xf32>, vector<16x128xf32> -> vector<16x128xf32>
    %365 = arith.addf %364, %7 : vector<16x128xf32>
    %366 = arith.mulf %363, %363 : vector<32x128xf32>
    %cst_113 = arith.constant 1.000000e+00 : f32
    %367 = vector.broadcast %cst_113 : f32 to vector<32x128xf32>
    %368 = arith.subf %367, %366 : vector<32x128xf32>
    %369 = arith.mulf %368, %10 : vector<32x128xf32>
    %cst_114 = arith.constant dense<0.000000e+00> : vector<128xf32>
    %370 = vector.multi_reduction <add>, %369, %cst_114 [0] : vector<32x128xf32> to vector<128xf32>
    %371 = vector.shape_cast %370 : vector<128xf32> to vector<1x128xf32>
    %372 = vector.broadcast %cst_12 : f32 to vector<16x128xf32>
    %373 = arith.mulf %372, %351 : vector<16x128xf32>
    %374 = arith.addf %287, %373 : vector<16x128xf32>
    %cst_115 = arith.constant dense<0.000000e+00> : vector<32x128xf32>
    %375 = tpu.matmul %0, %374, %cst_115 {dimension_numbers = #tpu.dot_dimension_numbers<[1], [0], [0], [1], [0, 0, 1, 1], [], []>} : vector<32x16xf32>, vector<16x128xf32>, vector<32x128xf32> -> vector<32x128xf32>
    %376 = arith.addf %375, %4 : vector<32x128xf32>
    %377 = math.tanh %376 : vector<32x128xf32>
    %cst_116 = arith.constant dense<0.000000e+00> : vector<16x128xf32>
    %378 = tpu.matmul %1, %377, %cst_116 {dimension_numbers = #tpu.dot_dimension_numbers<[1], [0], [0], [1], [0, 0, 1, 1], [], []>} : vector<16x32xf32>, vector<32x128xf32>, vector<16x128xf32> -> vector<16x128xf32>
    %379 = arith.addf %378, %7 : vector<16x128xf32>
    %380 = arith.mulf %377, %377 : vector<32x128xf32>
    %cst_117 = arith.constant 1.000000e+00 : f32
    %381 = vector.broadcast %cst_117 : f32 to vector<32x128xf32>
    %382 = arith.subf %381, %380 : vector<32x128xf32>
    %383 = arith.mulf %382, %10 : vector<32x128xf32>
    %cst_118 = arith.constant dense<0.000000e+00> : vector<128xf32>
    %384 = vector.multi_reduction <add>, %383, %cst_118 [0] : vector<32x128xf32> to vector<128xf32>
    %385 = vector.shape_cast %384 : vector<128xf32> to vector<1x128xf32>
    %386 = vector.broadcast %cst_13 : f32 to vector<16x128xf32>
    %387 = arith.mulf %386, %365 : vector<16x128xf32>
    %388 = arith.addf %277, %387 : vector<16x128xf32>
    %cst_119 = arith.constant dense<0.000000e+00> : vector<32x128xf32>
    %389 = tpu.matmul %0, %388, %cst_119 {dimension_numbers = #tpu.dot_dimension_numbers<[1], [0], [0], [1], [0, 0, 1, 1], [], []>} : vector<32x16xf32>, vector<16x128xf32>, vector<32x128xf32> -> vector<32x128xf32>
    %390 = arith.addf %389, %4 : vector<32x128xf32>
    %391 = math.tanh %390 : vector<32x128xf32>
    %cst_120 = arith.constant dense<0.000000e+00> : vector<16x128xf32>
    %392 = tpu.matmul %1, %391, %cst_120 {dimension_numbers = #tpu.dot_dimension_numbers<[1], [0], [0], [1], [0, 0, 1, 1], [], []>} : vector<16x32xf32>, vector<32x128xf32>, vector<16x128xf32> -> vector<16x128xf32>
    %393 = arith.addf %392, %7 : vector<16x128xf32>
    %394 = arith.mulf %391, %391 : vector<32x128xf32>
    %cst_121 = arith.constant 1.000000e+00 : f32
    %395 = vector.broadcast %cst_121 : f32 to vector<32x128xf32>
    %396 = arith.subf %395, %394 : vector<32x128xf32>
    %397 = arith.mulf %396, %10 : vector<32x128xf32>
    %cst_122 = arith.constant dense<0.000000e+00> : vector<128xf32>
    %398 = vector.multi_reduction <add>, %397, %cst_122 [0] : vector<32x128xf32> to vector<128xf32>
    %399 = vector.shape_cast %398 : vector<128xf32> to vector<1x128xf32>
    %400 = vector.broadcast %cst_13 : f32 to vector<16x128xf32>
    %401 = arith.mulf %400, %379 : vector<16x128xf32>
    %402 = arith.addf %287, %401 : vector<16x128xf32>
    %cst_123 = arith.constant dense<0.000000e+00> : vector<32x128xf32>
    %403 = tpu.matmul %0, %402, %cst_123 {dimension_numbers = #tpu.dot_dimension_numbers<[1], [0], [0], [1], [0, 0, 1, 1], [], []>} : vector<32x16xf32>, vector<16x128xf32>, vector<32x128xf32> -> vector<32x128xf32>
    %404 = arith.addf %403, %4 : vector<32x128xf32>
    %405 = math.tanh %404 : vector<32x128xf32>
    %cst_124 = arith.constant dense<0.000000e+00> : vector<16x128xf32>
    %406 = tpu.matmul %1, %405, %cst_124 {dimension_numbers = #tpu.dot_dimension_numbers<[1], [0], [0], [1], [0, 0, 1, 1], [], []>} : vector<16x32xf32>, vector<32x128xf32>, vector<16x128xf32> -> vector<16x128xf32>
    %407 = arith.addf %406, %7 : vector<16x128xf32>
    %408 = arith.mulf %405, %405 : vector<32x128xf32>
    %cst_125 = arith.constant 1.000000e+00 : f32
    %409 = vector.broadcast %cst_125 : f32 to vector<32x128xf32>
    %410 = arith.subf %409, %408 : vector<32x128xf32>
    %411 = arith.mulf %410, %10 : vector<32x128xf32>
    %cst_126 = arith.constant dense<0.000000e+00> : vector<128xf32>
    %412 = vector.multi_reduction <add>, %411, %cst_126 [0] : vector<32x128xf32> to vector<128xf32>
    %413 = vector.shape_cast %412 : vector<128xf32> to vector<1x128xf32>
    %cst_127 = arith.constant 2.000000e+00 : f32
    %414 = vector.broadcast %cst_127 : f32 to vector<16x128xf32>
    %415 = arith.mulf %414, %337 : vector<16x128xf32>
    %416 = arith.addf %312, %415 : vector<16x128xf32>
    %cst_128 = arith.constant 2.000000e+00 : f32
    %417 = vector.broadcast %cst_128 : f32 to vector<16x128xf32>
    %418 = arith.mulf %417, %365 : vector<16x128xf32>
    %419 = arith.addf %416, %418 : vector<16x128xf32>
    %420 = arith.addf %419, %393 : vector<16x128xf32>
    %421 = vector.broadcast %cst_14 : f32 to vector<16x128xf32>
    %422 = arith.mulf %421, %420 : vector<16x128xf32>
    %423 = arith.addf %277, %422 : vector<16x128xf32>
    %cst_129 = arith.constant 2.000000e+00 : f32
    %424 = vector.broadcast %cst_129 : f32 to vector<16x128xf32>
    %425 = arith.mulf %424, %351 : vector<16x128xf32>
    %426 = arith.addf %323, %425 : vector<16x128xf32>
    %cst_130 = arith.constant 2.000000e+00 : f32
    %427 = vector.broadcast %cst_130 : f32 to vector<16x128xf32>
    %428 = arith.mulf %427, %379 : vector<16x128xf32>
    %429 = arith.addf %426, %428 : vector<16x128xf32>
    %430 = arith.addf %429, %407 : vector<16x128xf32>
    %431 = vector.broadcast %cst_14 : f32 to vector<16x128xf32>
    %432 = arith.mulf %431, %430 : vector<16x128xf32>
    %433 = arith.addf %287, %432 : vector<16x128xf32>
    %cst_131 = arith.constant 2.000000e+00 : f32
    %434 = vector.broadcast %cst_131 : f32 to vector<1x128xf32>
    %435 = arith.mulf %434, %343 : vector<1x128xf32>
    %436 = arith.addf %318, %435 : vector<1x128xf32>
    %cst_132 = arith.constant 2.000000e+00 : f32
    %437 = vector.broadcast %cst_132 : f32 to vector<1x128xf32>
    %438 = arith.mulf %437, %371 : vector<1x128xf32>
    %439 = arith.addf %436, %438 : vector<1x128xf32>
    %440 = arith.addf %439, %399 : vector<1x128xf32>
    %441 = vector.broadcast %cst_14 : f32 to vector<1x128xf32>
    %442 = arith.mulf %441, %440 : vector<1x128xf32>
    %443 = arith.addf %297, %442 : vector<1x128xf32>
    %cst_133 = arith.constant 2.000000e+00 : f32
    %444 = vector.broadcast %cst_133 : f32 to vector<1x128xf32>
    %445 = arith.mulf %444, %357 : vector<1x128xf32>
    %446 = arith.addf %329, %445 : vector<1x128xf32>
    %cst_134 = arith.constant 2.000000e+00 : f32
    %447 = vector.broadcast %cst_134 : f32 to vector<1x128xf32>
    %448 = arith.mulf %447, %385 : vector<1x128xf32>
    %449 = arith.addf %446, %448 : vector<1x128xf32>
    %450 = arith.addf %449, %413 : vector<1x128xf32>
    %451 = vector.broadcast %cst_14 : f32 to vector<1x128xf32>
    %452 = arith.mulf %451, %450 : vector<1x128xf32>
    %453 = arith.addf %307, %452 : vector<1x128xf32>
    %c3_i32 = arith.constant 3 : i32
    %cst_135 = arith.constant dense<0.000000e+00> : vector<32x128xf32>
    %454 = tpu.matmul %0, %423, %cst_135 {dimension_numbers = #tpu.dot_dimension_numbers<[1], [0], [0], [1], [0, 0, 1, 1], [], []>} : vector<32x16xf32>, vector<16x128xf32>, vector<32x128xf32> -> vector<32x128xf32>
    %455 = arith.addf %454, %4 : vector<32x128xf32>
    %456 = math.tanh %455 : vector<32x128xf32>
    %cst_136 = arith.constant dense<0.000000e+00> : vector<16x128xf32>
    %457 = tpu.matmul %1, %456, %cst_136 {dimension_numbers = #tpu.dot_dimension_numbers<[1], [0], [0], [1], [0, 0, 1, 1], [], []>} : vector<16x32xf32>, vector<32x128xf32>, vector<16x128xf32> -> vector<16x128xf32>
    %458 = arith.addf %457, %7 : vector<16x128xf32>
    %459 = arith.mulf %456, %456 : vector<32x128xf32>
    %cst_137 = arith.constant 1.000000e+00 : f32
    %460 = vector.broadcast %cst_137 : f32 to vector<32x128xf32>
    %461 = arith.subf %460, %459 : vector<32x128xf32>
    %462 = arith.mulf %461, %10 : vector<32x128xf32>
    %cst_138 = arith.constant dense<0.000000e+00> : vector<128xf32>
    %463 = vector.multi_reduction <add>, %462, %cst_138 [0] : vector<32x128xf32> to vector<128xf32>
    %464 = vector.shape_cast %463 : vector<128xf32> to vector<1x128xf32>
    %cst_139 = arith.constant dense<0.000000e+00> : vector<32x128xf32>
    %465 = tpu.matmul %0, %433, %cst_139 {dimension_numbers = #tpu.dot_dimension_numbers<[1], [0], [0], [1], [0, 0, 1, 1], [], []>} : vector<32x16xf32>, vector<16x128xf32>, vector<32x128xf32> -> vector<32x128xf32>
    %466 = arith.addf %465, %4 : vector<32x128xf32>
    %467 = math.tanh %466 : vector<32x128xf32>
    %cst_140 = arith.constant dense<0.000000e+00> : vector<16x128xf32>
    %468 = tpu.matmul %1, %467, %cst_140 {dimension_numbers = #tpu.dot_dimension_numbers<[1], [0], [0], [1], [0, 0, 1, 1], [], []>} : vector<16x32xf32>, vector<32x128xf32>, vector<16x128xf32> -> vector<16x128xf32>
    %469 = arith.addf %468, %7 : vector<16x128xf32>
    %470 = arith.mulf %467, %467 : vector<32x128xf32>
    %cst_141 = arith.constant 1.000000e+00 : f32
    %471 = vector.broadcast %cst_141 : f32 to vector<32x128xf32>
    %472 = arith.subf %471, %470 : vector<32x128xf32>
    %473 = arith.mulf %472, %10 : vector<32x128xf32>
    %cst_142 = arith.constant dense<0.000000e+00> : vector<128xf32>
    %474 = vector.multi_reduction <add>, %473, %cst_142 [0] : vector<32x128xf32> to vector<128xf32>
    %475 = vector.shape_cast %474 : vector<128xf32> to vector<1x128xf32>
    %476 = vector.broadcast %cst_12 : f32 to vector<16x128xf32>
    %477 = arith.mulf %476, %458 : vector<16x128xf32>
    %478 = arith.addf %423, %477 : vector<16x128xf32>
    %cst_143 = arith.constant dense<0.000000e+00> : vector<32x128xf32>
    %479 = tpu.matmul %0, %478, %cst_143 {dimension_numbers = #tpu.dot_dimension_numbers<[1], [0], [0], [1], [0, 0, 1, 1], [], []>} : vector<32x16xf32>, vector<16x128xf32>, vector<32x128xf32> -> vector<32x128xf32>
    %480 = arith.addf %479, %4 : vector<32x128xf32>
    %481 = math.tanh %480 : vector<32x128xf32>
    %cst_144 = arith.constant dense<0.000000e+00> : vector<16x128xf32>
    %482 = tpu.matmul %1, %481, %cst_144 {dimension_numbers = #tpu.dot_dimension_numbers<[1], [0], [0], [1], [0, 0, 1, 1], [], []>} : vector<16x32xf32>, vector<32x128xf32>, vector<16x128xf32> -> vector<16x128xf32>
    %483 = arith.addf %482, %7 : vector<16x128xf32>
    %484 = arith.mulf %481, %481 : vector<32x128xf32>
    %cst_145 = arith.constant 1.000000e+00 : f32
    %485 = vector.broadcast %cst_145 : f32 to vector<32x128xf32>
    %486 = arith.subf %485, %484 : vector<32x128xf32>
    %487 = arith.mulf %486, %10 : vector<32x128xf32>
    %cst_146 = arith.constant dense<0.000000e+00> : vector<128xf32>
    %488 = vector.multi_reduction <add>, %487, %cst_146 [0] : vector<32x128xf32> to vector<128xf32>
    %489 = vector.shape_cast %488 : vector<128xf32> to vector<1x128xf32>
    %490 = vector.broadcast %cst_12 : f32 to vector<16x128xf32>
    %491 = arith.mulf %490, %469 : vector<16x128xf32>
    %492 = arith.addf %433, %491 : vector<16x128xf32>
    %cst_147 = arith.constant dense<0.000000e+00> : vector<32x128xf32>
    %493 = tpu.matmul %0, %492, %cst_147 {dimension_numbers = #tpu.dot_dimension_numbers<[1], [0], [0], [1], [0, 0, 1, 1], [], []>} : vector<32x16xf32>, vector<16x128xf32>, vector<32x128xf32> -> vector<32x128xf32>
    %494 = arith.addf %493, %4 : vector<32x128xf32>
    %495 = math.tanh %494 : vector<32x128xf32>
    %cst_148 = arith.constant dense<0.000000e+00> : vector<16x128xf32>
    %496 = tpu.matmul %1, %495, %cst_148 {dimension_numbers = #tpu.dot_dimension_numbers<[1], [0], [0], [1], [0, 0, 1, 1], [], []>} : vector<16x32xf32>, vector<32x128xf32>, vector<16x128xf32> -> vector<16x128xf32>
    %497 = arith.addf %496, %7 : vector<16x128xf32>
    %498 = arith.mulf %495, %495 : vector<32x128xf32>
    %cst_149 = arith.constant 1.000000e+00 : f32
    %499 = vector.broadcast %cst_149 : f32 to vector<32x128xf32>
    %500 = arith.subf %499, %498 : vector<32x128xf32>
    %501 = arith.mulf %500, %10 : vector<32x128xf32>
    %cst_150 = arith.constant dense<0.000000e+00> : vector<128xf32>
    %502 = vector.multi_reduction <add>, %501, %cst_150 [0] : vector<32x128xf32> to vector<128xf32>
    %503 = vector.shape_cast %502 : vector<128xf32> to vector<1x128xf32>
    %504 = vector.broadcast %cst_12 : f32 to vector<16x128xf32>
    %505 = arith.mulf %504, %483 : vector<16x128xf32>
    %506 = arith.addf %423, %505 : vector<16x128xf32>
    %cst_151 = arith.constant dense<0.000000e+00> : vector<32x128xf32>
    %507 = tpu.matmul %0, %506, %cst_151 {dimension_numbers = #tpu.dot_dimension_numbers<[1], [0], [0], [1], [0, 0, 1, 1], [], []>} : vector<32x16xf32>, vector<16x128xf32>, vector<32x128xf32> -> vector<32x128xf32>
    %508 = arith.addf %507, %4 : vector<32x128xf32>
    %509 = math.tanh %508 : vector<32x128xf32>
    %cst_152 = arith.constant dense<0.000000e+00> : vector<16x128xf32>
    %510 = tpu.matmul %1, %509, %cst_152 {dimension_numbers = #tpu.dot_dimension_numbers<[1], [0], [0], [1], [0, 0, 1, 1], [], []>} : vector<16x32xf32>, vector<32x128xf32>, vector<16x128xf32> -> vector<16x128xf32>
    %511 = arith.addf %510, %7 : vector<16x128xf32>
    %512 = arith.mulf %509, %509 : vector<32x128xf32>
    %cst_153 = arith.constant 1.000000e+00 : f32
    %513 = vector.broadcast %cst_153 : f32 to vector<32x128xf32>
    %514 = arith.subf %513, %512 : vector<32x128xf32>
    %515 = arith.mulf %514, %10 : vector<32x128xf32>
    %cst_154 = arith.constant dense<0.000000e+00> : vector<128xf32>
    %516 = vector.multi_reduction <add>, %515, %cst_154 [0] : vector<32x128xf32> to vector<128xf32>
    %517 = vector.shape_cast %516 : vector<128xf32> to vector<1x128xf32>
    %518 = vector.broadcast %cst_12 : f32 to vector<16x128xf32>
    %519 = arith.mulf %518, %497 : vector<16x128xf32>
    %520 = arith.addf %433, %519 : vector<16x128xf32>
    %cst_155 = arith.constant dense<0.000000e+00> : vector<32x128xf32>
    %521 = tpu.matmul %0, %520, %cst_155 {dimension_numbers = #tpu.dot_dimension_numbers<[1], [0], [0], [1], [0, 0, 1, 1], [], []>} : vector<32x16xf32>, vector<16x128xf32>, vector<32x128xf32> -> vector<32x128xf32>
    %522 = arith.addf %521, %4 : vector<32x128xf32>
    %523 = math.tanh %522 : vector<32x128xf32>
    %cst_156 = arith.constant dense<0.000000e+00> : vector<16x128xf32>
    %524 = tpu.matmul %1, %523, %cst_156 {dimension_numbers = #tpu.dot_dimension_numbers<[1], [0], [0], [1], [0, 0, 1, 1], [], []>} : vector<16x32xf32>, vector<32x128xf32>, vector<16x128xf32> -> vector<16x128xf32>
    %525 = arith.addf %524, %7 : vector<16x128xf32>
    %526 = arith.mulf %523, %523 : vector<32x128xf32>
    %cst_157 = arith.constant 1.000000e+00 : f32
    %527 = vector.broadcast %cst_157 : f32 to vector<32x128xf32>
    %528 = arith.subf %527, %526 : vector<32x128xf32>
    %529 = arith.mulf %528, %10 : vector<32x128xf32>
    %cst_158 = arith.constant dense<0.000000e+00> : vector<128xf32>
    %530 = vector.multi_reduction <add>, %529, %cst_158 [0] : vector<32x128xf32> to vector<128xf32>
    %531 = vector.shape_cast %530 : vector<128xf32> to vector<1x128xf32>
    %532 = vector.broadcast %cst_13 : f32 to vector<16x128xf32>
    %533 = arith.mulf %532, %511 : vector<16x128xf32>
    %534 = arith.addf %423, %533 : vector<16x128xf32>
    %cst_159 = arith.constant dense<0.000000e+00> : vector<32x128xf32>
    %535 = tpu.matmul %0, %534, %cst_159 {dimension_numbers = #tpu.dot_dimension_numbers<[1], [0], [0], [1], [0, 0, 1, 1], [], []>} : vector<32x16xf32>, vector<16x128xf32>, vector<32x128xf32> -> vector<32x128xf32>
    %536 = arith.addf %535, %4 : vector<32x128xf32>
    %537 = math.tanh %536 : vector<32x128xf32>
    %cst_160 = arith.constant dense<0.000000e+00> : vector<16x128xf32>
    %538 = tpu.matmul %1, %537, %cst_160 {dimension_numbers = #tpu.dot_dimension_numbers<[1], [0], [0], [1], [0, 0, 1, 1], [], []>} : vector<16x32xf32>, vector<32x128xf32>, vector<16x128xf32> -> vector<16x128xf32>
    %539 = arith.addf %538, %7 : vector<16x128xf32>
    %540 = arith.mulf %537, %537 : vector<32x128xf32>
    %cst_161 = arith.constant 1.000000e+00 : f32
    %541 = vector.broadcast %cst_161 : f32 to vector<32x128xf32>
    %542 = arith.subf %541, %540 : vector<32x128xf32>
    %543 = arith.mulf %542, %10 : vector<32x128xf32>
    %cst_162 = arith.constant dense<0.000000e+00> : vector<128xf32>
    %544 = vector.multi_reduction <add>, %543, %cst_162 [0] : vector<32x128xf32> to vector<128xf32>
    %545 = vector.shape_cast %544 : vector<128xf32> to vector<1x128xf32>
    %546 = vector.broadcast %cst_13 : f32 to vector<16x128xf32>
    %547 = arith.mulf %546, %525 : vector<16x128xf32>
    %548 = arith.addf %433, %547 : vector<16x128xf32>
    %cst_163 = arith.constant dense<0.000000e+00> : vector<32x128xf32>
    %549 = tpu.matmul %0, %548, %cst_163 {dimension_numbers = #tpu.dot_dimension_numbers<[1], [0], [0], [1], [0, 0, 1, 1], [], []>} : vector<32x16xf32>, vector<16x128xf32>, vector<32x128xf32> -> vector<32x128xf32>
    %550 = arith.addf %549, %4 : vector<32x128xf32>
    %551 = math.tanh %550 : vector<32x128xf32>
    %cst_164 = arith.constant dense<0.000000e+00> : vector<16x128xf32>
    %552 = tpu.matmul %1, %551, %cst_164 {dimension_numbers = #tpu.dot_dimension_numbers<[1], [0], [0], [1], [0, 0, 1, 1], [], []>} : vector<16x32xf32>, vector<32x128xf32>, vector<16x128xf32> -> vector<16x128xf32>
    %553 = arith.addf %552, %7 : vector<16x128xf32>
    %554 = arith.mulf %551, %551 : vector<32x128xf32>
    %cst_165 = arith.constant 1.000000e+00 : f32
    %555 = vector.broadcast %cst_165 : f32 to vector<32x128xf32>
    %556 = arith.subf %555, %554 : vector<32x128xf32>
    %557 = arith.mulf %556, %10 : vector<32x128xf32>
    %cst_166 = arith.constant dense<0.000000e+00> : vector<128xf32>
    %558 = vector.multi_reduction <add>, %557, %cst_166 [0] : vector<32x128xf32> to vector<128xf32>
    %559 = vector.shape_cast %558 : vector<128xf32> to vector<1x128xf32>
    %cst_167 = arith.constant 2.000000e+00 : f32
    %560 = vector.broadcast %cst_167 : f32 to vector<16x128xf32>
    %561 = arith.mulf %560, %483 : vector<16x128xf32>
    %562 = arith.addf %458, %561 : vector<16x128xf32>
    %cst_168 = arith.constant 2.000000e+00 : f32
    %563 = vector.broadcast %cst_168 : f32 to vector<16x128xf32>
    %564 = arith.mulf %563, %511 : vector<16x128xf32>
    %565 = arith.addf %562, %564 : vector<16x128xf32>
    %566 = arith.addf %565, %539 : vector<16x128xf32>
    %567 = vector.broadcast %cst_14 : f32 to vector<16x128xf32>
    %568 = arith.mulf %567, %566 : vector<16x128xf32>
    %569 = arith.addf %423, %568 : vector<16x128xf32>
    %cst_169 = arith.constant 2.000000e+00 : f32
    %570 = vector.broadcast %cst_169 : f32 to vector<16x128xf32>
    %571 = arith.mulf %570, %497 : vector<16x128xf32>
    %572 = arith.addf %469, %571 : vector<16x128xf32>
    %cst_170 = arith.constant 2.000000e+00 : f32
    %573 = vector.broadcast %cst_170 : f32 to vector<16x128xf32>
    %574 = arith.mulf %573, %525 : vector<16x128xf32>
    %575 = arith.addf %572, %574 : vector<16x128xf32>
    %576 = arith.addf %575, %553 : vector<16x128xf32>
    %577 = vector.broadcast %cst_14 : f32 to vector<16x128xf32>
    %578 = arith.mulf %577, %576 : vector<16x128xf32>
    %579 = arith.addf %433, %578 : vector<16x128xf32>
    %cst_171 = arith.constant 2.000000e+00 : f32
    %580 = vector.broadcast %cst_171 : f32 to vector<1x128xf32>
    %581 = arith.mulf %580, %489 : vector<1x128xf32>
    %582 = arith.addf %464, %581 : vector<1x128xf32>
    %cst_172 = arith.constant 2.000000e+00 : f32
    %583 = vector.broadcast %cst_172 : f32 to vector<1x128xf32>
    %584 = arith.mulf %583, %517 : vector<1x128xf32>
    %585 = arith.addf %582, %584 : vector<1x128xf32>
    %586 = arith.addf %585, %545 : vector<1x128xf32>
    %587 = vector.broadcast %cst_14 : f32 to vector<1x128xf32>
    %588 = arith.mulf %587, %586 : vector<1x128xf32>
    %589 = arith.addf %443, %588 : vector<1x128xf32>
    %cst_173 = arith.constant 2.000000e+00 : f32
    %590 = vector.broadcast %cst_173 : f32 to vector<1x128xf32>
    %591 = arith.mulf %590, %503 : vector<1x128xf32>
    %592 = arith.addf %475, %591 : vector<1x128xf32>
    %cst_174 = arith.constant 2.000000e+00 : f32
    %593 = vector.broadcast %cst_174 : f32 to vector<1x128xf32>
    %594 = arith.mulf %593, %531 : vector<1x128xf32>
    %595 = arith.addf %592, %594 : vector<1x128xf32>
    %596 = arith.addf %595, %559 : vector<1x128xf32>
    %597 = vector.broadcast %cst_14 : f32 to vector<1x128xf32>
    %598 = arith.mulf %597, %596 : vector<1x128xf32>
    %599 = arith.addf %453, %598 : vector<1x128xf32>
    %c4_i32 = arith.constant 4 : i32
    %cst_175 = arith.constant dense<0.000000e+00> : vector<32x128xf32>
    %600 = tpu.matmul %0, %569, %cst_175 {dimension_numbers = #tpu.dot_dimension_numbers<[1], [0], [0], [1], [0, 0, 1, 1], [], []>} : vector<32x16xf32>, vector<16x128xf32>, vector<32x128xf32> -> vector<32x128xf32>
    %601 = arith.addf %600, %4 : vector<32x128xf32>
    %602 = math.tanh %601 : vector<32x128xf32>
    %cst_176 = arith.constant dense<0.000000e+00> : vector<16x128xf32>
    %603 = tpu.matmul %1, %602, %cst_176 {dimension_numbers = #tpu.dot_dimension_numbers<[1], [0], [0], [1], [0, 0, 1, 1], [], []>} : vector<16x32xf32>, vector<32x128xf32>, vector<16x128xf32> -> vector<16x128xf32>
    %604 = arith.addf %603, %7 : vector<16x128xf32>
    %605 = arith.mulf %602, %602 : vector<32x128xf32>
    %cst_177 = arith.constant 1.000000e+00 : f32
    %606 = vector.broadcast %cst_177 : f32 to vector<32x128xf32>
    %607 = arith.subf %606, %605 : vector<32x128xf32>
    %608 = arith.mulf %607, %10 : vector<32x128xf32>
    %cst_178 = arith.constant dense<0.000000e+00> : vector<128xf32>
    %609 = vector.multi_reduction <add>, %608, %cst_178 [0] : vector<32x128xf32> to vector<128xf32>
    %610 = vector.shape_cast %609 : vector<128xf32> to vector<1x128xf32>
    %cst_179 = arith.constant dense<0.000000e+00> : vector<32x128xf32>
    %611 = tpu.matmul %0, %579, %cst_179 {dimension_numbers = #tpu.dot_dimension_numbers<[1], [0], [0], [1], [0, 0, 1, 1], [], []>} : vector<32x16xf32>, vector<16x128xf32>, vector<32x128xf32> -> vector<32x128xf32>
    %612 = arith.addf %611, %4 : vector<32x128xf32>
    %613 = math.tanh %612 : vector<32x128xf32>
    %cst_180 = arith.constant dense<0.000000e+00> : vector<16x128xf32>
    %614 = tpu.matmul %1, %613, %cst_180 {dimension_numbers = #tpu.dot_dimension_numbers<[1], [0], [0], [1], [0, 0, 1, 1], [], []>} : vector<16x32xf32>, vector<32x128xf32>, vector<16x128xf32> -> vector<16x128xf32>
    %615 = arith.addf %614, %7 : vector<16x128xf32>
    %616 = arith.mulf %613, %613 : vector<32x128xf32>
    %cst_181 = arith.constant 1.000000e+00 : f32
    %617 = vector.broadcast %cst_181 : f32 to vector<32x128xf32>
    %618 = arith.subf %617, %616 : vector<32x128xf32>
    %619 = arith.mulf %618, %10 : vector<32x128xf32>
    %cst_182 = arith.constant dense<0.000000e+00> : vector<128xf32>
    %620 = vector.multi_reduction <add>, %619, %cst_182 [0] : vector<32x128xf32> to vector<128xf32>
    %621 = vector.shape_cast %620 : vector<128xf32> to vector<1x128xf32>
    %622 = vector.broadcast %cst_12 : f32 to vector<16x128xf32>
    %623 = arith.mulf %622, %604 : vector<16x128xf32>
    %624 = arith.addf %569, %623 : vector<16x128xf32>
    %cst_183 = arith.constant dense<0.000000e+00> : vector<32x128xf32>
    %625 = tpu.matmul %0, %624, %cst_183 {dimension_numbers = #tpu.dot_dimension_numbers<[1], [0], [0], [1], [0, 0, 1, 1], [], []>} : vector<32x16xf32>, vector<16x128xf32>, vector<32x128xf32> -> vector<32x128xf32>
    %626 = arith.addf %625, %4 : vector<32x128xf32>
    %627 = math.tanh %626 : vector<32x128xf32>
    %cst_184 = arith.constant dense<0.000000e+00> : vector<16x128xf32>
    %628 = tpu.matmul %1, %627, %cst_184 {dimension_numbers = #tpu.dot_dimension_numbers<[1], [0], [0], [1], [0, 0, 1, 1], [], []>} : vector<16x32xf32>, vector<32x128xf32>, vector<16x128xf32> -> vector<16x128xf32>
    %629 = arith.addf %628, %7 : vector<16x128xf32>
    %630 = arith.mulf %627, %627 : vector<32x128xf32>
    %cst_185 = arith.constant 1.000000e+00 : f32
    %631 = vector.broadcast %cst_185 : f32 to vector<32x128xf32>
    %632 = arith.subf %631, %630 : vector<32x128xf32>
    %633 = arith.mulf %632, %10 : vector<32x128xf32>
    %cst_186 = arith.constant dense<0.000000e+00> : vector<128xf32>
    %634 = vector.multi_reduction <add>, %633, %cst_186 [0] : vector<32x128xf32> to vector<128xf32>
    %635 = vector.shape_cast %634 : vector<128xf32> to vector<1x128xf32>
    %636 = vector.broadcast %cst_12 : f32 to vector<16x128xf32>
    %637 = arith.mulf %636, %615 : vector<16x128xf32>
    %638 = arith.addf %579, %637 : vector<16x128xf32>
    %cst_187 = arith.constant dense<0.000000e+00> : vector<32x128xf32>
    %639 = tpu.matmul %0, %638, %cst_187 {dimension_numbers = #tpu.dot_dimension_numbers<[1], [0], [0], [1], [0, 0, 1, 1], [], []>} : vector<32x16xf32>, vector<16x128xf32>, vector<32x128xf32> -> vector<32x128xf32>
    %640 = arith.addf %639, %4 : vector<32x128xf32>
    %641 = math.tanh %640 : vector<32x128xf32>
    %cst_188 = arith.constant dense<0.000000e+00> : vector<16x128xf32>
    %642 = tpu.matmul %1, %641, %cst_188 {dimension_numbers = #tpu.dot_dimension_numbers<[1], [0], [0], [1], [0, 0, 1, 1], [], []>} : vector<16x32xf32>, vector<32x128xf32>, vector<16x128xf32> -> vector<16x128xf32>
    %643 = arith.addf %642, %7 : vector<16x128xf32>
    %644 = arith.mulf %641, %641 : vector<32x128xf32>
    %cst_189 = arith.constant 1.000000e+00 : f32
    %645 = vector.broadcast %cst_189 : f32 to vector<32x128xf32>
    %646 = arith.subf %645, %644 : vector<32x128xf32>
    %647 = arith.mulf %646, %10 : vector<32x128xf32>
    %cst_190 = arith.constant dense<0.000000e+00> : vector<128xf32>
    %648 = vector.multi_reduction <add>, %647, %cst_190 [0] : vector<32x128xf32> to vector<128xf32>
    %649 = vector.shape_cast %648 : vector<128xf32> to vector<1x128xf32>
    %650 = vector.broadcast %cst_12 : f32 to vector<16x128xf32>
    %651 = arith.mulf %650, %629 : vector<16x128xf32>
    %652 = arith.addf %569, %651 : vector<16x128xf32>
    %cst_191 = arith.constant dense<0.000000e+00> : vector<32x128xf32>
    %653 = tpu.matmul %0, %652, %cst_191 {dimension_numbers = #tpu.dot_dimension_numbers<[1], [0], [0], [1], [0, 0, 1, 1], [], []>} : vector<32x16xf32>, vector<16x128xf32>, vector<32x128xf32> -> vector<32x128xf32>
    %654 = arith.addf %653, %4 : vector<32x128xf32>
    %655 = math.tanh %654 : vector<32x128xf32>
    %cst_192 = arith.constant dense<0.000000e+00> : vector<16x128xf32>
    %656 = tpu.matmul %1, %655, %cst_192 {dimension_numbers = #tpu.dot_dimension_numbers<[1], [0], [0], [1], [0, 0, 1, 1], [], []>} : vector<16x32xf32>, vector<32x128xf32>, vector<16x128xf32> -> vector<16x128xf32>
    %657 = arith.addf %656, %7 : vector<16x128xf32>
    %658 = arith.mulf %655, %655 : vector<32x128xf32>
    %cst_193 = arith.constant 1.000000e+00 : f32
    %659 = vector.broadcast %cst_193 : f32 to vector<32x128xf32>
    %660 = arith.subf %659, %658 : vector<32x128xf32>
    %661 = arith.mulf %660, %10 : vector<32x128xf32>
    %cst_194 = arith.constant dense<0.000000e+00> : vector<128xf32>
    %662 = vector.multi_reduction <add>, %661, %cst_194 [0] : vector<32x128xf32> to vector<128xf32>
    %663 = vector.shape_cast %662 : vector<128xf32> to vector<1x128xf32>
    %664 = vector.broadcast %cst_12 : f32 to vector<16x128xf32>
    %665 = arith.mulf %664, %643 : vector<16x128xf32>
    %666 = arith.addf %579, %665 : vector<16x128xf32>
    %cst_195 = arith.constant dense<0.000000e+00> : vector<32x128xf32>
    %667 = tpu.matmul %0, %666, %cst_195 {dimension_numbers = #tpu.dot_dimension_numbers<[1], [0], [0], [1], [0, 0, 1, 1], [], []>} : vector<32x16xf32>, vector<16x128xf32>, vector<32x128xf32> -> vector<32x128xf32>
    %668 = arith.addf %667, %4 : vector<32x128xf32>
    %669 = math.tanh %668 : vector<32x128xf32>
    %cst_196 = arith.constant dense<0.000000e+00> : vector<16x128xf32>
    %670 = tpu.matmul %1, %669, %cst_196 {dimension_numbers = #tpu.dot_dimension_numbers<[1], [0], [0], [1], [0, 0, 1, 1], [], []>} : vector<16x32xf32>, vector<32x128xf32>, vector<16x128xf32> -> vector<16x128xf32>
    %671 = arith.addf %670, %7 : vector<16x128xf32>
    %672 = arith.mulf %669, %669 : vector<32x128xf32>
    %cst_197 = arith.constant 1.000000e+00 : f32
    %673 = vector.broadcast %cst_197 : f32 to vector<32x128xf32>
    %674 = arith.subf %673, %672 : vector<32x128xf32>
    %675 = arith.mulf %674, %10 : vector<32x128xf32>
    %cst_198 = arith.constant dense<0.000000e+00> : vector<128xf32>
    %676 = vector.multi_reduction <add>, %675, %cst_198 [0] : vector<32x128xf32> to vector<128xf32>
    %677 = vector.shape_cast %676 : vector<128xf32> to vector<1x128xf32>
    %678 = vector.broadcast %cst_13 : f32 to vector<16x128xf32>
    %679 = arith.mulf %678, %657 : vector<16x128xf32>
    %680 = arith.addf %569, %679 : vector<16x128xf32>
    %cst_199 = arith.constant dense<0.000000e+00> : vector<32x128xf32>
    %681 = tpu.matmul %0, %680, %cst_199 {dimension_numbers = #tpu.dot_dimension_numbers<[1], [0], [0], [1], [0, 0, 1, 1], [], []>} : vector<32x16xf32>, vector<16x128xf32>, vector<32x128xf32> -> vector<32x128xf32>
    %682 = arith.addf %681, %4 : vector<32x128xf32>
    %683 = math.tanh %682 : vector<32x128xf32>
    %cst_200 = arith.constant dense<0.000000e+00> : vector<16x128xf32>
    %684 = tpu.matmul %1, %683, %cst_200 {dimension_numbers = #tpu.dot_dimension_numbers<[1], [0], [0], [1], [0, 0, 1, 1], [], []>} : vector<16x32xf32>, vector<32x128xf32>, vector<16x128xf32> -> vector<16x128xf32>
    %685 = arith.addf %684, %7 : vector<16x128xf32>
    %686 = arith.mulf %683, %683 : vector<32x128xf32>
    %cst_201 = arith.constant 1.000000e+00 : f32
    %687 = vector.broadcast %cst_201 : f32 to vector<32x128xf32>
    %688 = arith.subf %687, %686 : vector<32x128xf32>
    %689 = arith.mulf %688, %10 : vector<32x128xf32>
    %cst_202 = arith.constant dense<0.000000e+00> : vector<128xf32>
    %690 = vector.multi_reduction <add>, %689, %cst_202 [0] : vector<32x128xf32> to vector<128xf32>
    %691 = vector.shape_cast %690 : vector<128xf32> to vector<1x128xf32>
    %692 = vector.broadcast %cst_13 : f32 to vector<16x128xf32>
    %693 = arith.mulf %692, %671 : vector<16x128xf32>
    %694 = arith.addf %579, %693 : vector<16x128xf32>
    %cst_203 = arith.constant dense<0.000000e+00> : vector<32x128xf32>
    %695 = tpu.matmul %0, %694, %cst_203 {dimension_numbers = #tpu.dot_dimension_numbers<[1], [0], [0], [1], [0, 0, 1, 1], [], []>} : vector<32x16xf32>, vector<16x128xf32>, vector<32x128xf32> -> vector<32x128xf32>
    %696 = arith.addf %695, %4 : vector<32x128xf32>
    %697 = math.tanh %696 : vector<32x128xf32>
    %cst_204 = arith.constant dense<0.000000e+00> : vector<16x128xf32>
    %698 = tpu.matmul %1, %697, %cst_204 {dimension_numbers = #tpu.dot_dimension_numbers<[1], [0], [0], [1], [0, 0, 1, 1], [], []>} : vector<16x32xf32>, vector<32x128xf32>, vector<16x128xf32> -> vector<16x128xf32>
    %699 = arith.addf %698, %7 : vector<16x128xf32>
    %700 = arith.mulf %697, %697 : vector<32x128xf32>
    %cst_205 = arith.constant 1.000000e+00 : f32
    %701 = vector.broadcast %cst_205 : f32 to vector<32x128xf32>
    %702 = arith.subf %701, %700 : vector<32x128xf32>
    %703 = arith.mulf %702, %10 : vector<32x128xf32>
    %cst_206 = arith.constant dense<0.000000e+00> : vector<128xf32>
    %704 = vector.multi_reduction <add>, %703, %cst_206 [0] : vector<32x128xf32> to vector<128xf32>
    %705 = vector.shape_cast %704 : vector<128xf32> to vector<1x128xf32>
    %cst_207 = arith.constant 2.000000e+00 : f32
    %706 = vector.broadcast %cst_207 : f32 to vector<16x128xf32>
    %707 = arith.mulf %706, %629 : vector<16x128xf32>
    %708 = arith.addf %604, %707 : vector<16x128xf32>
    %cst_208 = arith.constant 2.000000e+00 : f32
    %709 = vector.broadcast %cst_208 : f32 to vector<16x128xf32>
    %710 = arith.mulf %709, %657 : vector<16x128xf32>
    %711 = arith.addf %708, %710 : vector<16x128xf32>
    %712 = arith.addf %711, %685 : vector<16x128xf32>
    %713 = vector.broadcast %cst_14 : f32 to vector<16x128xf32>
    %714 = arith.mulf %713, %712 : vector<16x128xf32>
    %715 = arith.addf %569, %714 : vector<16x128xf32>
    %cst_209 = arith.constant 2.000000e+00 : f32
    %716 = vector.broadcast %cst_209 : f32 to vector<16x128xf32>
    %717 = arith.mulf %716, %643 : vector<16x128xf32>
    %718 = arith.addf %615, %717 : vector<16x128xf32>
    %cst_210 = arith.constant 2.000000e+00 : f32
    %719 = vector.broadcast %cst_210 : f32 to vector<16x128xf32>
    %720 = arith.mulf %719, %671 : vector<16x128xf32>
    %721 = arith.addf %718, %720 : vector<16x128xf32>
    %722 = arith.addf %721, %699 : vector<16x128xf32>
    %723 = vector.broadcast %cst_14 : f32 to vector<16x128xf32>
    %724 = arith.mulf %723, %722 : vector<16x128xf32>
    %725 = arith.addf %579, %724 : vector<16x128xf32>
    %cst_211 = arith.constant 2.000000e+00 : f32
    %726 = vector.broadcast %cst_211 : f32 to vector<1x128xf32>
    %727 = arith.mulf %726, %635 : vector<1x128xf32>
    %728 = arith.addf %610, %727 : vector<1x128xf32>
    %cst_212 = arith.constant 2.000000e+00 : f32
    %729 = vector.broadcast %cst_212 : f32 to vector<1x128xf32>
    %730 = arith.mulf %729, %663 : vector<1x128xf32>
    %731 = arith.addf %728, %730 : vector<1x128xf32>
    %732 = arith.addf %731, %691 : vector<1x128xf32>
    %733 = vector.broadcast %cst_14 : f32 to vector<1x128xf32>
    %734 = arith.mulf %733, %732 : vector<1x128xf32>
    %735 = arith.addf %589, %734 : vector<1x128xf32>
    %cst_213 = arith.constant 2.000000e+00 : f32
    %736 = vector.broadcast %cst_213 : f32 to vector<1x128xf32>
    %737 = arith.mulf %736, %649 : vector<1x128xf32>
    %738 = arith.addf %621, %737 : vector<1x128xf32>
    %cst_214 = arith.constant 2.000000e+00 : f32
    %739 = vector.broadcast %cst_214 : f32 to vector<1x128xf32>
    %740 = arith.mulf %739, %677 : vector<1x128xf32>
    %741 = arith.addf %738, %740 : vector<1x128xf32>
    %742 = arith.addf %741, %705 : vector<1x128xf32>
    %743 = vector.broadcast %cst_14 : f32 to vector<1x128xf32>
    %744 = arith.mulf %743, %742 : vector<1x128xf32>
    %745 = arith.addf %599, %744 : vector<1x128xf32>
    %c5_i32 = arith.constant 5 : i32
    %cst_215 = arith.constant dense<0.000000e+00> : vector<32x128xf32>
    %746 = tpu.matmul %0, %715, %cst_215 {dimension_numbers = #tpu.dot_dimension_numbers<[1], [0], [0], [1], [0, 0, 1, 1], [], []>} : vector<32x16xf32>, vector<16x128xf32>, vector<32x128xf32> -> vector<32x128xf32>
    %747 = arith.addf %746, %4 : vector<32x128xf32>
    %748 = math.tanh %747 : vector<32x128xf32>
    %cst_216 = arith.constant dense<0.000000e+00> : vector<16x128xf32>
    %749 = tpu.matmul %1, %748, %cst_216 {dimension_numbers = #tpu.dot_dimension_numbers<[1], [0], [0], [1], [0, 0, 1, 1], [], []>} : vector<16x32xf32>, vector<32x128xf32>, vector<16x128xf32> -> vector<16x128xf32>
    %750 = arith.addf %749, %7 : vector<16x128xf32>
    %751 = arith.mulf %748, %748 : vector<32x128xf32>
    %cst_217 = arith.constant 1.000000e+00 : f32
    %752 = vector.broadcast %cst_217 : f32 to vector<32x128xf32>
    %753 = arith.subf %752, %751 : vector<32x128xf32>
    %754 = arith.mulf %753, %10 : vector<32x128xf32>
    %cst_218 = arith.constant dense<0.000000e+00> : vector<128xf32>
    %755 = vector.multi_reduction <add>, %754, %cst_218 [0] : vector<32x128xf32> to vector<128xf32>
    %756 = vector.shape_cast %755 : vector<128xf32> to vector<1x128xf32>
    %cst_219 = arith.constant dense<0.000000e+00> : vector<32x128xf32>
    %757 = tpu.matmul %0, %725, %cst_219 {dimension_numbers = #tpu.dot_dimension_numbers<[1], [0], [0], [1], [0, 0, 1, 1], [], []>} : vector<32x16xf32>, vector<16x128xf32>, vector<32x128xf32> -> vector<32x128xf32>
    %758 = arith.addf %757, %4 : vector<32x128xf32>
    %759 = math.tanh %758 : vector<32x128xf32>
    %cst_220 = arith.constant dense<0.000000e+00> : vector<16x128xf32>
    %760 = tpu.matmul %1, %759, %cst_220 {dimension_numbers = #tpu.dot_dimension_numbers<[1], [0], [0], [1], [0, 0, 1, 1], [], []>} : vector<16x32xf32>, vector<32x128xf32>, vector<16x128xf32> -> vector<16x128xf32>
    %761 = arith.addf %760, %7 : vector<16x128xf32>
    %762 = arith.mulf %759, %759 : vector<32x128xf32>
    %cst_221 = arith.constant 1.000000e+00 : f32
    %763 = vector.broadcast %cst_221 : f32 to vector<32x128xf32>
    %764 = arith.subf %763, %762 : vector<32x128xf32>
    %765 = arith.mulf %764, %10 : vector<32x128xf32>
    %cst_222 = arith.constant dense<0.000000e+00> : vector<128xf32>
    %766 = vector.multi_reduction <add>, %765, %cst_222 [0] : vector<32x128xf32> to vector<128xf32>
    %767 = vector.shape_cast %766 : vector<128xf32> to vector<1x128xf32>
    %768 = vector.broadcast %cst_12 : f32 to vector<16x128xf32>
    %769 = arith.mulf %768, %750 : vector<16x128xf32>
    %770 = arith.addf %715, %769 : vector<16x128xf32>
    %cst_223 = arith.constant dense<0.000000e+00> : vector<32x128xf32>
    %771 = tpu.matmul %0, %770, %cst_223 {dimension_numbers = #tpu.dot_dimension_numbers<[1], [0], [0], [1], [0, 0, 1, 1], [], []>} : vector<32x16xf32>, vector<16x128xf32>, vector<32x128xf32> -> vector<32x128xf32>
    %772 = arith.addf %771, %4 : vector<32x128xf32>
    %773 = math.tanh %772 : vector<32x128xf32>
    %cst_224 = arith.constant dense<0.000000e+00> : vector<16x128xf32>
    %774 = tpu.matmul %1, %773, %cst_224 {dimension_numbers = #tpu.dot_dimension_numbers<[1], [0], [0], [1], [0, 0, 1, 1], [], []>} : vector<16x32xf32>, vector<32x128xf32>, vector<16x128xf32> -> vector<16x128xf32>
    %775 = arith.addf %774, %7 : vector<16x128xf32>
    %776 = arith.mulf %773, %773 : vector<32x128xf32>
    %cst_225 = arith.constant 1.000000e+00 : f32
    %777 = vector.broadcast %cst_225 : f32 to vector<32x128xf32>
    %778 = arith.subf %777, %776 : vector<32x128xf32>
    %779 = arith.mulf %778, %10 : vector<32x128xf32>
    %cst_226 = arith.constant dense<0.000000e+00> : vector<128xf32>
    %780 = vector.multi_reduction <add>, %779, %cst_226 [0] : vector<32x128xf32> to vector<128xf32>
    %781 = vector.shape_cast %780 : vector<128xf32> to vector<1x128xf32>
    %782 = vector.broadcast %cst_12 : f32 to vector<16x128xf32>
    %783 = arith.mulf %782, %761 : vector<16x128xf32>
    %784 = arith.addf %725, %783 : vector<16x128xf32>
    %cst_227 = arith.constant dense<0.000000e+00> : vector<32x128xf32>
    %785 = tpu.matmul %0, %784, %cst_227 {dimension_numbers = #tpu.dot_dimension_numbers<[1], [0], [0], [1], [0, 0, 1, 1], [], []>} : vector<32x16xf32>, vector<16x128xf32>, vector<32x128xf32> -> vector<32x128xf32>
    %786 = arith.addf %785, %4 : vector<32x128xf32>
    %787 = math.tanh %786 : vector<32x128xf32>
    %cst_228 = arith.constant dense<0.000000e+00> : vector<16x128xf32>
    %788 = tpu.matmul %1, %787, %cst_228 {dimension_numbers = #tpu.dot_dimension_numbers<[1], [0], [0], [1], [0, 0, 1, 1], [], []>} : vector<16x32xf32>, vector<32x128xf32>, vector<16x128xf32> -> vector<16x128xf32>
    %789 = arith.addf %788, %7 : vector<16x128xf32>
    %790 = arith.mulf %787, %787 : vector<32x128xf32>
    %cst_229 = arith.constant 1.000000e+00 : f32
    %791 = vector.broadcast %cst_229 : f32 to vector<32x128xf32>
    %792 = arith.subf %791, %790 : vector<32x128xf32>
    %793 = arith.mulf %792, %10 : vector<32x128xf32>
    %cst_230 = arith.constant dense<0.000000e+00> : vector<128xf32>
    %794 = vector.multi_reduction <add>, %793, %cst_230 [0] : vector<32x128xf32> to vector<128xf32>
    %795 = vector.shape_cast %794 : vector<128xf32> to vector<1x128xf32>
    %796 = vector.broadcast %cst_12 : f32 to vector<16x128xf32>
    %797 = arith.mulf %796, %775 : vector<16x128xf32>
    %798 = arith.addf %715, %797 : vector<16x128xf32>
    %cst_231 = arith.constant dense<0.000000e+00> : vector<32x128xf32>
    %799 = tpu.matmul %0, %798, %cst_231 {dimension_numbers = #tpu.dot_dimension_numbers<[1], [0], [0], [1], [0, 0, 1, 1], [], []>} : vector<32x16xf32>, vector<16x128xf32>, vector<32x128xf32> -> vector<32x128xf32>
    %800 = arith.addf %799, %4 : vector<32x128xf32>
    %801 = math.tanh %800 : vector<32x128xf32>
    %cst_232 = arith.constant dense<0.000000e+00> : vector<16x128xf32>
    %802 = tpu.matmul %1, %801, %cst_232 {dimension_numbers = #tpu.dot_dimension_numbers<[1], [0], [0], [1], [0, 0, 1, 1], [], []>} : vector<16x32xf32>, vector<32x128xf32>, vector<16x128xf32> -> vector<16x128xf32>
    %803 = arith.addf %802, %7 : vector<16x128xf32>
    %804 = arith.mulf %801, %801 : vector<32x128xf32>
    %cst_233 = arith.constant 1.000000e+00 : f32
    %805 = vector.broadcast %cst_233 : f32 to vector<32x128xf32>
    %806 = arith.subf %805, %804 : vector<32x128xf32>
    %807 = arith.mulf %806, %10 : vector<32x128xf32>
    %cst_234 = arith.constant dense<0.000000e+00> : vector<128xf32>
    %808 = vector.multi_reduction <add>, %807, %cst_234 [0] : vector<32x128xf32> to vector<128xf32>
    %809 = vector.shape_cast %808 : vector<128xf32> to vector<1x128xf32>
    %810 = vector.broadcast %cst_12 : f32 to vector<16x128xf32>
    %811 = arith.mulf %810, %789 : vector<16x128xf32>
    %812 = arith.addf %725, %811 : vector<16x128xf32>
    %cst_235 = arith.constant dense<0.000000e+00> : vector<32x128xf32>
    %813 = tpu.matmul %0, %812, %cst_235 {dimension_numbers = #tpu.dot_dimension_numbers<[1], [0], [0], [1], [0, 0, 1, 1], [], []>} : vector<32x16xf32>, vector<16x128xf32>, vector<32x128xf32> -> vector<32x128xf32>
    %814 = arith.addf %813, %4 : vector<32x128xf32>
    %815 = math.tanh %814 : vector<32x128xf32>
    %cst_236 = arith.constant dense<0.000000e+00> : vector<16x128xf32>
    %816 = tpu.matmul %1, %815, %cst_236 {dimension_numbers = #tpu.dot_dimension_numbers<[1], [0], [0], [1], [0, 0, 1, 1], [], []>} : vector<16x32xf32>, vector<32x128xf32>, vector<16x128xf32> -> vector<16x128xf32>
    %817 = arith.addf %816, %7 : vector<16x128xf32>
    %818 = arith.mulf %815, %815 : vector<32x128xf32>
    %cst_237 = arith.constant 1.000000e+00 : f32
    %819 = vector.broadcast %cst_237 : f32 to vector<32x128xf32>
    %820 = arith.subf %819, %818 : vector<32x128xf32>
    %821 = arith.mulf %820, %10 : vector<32x128xf32>
    %cst_238 = arith.constant dense<0.000000e+00> : vector<128xf32>
    %822 = vector.multi_reduction <add>, %821, %cst_238 [0] : vector<32x128xf32> to vector<128xf32>
    %823 = vector.shape_cast %822 : vector<128xf32> to vector<1x128xf32>
    %824 = vector.broadcast %cst_13 : f32 to vector<16x128xf32>
    %825 = arith.mulf %824, %803 : vector<16x128xf32>
    %826 = arith.addf %715, %825 : vector<16x128xf32>
    %cst_239 = arith.constant dense<0.000000e+00> : vector<32x128xf32>
    %827 = tpu.matmul %0, %826, %cst_239 {dimension_numbers = #tpu.dot_dimension_numbers<[1], [0], [0], [1], [0, 0, 1, 1], [], []>} : vector<32x16xf32>, vector<16x128xf32>, vector<32x128xf32> -> vector<32x128xf32>
    %828 = arith.addf %827, %4 : vector<32x128xf32>
    %829 = math.tanh %828 : vector<32x128xf32>
    %cst_240 = arith.constant dense<0.000000e+00> : vector<16x128xf32>
    %830 = tpu.matmul %1, %829, %cst_240 {dimension_numbers = #tpu.dot_dimension_numbers<[1], [0], [0], [1], [0, 0, 1, 1], [], []>} : vector<16x32xf32>, vector<32x128xf32>, vector<16x128xf32> -> vector<16x128xf32>
    %831 = arith.addf %830, %7 : vector<16x128xf32>
    %832 = arith.mulf %829, %829 : vector<32x128xf32>
    %cst_241 = arith.constant 1.000000e+00 : f32
    %833 = vector.broadcast %cst_241 : f32 to vector<32x128xf32>
    %834 = arith.subf %833, %832 : vector<32x128xf32>
    %835 = arith.mulf %834, %10 : vector<32x128xf32>
    %cst_242 = arith.constant dense<0.000000e+00> : vector<128xf32>
    %836 = vector.multi_reduction <add>, %835, %cst_242 [0] : vector<32x128xf32> to vector<128xf32>
    %837 = vector.shape_cast %836 : vector<128xf32> to vector<1x128xf32>
    %838 = vector.broadcast %cst_13 : f32 to vector<16x128xf32>
    %839 = arith.mulf %838, %817 : vector<16x128xf32>
    %840 = arith.addf %725, %839 : vector<16x128xf32>
    %cst_243 = arith.constant dense<0.000000e+00> : vector<32x128xf32>
    %841 = tpu.matmul %0, %840, %cst_243 {dimension_numbers = #tpu.dot_dimension_numbers<[1], [0], [0], [1], [0, 0, 1, 1], [], []>} : vector<32x16xf32>, vector<16x128xf32>, vector<32x128xf32> -> vector<32x128xf32>
    %842 = arith.addf %841, %4 : vector<32x128xf32>
    %843 = math.tanh %842 : vector<32x128xf32>
    %cst_244 = arith.constant dense<0.000000e+00> : vector<16x128xf32>
    %844 = tpu.matmul %1, %843, %cst_244 {dimension_numbers = #tpu.dot_dimension_numbers<[1], [0], [0], [1], [0, 0, 1, 1], [], []>} : vector<16x32xf32>, vector<32x128xf32>, vector<16x128xf32> -> vector<16x128xf32>
    %845 = arith.addf %844, %7 : vector<16x128xf32>
    %846 = arith.mulf %843, %843 : vector<32x128xf32>
    %cst_245 = arith.constant 1.000000e+00 : f32
    %847 = vector.broadcast %cst_245 : f32 to vector<32x128xf32>
    %848 = arith.subf %847, %846 : vector<32x128xf32>
    %849 = arith.mulf %848, %10 : vector<32x128xf32>
    %cst_246 = arith.constant dense<0.000000e+00> : vector<128xf32>
    %850 = vector.multi_reduction <add>, %849, %cst_246 [0] : vector<32x128xf32> to vector<128xf32>
    %851 = vector.shape_cast %850 : vector<128xf32> to vector<1x128xf32>
    %cst_247 = arith.constant 2.000000e+00 : f32
    %852 = vector.broadcast %cst_247 : f32 to vector<16x128xf32>
    %853 = arith.mulf %852, %775 : vector<16x128xf32>
    %854 = arith.addf %750, %853 : vector<16x128xf32>
    %cst_248 = arith.constant 2.000000e+00 : f32
    %855 = vector.broadcast %cst_248 : f32 to vector<16x128xf32>
    %856 = arith.mulf %855, %803 : vector<16x128xf32>
    %857 = arith.addf %854, %856 : vector<16x128xf32>
    %858 = arith.addf %857, %831 : vector<16x128xf32>
    %859 = vector.broadcast %cst_14 : f32 to vector<16x128xf32>
    %860 = arith.mulf %859, %858 : vector<16x128xf32>
    %861 = arith.addf %715, %860 : vector<16x128xf32>
    %cst_249 = arith.constant 2.000000e+00 : f32
    %862 = vector.broadcast %cst_249 : f32 to vector<16x128xf32>
    %863 = arith.mulf %862, %789 : vector<16x128xf32>
    %864 = arith.addf %761, %863 : vector<16x128xf32>
    %cst_250 = arith.constant 2.000000e+00 : f32
    %865 = vector.broadcast %cst_250 : f32 to vector<16x128xf32>
    %866 = arith.mulf %865, %817 : vector<16x128xf32>
    %867 = arith.addf %864, %866 : vector<16x128xf32>
    %868 = arith.addf %867, %845 : vector<16x128xf32>
    %869 = vector.broadcast %cst_14 : f32 to vector<16x128xf32>
    %870 = arith.mulf %869, %868 : vector<16x128xf32>
    %871 = arith.addf %725, %870 : vector<16x128xf32>
    %cst_251 = arith.constant 2.000000e+00 : f32
    %872 = vector.broadcast %cst_251 : f32 to vector<1x128xf32>
    %873 = arith.mulf %872, %781 : vector<1x128xf32>
    %874 = arith.addf %756, %873 : vector<1x128xf32>
    %cst_252 = arith.constant 2.000000e+00 : f32
    %875 = vector.broadcast %cst_252 : f32 to vector<1x128xf32>
    %876 = arith.mulf %875, %809 : vector<1x128xf32>
    %877 = arith.addf %874, %876 : vector<1x128xf32>
    %878 = arith.addf %877, %837 : vector<1x128xf32>
    %879 = vector.broadcast %cst_14 : f32 to vector<1x128xf32>
    %880 = arith.mulf %879, %878 : vector<1x128xf32>
    %881 = arith.addf %735, %880 : vector<1x128xf32>
    %cst_253 = arith.constant 2.000000e+00 : f32
    %882 = vector.broadcast %cst_253 : f32 to vector<1x128xf32>
    %883 = arith.mulf %882, %795 : vector<1x128xf32>
    %884 = arith.addf %767, %883 : vector<1x128xf32>
    %cst_254 = arith.constant 2.000000e+00 : f32
    %885 = vector.broadcast %cst_254 : f32 to vector<1x128xf32>
    %886 = arith.mulf %885, %823 : vector<1x128xf32>
    %887 = arith.addf %884, %886 : vector<1x128xf32>
    %888 = arith.addf %887, %851 : vector<1x128xf32>
    %889 = vector.broadcast %cst_14 : f32 to vector<1x128xf32>
    %890 = arith.mulf %889, %888 : vector<1x128xf32>
    %891 = arith.addf %745, %890 : vector<1x128xf32>
    %c6_i32 = arith.constant 6 : i32
    %cst_255 = arith.constant dense<0.000000e+00> : vector<32x128xf32>
    %892 = tpu.matmul %0, %861, %cst_255 {dimension_numbers = #tpu.dot_dimension_numbers<[1], [0], [0], [1], [0, 0, 1, 1], [], []>} : vector<32x16xf32>, vector<16x128xf32>, vector<32x128xf32> -> vector<32x128xf32>
    %893 = arith.addf %892, %4 : vector<32x128xf32>
    %894 = math.tanh %893 : vector<32x128xf32>
    %cst_256 = arith.constant dense<0.000000e+00> : vector<16x128xf32>
    %895 = tpu.matmul %1, %894, %cst_256 {dimension_numbers = #tpu.dot_dimension_numbers<[1], [0], [0], [1], [0, 0, 1, 1], [], []>} : vector<16x32xf32>, vector<32x128xf32>, vector<16x128xf32> -> vector<16x128xf32>
    %896 = arith.addf %895, %7 : vector<16x128xf32>
    %897 = arith.mulf %894, %894 : vector<32x128xf32>
    %cst_257 = arith.constant 1.000000e+00 : f32
    %898 = vector.broadcast %cst_257 : f32 to vector<32x128xf32>
    %899 = arith.subf %898, %897 : vector<32x128xf32>
    %900 = arith.mulf %899, %10 : vector<32x128xf32>
    %cst_258 = arith.constant dense<0.000000e+00> : vector<128xf32>
    %901 = vector.multi_reduction <add>, %900, %cst_258 [0] : vector<32x128xf32> to vector<128xf32>
    %902 = vector.shape_cast %901 : vector<128xf32> to vector<1x128xf32>
    %cst_259 = arith.constant dense<0.000000e+00> : vector<32x128xf32>
    %903 = tpu.matmul %0, %871, %cst_259 {dimension_numbers = #tpu.dot_dimension_numbers<[1], [0], [0], [1], [0, 0, 1, 1], [], []>} : vector<32x16xf32>, vector<16x128xf32>, vector<32x128xf32> -> vector<32x128xf32>
    %904 = arith.addf %903, %4 : vector<32x128xf32>
    %905 = math.tanh %904 : vector<32x128xf32>
    %cst_260 = arith.constant dense<0.000000e+00> : vector<16x128xf32>
    %906 = tpu.matmul %1, %905, %cst_260 {dimension_numbers = #tpu.dot_dimension_numbers<[1], [0], [0], [1], [0, 0, 1, 1], [], []>} : vector<16x32xf32>, vector<32x128xf32>, vector<16x128xf32> -> vector<16x128xf32>
    %907 = arith.addf %906, %7 : vector<16x128xf32>
    %908 = arith.mulf %905, %905 : vector<32x128xf32>
    %cst_261 = arith.constant 1.000000e+00 : f32
    %909 = vector.broadcast %cst_261 : f32 to vector<32x128xf32>
    %910 = arith.subf %909, %908 : vector<32x128xf32>
    %911 = arith.mulf %910, %10 : vector<32x128xf32>
    %cst_262 = arith.constant dense<0.000000e+00> : vector<128xf32>
    %912 = vector.multi_reduction <add>, %911, %cst_262 [0] : vector<32x128xf32> to vector<128xf32>
    %913 = vector.shape_cast %912 : vector<128xf32> to vector<1x128xf32>
    %914 = vector.broadcast %cst_12 : f32 to vector<16x128xf32>
    %915 = arith.mulf %914, %896 : vector<16x128xf32>
    %916 = arith.addf %861, %915 : vector<16x128xf32>
    %cst_263 = arith.constant dense<0.000000e+00> : vector<32x128xf32>
    %917 = tpu.matmul %0, %916, %cst_263 {dimension_numbers = #tpu.dot_dimension_numbers<[1], [0], [0], [1], [0, 0, 1, 1], [], []>} : vector<32x16xf32>, vector<16x128xf32>, vector<32x128xf32> -> vector<32x128xf32>
    %918 = arith.addf %917, %4 : vector<32x128xf32>
    %919 = math.tanh %918 : vector<32x128xf32>
    %cst_264 = arith.constant dense<0.000000e+00> : vector<16x128xf32>
    %920 = tpu.matmul %1, %919, %cst_264 {dimension_numbers = #tpu.dot_dimension_numbers<[1], [0], [0], [1], [0, 0, 1, 1], [], []>} : vector<16x32xf32>, vector<32x128xf32>, vector<16x128xf32> -> vector<16x128xf32>
    %921 = arith.addf %920, %7 : vector<16x128xf32>
    %922 = arith.mulf %919, %919 : vector<32x128xf32>
    %cst_265 = arith.constant 1.000000e+00 : f32
    %923 = vector.broadcast %cst_265 : f32 to vector<32x128xf32>
    %924 = arith.subf %923, %922 : vector<32x128xf32>
    %925 = arith.mulf %924, %10 : vector<32x128xf32>
    %cst_266 = arith.constant dense<0.000000e+00> : vector<128xf32>
    %926 = vector.multi_reduction <add>, %925, %cst_266 [0] : vector<32x128xf32> to vector<128xf32>
    %927 = vector.shape_cast %926 : vector<128xf32> to vector<1x128xf32>
    %928 = vector.broadcast %cst_12 : f32 to vector<16x128xf32>
    %929 = arith.mulf %928, %907 : vector<16x128xf32>
    %930 = arith.addf %871, %929 : vector<16x128xf32>
    %cst_267 = arith.constant dense<0.000000e+00> : vector<32x128xf32>
    %931 = tpu.matmul %0, %930, %cst_267 {dimension_numbers = #tpu.dot_dimension_numbers<[1], [0], [0], [1], [0, 0, 1, 1], [], []>} : vector<32x16xf32>, vector<16x128xf32>, vector<32x128xf32> -> vector<32x128xf32>
    %932 = arith.addf %931, %4 : vector<32x128xf32>
    %933 = math.tanh %932 : vector<32x128xf32>
    %cst_268 = arith.constant dense<0.000000e+00> : vector<16x128xf32>
    %934 = tpu.matmul %1, %933, %cst_268 {dimension_numbers = #tpu.dot_dimension_numbers<[1], [0], [0], [1], [0, 0, 1, 1], [], []>} : vector<16x32xf32>, vector<32x128xf32>, vector<16x128xf32> -> vector<16x128xf32>
    %935 = arith.addf %934, %7 : vector<16x128xf32>
    %936 = arith.mulf %933, %933 : vector<32x128xf32>
    %cst_269 = arith.constant 1.000000e+00 : f32
    %937 = vector.broadcast %cst_269 : f32 to vector<32x128xf32>
    %938 = arith.subf %937, %936 : vector<32x128xf32>
    %939 = arith.mulf %938, %10 : vector<32x128xf32>
    %cst_270 = arith.constant dense<0.000000e+00> : vector<128xf32>
    %940 = vector.multi_reduction <add>, %939, %cst_270 [0] : vector<32x128xf32> to vector<128xf32>
    %941 = vector.shape_cast %940 : vector<128xf32> to vector<1x128xf32>
    %942 = vector.broadcast %cst_12 : f32 to vector<16x128xf32>
    %943 = arith.mulf %942, %921 : vector<16x128xf32>
    %944 = arith.addf %861, %943 : vector<16x128xf32>
    %cst_271 = arith.constant dense<0.000000e+00> : vector<32x128xf32>
    %945 = tpu.matmul %0, %944, %cst_271 {dimension_numbers = #tpu.dot_dimension_numbers<[1], [0], [0], [1], [0, 0, 1, 1], [], []>} : vector<32x16xf32>, vector<16x128xf32>, vector<32x128xf32> -> vector<32x128xf32>
    %946 = arith.addf %945, %4 : vector<32x128xf32>
    %947 = math.tanh %946 : vector<32x128xf32>
    %cst_272 = arith.constant dense<0.000000e+00> : vector<16x128xf32>
    %948 = tpu.matmul %1, %947, %cst_272 {dimension_numbers = #tpu.dot_dimension_numbers<[1], [0], [0], [1], [0, 0, 1, 1], [], []>} : vector<16x32xf32>, vector<32x128xf32>, vector<16x128xf32> -> vector<16x128xf32>
    %949 = arith.addf %948, %7 : vector<16x128xf32>
    %950 = arith.mulf %947, %947 : vector<32x128xf32>
    %cst_273 = arith.constant 1.000000e+00 : f32
    %951 = vector.broadcast %cst_273 : f32 to vector<32x128xf32>
    %952 = arith.subf %951, %950 : vector<32x128xf32>
    %953 = arith.mulf %952, %10 : vector<32x128xf32>
    %cst_274 = arith.constant dense<0.000000e+00> : vector<128xf32>
    %954 = vector.multi_reduction <add>, %953, %cst_274 [0] : vector<32x128xf32> to vector<128xf32>
    %955 = vector.shape_cast %954 : vector<128xf32> to vector<1x128xf32>
    %956 = vector.broadcast %cst_12 : f32 to vector<16x128xf32>
    %957 = arith.mulf %956, %935 : vector<16x128xf32>
    %958 = arith.addf %871, %957 : vector<16x128xf32>
    %cst_275 = arith.constant dense<0.000000e+00> : vector<32x128xf32>
    %959 = tpu.matmul %0, %958, %cst_275 {dimension_numbers = #tpu.dot_dimension_numbers<[1], [0], [0], [1], [0, 0, 1, 1], [], []>} : vector<32x16xf32>, vector<16x128xf32>, vector<32x128xf32> -> vector<32x128xf32>
    %960 = arith.addf %959, %4 : vector<32x128xf32>
    %961 = math.tanh %960 : vector<32x128xf32>
    %cst_276 = arith.constant dense<0.000000e+00> : vector<16x128xf32>
    %962 = tpu.matmul %1, %961, %cst_276 {dimension_numbers = #tpu.dot_dimension_numbers<[1], [0], [0], [1], [0, 0, 1, 1], [], []>} : vector<16x32xf32>, vector<32x128xf32>, vector<16x128xf32> -> vector<16x128xf32>
    %963 = arith.addf %962, %7 : vector<16x128xf32>
    %964 = arith.mulf %961, %961 : vector<32x128xf32>
    %cst_277 = arith.constant 1.000000e+00 : f32
    %965 = vector.broadcast %cst_277 : f32 to vector<32x128xf32>
    %966 = arith.subf %965, %964 : vector<32x128xf32>
    %967 = arith.mulf %966, %10 : vector<32x128xf32>
    %cst_278 = arith.constant dense<0.000000e+00> : vector<128xf32>
    %968 = vector.multi_reduction <add>, %967, %cst_278 [0] : vector<32x128xf32> to vector<128xf32>
    %969 = vector.shape_cast %968 : vector<128xf32> to vector<1x128xf32>
    %970 = vector.broadcast %cst_13 : f32 to vector<16x128xf32>
    %971 = arith.mulf %970, %949 : vector<16x128xf32>
    %972 = arith.addf %861, %971 : vector<16x128xf32>
    %cst_279 = arith.constant dense<0.000000e+00> : vector<32x128xf32>
    %973 = tpu.matmul %0, %972, %cst_279 {dimension_numbers = #tpu.dot_dimension_numbers<[1], [0], [0], [1], [0, 0, 1, 1], [], []>} : vector<32x16xf32>, vector<16x128xf32>, vector<32x128xf32> -> vector<32x128xf32>
    %974 = arith.addf %973, %4 : vector<32x128xf32>
    %975 = math.tanh %974 : vector<32x128xf32>
    %cst_280 = arith.constant dense<0.000000e+00> : vector<16x128xf32>
    %976 = tpu.matmul %1, %975, %cst_280 {dimension_numbers = #tpu.dot_dimension_numbers<[1], [0], [0], [1], [0, 0, 1, 1], [], []>} : vector<16x32xf32>, vector<32x128xf32>, vector<16x128xf32> -> vector<16x128xf32>
    %977 = arith.addf %976, %7 : vector<16x128xf32>
    %978 = arith.mulf %975, %975 : vector<32x128xf32>
    %cst_281 = arith.constant 1.000000e+00 : f32
    %979 = vector.broadcast %cst_281 : f32 to vector<32x128xf32>
    %980 = arith.subf %979, %978 : vector<32x128xf32>
    %981 = arith.mulf %980, %10 : vector<32x128xf32>
    %cst_282 = arith.constant dense<0.000000e+00> : vector<128xf32>
    %982 = vector.multi_reduction <add>, %981, %cst_282 [0] : vector<32x128xf32> to vector<128xf32>
    %983 = vector.shape_cast %982 : vector<128xf32> to vector<1x128xf32>
    %984 = vector.broadcast %cst_13 : f32 to vector<16x128xf32>
    %985 = arith.mulf %984, %963 : vector<16x128xf32>
    %986 = arith.addf %871, %985 : vector<16x128xf32>
    %cst_283 = arith.constant dense<0.000000e+00> : vector<32x128xf32>
    %987 = tpu.matmul %0, %986, %cst_283 {dimension_numbers = #tpu.dot_dimension_numbers<[1], [0], [0], [1], [0, 0, 1, 1], [], []>} : vector<32x16xf32>, vector<16x128xf32>, vector<32x128xf32> -> vector<32x128xf32>
    %988 = arith.addf %987, %4 : vector<32x128xf32>
    %989 = math.tanh %988 : vector<32x128xf32>
    %cst_284 = arith.constant dense<0.000000e+00> : vector<16x128xf32>
    %990 = tpu.matmul %1, %989, %cst_284 {dimension_numbers = #tpu.dot_dimension_numbers<[1], [0], [0], [1], [0, 0, 1, 1], [], []>} : vector<16x32xf32>, vector<32x128xf32>, vector<16x128xf32> -> vector<16x128xf32>
    %991 = arith.addf %990, %7 : vector<16x128xf32>
    %992 = arith.mulf %989, %989 : vector<32x128xf32>
    %cst_285 = arith.constant 1.000000e+00 : f32
    %993 = vector.broadcast %cst_285 : f32 to vector<32x128xf32>
    %994 = arith.subf %993, %992 : vector<32x128xf32>
    %995 = arith.mulf %994, %10 : vector<32x128xf32>
    %cst_286 = arith.constant dense<0.000000e+00> : vector<128xf32>
    %996 = vector.multi_reduction <add>, %995, %cst_286 [0] : vector<32x128xf32> to vector<128xf32>
    %997 = vector.shape_cast %996 : vector<128xf32> to vector<1x128xf32>
    %cst_287 = arith.constant 2.000000e+00 : f32
    %998 = vector.broadcast %cst_287 : f32 to vector<16x128xf32>
    %999 = arith.mulf %998, %921 : vector<16x128xf32>
    %1000 = arith.addf %896, %999 : vector<16x128xf32>
    %cst_288 = arith.constant 2.000000e+00 : f32
    %1001 = vector.broadcast %cst_288 : f32 to vector<16x128xf32>
    %1002 = arith.mulf %1001, %949 : vector<16x128xf32>
    %1003 = arith.addf %1000, %1002 : vector<16x128xf32>
    %1004 = arith.addf %1003, %977 : vector<16x128xf32>
    %1005 = vector.broadcast %cst_14 : f32 to vector<16x128xf32>
    %1006 = arith.mulf %1005, %1004 : vector<16x128xf32>
    %1007 = arith.addf %861, %1006 : vector<16x128xf32>
    %cst_289 = arith.constant 2.000000e+00 : f32
    %1008 = vector.broadcast %cst_289 : f32 to vector<16x128xf32>
    %1009 = arith.mulf %1008, %935 : vector<16x128xf32>
    %1010 = arith.addf %907, %1009 : vector<16x128xf32>
    %cst_290 = arith.constant 2.000000e+00 : f32
    %1011 = vector.broadcast %cst_290 : f32 to vector<16x128xf32>
    %1012 = arith.mulf %1011, %963 : vector<16x128xf32>
    %1013 = arith.addf %1010, %1012 : vector<16x128xf32>
    %1014 = arith.addf %1013, %991 : vector<16x128xf32>
    %1015 = vector.broadcast %cst_14 : f32 to vector<16x128xf32>
    %1016 = arith.mulf %1015, %1014 : vector<16x128xf32>
    %1017 = arith.addf %871, %1016 : vector<16x128xf32>
    %cst_291 = arith.constant 2.000000e+00 : f32
    %1018 = vector.broadcast %cst_291 : f32 to vector<1x128xf32>
    %1019 = arith.mulf %1018, %927 : vector<1x128xf32>
    %1020 = arith.addf %902, %1019 : vector<1x128xf32>
    %cst_292 = arith.constant 2.000000e+00 : f32
    %1021 = vector.broadcast %cst_292 : f32 to vector<1x128xf32>
    %1022 = arith.mulf %1021, %955 : vector<1x128xf32>
    %1023 = arith.addf %1020, %1022 : vector<1x128xf32>
    %1024 = arith.addf %1023, %983 : vector<1x128xf32>
    %1025 = vector.broadcast %cst_14 : f32 to vector<1x128xf32>
    %1026 = arith.mulf %1025, %1024 : vector<1x128xf32>
    %1027 = arith.addf %881, %1026 : vector<1x128xf32>
    %cst_293 = arith.constant 2.000000e+00 : f32
    %1028 = vector.broadcast %cst_293 : f32 to vector<1x128xf32>
    %1029 = arith.mulf %1028, %941 : vector<1x128xf32>
    %1030 = arith.addf %913, %1029 : vector<1x128xf32>
    %cst_294 = arith.constant 2.000000e+00 : f32
    %1031 = vector.broadcast %cst_294 : f32 to vector<1x128xf32>
    %1032 = arith.mulf %1031, %969 : vector<1x128xf32>
    %1033 = arith.addf %1030, %1032 : vector<1x128xf32>
    %1034 = arith.addf %1033, %997 : vector<1x128xf32>
    %1035 = vector.broadcast %cst_14 : f32 to vector<1x128xf32>
    %1036 = arith.mulf %1035, %1034 : vector<1x128xf32>
    %1037 = arith.addf %891, %1036 : vector<1x128xf32>
    %c7_i32 = arith.constant 7 : i32
    %cst_295 = arith.constant dense<0.000000e+00> : vector<32x128xf32>
    %1038 = tpu.matmul %0, %1007, %cst_295 {dimension_numbers = #tpu.dot_dimension_numbers<[1], [0], [0], [1], [0, 0, 1, 1], [], []>} : vector<32x16xf32>, vector<16x128xf32>, vector<32x128xf32> -> vector<32x128xf32>
    %1039 = arith.addf %1038, %4 : vector<32x128xf32>
    %1040 = math.tanh %1039 : vector<32x128xf32>
    %cst_296 = arith.constant dense<0.000000e+00> : vector<16x128xf32>
    %1041 = tpu.matmul %1, %1040, %cst_296 {dimension_numbers = #tpu.dot_dimension_numbers<[1], [0], [0], [1], [0, 0, 1, 1], [], []>} : vector<16x32xf32>, vector<32x128xf32>, vector<16x128xf32> -> vector<16x128xf32>
    %1042 = arith.addf %1041, %7 : vector<16x128xf32>
    %1043 = arith.mulf %1040, %1040 : vector<32x128xf32>
    %cst_297 = arith.constant 1.000000e+00 : f32
    %1044 = vector.broadcast %cst_297 : f32 to vector<32x128xf32>
    %1045 = arith.subf %1044, %1043 : vector<32x128xf32>
    %1046 = arith.mulf %1045, %10 : vector<32x128xf32>
    %cst_298 = arith.constant dense<0.000000e+00> : vector<128xf32>
    %1047 = vector.multi_reduction <add>, %1046, %cst_298 [0] : vector<32x128xf32> to vector<128xf32>
    %1048 = vector.shape_cast %1047 : vector<128xf32> to vector<1x128xf32>
    %cst_299 = arith.constant dense<0.000000e+00> : vector<32x128xf32>
    %1049 = tpu.matmul %0, %1017, %cst_299 {dimension_numbers = #tpu.dot_dimension_numbers<[1], [0], [0], [1], [0, 0, 1, 1], [], []>} : vector<32x16xf32>, vector<16x128xf32>, vector<32x128xf32> -> vector<32x128xf32>
    %1050 = arith.addf %1049, %4 : vector<32x128xf32>
    %1051 = math.tanh %1050 : vector<32x128xf32>
    %cst_300 = arith.constant dense<0.000000e+00> : vector<16x128xf32>
    %1052 = tpu.matmul %1, %1051, %cst_300 {dimension_numbers = #tpu.dot_dimension_numbers<[1], [0], [0], [1], [0, 0, 1, 1], [], []>} : vector<16x32xf32>, vector<32x128xf32>, vector<16x128xf32> -> vector<16x128xf32>
    %1053 = arith.addf %1052, %7 : vector<16x128xf32>
    %1054 = arith.mulf %1051, %1051 : vector<32x128xf32>
    %cst_301 = arith.constant 1.000000e+00 : f32
    %1055 = vector.broadcast %cst_301 : f32 to vector<32x128xf32>
    %1056 = arith.subf %1055, %1054 : vector<32x128xf32>
    %1057 = arith.mulf %1056, %10 : vector<32x128xf32>
    %cst_302 = arith.constant dense<0.000000e+00> : vector<128xf32>
    %1058 = vector.multi_reduction <add>, %1057, %cst_302 [0] : vector<32x128xf32> to vector<128xf32>
    %1059 = vector.shape_cast %1058 : vector<128xf32> to vector<1x128xf32>
    %1060 = vector.broadcast %cst_12 : f32 to vector<16x128xf32>
    %1061 = arith.mulf %1060, %1042 : vector<16x128xf32>
    %1062 = arith.addf %1007, %1061 : vector<16x128xf32>
    %cst_303 = arith.constant dense<0.000000e+00> : vector<32x128xf32>
    %1063 = tpu.matmul %0, %1062, %cst_303 {dimension_numbers = #tpu.dot_dimension_numbers<[1], [0], [0], [1], [0, 0, 1, 1], [], []>} : vector<32x16xf32>, vector<16x128xf32>, vector<32x128xf32> -> vector<32x128xf32>
    %1064 = arith.addf %1063, %4 : vector<32x128xf32>
    %1065 = math.tanh %1064 : vector<32x128xf32>
    %cst_304 = arith.constant dense<0.000000e+00> : vector<16x128xf32>
    %1066 = tpu.matmul %1, %1065, %cst_304 {dimension_numbers = #tpu.dot_dimension_numbers<[1], [0], [0], [1], [0, 0, 1, 1], [], []>} : vector<16x32xf32>, vector<32x128xf32>, vector<16x128xf32> -> vector<16x128xf32>
    %1067 = arith.addf %1066, %7 : vector<16x128xf32>
    %1068 = arith.mulf %1065, %1065 : vector<32x128xf32>
    %cst_305 = arith.constant 1.000000e+00 : f32
    %1069 = vector.broadcast %cst_305 : f32 to vector<32x128xf32>
    %1070 = arith.subf %1069, %1068 : vector<32x128xf32>
    %1071 = arith.mulf %1070, %10 : vector<32x128xf32>
    %cst_306 = arith.constant dense<0.000000e+00> : vector<128xf32>
    %1072 = vector.multi_reduction <add>, %1071, %cst_306 [0] : vector<32x128xf32> to vector<128xf32>
    %1073 = vector.shape_cast %1072 : vector<128xf32> to vector<1x128xf32>
    %1074 = vector.broadcast %cst_12 : f32 to vector<16x128xf32>
    %1075 = arith.mulf %1074, %1053 : vector<16x128xf32>
    %1076 = arith.addf %1017, %1075 : vector<16x128xf32>
    %cst_307 = arith.constant dense<0.000000e+00> : vector<32x128xf32>
    %1077 = tpu.matmul %0, %1076, %cst_307 {dimension_numbers = #tpu.dot_dimension_numbers<[1], [0], [0], [1], [0, 0, 1, 1], [], []>} : vector<32x16xf32>, vector<16x128xf32>, vector<32x128xf32> -> vector<32x128xf32>
    %1078 = arith.addf %1077, %4 : vector<32x128xf32>
    %1079 = math.tanh %1078 : vector<32x128xf32>
    %cst_308 = arith.constant dense<0.000000e+00> : vector<16x128xf32>
    %1080 = tpu.matmul %1, %1079, %cst_308 {dimension_numbers = #tpu.dot_dimension_numbers<[1], [0], [0], [1], [0, 0, 1, 1], [], []>} : vector<16x32xf32>, vector<32x128xf32>, vector<16x128xf32> -> vector<16x128xf32>
    %1081 = arith.addf %1080, %7 : vector<16x128xf32>
    %1082 = arith.mulf %1079, %1079 : vector<32x128xf32>
    %cst_309 = arith.constant 1.000000e+00 : f32
    %1083 = vector.broadcast %cst_309 : f32 to vector<32x128xf32>
    %1084 = arith.subf %1083, %1082 : vector<32x128xf32>
    %1085 = arith.mulf %1084, %10 : vector<32x128xf32>
    %cst_310 = arith.constant dense<0.000000e+00> : vector<128xf32>
    %1086 = vector.multi_reduction <add>, %1085, %cst_310 [0] : vector<32x128xf32> to vector<128xf32>
    %1087 = vector.shape_cast %1086 : vector<128xf32> to vector<1x128xf32>
    %1088 = vector.broadcast %cst_12 : f32 to vector<16x128xf32>
    %1089 = arith.mulf %1088, %1067 : vector<16x128xf32>
    %1090 = arith.addf %1007, %1089 : vector<16x128xf32>
    %cst_311 = arith.constant dense<0.000000e+00> : vector<32x128xf32>
    %1091 = tpu.matmul %0, %1090, %cst_311 {dimension_numbers = #tpu.dot_dimension_numbers<[1], [0], [0], [1], [0, 0, 1, 1], [], []>} : vector<32x16xf32>, vector<16x128xf32>, vector<32x128xf32> -> vector<32x128xf32>
    %1092 = arith.addf %1091, %4 : vector<32x128xf32>
    %1093 = math.tanh %1092 : vector<32x128xf32>
    %cst_312 = arith.constant dense<0.000000e+00> : vector<16x128xf32>
    %1094 = tpu.matmul %1, %1093, %cst_312 {dimension_numbers = #tpu.dot_dimension_numbers<[1], [0], [0], [1], [0, 0, 1, 1], [], []>} : vector<16x32xf32>, vector<32x128xf32>, vector<16x128xf32> -> vector<16x128xf32>
    %1095 = arith.addf %1094, %7 : vector<16x128xf32>
    %1096 = arith.mulf %1093, %1093 : vector<32x128xf32>
    %cst_313 = arith.constant 1.000000e+00 : f32
    %1097 = vector.broadcast %cst_313 : f32 to vector<32x128xf32>
    %1098 = arith.subf %1097, %1096 : vector<32x128xf32>
    %1099 = arith.mulf %1098, %10 : vector<32x128xf32>
    %cst_314 = arith.constant dense<0.000000e+00> : vector<128xf32>
    %1100 = vector.multi_reduction <add>, %1099, %cst_314 [0] : vector<32x128xf32> to vector<128xf32>
    %1101 = vector.shape_cast %1100 : vector<128xf32> to vector<1x128xf32>
    %1102 = vector.broadcast %cst_12 : f32 to vector<16x128xf32>
    %1103 = arith.mulf %1102, %1081 : vector<16x128xf32>
    %1104 = arith.addf %1017, %1103 : vector<16x128xf32>
    %cst_315 = arith.constant dense<0.000000e+00> : vector<32x128xf32>
    %1105 = tpu.matmul %0, %1104, %cst_315 {dimension_numbers = #tpu.dot_dimension_numbers<[1], [0], [0], [1], [0, 0, 1, 1], [], []>} : vector<32x16xf32>, vector<16x128xf32>, vector<32x128xf32> -> vector<32x128xf32>
    %1106 = arith.addf %1105, %4 : vector<32x128xf32>
    %1107 = math.tanh %1106 : vector<32x128xf32>
    %cst_316 = arith.constant dense<0.000000e+00> : vector<16x128xf32>
    %1108 = tpu.matmul %1, %1107, %cst_316 {dimension_numbers = #tpu.dot_dimension_numbers<[1], [0], [0], [1], [0, 0, 1, 1], [], []>} : vector<16x32xf32>, vector<32x128xf32>, vector<16x128xf32> -> vector<16x128xf32>
    %1109 = arith.addf %1108, %7 : vector<16x128xf32>
    %1110 = arith.mulf %1107, %1107 : vector<32x128xf32>
    %cst_317 = arith.constant 1.000000e+00 : f32
    %1111 = vector.broadcast %cst_317 : f32 to vector<32x128xf32>
    %1112 = arith.subf %1111, %1110 : vector<32x128xf32>
    %1113 = arith.mulf %1112, %10 : vector<32x128xf32>
    %cst_318 = arith.constant dense<0.000000e+00> : vector<128xf32>
    %1114 = vector.multi_reduction <add>, %1113, %cst_318 [0] : vector<32x128xf32> to vector<128xf32>
    %1115 = vector.shape_cast %1114 : vector<128xf32> to vector<1x128xf32>
    %1116 = vector.broadcast %cst_13 : f32 to vector<16x128xf32>
    %1117 = arith.mulf %1116, %1095 : vector<16x128xf32>
    %1118 = arith.addf %1007, %1117 : vector<16x128xf32>
    %cst_319 = arith.constant dense<0.000000e+00> : vector<32x128xf32>
    %1119 = tpu.matmul %0, %1118, %cst_319 {dimension_numbers = #tpu.dot_dimension_numbers<[1], [0], [0], [1], [0, 0, 1, 1], [], []>} : vector<32x16xf32>, vector<16x128xf32>, vector<32x128xf32> -> vector<32x128xf32>
    %1120 = arith.addf %1119, %4 : vector<32x128xf32>
    %1121 = math.tanh %1120 : vector<32x128xf32>
    %cst_320 = arith.constant dense<0.000000e+00> : vector<16x128xf32>
    %1122 = tpu.matmul %1, %1121, %cst_320 {dimension_numbers = #tpu.dot_dimension_numbers<[1], [0], [0], [1], [0, 0, 1, 1], [], []>} : vector<16x32xf32>, vector<32x128xf32>, vector<16x128xf32> -> vector<16x128xf32>
    %1123 = arith.addf %1122, %7 : vector<16x128xf32>
    %1124 = arith.mulf %1121, %1121 : vector<32x128xf32>
    %cst_321 = arith.constant 1.000000e+00 : f32
    %1125 = vector.broadcast %cst_321 : f32 to vector<32x128xf32>
    %1126 = arith.subf %1125, %1124 : vector<32x128xf32>
    %1127 = arith.mulf %1126, %10 : vector<32x128xf32>
    %cst_322 = arith.constant dense<0.000000e+00> : vector<128xf32>
    %1128 = vector.multi_reduction <add>, %1127, %cst_322 [0] : vector<32x128xf32> to vector<128xf32>
    %1129 = vector.shape_cast %1128 : vector<128xf32> to vector<1x128xf32>
    %1130 = vector.broadcast %cst_13 : f32 to vector<16x128xf32>
    %1131 = arith.mulf %1130, %1109 : vector<16x128xf32>
    %1132 = arith.addf %1017, %1131 : vector<16x128xf32>
    %cst_323 = arith.constant dense<0.000000e+00> : vector<32x128xf32>
    %1133 = tpu.matmul %0, %1132, %cst_323 {dimension_numbers = #tpu.dot_dimension_numbers<[1], [0], [0], [1], [0, 0, 1, 1], [], []>} : vector<32x16xf32>, vector<16x128xf32>, vector<32x128xf32> -> vector<32x128xf32>
    %1134 = arith.addf %1133, %4 : vector<32x128xf32>
    %1135 = math.tanh %1134 : vector<32x128xf32>
    %cst_324 = arith.constant dense<0.000000e+00> : vector<16x128xf32>
    %1136 = tpu.matmul %1, %1135, %cst_324 {dimension_numbers = #tpu.dot_dimension_numbers<[1], [0], [0], [1], [0, 0, 1, 1], [], []>} : vector<16x32xf32>, vector<32x128xf32>, vector<16x128xf32> -> vector<16x128xf32>
    %1137 = arith.addf %1136, %7 : vector<16x128xf32>
    %1138 = arith.mulf %1135, %1135 : vector<32x128xf32>
    %cst_325 = arith.constant 1.000000e+00 : f32
    %1139 = vector.broadcast %cst_325 : f32 to vector<32x128xf32>
    %1140 = arith.subf %1139, %1138 : vector<32x128xf32>
    %1141 = arith.mulf %1140, %10 : vector<32x128xf32>
    %cst_326 = arith.constant dense<0.000000e+00> : vector<128xf32>
    %1142 = vector.multi_reduction <add>, %1141, %cst_326 [0] : vector<32x128xf32> to vector<128xf32>
    %1143 = vector.shape_cast %1142 : vector<128xf32> to vector<1x128xf32>
    %cst_327 = arith.constant 2.000000e+00 : f32
    %1144 = vector.broadcast %cst_327 : f32 to vector<16x128xf32>
    %1145 = arith.mulf %1144, %1067 : vector<16x128xf32>
    %1146 = arith.addf %1042, %1145 : vector<16x128xf32>
    %cst_328 = arith.constant 2.000000e+00 : f32
    %1147 = vector.broadcast %cst_328 : f32 to vector<16x128xf32>
    %1148 = arith.mulf %1147, %1095 : vector<16x128xf32>
    %1149 = arith.addf %1146, %1148 : vector<16x128xf32>
    %1150 = arith.addf %1149, %1123 : vector<16x128xf32>
    %1151 = vector.broadcast %cst_14 : f32 to vector<16x128xf32>
    %1152 = arith.mulf %1151, %1150 : vector<16x128xf32>
    %1153 = arith.addf %1007, %1152 : vector<16x128xf32>
    %cst_329 = arith.constant 2.000000e+00 : f32
    %1154 = vector.broadcast %cst_329 : f32 to vector<16x128xf32>
    %1155 = arith.mulf %1154, %1081 : vector<16x128xf32>
    %1156 = arith.addf %1053, %1155 : vector<16x128xf32>
    %cst_330 = arith.constant 2.000000e+00 : f32
    %1157 = vector.broadcast %cst_330 : f32 to vector<16x128xf32>
    %1158 = arith.mulf %1157, %1109 : vector<16x128xf32>
    %1159 = arith.addf %1156, %1158 : vector<16x128xf32>
    %1160 = arith.addf %1159, %1137 : vector<16x128xf32>
    %1161 = vector.broadcast %cst_14 : f32 to vector<16x128xf32>
    %1162 = arith.mulf %1161, %1160 : vector<16x128xf32>
    %1163 = arith.addf %1017, %1162 : vector<16x128xf32>
    %cst_331 = arith.constant 2.000000e+00 : f32
    %1164 = vector.broadcast %cst_331 : f32 to vector<1x128xf32>
    %1165 = arith.mulf %1164, %1073 : vector<1x128xf32>
    %1166 = arith.addf %1048, %1165 : vector<1x128xf32>
    %cst_332 = arith.constant 2.000000e+00 : f32
    %1167 = vector.broadcast %cst_332 : f32 to vector<1x128xf32>
    %1168 = arith.mulf %1167, %1101 : vector<1x128xf32>
    %1169 = arith.addf %1166, %1168 : vector<1x128xf32>
    %1170 = arith.addf %1169, %1129 : vector<1x128xf32>
    %1171 = vector.broadcast %cst_14 : f32 to vector<1x128xf32>
    %1172 = arith.mulf %1171, %1170 : vector<1x128xf32>
    %1173 = arith.addf %1027, %1172 : vector<1x128xf32>
    %cst_333 = arith.constant 2.000000e+00 : f32
    %1174 = vector.broadcast %cst_333 : f32 to vector<1x128xf32>
    %1175 = arith.mulf %1174, %1087 : vector<1x128xf32>
    %1176 = arith.addf %1059, %1175 : vector<1x128xf32>
    %cst_334 = arith.constant 2.000000e+00 : f32
    %1177 = vector.broadcast %cst_334 : f32 to vector<1x128xf32>
    %1178 = arith.mulf %1177, %1115 : vector<1x128xf32>
    %1179 = arith.addf %1176, %1178 : vector<1x128xf32>
    %1180 = arith.addf %1179, %1143 : vector<1x128xf32>
    %1181 = vector.broadcast %cst_14 : f32 to vector<1x128xf32>
    %1182 = arith.mulf %1181, %1180 : vector<1x128xf32>
    %1183 = arith.addf %1037, %1182 : vector<1x128xf32>
    %c0_335 = arith.constant 0 : index
    %c0_336 = arith.constant 0 : index
    %1184 = vector.load %arg7[%c0_335, %c0_336] : memref<16x256xf32, #tpu.memory_space<vmem>>, vector<16x128xf32>
    tpu.vector_store %arg7[%c0_335, %c0_336], %1153 {strides = array<i32>} : memref<16x256xf32, #tpu.memory_space<vmem>>, vector<16x128xf32>,
    %cst_337 = arith.constant 0.000000e+00 : f32
    %1185 = vector.broadcast %cst_337 : f32 to vector<1x128xf32>
    %1186 = arith.subf %1185, %1173 : vector<1x128xf32>
    %c0_338 = arith.constant 0 : index
    %c0_339 = arith.constant 0 : index
    %1187 = vector.load %arg8[%c0_338, %c0_339] : memref<1x256xf32, #tpu.memory_space<vmem>>, vector<1x128xf32>
    tpu.vector_store %arg8[%c0_338, %c0_339], %1186 {strides = array<i32>} : memref<1x256xf32, #tpu.memory_space<vmem>>, vector<1x128xf32>,
    %c0_340 = arith.constant 0 : index
    %c128 = arith.constant 128 : index
    %1188 = vector.load %arg7[%c0_340, %c128] : memref<16x256xf32, #tpu.memory_space<vmem>>, vector<16x128xf32>
    tpu.vector_store %arg7[%c0_340, %c128], %1163 {strides = array<i32>} : memref<16x256xf32, #tpu.memory_space<vmem>>, vector<16x128xf32>,
    %cst_341 = arith.constant 0.000000e+00 : f32
    %1189 = vector.broadcast %cst_341 : f32 to vector<1x128xf32>
    %1190 = arith.subf %1189, %1183 : vector<1x128xf32>
    %c0_342 = arith.constant 0 : index
    %c128_343 = arith.constant 128 : index
    %1191 = vector.load %arg8[%c0_342, %c128_343] : memref<1x256xf32, #tpu.memory_space<vmem>>, vector<1x128xf32>
    tpu.vector_store %arg8[%c0_342, %c128_343], %1190 {strides = array<i32>} : memref<1x256xf32, #tpu.memory_space<vmem>>, vector<1x128xf32>,
    return
  }
  func.func @transform_0(%arg0: i32) -> (i32, i32) {
    %c0_i32 = arith.constant 0 : i32
    %c0_i32_0 = arith.constant 0 : i32
    return %c0_i32, %arg0 : i32, i32
  }
  func.func @transform_1(%arg0: i32) -> (i32, i32) {
    %c0_i32 = arith.constant 0 : i32
    %c0_i32_0 = arith.constant 0 : i32
    %c0_i32_1 = arith.constant 0 : i32
    return %c0_i32, %c0_i32_0 : i32, i32
  }
  func.func @transform_2(%arg0: i32) -> (i32, i32) {
    %c0_i32 = arith.constant 0 : i32
    %c0_i32_0 = arith.constant 0 : i32
    %c0_i32_1 = arith.constant 0 : i32
    return %c0_i32, %c0_i32_0 : i32, i32
  }
  func.func @transform_3(%arg0: i32) -> (i32, i32) {
    %c0_i32 = arith.constant 0 : i32
    %c0_i32_0 = arith.constant 0 : i32
    %c0_i32_1 = arith.constant 0 : i32
    return %c0_i32, %c0_i32_0 : i32, i32
  }
  func.func @transform_4(%arg0: i32) -> (i32, i32) {
    %c0_i32 = arith.constant 0 : i32
    %c0_i32_0 = arith.constant 0 : i32
    %c0_i32_1 = arith.constant 0 : i32
    return %c0_i32, %c0_i32_0 : i32, i32
  }
  func.func @transform_5(%arg0: i32) -> (i32, i32) {
    %c0_i32 = arith.constant 0 : i32
    %c0_i32_0 = arith.constant 0 : i32
    %c0_i32_1 = arith.constant 0 : i32
    return %c0_i32, %c0_i32_0 : i32, i32
  }
  func.func @transform_6(%arg0: i32) -> (i32, i32) {
    %c0_i32 = arith.constant 0 : i32
    %c0_i32_0 = arith.constant 0 : i32
    return %c0_i32, %arg0 : i32, i32
  }
  func.func @transform_7(%arg0: i32) -> (i32, i32) {
    %c0_i32 = arith.constant 0 : i32
    %c0_i32_0 = arith.constant 0 : i32
    return %c0_i32, %arg0 : i32, i32
  }
}

</mosaic_0001>

<bundles_post_ra>
// kernel: tpu_custom_call.1
= control target key start
LH: loop header
LB: loop body
LE: loop exit
PB: predicated region body
PF: predicated region fallthrough
CT: control target
= control target key end

     0   :  { %13 = vsyncpa [#allocation4], 0  ;;  %s18829_s0 = inlined_call_operand.vmem [shape: f32[16,512], index: 0, kind: input, shape index: {}]   ;;  %s18830_s1 = inlined_call_operand.vmem [shape: f32[32,16], index: 1, kind: input, shape index: {}]   ;;  %s18831_s2 = inlined_call_operand.vmem [shape: f32[32,1], index: 2, kind: input, shape index: {}]   ;;  %s18832_s3 = inlined_call_operand.vmem [shape: f32[16,32], index: 3, kind: input, shape index: {}]   ;;  %s18833_s4 = inlined_call_operand.vmem [shape: f32[16,1], index: 4, kind: input, shape index: {}]   ;;  %s18834_s5 = inlined_call_operand.vmem [shape: f32[32,1], index: 5, kind: input, shape index: {}]   ;;  %s18835_s6 = inlined_call_operand.hbm [shape: f32[16,512], index: 6, kind: output, shape index: {0}]   ;;  %s18836_s7 = inlined_call_operand.hbm [shape: f32[1,512], index: 7, kind: output, shape index: {1}]  }
   0x1   :  { %15 = vsyncpa [#allocation4 + $0x1], 0 }
   0x2   :  { %16 = vsyncpa [#allocation6], 0 }
   0x3   :  { %18 = vsyncpa [#allocation6 + $0x1], 0  ;;  %s16183_s24 = smov 0   ;;  %s16185_s25 = smov 0  }
   0x4   :  { %s16187_s26 = smov 0   ;;  %s16189_s27 = smov 0  }
   0x5 LB: > { %s16204_s28 = sadd.s32 4294967295, %s16135_s27   ;;  %s12920_s29 = sadd.s32 4294967294, %s16135_s27   ;;  %s16135_s27 = sphi %s16189_s27, %s18846_s27   ;;  %s16131_s26 = sphi %s16187_s26, %s18845_s26   ;;  %s16127_s25 = sphi %s16185_s25, %s18844_s25   ;;  %s16123_s24 = sphi %s16183_s24, %s18843_s24  }
   0x6   : > { %s16208_s30 = sadd.s32 1, %s16135_s27   ;;  %s31_s8 = sadd.s32 1, %s16131_s26 }
   0x7   : > { %s28_s9 = ssub.s32 %s16135_s27, %s16208_s30  ;;  %p38_p0 = scmp.ne.s32.totalorder %s16131_s26, %s16127_s25 }
   0x8   : > { %p29_p1 = scmp.eq.s32.totalorder %s28_s9, 0  ;;  %p39_p2 = scmp.eq.s32.totalorder %s16135_s27, 0 }
   0x9   : > { %p173_p3 = scmp.eq.s32.totalorder %s16204_s28, 1  ;;  %p178_p4 = scmp.ne.s32.totalorder %s16127_s25, %s16123_s24 }
   0xa   : > { %s16220_s10 = scalar_select %p29_p1, %s16131_s26, %s31_s8  }
   0xb   : > { %p40_p5 = por %p39_p2, %p38_p0  ;;  %p16222_p6 = por %p173_p3, %p38_p0 }
   0xc   : > { %p179_p7 = scmp.eq.s32.totalorder %s12920_s29, 1  ;;  %p18838_p9 = scmp.ge.s32.totalorder %s16135_s27, 2 }
   0xe   : > { %p16226_p8 = por %p179_p7, %p178_p4  ;;  %236 = sbr.rel (%p18838_p9) target bundleno = 25 (0x19), region = 36 }
  0x13   : > { %239 = sbr.rel (!%p40_p5) target bundleno = 25 (0x19), region = 40  ;;  %s241_s13 = sand.u32 (%p40_p5), 1, %s16131_s26  }
  0x14   : > { %s13322_s14 = sshll.u32 (%p40_p5), %s16135_s27, 4  ;;  %s12923_s15 = sshll.u32 (%p40_p5), %s241_s13, 5 }
  0x15   : > { %s246_s18 = scalar_lea.vmem (%p40_p5), %s18829_s0, %s13322_s14  ;;  %s243_s19 = scalar_lea.vmem (%p40_p5), [#allocation2], %s12923_s15 }
  0x16   : > { %v259_v0 = vld [vmem:[%s246_s18] sm:$0xff] (%p40_p5)  ;;  %v261_v1 = vld [vmem:[%s246_s18 + $0x8] sm:$0xff] (%p40_p5) }
  0x17   : > { %v263_v2 = vld [vmem:[%s246_s18 + $0x20] sm:$0xff] (%p40_p5)  ;;  %260 = vst [vmem:[%s243_s19] sm:$0xff] (%p40_p5), %v259_v0  ;;  %262 = vst [vmem:[%s243_s19 + $0x8] sm:$0xff] (%p40_p5), %v261_v1  ;;  %v265_v3 = vld [vmem:[%s246_s18 + $0x28] sm:$0xff] (%p40_p5) }
  0x18   : > { %264 = vst [vmem:[%s243_s19 + $0x10] sm:$0xff] %v263_v2  ;;  %266 = vst [vmem:[%s243_s19 + $0x18] sm:$0xff] %v265_v3 }
  0x19 PF: > { %p12926_p10 = scmp.ge.s32.totalorder %s16135_s27, 1  ;;  %p271_p11 = scmp.lt.s32.totalorder %s16135_s27, 3 }
  0x1b   : > { %p272_p12 = pnand %p12926_p10, %p271_p11 }
  0x1c   : > { %s16241_s20 = sand.u32 (!%p272_p12), 1, %s16127_s25   ;;  %s13324_s22 = sshll.u32 (!%p272_p12), %s16204_s28, 5 }
  0x1d   : > { %275 = sbr.rel (%p272_p12) target bundleno = 13647 (0x354f), region = 63  ;;  %s18837_s23 = sshll.u32 (!%p272_p12), %s16241_s20, 5 }
  0x1e   : > { %s16259_s14 = scalar_lea.vmem (!%p272_p12), [#allocation2], %s18837_s23  ;;  %s12929_s19 = sshll.u32 (!%p272_p12), %s16241_s20, 1 }
  0x1f   : > { %s313_s21 = scalar_lea.vmem (!%p272_p12), [#allocation5], %s12929_s19  ;;  %s12821_s9 = scalar_lea.hbm (!%p272_p12), %s18836_s7, %s13324_s22 }
  0x20   : > { %s12823_s13 = sshll.u32 (!%p272_p12), %s313_s21, 4  ;;  %s12793_s15 = scalar_lea.sflag (!%p272_p12), [#allocation6], %s16241_s20  ;;  %s12824_s13 = int_to_ptr.vmem [resolvable:$true] %s12823_s13 }
  0x21   : > { %s16138_s16 = smov (!%p272_p12), [#allocation5]  }
  0x22   : > { %v16246_v4 = vld [vmem:[%s18830_s1] sm:$0xff]  ;;  %vm387_vm0 = vcmask 130048   ;;  %v16137_v5 = vmov 0   ;;  %v326_v6 = vld [vmem:[%s18831_s2 + $0x18] sm:$0xff]  ;;  %v324_v7 = vld [vmem:[%s18831_s2 + $0x8] sm:$0xff]  ;;  %vm489_vm1 = vcmask 261120  }
  0x23   : > { %14097 = vmatprep.mubr.msk.f32.mxu0 %vm387_vm0, %v16246_v4  ;;  %15485 = vset.pattern.permute.xlu0 %v16137_v5  ;;  %v16262_v8 = vld [vmem:[%s16259_s14 + $0x10] sm:$0xff]  ;;  %v16265_v9 = vld [vmem:[%s16259_s14] sm:$0xff]  ;;  %v16278_v12 = vld [vmem:[%s18830_s1 + $0x8] sm:$0xff]  ;;  %s16049_s17 = sshll.u32 %s16138_s16, 4  ;;  %s16050_s17 = int_to_ptr.vmem [resolvable:$false] %s16049_s17 }
  0x24   : > { %344 = vperm.xlu0 %15485, %v326_v6   ;;  %15486 = vset.pattern.permute.xlu1 %v16137_v5  ;;  %v325_v10 = vld [vmem:[%s18831_s2 + $0x10] sm:$0xff]  ;;  %v323_v11 = vld [vmem:[%s18831_s2] sm:$0xff]  ;;  %v16281_v13 = vld [vmem:[%s16259_s14 + $0x18] sm:$0xff]  ;;  %s16051_s18 = scalar_lea.vmem %s16050_s17, 64  ;;  %p16052_p2 = scmp.lt.s32.totalorder %s12824_s13, %s16050_s17 }
  0x25   : > { %334 = vperm.xlu1 %15486, %v324_v7   ;;  %14093 = vmatprep.subr.mxu0 %v16262_v8  ;;  %v16287_v14 = vld [vmem:[%s18830_s1 + $0x10] sm:$0xff]  ;;  %v16291_v15 = vld [vmem:[%s16259_s14 + $0x8] sm:$0xff]  ;;  %v347_v17 = vld [vmem:[%s18833_s4] sm:$0xff] }
  0x26   : > { %14094 = vmatpush3.msra.mxu0 %v16262_v8  ;;  %v348_v16 = vld [vmem:[%s18833_s4 + $0x8] sm:$0xff]  ;;  %v16307_v18 = vld [vmem:[%s18830_s1 + $0x18] sm:$0xff]  ;;  %v359_v19 = vld [vmem:[%s18834_s5] sm:$0xff] }
  0x27   : > { %14095 = vmatprep.subr.mxu0 %v16265_v9  ;;  %v360_v20 = vld [vmem:[%s18834_s5 + $0x8] sm:$0xff]  ;;  %v361_v21 = vld [vmem:[%s18834_s5 + $0x10] sm:$0xff]  ;;  %v362_v22 = vld [vmem:[%s18834_s5 + $0x18] sm:$0xff] }
  0x28   : > { %339 = vperm.xlu0 %15485, %v325_v10   ;;  %14096 = vmatpush3.msra.mxu0 %v16265_v9  ;;  %v16339_v23 = vld [vmem:[%s18832_s3] sm:$0xff]  ;;  %v16374_v3 = vld [vmem:[%s18832_s3 + $0x8] sm:$0xff] }
  0x29   : > { %329 = vperm.xlu1 %15486, %v323_v11   ;;  %14098 = vmatmul.mubr.msk.f32.vlgmr.msra.gmra.mxu0 %vm387_vm0, %v16278_v12 }
  0x2a   : > { %14114 = vmatprep.subr.mxu0 %v16281_v13  ;;  %14100 = vmatprep.mubr.msk.f32.mxu0 %vm387_vm0, %v16287_v14 }
  0x2b   : > { %14115 = vmatpush3.msra.mxu0 %v16281_v13  ;;  %14111 = vmatprep.mubr.msk.f32.mxu1 %vm489_vm1, %v16339_v23 }
  0x2c   : > { %14116 = vmatprep.subr.mxu0 %v16291_v15  ;;  %356 = vperm.xlu0 %15485, %v348_v16  }
  0x2d   : > { %14117 = vmatpush3.msra.mxu0 %v16291_v15  ;;  %351 = vperm.xlu1 %15486, %v347_v17  }
  0x2e   : > { %14101 = vmatmul.mubr.msk.f32.gmra.mxu0 %vm387_vm0, %v16307_v18 }
  0x2f   : > { %14118 = vmatprep.mubr.msk.f32.mxu0 %vm387_vm0, %v16246_v4 }
  0x30   : > { %365 = vperm.xlu0 %15485, %v359_v19  }
  0x31   : > { %370 = vperm.xlu1 %15486, %v360_v20  }
  0x32   : > { %14119 = vmatmul.mubr.msk.f32.vlgmr.msra.gmra.mxu0 %vm387_vm0, %v16278_v12 }
  0x33   : > { %14121 = vmatprep.mubr.msk.f32.mxu0 %vm387_vm0, %v16287_v14 }
  0x34   : > { %375 = vperm.xlu0 %15485, %v361_v21  }
  0x35   : > { %380 = vperm.xlu1 %15486, %v362_v22  }
  0x36   : > { %14122 = vmatmul.mubr.msk.f32.gmra.mxu0 %vm387_vm0, %v16307_v18 }
  0x37   : > { %14139 = vmatprep.mubr.msk.f32.mxu0 %vm387_vm0, %v16246_v4 }
  0x9f   : > { %v16345_v25 = vpop.permute.xlu0 %344 }
  0xa0   : > { %v16343_v24 = vpop.permute.xlu1 %334 }
  0xa3   : > { %v16352_v33 = vpop.permute.xlu0 %339 }
  0xa4   : > { %v16348_v28 = vpop.permute.xlu1 %329 }
  0xa7   : > { %v16358_v42 = vpop.permute.xlu0 %356 }
  0xa8   : > { %v16361_v46 = vpop.permute.xlu1 %351 }
  0xab   : > { %v16363_v52 = vpop.permute.xlu0 %365 }
  0xac   : > { %v16365_v56 = vpop.permute.xlu1 %370 }
  0xaf   : > { %v16369_v2 = vpop.permute.xlu0 %375 }
  0xb0   : > { %v16377_v11 = vpop.permute.xlu1 %380 }
  0xe9   : > { %v14099_v26 = vpop.f32.mrf.mxu0 }
  0xea   : > { %v472_v27 = vadd.f32 %v14099_v26, %v16343_v24 }
  0xeb   : > { %v466_v29 = vpop.f32.mrf.mxu0 }
  0xec   : > { %15487 = vtanh.f32 %v472_v27  ;;  %v467_v30 = vadd.f32 %v466_v29, %v16348_v28 }
  0xee   : > { %v14102_v31 = vpop.f32.mrf.mxu0  ;;  %15489 = vtanh.f32 %v467_v30 }
  0xef   : > { %v482_v32 = vadd.f32 %v14102_v31, %v16345_v25 }
  0xf0   : > { %v476_v34 = vpop.f32.mrf.mxu0 }
  0xf1   : > { %15491 = vtanh.f32 %v482_v32  ;;  %v477_v35 = vadd.f32 %v476_v34, %v16352_v33 }
  0xf2   : > { %v14120_v36 = vpop.f32.mrf.mxu0 }
  0xf3   : > { %15493 = vtanh.f32 %v477_v35  ;;  %v664_v37 = vadd.f32 %v14120_v36, %v16343_v24 }
  0xf4   : > { %v658_v38 = vpop.f32.mrf.mxu0 }
  0xf5   : > { %15495 = vtanh.f32 %v664_v37  ;;  %v659_v39 = vadd.f32 %v658_v38, %v16348_v28 }
  0xf6   : > { %v14123_v40 = vpop.f32.mrf.mxu0 }
  0xf7   : > { %15497 = vtanh.f32 %v659_v39  ;;  %v674_v41 = vadd.f32 %v14123_v40, %v16345_v25 }
  0xf8   : > { %v668_v43 = vpop.f32.mrf.mxu0 }
  0xf9   : > { %15499 = vtanh.f32 %v674_v41  ;;  %v669_v44 = vadd.f32 %v668_v43, %v16352_v33  ;;  %v15488_v45 = vpop.eup %15487 }
  0xfa   : > { %v572_v47 = vmul.f32 %v15488_v45, %v15488_v45 }
  0xfb   : > { %15501 = vtanh.f32 %v669_v44  ;;  %v15490_v48 = vpop.eup %15489 }
  0xfc   : > { %v576_v49 = vsub.f32 1.0, %v572_v47  ;;  %v571_v50 = vmul.f32 %v15490_v48, %v15490_v48 }
  0xfe   : > { %v15492_v51 = vpop.eup %15491  ;;  %v575_v53 = vsub.f32 1.0, %v571_v50  ;;  %v580_v58 = vmul.f32 %v576_v49, %v16365_v56 }
  0xff   : > { %v574_v54 = vmul.f32 %v15492_v51, %v15492_v51  ;;  %14103 = vmatprep.subr.mxu1 %v15492_v51 }
 0x100   : > { %v15494_v55 = vpop.eup %15493  ;;  %14104 = vmatpush3.msra.mxu1 %v15492_v51  ;;  %v579_v57 = vmul.f32 %v575_v53, %v16363_v52 }
 0x101   : > { %v573_v59 = vmul.f32 %v15494_v55, %v15494_v55  ;;  %14105 = vmatprep.subr.mxu1 %v15494_v55  ;;  %v578_v62 = vsub.f32 1.0, %v574_v54 }
 0x102   : > { %v15496_v60 = vpop.eup %15495  ;;  %14106 = vmatpush3.msra.mxu1 %v15494_v55  ;;  %v583_v61 = vadd.f32 %v580_v58, %v579_v57 }
 0x103   : > { %v577_v63 = vsub.f32 1.0, %v573_v59  ;;  %v757_v0 = vmul.f32 %v15496_v60, %v15496_v60  ;;  %14107 = vmatprep.subr.mxu1 %v15488_v45  ;;  %v582_v20 = vmul.f32 %v578_v62, %v16377_v11 }
 0x104   : > { %v15498_v1 = vpop.eup %15497  ;;  %14108 = vmatpush3.msra.mxu1 %v15488_v45 }
 0x105   : > { %v581_v5 = vmul.f32 %v577_v63, %v16369_v2  ;;  %v761_v6 = vsub.f32 1.0, %v757_v0  ;;  %v756_v7 = vmul.f32 %v15498_v1, %v15498_v1  ;;  %14109 = vmatprep.subr.mxu1 %v15490_v48 }
 0x106   : > { %v15500_v10 = vpop.eup %15499  ;;  %14110 = vmatpush3.msra.mxu1 %v15490_v48 }
 0x107   : > { %v584_v16 = vadd.f32 %v583_v61, %v581_v5  ;;  %v760_v17 = vsub.f32 1.0, %v756_v7  ;;  %v759_v19 = vmul.f32 %v15500_v10, %v15500_v10  ;;  %14112 = vmatmul.mubr.msk.f32.vlgmr.msra.gmra.mxu1 %vm489_vm1, %v16374_v3  ;;  %14124 = vmatprep.subr.mxu1 %v15500_v10  ;;  %v765_v22 = vmul.f32 %v761_v6, %v16365_v56 }
 0x108   : > { %v15502_v21 = vpop.eup %15501  ;;  %14125 = vmatpush3.msra.mxu1 %v15500_v10  ;;  %14132 = vmatprep.mubr.msk.f32.mxu1 %vm489_vm1, %v16339_v23 }
 0x109   : > { %v764_v26 = vmul.f32 %v760_v17, %v16363_v52  ;;  %v758_v27 = vmul.f32 %v15502_v21, %v15502_v21  ;;  %14126 = vmatprep.subr.mxu1 %v15502_v21  ;;  %v16386_v29 = vadd.f32 %v584_v16, %v582_v20  ;;  %v763_v31 = vsub.f32 1.0, %v759_v19 }
 0x10a   : > { %14127 = vmatpush3.msra.mxu1 %v15502_v21 }
 0x10b   : > { %v768_v30 = vadd.f32 %v765_v22, %v764_v26  ;;  %v762_v32 = vsub.f32 1.0, %v758_v27  ;;  %14128 = vmatprep.subr.mxu1 %v15496_v60  ;;  %v767_v35 = vmul.f32 %v763_v31, %v16377_v11 }
 0x10c   : > { %14129 = vmatpush3.msra.mxu1 %v15496_v60 }
 0x10d   : > { %v766_v34 = vmul.f32 %v762_v32, %v16369_v2  ;;  %14130 = vmatprep.subr.mxu1 %v15498_v1 }
 0x10e   : > { %14131 = vmatpush3.msra.mxu1 %v15498_v1 }
 0x10f   : > { %v769_v36 = vadd.f32 %v768_v30, %v766_v34  ;;  %14133 = vmatmul.mubr.msk.f32.vlgmr.msra.gmra.mxu1 %vm489_vm1, %v16374_v3 }
 0x110   : > { %14153 = vmatprep.mubr.msk.f32.mxu1 %vm489_vm1, %v16339_v23 }
 0x111   : > { %v16394_v37 = vadd.f32 %v769_v36, %v767_v35 }
 0x1c7   : > { %v14113_v38 = vpop.f32.mrf.mxu1 }
 0x1c8   : > { %v16397_v39 = vadd.f32 %v14113_v38, %v16358_v42 }
 0x1c9   : > { %v562_v40 = vpop.f32.mrf.mxu1 }
 0x1ca   : > { %v778_v41 = vmul.f32 0.0625, %v16397_v39  ;;  %v16401_v43 = vadd.f32 %v562_v40, %v16361_v46 }
 0x1cc   : > { %v777_v44 = vmul.f32 0.0625, %v16401_v43  ;;  %v780_v45 = vadd.f32 %v778_v41, %v16262_v8 }
 0x1ce   : > { %14135 = vmatprep.subr.mxu0 %v780_v45  ;;  %v779_v47 = vadd.f32 %v777_v44, %v16265_v9  ;;  %v586_v44 = vrot.slane %v16386_v29, 4 }
 0x1cf   : > { %v14134_v48 = vpop.f32.mrf.mxu1  ;;  %14136 = vmatpush3.msra.mxu0 %v780_v45 }
 0x1d0   : > { %v16407_v49 = vadd.f32 %v14134_v48, %v16358_v42  ;;  %14137 = vmatprep.subr.mxu0 %v779_v47 }
 0x1d1   : > { %v747_v50 = vpop.f32.mrf.mxu1  ;;  %14138 = vmatpush3.msra.mxu0 %v779_v47 }
 0x1d2   : > { %v967_v51 = vmul.f32 0.0625, %v16407_v49  ;;  %v16411_v53 = vadd.f32 %v747_v50, %v16361_v46  ;;  %14140 = vmatmul.mubr.msk.f32.vlgmr.msra.gmra.mxu0 %vm387_vm0, %v16278_v12 }
 0x1d3   : > { %14142 = vmatprep.mubr.msk.f32.mxu0 %vm387_vm0, %v16287_v14 }
 0x1d4   : > { %v966_v54 = vmul.f32 0.0625, %v16411_v53  ;;  %v969_v55 = vadd.f32 %v967_v51, %v16281_v13 }
 0x1d6   : > { %14143 = vmatmul.mubr.msk.f32.gmra.mxu0 %vm387_vm0, %v16307_v18  ;;  %14156 = vmatprep.subr.mxu0 %v969_v55  ;;  %v968_v57 = vadd.f32 %v966_v54, %v16291_v15 }
 0x1d7   : > { %14157 = vmatpush3.msra.mxu0 %v969_v55  ;;  %14160 = vmatprep.mubr.msk.f32.mxu0 %vm387_vm0, %v16246_v4 }
 0x1d8   : > { %14158 = vmatprep.subr.mxu0 %v968_v57 }
 0x1d9   : > { %14159 = vmatpush3.msra.mxu0 %v968_v57 }
 0x1da   : > { %14161 = vmatmul.mubr.msk.f32.vlgmr.msra.gmra.mxu0 %vm387_vm0, %v16278_v12 }
 0x1db   : > { %14163 = vmatprep.mubr.msk.f32.mxu0 %vm387_vm0, %v16287_v14 }
 0x1de   : > { %14164 = vmatmul.mubr.msk.f32.gmra.mxu0 %vm387_vm0, %v16307_v18 }
 0x1df   : > { %14181 = vmatprep.mubr.msk.f32.mxu0 %vm387_vm0, %v16246_v4 }
 0x292   : > { %v14141_v58 = vpop.f32.mrf.mxu0 }
 0x293   : > { %v853_v59 = vadd.f32 %v14141_v58, %v16343_v24 }
 0x294   : > { %v847_v60 = vpop.f32.mrf.mxu0 }
 0x295   : > { %15503 = vtanh.f32 %v853_v59  ;;  %v848_v61 = vadd.f32 %v847_v60, %v16348_v28  ;;  %v587_v59 = vadd.f32 %v586_v44, %v16386_v29 }
 0x296   : > { %v14144_v62 = vpop.f32.mrf.mxu0 }
 0x297   : > { %15505 = vtanh.f32 %v848_v61  ;;  %v863_v63 = vadd.f32 %v14144_v62, %v16345_v25 }
 0x298   : > { %v857_v0 = vpop.f32.mrf.mxu0 }
 0x299   : > { %15507 = vtanh.f32 %v863_v63  ;;  %v858_v1 = vadd.f32 %v857_v0, %v16352_v33 }
 0x29a   : > { %v14162_v5 = vpop.f32.mrf.mxu0 }
 0x29b   : > { %15509 = vtanh.f32 %v858_v1  ;;  %v1042_v6 = vadd.f32 %v14162_v5, %v16343_v24 }
 0x29c   : > { %v1036_v7 = vpop.f32.mrf.mxu0 }
 0x29d   : > { %15511 = vtanh.f32 %v1042_v6  ;;  %v1037_v10 = vadd.f32 %v1036_v7, %v16348_v28  ;;  %v588_v7 = vrot.slane %v587_v59, 2 }
 0x29e   : > { %v14165_v16 = vpop.f32.mrf.mxu0 }
 0x29f   : > { %15513 = vtanh.f32 %v1037_v10  ;;  %v1052_v17 = vadd.f32 %v14165_v16, %v16345_v25  ;;  %v771_v10 = vrot.slane %v16394_v37, 4 }
 0x2a0   : > { %v1046_v19 = vpop.f32.mrf.mxu0 }
 0x2a1   : > { %15515 = vtanh.f32 %v1052_v17  ;;  %v1047_v20 = vadd.f32 %v1046_v19, %v16352_v33 }
 0x2a2   : > { %v15504_v21 = vpop.eup %15503 }
 0x2a3   : > { %v946_v22 = vmul.f32 %v15504_v21, %v15504_v21  ;;  %15517 = vtanh.f32 %v1047_v20 }
 0x2a4   : > { %v15506_v26 = vpop.eup %15505 }
 0x2a5   : > { %v950_v27 = vsub.f32 1.0, %v946_v22  ;;  %v945_v30 = vmul.f32 %v15506_v26, %v15506_v26 }
 0x2a6   : > { %v15508_v31 = vpop.eup %15507 }
 0x2a7   : > { %v949_v32 = vsub.f32 1.0, %v945_v30  ;;  %v948_v34 = vmul.f32 %v15508_v31, %v15508_v31  ;;  %14145 = vmatprep.subr.mxu1 %v15508_v31  ;;  %v954_v36 = vmul.f32 %v950_v27, %v16365_v56 }
 0x2a8   : > { %v15510_v35 = vpop.eup %15509  ;;  %14146 = vmatpush3.msra.mxu1 %v15508_v31  ;;  %v772_v31 = vadd.f32 %v771_v10, %v16394_v37 }
 0x2a9   : > { %v953_v38 = vmul.f32 %v949_v32, %v16363_v52  ;;  %v947_v40 = vmul.f32 %v15510_v35, %v15510_v35  ;;  %14147 = vmatprep.subr.mxu1 %v15510_v35  ;;  %v952_v47 = vsub.f32 1.0, %v948_v34 }
 0x2aa   : > { %v15512_v41 = vpop.eup %15511  ;;  %14148 = vmatpush3.msra.mxu1 %v15510_v35 }
 0x2ab   : > { %v957_v45 = vadd.f32 %v954_v36, %v953_v38  ;;  %v951_v48 = vsub.f32 1.0, %v947_v40  ;;  %v1135_v50 = vmul.f32 %v15512_v41, %v15512_v41  ;;  %14149 = vmatprep.subr.mxu1 %v15504_v21  ;;  %v956_v60 = vmul.f32 %v952_v47, %v16377_v11 }
 0x2ac   : > { %v15514_v51 = vpop.eup %15513  ;;  %14150 = vmatpush3.msra.mxu1 %v15504_v21  ;;  %v773_v38 = vrot.slane %v772_v31, 2 }
 0x2ad   : > { %v955_v54 = vmul.f32 %v951_v48, %v16369_v2  ;;  %v1139_v55 = vsub.f32 1.0, %v1135_v50  ;;  %v1134_v57 = vmul.f32 %v15514_v51, %v15514_v51  ;;  %14151 = vmatprep.subr.mxu1 %v15506_v26 }
 0x2ae   : > { %v15516_v58 = vpop.eup %15515  ;;  %14152 = vmatpush3.msra.mxu1 %v15506_v26  ;;  %v589_v26 = vadd.f32 %v588_v7, %v587_v59  ;;  %v774_v48 = vadd.f32 %v773_v38, %v772_v31 }
 0x2af   : > { %v958_v61 = vadd.f32 %v957_v45, %v955_v54  ;;  %v1138_v62 = vsub.f32 1.0, %v1134_v57  ;;  %v1137_v63 = vmul.f32 %v15516_v58, %v15516_v58  ;;  %14154 = vmatmul.mubr.msk.f32.vlgmr.msra.gmra.mxu1 %vm489_vm1, %v16374_v3  ;;  %14166 = vmatprep.subr.mxu1 %v15516_v58  ;;  %v1143_v1 = vmul.f32 %v1139_v55, %v16365_v56 }
 0x2b0   : > { %v15518_v0 = vpop.eup %15517  ;;  %14167 = vmatpush3.msra.mxu1 %v15516_v58  ;;  %14174 = vmatprep.mubr.msk.f32.mxu1 %vm489_vm1, %v16339_v23  ;;  %v590_v36 = vrot.slane %v589_v26, 1  ;;  %v775_v37 = vrot.slane %v774_v48, 1 }
 0x2b1   : > { %v1142_v5 = vmul.f32 %v1138_v62, %v16363_v52  ;;  %v1136_v6 = vmul.f32 %v15518_v0, %v15518_v0  ;;  %14168 = vmatprep.subr.mxu1 %v15518_v0  ;;  %v959_v29 = vadd.f32 %v958_v61, %v956_v60  ;;  %v1141_v17 = vsub.f32 1.0, %v1137_v63 }
 0x2b2   : > { %14169 = vmatpush3.msra.mxu1 %v15518_v0  ;;  %v591_v47 = vadd.f32 %v590_v36, %v589_v26  ;;  %v776_v59 = vadd.f32 %v775_v37, %v774_v48 }
 0x2b3   : > { %v1146_v16 = vadd.f32 %v1143_v1, %v1142_v5  ;;  %v1140_v19 = vsub.f32 1.0, %v1136_v6  ;;  %14170 = vmatprep.subr.mxu1 %v15512_v41  ;;  %v960_v20 = vrot.slane %v959_v29, 4  ;;  %v1145_v27 = vmul.f32 %v1141_v17, %v16377_v11 }
 0x2b4   : > { %14171 = vmatpush3.msra.mxu1 %v15512_v41 }
 0x2b5   : > { %v1144_v21 = vmul.f32 %v1140_v19, %v16369_v2  ;;  %14172 = vmatprep.subr.mxu1 %v15514_v51  ;;  %v961_v22 = vadd.f32 %v960_v20, %v959_v29 }
 0x2b6   : > { %14173 = vmatpush3.msra.mxu1 %v15514_v51 }
 0x2b7   : > { %v1147_v30 = vadd.f32 %v1146_v16, %v1144_v21  ;;  %14175 = vmatmul.mubr.msk.f32.vlgmr.msra.gmra.mxu1 %vm489_vm1, %v16374_v3  ;;  %v962_v32 = vrot.slane %v961_v22, 2 }
 0x2b8   : > { %14195 = vmatprep.mubr.msk.f32.mxu1 %vm489_vm1, %v16339_v23 }
 0x2b9   : > { %v963_v34 = vadd.f32 %v962_v32, %v961_v22  ;;  %v1148_v35 = vadd.f32 %v1147_v30, %v1145_v27 }
 0x2bb   : > { %v964_v40 = vrot.slane %v963_v34, 1  ;;  %v1149_v41 = vrot.slane %v1148_v35, 4 }
 0x2bd   : > { %v965_v44 = vadd.f32 %v964_v40, %v963_v34  ;;  %v1150_v45 = vadd.f32 %v1149_v41, %v1148_v35 }
 0x2bf   : > { %v1151_v50 = vrot.slane %v1150_v45, 2  ;;  %v1939_v51 = vmul.f32 2.0, %v965_v44 }
 0x2c1   : > { %v1152_v54 = vadd.f32 %v1151_v50, %v1150_v45  ;;  %v16460_v55 = vadd.f32 %v1939_v51, %v591_v47 }
 0x2c3   : > { %v1153_v57 = vrot.slane %v1152_v54, 1 }
 0x2c5   : > { %v1154_v58 = vadd.f32 %v1153_v57, %v1152_v54 }
 0x2c7   : > { %v1946_v60 = vmul.f32 2.0, %v1154_v58 }
 0x2c9   : > { %v16462_v61 = vadd.f32 %v1946_v60, %v776_v59 }
 0x36f   : > { %v14155_v62 = vpop.f32.mrf.mxu1 }
 0x370   : > { %v16465_v63 = vadd.f32 %v14155_v62, %v16358_v42 }
 0x371   : > { %v936_v0 = vpop.f32.mrf.mxu1 }
 0x372   : > { %v1156_v1 = vmul.f32 0.0625, %v16465_v63  ;;  %v16469_v5 = vadd.f32 %v936_v0, %v16361_v46 }
 0x374   : > { %v1155_v6 = vmul.f32 0.0625, %v16469_v5  ;;  %v1158_v29 = vadd.f32 %v1156_v1, %v16262_v8 }
 0x376   : > { %14177 = vmatprep.subr.mxu0 %v1158_v29  ;;  %v1157_v7 = vadd.f32 %v1155_v6, %v16265_v9 }
 0x377   : > { %v14176_v10 = vpop.f32.mrf.mxu1  ;;  %14178 = vmatpush3.msra.mxu0 %v1158_v29 }
 0x378   : > { %v16475_v16 = vadd.f32 %v14176_v10, %v16358_v42  ;;  %14179 = vmatprep.subr.mxu0 %v1157_v7 }
 0x379   : > { %v1125_v17 = vpop.f32.mrf.mxu1  ;;  %14180 = vmatpush3.msra.mxu0 %v1157_v7 }
 0x37a   : > { %v1345_v19 = vmul.f32 0.0625, %v16475_v16  ;;  %v16479_v20 = vadd.f32 %v1125_v17, %v16361_v46  ;;  %14182 = vmatmul.mubr.msk.f32.vlgmr.msra.gmra.mxu0 %vm387_vm0, %v16278_v12 }
 0x37b   : > { %14184 = vmatprep.mubr.msk.f32.mxu0 %vm387_vm0, %v16287_v14 }
 0x37c   : > { %v1344_v21 = vmul.f32 0.0625, %v16479_v20  ;;  %v1347_v22 = vadd.f32 %v1345_v19, %v16281_v13 }
 0x37e   : > { %14185 = vmatmul.mubr.msk.f32.gmra.mxu0 %vm387_vm0, %v16307_v18  ;;  %14198 = vmatprep.subr.mxu0 %v1347_v22  ;;  %v1346_v26 = vadd.f32 %v1344_v21, %v16291_v15 }
 0x37f   : > { %14199 = vmatpush3.msra.mxu0 %v1347_v22  ;;  %14202 = vmatprep.mubr.msk.f32.mxu0 %vm387_vm0, %v16246_v4 }
 0x380   : > { %14200 = vmatprep.subr.mxu0 %v1346_v26 }
 0x381   : > { %14201 = vmatpush3.msra.mxu0 %v1346_v26 }
 0x382   : > { %14203 = vmatmul.mubr.msk.f32.vlgmr.msra.gmra.mxu0 %vm387_vm0, %v16278_v12 }
 0x383   : > { %14205 = vmatprep.mubr.msk.f32.mxu0 %vm387_vm0, %v16287_v14 }
 0x386   : > { %14206 = vmatmul.mubr.msk.f32.gmra.mxu0 %vm387_vm0, %v16307_v18 }
 0x387   : > { %14223 = vmatprep.mubr.msk.f32.mxu0 %vm387_vm0, %v16246_v4 }
 0x43a   : > { %v14183_v27 = vpop.f32.mrf.mxu0 }
 0x43b   : > { %v1231_v30 = vadd.f32 %v14183_v27, %v16343_v24 }
 0x43c   : > { %v1225_v31 = vpop.f32.mrf.mxu0 }
 0x43d   : > { %15519 = vtanh.f32 %v1231_v30  ;;  %v1226_v32 = vadd.f32 %v1225_v31, %v16348_v28 }
 0x43e   : > { %v14186_v34 = vpop.f32.mrf.mxu0 }
 0x43f   : > { %15521 = vtanh.f32 %v1226_v32  ;;  %v1241_v35 = vadd.f32 %v14186_v34, %v16345_v25 }
 0x440   : > { %v1235_v36 = vpop.f32.mrf.mxu0 }
 0x441   : > { %15523 = vtanh.f32 %v1241_v35  ;;  %v1236_v38 = vadd.f32 %v1235_v36, %v16352_v33 }
 0x442   : > { %v14204_v40 = vpop.f32.mrf.mxu0 }
 0x443   : > { %15525 = vtanh.f32 %v1236_v38  ;;  %v1420_v41 = vadd.f32 %v14204_v40, %v16343_v24 }
 0x444   : > { %v1414_v44 = vpop.f32.mrf.mxu0 }
 0x445   : > { %15527 = vtanh.f32 %v1420_v41  ;;  %v1415_v45 = vadd.f32 %v1414_v44, %v16348_v28 }
 0x446   : > { %v14207_v47 = vpop.f32.mrf.mxu0 }
 0x447   : > { %15529 = vtanh.f32 %v1415_v45  ;;  %v1430_v48 = vadd.f32 %v14207_v47, %v16345_v25 }
 0x448   : > { %v1424_v50 = vpop.f32.mrf.mxu0 }
 0x449   : > { %15531 = vtanh.f32 %v1430_v48  ;;  %v1425_v51 = vadd.f32 %v1424_v50, %v16352_v33 }
 0x44a   : > { %v15520_v54 = vpop.eup %15519 }
 0x44b   : > { %v1324_v37 = vmul.f32 %v15520_v54, %v15520_v54  ;;  %15533 = vtanh.f32 %v1425_v51 }
 0x44c   : > { %v15522_v57 = vpop.eup %15521 }
 0x44d   : > { %v1328_v58 = vsub.f32 1.0, %v1324_v37  ;;  %v1323_v59 = vmul.f32 %v15522_v57, %v15522_v57 }
 0x44e   : > { %v15524_v60 = vpop.eup %15523 }
 0x44f   : > { %v1327_v62 = vsub.f32 1.0, %v1323_v59  ;;  %v1326_v0 = vmul.f32 %v15524_v60, %v15524_v60  ;;  %14187 = vmatprep.subr.mxu1 %v15524_v60  ;;  %v1332_v6 = vmul.f32 %v1328_v58, %v16365_v56 }
 0x450   : > { %v15526_v1 = vpop.eup %15525  ;;  %14188 = vmatpush3.msra.mxu1 %v15524_v60 }
 0x451   : > { %v1331_v29 = vmul.f32 %v1327_v62, %v16363_v52  ;;  %v1325_v7 = vmul.f32 %v15526_v1, %v15526_v1  ;;  %14189 = vmatprep.subr.mxu1 %v15526_v1  ;;  %v1330_v19 = vsub.f32 1.0, %v1326_v0 }
 0x452   : > { %v15528_v10 = vpop.eup %15527  ;;  %14190 = vmatpush3.msra.mxu1 %v15526_v1 }
 0x453   : > { %v1335_v17 = vadd.f32 %v1332_v6, %v1331_v29  ;;  %v1329_v21 = vsub.f32 1.0, %v1325_v7  ;;  %v1513_v22 = vmul.f32 %v15528_v10, %v15528_v10  ;;  %14191 = vmatprep.subr.mxu1 %v15520_v54  ;;  %v1334_v34 = vmul.f32 %v1330_v19, %v16377_v11 }
 0x454   : > { %v15530_v26 = vpop.eup %15529  ;;  %14192 = vmatpush3.msra.mxu1 %v15520_v54 }
 0x455   : > { %v1333_v27 = vmul.f32 %v1329_v21, %v16369_v2  ;;  %v1517_v30 = vsub.f32 1.0, %v1513_v22  ;;  %v1512_v31 = vmul.f32 %v15530_v26, %v15530_v26  ;;  %14193 = vmatprep.subr.mxu1 %v15522_v57 }
 0x456   : > { %v15532_v32 = vpop.eup %15531  ;;  %14194 = vmatpush3.msra.mxu1 %v15522_v57 }
 0x457   : > { %v1516_v35 = vsub.f32 1.0, %v1512_v31  ;;  %v1515_v36 = vmul.f32 %v15532_v32, %v15532_v32  ;;  %14196 = vmatmul.mubr.msk.f32.vlgmr.msra.gmra.mxu1 %vm489_vm1, %v16374_v3  ;;  %14208 = vmatprep.subr.mxu1 %v15532_v32  ;;  %v1336_v38 = vadd.f32 %v1335_v17, %v1333_v27  ;;  %v1521_v41 = vmul.f32 %v1517_v30, %v16365_v56 }
 0x458   : > { %v15534_v40 = vpop.eup %15533  ;;  %14209 = vmatpush3.msra.mxu1 %v15532_v32  ;;  %14216 = vmatprep.mubr.msk.f32.mxu1 %vm489_vm1, %v16339_v23  ;;  %v1912_v31 = vmul.f32 2.0, %v16465_v63  ;;  %v1911_v32 = vmul.f32 2.0, %v16469_v5  ;;  %v1926_v63 = vmul.f32 2.0, %v16475_v16 }
 0x459   : > { %v1520_v44 = vmul.f32 %v1516_v35, %v16363_v52  ;;  %v1514_v45 = vmul.f32 %v15534_v40, %v15534_v40  ;;  %14210 = vmatprep.subr.mxu1 %v15534_v40  ;;  %v1337_v47 = vadd.f32 %v1336_v38, %v1334_v34  ;;  %v1519_v50 = vsub.f32 1.0, %v1515_v36 }
 0x45a   : > { %14211 = vmatpush3.msra.mxu1 %v15534_v40  ;;  %v1914_v38 = vadd.f32 %v1912_v31, %v16397_v39  ;;  %v1925_v39 = vmul.f32 2.0, %v16479_v20 }
 0x45b   : > { %v1524_v48 = vadd.f32 %v1521_v41, %v1520_v44  ;;  %v1518_v51 = vsub.f32 1.0, %v1514_v45  ;;  %14212 = vmatprep.subr.mxu1 %v15528_v10  ;;  %v1338_v54 = vrot.slane %v1337_v47, 4  ;;  %v1523_v58 = vmul.f32 %v1519_v50, %v16377_v11 }
 0x45c   : > { %14213 = vmatpush3.msra.mxu1 %v15528_v10  ;;  %v1913_v44 = vadd.f32 %v1911_v32, %v16401_v43 }
 0x45d   : > { %v1522_v37 = vmul.f32 %v1518_v51, %v16369_v2  ;;  %14214 = vmatprep.subr.mxu1 %v15530_v26  ;;  %v1339_v57 = vadd.f32 %v1338_v54, %v1337_v47 }
 0x45e   : > { %14215 = vmatpush3.msra.mxu1 %v15530_v26 }
 0x45f   : > { %14217 = vmatmul.mubr.msk.f32.vlgmr.msra.gmra.mxu1 %vm489_vm1, %v16374_v3  ;;  %v1340_v59 = vrot.slane %v1339_v57, 2  ;;  %v1525_v60 = vadd.f32 %v1524_v48, %v1522_v37 }
 0x460   : > { %14237 = vmatprep.mubr.msk.f32.mxu1 %vm489_vm1, %v16339_v23 }
 0x461   : > { %v1341_v62 = vadd.f32 %v1340_v59, %v1339_v57  ;;  %v1526_v0 = vadd.f32 %v1525_v60, %v1523_v58 }
 0x463   : > { %v1342_v1 = vrot.slane %v1341_v62, 1  ;;  %v1527_v6 = vrot.slane %v1526_v0, 4 }
 0x465   : > { %v1343_v29 = vadd.f32 %v1342_v1, %v1341_v62  ;;  %v1528_v7 = vadd.f32 %v1527_v6, %v1526_v0 }
 0x467   : > { %v1529_v10 = vrot.slane %v1528_v7, 2  ;;  %v1941_v17 = vmul.f32 2.0, %v1343_v29 }
 0x469   : > { %v1530_v19 = vadd.f32 %v1529_v10, %v1528_v7  ;;  %v16525_v21 = vadd.f32 %v1941_v17, %v16460_v55 }
 0x46b   : > { %v1531_v22 = vrot.slane %v1530_v19, 1 }
 0x46d   : > { %v1532_v26 = vadd.f32 %v1531_v22, %v1530_v19 }
 0x46f   : > { %v1948_v27 = vmul.f32 2.0, %v1532_v26 }
 0x471   : > { %v16528_v30 = vadd.f32 %v1948_v27, %v16462_v61 }
 0x517   : > { %v14197_v34 = vpop.f32.mrf.mxu1 }
 0x518   : > { %v1320_v35 = vadd.f32 %v14197_v34, %v16358_v42 }
 0x519   : > { %v1314_v36 = vpop.f32.mrf.mxu1 }
 0x51a   : > { %v1534_v40 = vmul.f32 0.125, %v1320_v35  ;;  %v1916_v41 = vmul.f32 2.0, %v1320_v35  ;;  %v1315_v55 = vadd.f32 %v1314_v36, %v16361_v46 }
 0x51c   : > { %v1533_v45 = vmul.f32 0.125, %v1315_v55  ;;  %v1915_v47 = vmul.f32 2.0, %v1315_v55  ;;  %v1536_v61 = vadd.f32 %v1534_v40, %v16262_v8  ;;  %v16537_v48 = vadd.f32 %v1916_v41, %v1914_v38 }
 0x51d   : > { %v1928_v8 = vadd.f32 %v1926_v63, %v16407_v49 }
 0x51e   : > { %14219 = vmatprep.subr.mxu0 %v1536_v61  ;;  %v1535_v5 = vadd.f32 %v1533_v45, %v16265_v9  ;;  %v16541_v50 = vadd.f32 %v1915_v47, %v1913_v44  ;;  %v1927_v9 = vadd.f32 %v1925_v39, %v16411_v53 }
 0x51f   : > { %v14218_v51 = vpop.f32.mrf.mxu1  ;;  %14220 = vmatpush3.msra.mxu0 %v1536_v61 }
 0x520   : > { %v1509_v54 = vadd.f32 %v14218_v51, %v16358_v42  ;;  %14221 = vmatprep.subr.mxu0 %v1535_v5 }
 0x521   : > { %v1503_v43 = vpop.f32.mrf.mxu1  ;;  %14222 = vmatpush3.msra.mxu0 %v1535_v5 }
 0x522   : > { %v1723_v37 = vmul.f32 0.125, %v1509_v54  ;;  %v1930_v57 = vmul.f32 2.0, %v1509_v54  ;;  %v1504_v16 = vadd.f32 %v1503_v43, %v16361_v46  ;;  %14224 = vmatmul.mubr.msk.f32.vlgmr.msra.gmra.mxu0 %vm387_vm0, %v16278_v12 }
 0x523   : > { %14226 = vmatprep.mubr.msk.f32.mxu0 %vm387_vm0, %v16287_v14 }
 0x524   : > { %v1722_v20 = vmul.f32 0.125, %v1504_v16  ;;  %v1929_v58 = vmul.f32 2.0, %v1504_v16  ;;  %v1725_v59 = vadd.f32 %v1723_v37, %v16281_v13  ;;  %v16553_v60 = vadd.f32 %v1930_v57, %v1928_v8 }
 0x526   : > { %14227 = vmatmul.mubr.msk.f32.gmra.mxu0 %vm387_vm0, %v16307_v18  ;;  %14240 = vmatprep.subr.mxu0 %v1725_v59  ;;  %v1724_v49 = vadd.f32 %v1722_v20, %v16291_v15  ;;  %v16558_v62 = vadd.f32 %v1929_v58, %v1927_v9 }
 0x527   : > { %14241 = vmatpush3.msra.mxu0 %v1725_v59  ;;  %14244 = vmatprep.mubr.msk.f32.mxu0 %vm387_vm0, %v16246_v4 }
 0x528   : > { %14242 = vmatprep.subr.mxu0 %v1724_v49 }
 0x529   : > { %14243 = vmatpush3.msra.mxu0 %v1724_v49 }
 0x52a   : > { %14245 = vmatmul.mubr.msk.f32.vlgmr.msra.gmra.mxu0 %vm387_vm0, %v16278_v12 }
 0x52b   : > { %14247 = vmatprep.mubr.msk.f32.mxu0 %vm387_vm0, %v16287_v14 }
 0x52e   : > { %14248 = vmatmul.mubr.msk.f32.gmra.mxu0 %vm387_vm0, %v16307_v18 }
 0x52f   : > { %14265 = vmatprep.mubr.msk.f32.mxu0 %vm387_vm0, %v16246_v4 }
 0x5e2   : > { %v14225_v13 = vpop.f32.mrf.mxu0 }
 0x5e3   : > { %v1609_v15 = vadd.f32 %v14225_v13, %v16343_v24 }
 0x5e4   : > { %v1603_v53 = vpop.f32.mrf.mxu0 }
 0x5e5   : > { %15535 = vtanh.f32 %v1609_v15  ;;  %v1604_v0 = vadd.f32 %v1603_v53, %v16348_v28 }
 0x5e6   : > { %v14228_v1 = vpop.f32.mrf.mxu0 }
 0x5e7   : > { %15537 = vtanh.f32 %v1604_v0  ;;  %v1619_v12 = vadd.f32 %v14228_v1, %v16345_v25 }
 0x5e8   : > { %v1613_v6 = vpop.f32.mrf.mxu0 }
 0x5e9   : > { %15539 = vtanh.f32 %v1619_v12  ;;  %v1614_v14 = vadd.f32 %v1613_v6, %v16352_v33 }
 0x5ea   : > { %v14246_v29 = vpop.f32.mrf.mxu0 }
 0x5eb   : > { %15541 = vtanh.f32 %v1614_v14  ;;  %v1798_v18 = vadd.f32 %v14246_v29, %v16343_v24 }
 0x5ec   : > { %v1792_v4 = vpop.f32.mrf.mxu0 }
 0x5ed   : > { %15543 = vtanh.f32 %v1798_v18  ;;  %v1793_v7 = vadd.f32 %v1792_v4, %v16348_v28 }
 0x5ee   : > { %v14249_v10 = vpop.f32.mrf.mxu0 }
 0x5ef   : > { %15545 = vtanh.f32 %v1793_v7  ;;  %v1808_v17 = vadd.f32 %v14249_v10, %v16345_v25 }
 0x5f0   : > { %v1802_v19 = vpop.f32.mrf.mxu0 }
 0x5f1   : > { %15547 = vtanh.f32 %v1808_v17  ;;  %v1803_v22 = vadd.f32 %v1802_v19, %v16352_v33 }
 0x5f2   : > { %v15536_v26 = vpop.eup %15535 }
 0x5f3   : > { %v1702_v27 = vmul.f32 %v15536_v26, %v15536_v26  ;;  %15549 = vtanh.f32 %v1803_v22 }
 0x5f4   : > { %v15538_v31 = vpop.eup %15537 }
 0x5f5   : > { %v1706_v32 = vsub.f32 1.0, %v1702_v27  ;;  %v1701_v34 = vmul.f32 %v15538_v31, %v15538_v31 }
 0x5f6   : > { %v15540_v35 = vpop.eup %15539 }
 0x5f7   : > { %v1705_v36 = vsub.f32 1.0, %v1701_v34  ;;  %v1704_v38 = vmul.f32 %v15540_v35, %v15540_v35  ;;  %14229 = vmatprep.subr.mxu1 %v15540_v35  ;;  %v1710_v41 = vmul.f32 %v1706_v32, %v16365_v56 }
 0x5f8   : > { %v15542_v40 = vpop.eup %15541  ;;  %14230 = vmatpush3.msra.mxu1 %v15540_v35 }
 0x5f9   : > { %v1709_v55 = vmul.f32 %v1705_v36, %v16363_v52  ;;  %v1703_v44 = vmul.f32 %v15542_v40, %v15542_v40  ;;  %14231 = vmatprep.subr.mxu1 %v15542_v40  ;;  %v1708_v47 = vsub.f32 1.0, %v1704_v38 }
 0x5fa   : > { %v15544_v45 = vpop.eup %15543  ;;  %14232 = vmatpush3.msra.mxu1 %v15542_v40 }
 0x5fb   : > { %v1707_v61 = vsub.f32 1.0, %v1703_v44  ;;  %v1891_v63 = vmul.f32 %v15544_v45, %v15544_v45  ;;  %14233 = vmatprep.subr.mxu1 %v15536_v26  ;;  %v1713_v5 = vadd.f32 %v1710_v41, %v1709_v55  ;;  %v1712_v37 = vmul.f32 %v1708_v47, %v16377_v11 }
 0x5fc   : > { %v15546_v39 = vpop.eup %15545  ;;  %14234 = vmatpush3.msra.mxu1 %v15536_v26 }
 0x5fd   : > { %v1711_v51 = vmul.f32 %v1707_v61, %v16369_v2  ;;  %v1895_v54 = vsub.f32 1.0, %v1891_v63  ;;  %v1890_v43 = vmul.f32 %v15546_v39, %v15546_v39  ;;  %14235 = vmatprep.subr.mxu1 %v15538_v31  ;;  %v16000_v61 = vld [vmem:[%s16259_s14] sm:$0xff] }
 0x5fe   : > { %v15548_v8 = vpop.eup %15547  ;;  %14236 = vmatpush3.msra.mxu1 %v15538_v31 }
 0x5ff   : > { %v1894_v57 = vsub.f32 1.0, %v1890_v43  ;;  %v1893_v16 = vmul.f32 %v15548_v8, %v15548_v8  ;;  %14238 = vmatmul.mubr.msk.f32.vlgmr.msra.gmra.mxu1 %vm489_vm1, %v16374_v3  ;;  %14250 = vmatprep.subr.mxu1 %v15548_v8  ;;  %v1714_v9 = vadd.f32 %v1713_v5, %v1711_v51  ;;  %v1899_v58 = vmul.f32 %v1895_v54, %v16365_v56  ;;  %v16621_v54 = vld [vmem:[%s18830_s1 + $0x8] sm:$0xff]  ;;  %v16003_v43 = vld [vmem:[%s16259_s14 + $0x18] sm:$0xff] }
 0x600   : > { %v15550_v20 = vpop.eup %15549  ;;  %14251 = vmatpush3.msra.mxu1 %v15548_v8  ;;  %14258 = vmatprep.mubr.msk.f32.mxu1 %vm489_vm1, %v16339_v23 }
 0x601   : > { %v1898_v59 = vmul.f32 %v1894_v57, %v16363_v52  ;;  %v1892_v49 = vmul.f32 %v15550_v20, %v15550_v20  ;;  %14252 = vmatprep.subr.mxu1 %v15550_v20  ;;  %v1715_v13 = vadd.f32 %v1714_v9, %v1712_v37  ;;  %v1897_v15 = vsub.f32 1.0, %v1893_v16  ;;  %v16004_v37 = vld [vmem:[%s16259_s14 + $0x8] sm:$0xff]  ;;  %v16641_v16 = vld [vmem:[%s18830_s1 + $0x18] sm:$0xff]  ;;  %v16650_v9 = vld [vmem:[%s18830_s1] sm:$0xff] }
 0x602   : > { %14253 = vmatpush3.msra.mxu1 %v15550_v20 }
 0x603   : > { %v1896_v53 = vsub.f32 1.0, %v1892_v49  ;;  %14254 = vmatprep.subr.mxu1 %v15544_v45  ;;  %v1716_v0 = vrot.slane %v1715_v13, 4  ;;  %v1902_v1 = vadd.f32 %v1899_v58, %v1898_v59  ;;  %v1901_v14 = vmul.f32 %v1897_v15, %v16377_v11 }
 0x604   : > { %14255 = vmatpush3.msra.mxu1 %v15544_v45 }
 0x605   : > { %v1900_v12 = vmul.f32 %v1896_v53, %v16369_v2  ;;  %14256 = vmatprep.subr.mxu1 %v15546_v39  ;;  %v1717_v6 = vadd.f32 %v1716_v0, %v1715_v13 }
 0x606   : > { %14257 = vmatpush3.msra.mxu1 %v15546_v39 }
 0x607   : > { %14259 = vmatmul.mubr.msk.f32.vlgmr.msra.gmra.mxu1 %vm489_vm1, %v16374_v3  ;;  %v1718_v29 = vrot.slane %v1717_v6, 2  ;;  %v1903_v18 = vadd.f32 %v1902_v1, %v1900_v12 }
 0x608   : > { %14279 = vmatprep.mubr.msk.f32.mxu1 %vm489_vm1, %v16339_v23 }
 0x609   : > { %v1719_v4 = vadd.f32 %v1718_v29, %v1717_v6  ;;  %v1904_v7 = vadd.f32 %v1903_v18, %v1901_v14 }
 0x60b   : > { %v1720_v10 = vrot.slane %v1719_v4, 1  ;;  %v1905_v17 = vrot.slane %v1904_v7, 4 }
 0x60d   : > { %v1721_v19 = vadd.f32 %v1720_v10, %v1719_v4  ;;  %v1906_v22 = vadd.f32 %v1905_v17, %v1904_v7 }
 0x60f   : > { %v1907_v26 = vrot.slane %v1906_v22, 2  ;;  %v16595_v27 = vadd.f32 %v16525_v21, %v1721_v19  ;;  %v15999_v21 = vld [vmem:[%s16259_s14 + $0x10] sm:$0xff]  ;;  %s16045_s14 = scalar_lea.vmem %s12824_s13, 32 }
 0x610   : > { %p16046_p13 = scmp.ne.s32.totalorder %s12824_s13, %s16045_s14  ;;  %p16053_p3 = scmp.lt.s32.totalorder %s16051_s18, %s16045_s14 }
 0x611   : > { %v1908_v31 = vadd.f32 %v1907_v26, %v1906_v22 }
 0x612   : > { %p16047_p0 = pnand %p16046_p13, %p16222_p6  ;;  %p16054_p4 = por %p16053_p3, %p16052_p2 }
 0x613   : > { %v1909_v32 = vrot.slane %v1908_v31, 1 }
 0x614   : > { %p16048_p1 = pneg %p16047_p0 }
 0x615   : > { %v1910_v3 = vadd.f32 %v1909_v32, %v1908_v31 }
 0x616   : > { %p16055_p5 = pnand %p16054_p4, %p16048_p1 }
 0x617   : > { %v16598_v34 = vadd.f32 %v16528_v30, %v1910_v3 }
 0x6bf   : > { %v14239_v35 = vpop.f32.mrf.mxu1 }
 0x6c0   : > { %v1698_v23 = vadd.f32 %v14239_v35, %v16358_v42 }
 0x6c1   : > { %v1692_v36 = vpop.f32.mrf.mxu1 }
 0x6c2   : > { %v1920_v38 = vadd.f32 %v16537_v48, %v1698_v23  ;;  %v1693_v40 = vadd.f32 %v1692_v36, %v16361_v46 }
 0x6c4   : > { %v1922_v41 = vmul.f32 0.020833334, %v1920_v38  ;;  %v1919_v55 = vadd.f32 %v16541_v50, %v1693_v40 }
 0x6c6   : > { %v16605_v44 = vadd.f32 %v15999_v21, %v1922_v41  ;;  %v1921_v45 = vmul.f32 0.020833334, %v1919_v55 }
 0x6c7   : > { %v14260_v47 = vpop.f32.mrf.mxu1 }
 0x6c8   : > { %v16608_v30 = vadd.f32 %v16000_v61, %v1921_v45  ;;  %v1887_v63 = vadd.f32 %v14260_v47, %v16358_v42  ;;  %14261 = vmatprep.subr.mxu0 %v16605_v44 }
 0x6c9   : > { %v1881_v48 = vpop.f32.mrf.mxu1  ;;  %14262 = vmatpush3.msra.mxu0 %v16605_v44 }
 0x6ca   : > { %v1934_v5 = vadd.f32 %v16553_v60, %v1887_v63  ;;  %v1882_v50 = vadd.f32 %v1881_v48, %v16361_v46  ;;  %14263 = vmatprep.subr.mxu0 %v16608_v30  ;;  %v16628_v60 = vld [vmem:[%s18830_s1 + $0x10] sm:$0xff] }
 0x6cb   : > { %14264 = vmatpush3.msra.mxu0 %v16608_v30 }
 0x6cc   : > { %v1936_v39 = vmul.f32 0.020833334, %v1934_v5  ;;  %v1933_v51 = vadd.f32 %v16558_v62, %v1882_v50  ;;  %14266 = vmatmul.mubr.msk.f32.vlgmr.msra.gmra.mxu0 %vm387_vm0, %v16621_v54 }
 0x6cd   : > { %14268 = vmatprep.mubr.msk.f32.mxu0 %vm387_vm0, %v16628_v60 }
 0x6ce   : > { %v16633_v8 = vadd.f32 %v16003_v43, %v1936_v39  ;;  %v1935_v62 = vmul.f32 0.020833334, %v1933_v51 }
 0x6d0   : > { %v16636_v57 = vadd.f32 %v16004_v37, %v1935_v62  ;;  %14269 = vmatmul.mubr.msk.f32.gmra.mxu0 %vm387_vm0, %v16641_v16  ;;  %14282 = vmatprep.subr.mxu0 %v16633_v8  ;;  %v16679_v62 = vld [vmem:[%s18832_s3 + $0x8] sm:$0xff] }
 0x6d1   : > { %14283 = vmatpush3.msra.mxu0 %v16633_v8  ;;  %14286 = vmatprep.mubr.msk.f32.mxu0 %vm387_vm0, %v16650_v9 }
 0x6d2   : > { %14284 = vmatprep.subr.mxu0 %v16636_v57 }
 0x6d3   : > { %14285 = vmatpush3.msra.mxu0 %v16636_v57 }
 0x6d4   : > { %14287 = vmatmul.mubr.msk.f32.vlgmr.msra.gmra.mxu0 %vm387_vm0, %v16621_v54 }
 0x6d5   : > { %14289 = vmatprep.mubr.msk.f32.mxu0 %vm387_vm0, %v16628_v60 }
 0x6d8   : > { %14290 = vmatmul.mubr.msk.f32.gmra.mxu0 %vm387_vm0, %v16641_v16 }
 0x6d9   : > { %14307 = vmatprep.mubr.msk.f32.mxu0 %vm387_vm0, %v16650_v9 }
 0x78c   : > { %v14267_v20 = vpop.f32.mrf.mxu0 }
 0x78d   : > { %v2025_v58 = vadd.f32 %v14267_v20, %v16343_v24  ;;  %v16686_v20 = vld [vmem:[%s18832_s3] sm:$0xff] }
 0x78e   : > { %v2019_v59 = vpop.f32.mrf.mxu0 }
 0x78f   : > { %15551 = vtanh.f32 %v2025_v58  ;;  %v2020_v49 = vadd.f32 %v2019_v59, %v16348_v28 }
 0x790   : > { %v14270_v13 = vpop.f32.mrf.mxu0 }
 0x791   : > { %15553 = vtanh.f32 %v2020_v49  ;;  %v2035_v15 = vadd.f32 %v14270_v13, %v16345_v25 }
 0x792   : > { %v2029_v53 = vpop.f32.mrf.mxu0 }
 0x793   : > { %15555 = vtanh.f32 %v2035_v15  ;;  %v2030_v0 = vadd.f32 %v2029_v53, %v16352_v33 }
 0x794   : > { %v14288_v1 = vpop.f32.mrf.mxu0 }
 0x795   : > { %15557 = vtanh.f32 %v2030_v0  ;;  %v2210_v12 = vadd.f32 %v14288_v1, %v16343_v24 }
 0x796   : > { %v2204_v6 = vpop.f32.mrf.mxu0 }
 0x797   : > { %15559 = vtanh.f32 %v2210_v12  ;;  %v2205_v14 = vadd.f32 %v2204_v6, %v16348_v28 }
 0x798   : > { %v14291_v29 = vpop.f32.mrf.mxu0 }
 0x799   : > { %15561 = vtanh.f32 %v2205_v14  ;;  %v2220_v18 = vadd.f32 %v14291_v29, %v16345_v25 }
 0x79a   : > { %v2214_v4 = vpop.f32.mrf.mxu0 }
 0x79b   : > { %15563 = vtanh.f32 %v2220_v18  ;;  %v2215_v7 = vadd.f32 %v2214_v4, %v16352_v33 }
 0x79c   : > { %v15552_v10 = vpop.eup %15551 }
 0x79d   : > { %v2118_v17 = vmul.f32 %v15552_v10, %v15552_v10  ;;  %15565 = vtanh.f32 %v2215_v7 }
 0x79e   : > { %v15554_v19 = vpop.eup %15553 }
 0x79f   : > { %v2122_v22 = vsub.f32 1.0, %v2118_v17  ;;  %v2117_v26 = vmul.f32 %v15554_v19, %v15554_v19 }
 0x7a0   : > { %v15556_v31 = vpop.eup %15555 }
 0x7a1   : > { %v2121_v32 = vsub.f32 1.0, %v2117_v26  ;;  %v2120_v3 = vmul.f32 %v15556_v31, %v15556_v31  ;;  %14271 = vmatprep.subr.mxu1 %v15556_v31  ;;  %v2126_v23 = vmul.f32 %v2122_v22, %v16365_v56 }
 0x7a2   : > { %v15558_v35 = vpop.eup %15557  ;;  %14272 = vmatpush3.msra.mxu1 %v15556_v31 }
 0x7a3   : > { %v2125_v36 = vmul.f32 %v2121_v32, %v16363_v52  ;;  %v2119_v38 = vmul.f32 %v15558_v35, %v15558_v35  ;;  %14273 = vmatprep.subr.mxu1 %v15558_v35  ;;  %v2124_v55 = vsub.f32 1.0, %v2120_v3 }
 0x7a4   : > { %v15560_v40 = vpop.eup %15559  ;;  %14274 = vmatpush3.msra.mxu1 %v15558_v35 }
 0x7a5   : > { %v2129_v41 = vadd.f32 %v2126_v23, %v2125_v36  ;;  %v2123_v21 = vsub.f32 1.0, %v2119_v38  ;;  %v2303_v45 = vmul.f32 %v15560_v40, %v15560_v40  ;;  %14275 = vmatprep.subr.mxu1 %v15552_v10  ;;  %v2128_v50 = vmul.f32 %v2124_v55, %v16377_v11 }
 0x7a6   : > { %v15562_v47 = vpop.eup %15561  ;;  %14276 = vmatpush3.msra.mxu1 %v15552_v10 }
 0x7a7   : > { %v2127_v61 = vmul.f32 %v2123_v21, %v16369_v2  ;;  %v2307_v63 = vsub.f32 1.0, %v2303_v45  ;;  %v2302_v48 = vmul.f32 %v15562_v47, %v15562_v47  ;;  %14277 = vmatprep.subr.mxu1 %v15554_v19 }
 0x7a8   : > { %v15564_v5 = vpop.eup %15563  ;;  %14278 = vmatpush3.msra.mxu1 %v15554_v19 }
 0x7a9   : > { %v2130_v39 = vadd.f32 %v2129_v41, %v2127_v61  ;;  %v2306_v51 = vsub.f32 1.0, %v2302_v48  ;;  %v2305_v43 = vmul.f32 %v15564_v5, %v15564_v5  ;;  %14280 = vmatmul.mubr.msk.f32.vlgmr.msra.gmra.mxu1 %vm489_vm1, %v16679_v62  ;;  %14292 = vmatprep.subr.mxu1 %v15564_v5  ;;  %v2311_v58 = vmul.f32 %v2307_v63, %v16365_v56 }
 0x7aa   : > { %v15566_v37 = vpop.eup %15565  ;;  %14293 = vmatpush3.msra.mxu1 %v15564_v5  ;;  %14300 = vmatprep.mubr.msk.f32.mxu1 %vm489_vm1, %v16686_v20 }
 0x7ab   : > { %v2310_v59 = vmul.f32 %v2306_v51, %v16363_v52  ;;  %v2304_v49 = vmul.f32 %v15566_v37, %v15566_v37  ;;  %14294 = vmatprep.subr.mxu1 %v15566_v37  ;;  %v16692_v13 = vadd.f32 %v2130_v39, %v2128_v50  ;;  %v2309_v53 = vsub.f32 1.0, %v2305_v43 }
 0x7ac   : > { %14295 = vmatpush3.msra.mxu1 %v15566_v37 }
 0x7ad   : > { %v2314_v15 = vadd.f32 %v2311_v58, %v2310_v59  ;;  %v2308_v0 = vsub.f32 1.0, %v2304_v49  ;;  %14296 = vmatprep.subr.mxu1 %v15560_v40  ;;  %v2313_v12 = vmul.f32 %v2309_v53, %v16377_v11 }
 0x7ae   : > { %14297 = vmatpush3.msra.mxu1 %v15560_v40 }
 0x7af   : > { %v2312_v1 = vmul.f32 %v2308_v0, %v16369_v2  ;;  %14298 = vmatprep.subr.mxu1 %v15562_v47 }
 0x7b0   : > { %14299 = vmatpush3.msra.mxu1 %v15562_v47 }
 0x7b1   : > { %v2315_v6 = vadd.f32 %v2314_v15, %v2312_v1  ;;  %14301 = vmatmul.mubr.msk.f32.vlgmr.msra.gmra.mxu1 %vm489_vm1, %v16679_v62 }
 0x7b2   : > { %14321 = vmatprep.mubr.msk.f32.mxu1 %vm489_vm1, %v16686_v20 }
 0x7b3   : > { %v16700_v14 = vadd.f32 %v2315_v6, %v2313_v12 }
 0x869   : > { %v14281_v29 = vpop.f32.mrf.mxu1 }
 0x86a   : > { %v16703_v18 = vadd.f32 %v14281_v29, %v16358_v42 }
 0x86b   : > { %v2108_v4 = vpop.f32.mrf.mxu1 }
 0x86c   : > { %v2324_v7 = vmul.f32 0.0625, %v16703_v18  ;;  %v16707_v10 = vadd.f32 %v2108_v4, %v16361_v46 }
 0x86e   : > { %v2323_v17 = vmul.f32 0.0625, %v16707_v10  ;;  %v2326_v19 = vadd.f32 %v2324_v7, %v16605_v44 }
 0x870   : > { %14303 = vmatprep.subr.mxu0 %v2326_v19  ;;  %v2325_v22 = vadd.f32 %v2323_v17, %v16608_v30 }
 0x871   : > { %v14302_v26 = vpop.f32.mrf.mxu1  ;;  %14304 = vmatpush3.msra.mxu0 %v2326_v19 }
 0x872   : > { %v16713_v31 = vadd.f32 %v14302_v26, %v16358_v42  ;;  %14305 = vmatprep.subr.mxu0 %v2325_v22 }
 0x873   : > { %v2293_v32 = vpop.f32.mrf.mxu1  ;;  %14306 = vmatpush3.msra.mxu0 %v2325_v22  ;;  %v2132_v22 = vrot.slane %v16692_v13, 4 }
 0x874   : > { %v2513_v3 = vmul.f32 0.0625, %v16713_v31  ;;  %v16717_v35 = vadd.f32 %v2293_v32, %v16361_v46  ;;  %14308 = vmatmul.mubr.msk.f32.vlgmr.msra.gmra.mxu0 %vm387_vm0, %v16621_v54 }
 0x875   : > { %14310 = vmatprep.mubr.msk.f32.mxu0 %vm387_vm0, %v16628_v60 }
 0x876   : > { %v2512_v23 = vmul.f32 0.0625, %v16717_v35  ;;  %v2515_v36 = vadd.f32 %v2513_v3, %v16633_v8 }
 0x878   : > { %14311 = vmatmul.mubr.msk.f32.gmra.mxu0 %vm387_vm0, %v16641_v16  ;;  %14324 = vmatprep.subr.mxu0 %v2515_v36  ;;  %v2514_v38 = vadd.f32 %v2512_v23, %v16636_v57 }
 0x879   : > { %14325 = vmatpush3.msra.mxu0 %v2515_v36  ;;  %14328 = vmatprep.mubr.msk.f32.mxu0 %vm387_vm0, %v16650_v9 }
 0x87a   : > { %14326 = vmatprep.subr.mxu0 %v2514_v38 }
 0x87b   : > { %14327 = vmatpush3.msra.mxu0 %v2514_v38 }
 0x87c   : > { %14329 = vmatmul.mubr.msk.f32.vlgmr.msra.gmra.mxu0 %vm387_vm0, %v16621_v54 }
 0x87d   : > { %14331 = vmatprep.mubr.msk.f32.mxu0 %vm387_vm0, %v16628_v60 }
 0x880   : > { %14332 = vmatmul.mubr.msk.f32.gmra.mxu0 %vm387_vm0, %v16641_v16 }
 0x881   : > { %14349 = vmatprep.mubr.msk.f32.mxu0 %vm387_vm0, %v16650_v9 }
 0x934   : > { %v14309_v40 = vpop.f32.mrf.mxu0 }
 0x935   : > { %v2399_v41 = vadd.f32 %v14309_v40, %v16343_v24 }
 0x936   : > { %v2393_v55 = vpop.f32.mrf.mxu0 }
 0x937   : > { %15567 = vtanh.f32 %v2399_v41  ;;  %v2394_v21 = vadd.f32 %v2393_v55, %v16348_v28 }
 0x938   : > { %v14312_v45 = vpop.f32.mrf.mxu0 }
 0x939   : > { %15569 = vtanh.f32 %v2394_v21  ;;  %v2409_v47 = vadd.f32 %v14312_v45, %v16345_v25  ;;  %v2133_v21 = vadd.f32 %v2132_v22, %v16692_v13 }
 0x93a   : > { %v2403_v61 = vpop.f32.mrf.mxu0 }
 0x93b   : > { %15571 = vtanh.f32 %v2409_v47  ;;  %v2404_v63 = vadd.f32 %v2403_v61, %v16352_v33 }
 0x93c   : > { %v14330_v48 = vpop.f32.mrf.mxu0 }
 0x93d   : > { %15573 = vtanh.f32 %v2404_v63  ;;  %v2588_v5 = vadd.f32 %v14330_v48, %v16343_v24 }
 0x93e   : > { %v2582_v50 = vpop.f32.mrf.mxu0 }
 0x93f   : > { %15575 = vtanh.f32 %v2588_v5  ;;  %v2583_v39 = vadd.f32 %v2582_v50, %v16348_v28 }
 0x940   : > { %v14333_v51 = vpop.f32.mrf.mxu0 }
 0x941   : > { %15577 = vtanh.f32 %v2583_v39  ;;  %v2598_v43 = vadd.f32 %v14333_v51, %v16345_v25  ;;  %v2134_v51 = vrot.slane %v2133_v21, 2 }
 0x942   : > { %v2592_v37 = vpop.f32.mrf.mxu0 }
 0x943   : > { %15579 = vtanh.f32 %v2598_v43  ;;  %v2593_v58 = vadd.f32 %v2592_v37, %v16352_v33  ;;  %v2317_v43 = vrot.slane %v16700_v14, 4 }
 0x944   : > { %v15568_v59 = vpop.eup %15567 }
 0x945   : > { %v2492_v49 = vmul.f32 %v15568_v59, %v15568_v59  ;;  %15581 = vtanh.f32 %v2593_v58 }
 0x946   : > { %v15570_v15 = vpop.eup %15569 }
 0x947   : > { %v2496_v53 = vsub.f32 1.0, %v2492_v49  ;;  %v2491_v0 = vmul.f32 %v15570_v15, %v15570_v15 }
 0x948   : > { %v15572_v1 = vpop.eup %15571 }
 0x949   : > { %v2495_v12 = vsub.f32 1.0, %v2491_v0  ;;  %v2494_v6 = vmul.f32 %v15572_v1, %v15572_v1  ;;  %14313 = vmatprep.subr.mxu1 %v15572_v1  ;;  %v2500_v4 = vmul.f32 %v2496_v53, %v16365_v56  ;;  %v2135_v0 = vadd.f32 %v2134_v51, %v2133_v21 }
 0x94a   : > { %v15574_v29 = vpop.eup %15573  ;;  %14314 = vmatpush3.msra.mxu1 %v15572_v1 }
 0x94b   : > { %v2499_v7 = vmul.f32 %v2495_v12, %v16363_v52  ;;  %v2493_v17 = vmul.f32 %v15574_v29, %v15574_v29  ;;  %14315 = vmatprep.subr.mxu1 %v15574_v29  ;;  %v2498_v32 = vsub.f32 1.0, %v2494_v6  ;;  %v2318_v6 = vadd.f32 %v2317_v43, %v16700_v14 }
 0x94c   : > { %v15576_v19 = vpop.eup %15575  ;;  %14316 = vmatpush3.msra.mxu1 %v15574_v29 }
 0x94d   : > { %v2503_v26 = vadd.f32 %v2500_v4, %v2499_v7  ;;  %v2497_v3 = vsub.f32 1.0, %v2493_v17  ;;  %v2681_v23 = vmul.f32 %v15576_v19, %v15576_v19  ;;  %14317 = vmatprep.subr.mxu1 %v15568_v59  ;;  %v2502_v45 = vmul.f32 %v2498_v32, %v16377_v11 }
 0x94e   : > { %v15578_v36 = vpop.eup %15577  ;;  %14318 = vmatpush3.msra.mxu1 %v15568_v59  ;;  %v2136_v17 = vrot.slane %v2135_v0, 1 }
 0x94f   : > { %v2501_v38 = vmul.f32 %v2497_v3, %v16369_v2  ;;  %v2685_v40 = vsub.f32 1.0, %v2681_v23  ;;  %v2680_v41 = vmul.f32 %v15578_v36, %v15578_v36  ;;  %14319 = vmatprep.subr.mxu1 %v15570_v15 }
 0x950   : > { %v15580_v55 = vpop.eup %15579  ;;  %14320 = vmatpush3.msra.mxu1 %v15570_v15  ;;  %v2137_v23 = vadd.f32 %v2136_v17, %v2135_v0 }
 0x951   : > { %v2504_v47 = vadd.f32 %v2503_v26, %v2501_v38  ;;  %v2684_v61 = vsub.f32 1.0, %v2680_v41  ;;  %v2683_v63 = vmul.f32 %v15580_v55, %v15580_v55  ;;  %14322 = vmatmul.mubr.msk.f32.vlgmr.msra.gmra.mxu1 %vm489_vm1, %v16679_v62  ;;  %14334 = vmatprep.subr.mxu1 %v15580_v55  ;;  %v2689_v5 = vmul.f32 %v2685_v40, %v16365_v56 }
 0x952   : > { %v15582_v48 = vpop.eup %15581  ;;  %14335 = vmatpush3.msra.mxu1 %v15580_v55  ;;  %14342 = vmatprep.mubr.msk.f32.mxu1 %vm489_vm1, %v16686_v20 }
 0x953   : > { %v2688_v50 = vmul.f32 %v2684_v61, %v16363_v52  ;;  %v2682_v39 = vmul.f32 %v15582_v48, %v15582_v48  ;;  %14336 = vmatprep.subr.mxu1 %v15582_v48  ;;  %v2505_v13 = vadd.f32 %v2504_v47, %v2502_v45  ;;  %v2687_v58 = vsub.f32 1.0, %v2683_v63 }
 0x954   : > { %14337 = vmatpush3.msra.mxu1 %v15582_v48 }
 0x955   : > { %v2692_v37 = vadd.f32 %v2689_v5, %v2688_v50  ;;  %v2686_v59 = vsub.f32 1.0, %v2682_v39  ;;  %14338 = vmatprep.subr.mxu1 %v15576_v19  ;;  %v2506_v49 = vrot.slane %v2505_v13, 4  ;;  %v2691_v1 = vmul.f32 %v2687_v58, %v16377_v11 }
 0x956   : > { %14339 = vmatpush3.msra.mxu1 %v15576_v19  ;;  %v2319_v19 = vrot.slane %v2318_v6, 2 }
 0x957   : > { %v2690_v15 = vmul.f32 %v2686_v59, %v16369_v2  ;;  %14340 = vmatprep.subr.mxu1 %v15578_v36  ;;  %v2507_v53 = vadd.f32 %v2506_v49, %v2505_v13 }
 0x958   : > { %14341 = vmatpush3.msra.mxu1 %v15578_v36  ;;  %v2320_v36 = vadd.f32 %v2319_v19, %v2318_v6 }
 0x959   : > { %v2693_v12 = vadd.f32 %v2692_v37, %v2690_v15  ;;  %14343 = vmatmul.mubr.msk.f32.vlgmr.msra.gmra.mxu1 %vm489_vm1, %v16679_v62  ;;  %v2508_v29 = vrot.slane %v2507_v53, 2 }
 0x95a   : > { %14363 = vmatprep.mubr.msk.f32.mxu1 %vm489_vm1, %v16686_v20  ;;  %v2321_v14 = vrot.slane %v2320_v36, 1 }
 0x95b   : > { %v2509_v4 = vadd.f32 %v2508_v29, %v2507_v53  ;;  %v2694_v7 = vadd.f32 %v2693_v12, %v2691_v1 }
 0x95c   : > { %v2322_v47 = vadd.f32 %v2321_v14, %v2320_v36 }
 0x95d   : > { %v2510_v22 = vrot.slane %v2509_v4, 1  ;;  %v2695_v26 = vrot.slane %v2694_v7, 4 }
 0x95f   : > { %v2511_v32 = vadd.f32 %v2510_v22, %v2509_v4  ;;  %v2696_v3 = vadd.f32 %v2695_v26, %v2694_v7 }
 0x961   : > { %v2697_v38 = vrot.slane %v2696_v3, 2  ;;  %v3485_v40 = vmul.f32 2.0, %v2511_v32 }
 0x963   : > { %v2698_v41 = vadd.f32 %v2697_v38, %v2696_v3  ;;  %v16766_v55 = vadd.f32 %v3485_v40, %v2137_v23 }
 0x965   : > { %v2699_v21 = vrot.slane %v2698_v41, 1 }
 0x967   : > { %v2700_v45 = vadd.f32 %v2699_v21, %v2698_v41 }
 0x969   : > { %v3492_v61 = vmul.f32 2.0, %v2700_v45 }
 0x96b   : > { %v16768_v63 = vadd.f32 %v3492_v61, %v2322_v47 }
 0xa11   : > { %v14323_v48 = vpop.f32.mrf.mxu1 }
 0xa12   : > { %v16771_v5 = vadd.f32 %v14323_v48, %v16358_v42 }
 0xa13   : > { %v2482_v50 = vpop.f32.mrf.mxu1 }
 0xa14   : > { %v2702_v39 = vmul.f32 0.0625, %v16771_v5  ;;  %v16775_v13 = vadd.f32 %v2482_v50, %v16361_v46 }
 0xa16   : > { %v2701_v51 = vmul.f32 0.0625, %v16775_v13  ;;  %v2704_v43 = vadd.f32 %v2702_v39, %v16605_v44 }
 0xa18   : > { %14345 = vmatprep.subr.mxu0 %v2704_v43  ;;  %v2703_v37 = vadd.f32 %v2701_v51, %v16608_v30 }
 0xa19   : > { %v14344_v58 = vpop.f32.mrf.mxu1  ;;  %14346 = vmatpush3.msra.mxu0 %v2704_v43 }
 0xa1a   : > { %v16781_v59 = vadd.f32 %v14344_v58, %v16358_v42  ;;  %14347 = vmatprep.subr.mxu0 %v2703_v37 }
 0xa1b   : > { %v2671_v49 = vpop.f32.mrf.mxu1  ;;  %14348 = vmatpush3.msra.mxu0 %v2703_v37 }
 0xa1c   : > { %v2891_v15 = vmul.f32 0.0625, %v16781_v59  ;;  %v16785_v53 = vadd.f32 %v2671_v49, %v16361_v46  ;;  %14350 = vmatmul.mubr.msk.f32.vlgmr.msra.gmra.mxu0 %vm387_vm0, %v16621_v54 }
 0xa1d   : > { %14352 = vmatprep.mubr.msk.f32.mxu0 %vm387_vm0, %v16628_v60 }
 0xa1e   : > { %v2890_v0 = vmul.f32 0.0625, %v16785_v53  ;;  %v2893_v1 = vadd.f32 %v2891_v15, %v16633_v8 }
 0xa20   : > { %14353 = vmatmul.mubr.msk.f32.gmra.mxu0 %vm387_vm0, %v16641_v16  ;;  %14366 = vmatprep.subr.mxu0 %v2893_v1  ;;  %v2892_v12 = vadd.f32 %v2890_v0, %v16636_v57 }
 0xa21   : > { %14367 = vmatpush3.msra.mxu0 %v2893_v1  ;;  %14370 = vmatprep.mubr.msk.f32.mxu0 %vm387_vm0, %v16650_v9 }
 0xa22   : > { %14368 = vmatprep.subr.mxu0 %v2892_v12 }
 0xa23   : > { %14369 = vmatpush3.msra.mxu0 %v2892_v12 }
 0xa24   : > { %14371 = vmatmul.mubr.msk.f32.vlgmr.msra.gmra.mxu0 %vm387_vm0, %v16621_v54 }
 0xa25   : > { %14373 = vmatprep.mubr.msk.f32.mxu0 %vm387_vm0, %v16628_v60 }
 0xa28   : > { %14374 = vmatmul.mubr.msk.f32.gmra.mxu0 %vm387_vm0, %v16641_v16 }
 0xa29   : > { %14391 = vmatprep.mubr.msk.f32.mxu0 %vm387_vm0, %v16650_v9 }
 0xadc   : > { %v14351_v6 = vpop.f32.mrf.mxu0 }
 0xadd   : > { %v2777_v29 = vadd.f32 %v14351_v6, %v16343_v24 }
 0xade   : > { %v2771_v4 = vpop.f32.mrf.mxu0 }
 0xadf   : > { %15583 = vtanh.f32 %v2777_v29  ;;  %v2772_v7 = vadd.f32 %v2771_v4, %v16348_v28 }
 0xae0   : > { %v14354_v17 = vpop.f32.mrf.mxu0 }
 0xae1   : > { %15585 = vtanh.f32 %v2772_v7  ;;  %v2787_v19 = vadd.f32 %v14354_v17, %v16345_v25 }
 0xae2   : > { %v2781_v22 = vpop.f32.mrf.mxu0 }
 0xae3   : > { %15587 = vtanh.f32 %v2787_v19  ;;  %v2782_v26 = vadd.f32 %v2781_v22, %v16352_v33 }
 0xae4   : > { %v14372_v32 = vpop.f32.mrf.mxu0 }
 0xae5   : > { %15589 = vtanh.f32 %v2782_v26  ;;  %v2966_v3 = vadd.f32 %v14372_v32, %v16343_v24 }
 0xae6   : > { %v2960_v23 = vpop.f32.mrf.mxu0 }
 0xae7   : > { %15591 = vtanh.f32 %v2966_v3  ;;  %v2961_v36 = vadd.f32 %v2960_v23, %v16348_v28 }
 0xae8   : > { %v14375_v38 = vpop.f32.mrf.mxu0 }
 0xae9   : > { %15593 = vtanh.f32 %v2961_v36  ;;  %v2976_v40 = vadd.f32 %v14375_v38, %v16345_v25 }
 0xaea   : > { %v2970_v41 = vpop.f32.mrf.mxu0 }
 0xaeb   : > { %15595 = vtanh.f32 %v2976_v40  ;;  %v2971_v14 = vadd.f32 %v2970_v41, %v16352_v33 }
 0xaec   : > { %v15584_v21 = vpop.eup %15583 }
 0xaed   : > { %v2870_v45 = vmul.f32 %v15584_v21, %v15584_v21  ;;  %15597 = vtanh.f32 %v2971_v14 }
 0xaee   : > { %v15586_v47 = vpop.eup %15585 }
 0xaef   : > { %v2874_v61 = vsub.f32 1.0, %v2870_v45  ;;  %v2869_v48 = vmul.f32 %v15586_v47, %v15586_v47 }
 0xaf0   : > { %v15588_v50 = vpop.eup %15587 }
 0xaf1   : > { %v2873_v39 = vsub.f32 1.0, %v2869_v48  ;;  %v2872_v51 = vmul.f32 %v15588_v50, %v15588_v50  ;;  %14355 = vmatprep.subr.mxu1 %v15588_v50  ;;  %v2878_v37 = vmul.f32 %v2874_v61, %v16365_v56 }
 0xaf2   : > { %v15590_v43 = vpop.eup %15589  ;;  %14356 = vmatpush3.msra.mxu1 %v15588_v50 }
 0xaf3   : > { %v2877_v58 = vmul.f32 %v2873_v39, %v16363_v52  ;;  %v2871_v49 = vmul.f32 %v15590_v43, %v15590_v43  ;;  %14357 = vmatprep.subr.mxu1 %v15590_v43  ;;  %v2876_v1 = vsub.f32 1.0, %v2872_v51 }
 0xaf4   : > { %v15592_v15 = vpop.eup %15591  ;;  %14358 = vmatpush3.msra.mxu1 %v15590_v43 }
 0xaf5   : > { %v2881_v0 = vadd.f32 %v2878_v37, %v2877_v58  ;;  %v2875_v12 = vsub.f32 1.0, %v2871_v49  ;;  %v3059_v6 = vmul.f32 %v15592_v15, %v15592_v15  ;;  %14359 = vmatprep.subr.mxu1 %v15584_v21  ;;  %v2880_v22 = vmul.f32 %v2876_v1, %v16377_v11 }
 0xaf6   : > { %v15594_v29 = vpop.eup %15593  ;;  %14360 = vmatpush3.msra.mxu1 %v15584_v21 }
 0xaf7   : > { %v2879_v4 = vmul.f32 %v2875_v12, %v16369_v2  ;;  %v3063_v7 = vsub.f32 1.0, %v3059_v6  ;;  %v3058_v17 = vmul.f32 %v15594_v29, %v15594_v29  ;;  %14361 = vmatprep.subr.mxu1 %v15586_v47 }
 0xaf8   : > { %v15596_v19 = vpop.eup %15595  ;;  %14362 = vmatpush3.msra.mxu1 %v15586_v47 }
 0xaf9   : > { %v3062_v26 = vsub.f32 1.0, %v3058_v17  ;;  %v3061_v32 = vmul.f32 %v15596_v19, %v15596_v19  ;;  %14364 = vmatmul.mubr.msk.f32.vlgmr.msra.gmra.mxu1 %vm489_vm1, %v16679_v62  ;;  %14376 = vmatprep.subr.mxu1 %v15596_v19  ;;  %v2882_v3 = vadd.f32 %v2881_v0, %v2879_v4  ;;  %v3067_v36 = vmul.f32 %v3063_v7, %v16365_v56 }
 0xafa   : > { %v15598_v23 = vpop.eup %15597  ;;  %14377 = vmatpush3.msra.mxu1 %v15596_v19  ;;  %14384 = vmatprep.mubr.msk.f32.mxu1 %vm489_vm1, %v16686_v20 }
 0xafb   : > { %v3066_v38 = vmul.f32 %v3062_v26, %v16363_v52  ;;  %v3060_v40 = vmul.f32 %v15598_v23, %v15598_v23  ;;  %14378 = vmatprep.subr.mxu1 %v15598_v23  ;;  %v2883_v41 = vadd.f32 %v2882_v3, %v2880_v22  ;;  %v3065_v21 = vsub.f32 1.0, %v3061_v32 }
 0xafc   : > { %14379 = vmatpush3.msra.mxu1 %v15598_v23  ;;  %v3458_v22 = vmul.f32 2.0, %v16771_v5  ;;  %v3457_v26 = vmul.f32 2.0, %v16775_v13  ;;  %v3472_v5 = vmul.f32 2.0, %v16781_v59 }
 0xafd   : > { %v3070_v14 = vadd.f32 %v3067_v36, %v3066_v38  ;;  %v3064_v45 = vsub.f32 1.0, %v3060_v40  ;;  %14380 = vmatprep.subr.mxu1 %v15592_v15  ;;  %v2884_v47 = vrot.slane %v2883_v41, 4  ;;  %v3069_v50 = vmul.f32 %v3065_v21, %v16377_v11 }
 0xafe   : > { %14381 = vmatpush3.msra.mxu1 %v15592_v15  ;;  %v3460_v36 = vadd.f32 %v3458_v22, %v16703_v18  ;;  %v3471_v18 = vmul.f32 2.0, %v16785_v53 }
 0xaff   : > { %v3068_v61 = vmul.f32 %v3064_v45, %v16369_v2  ;;  %14382 = vmatprep.subr.mxu1 %v15594_v29  ;;  %v2885_v48 = vadd.f32 %v2884_v47, %v2883_v41  ;;  %v3459_v41 = vadd.f32 %v3457_v26, %v16707_v10 }
 0xb00   : > { %14383 = vmatpush3.msra.mxu1 %v15594_v29 }
 0xb01   : > { %14385 = vmatmul.mubr.msk.f32.vlgmr.msra.gmra.mxu1 %vm489_vm1, %v16679_v62  ;;  %v2886_v39 = vrot.slane %v2885_v48, 2  ;;  %v3071_v51 = vadd.f32 %v3070_v14, %v3068_v61 }
 0xb02   : > { %14405 = vmatprep.mubr.msk.f32.mxu1 %vm489_vm1, %v16686_v20 }
 0xb03   : > { %v2887_v43 = vadd.f32 %v2886_v39, %v2885_v48  ;;  %v3072_v37 = vadd.f32 %v3071_v51, %v3069_v50  ;;  %v3474_v50 = vadd.f32 %v3472_v5, %v16713_v31 }
 0xb05   : > { %v2888_v58 = vrot.slane %v2887_v43, 1  ;;  %v3073_v49 = vrot.slane %v3072_v37, 4 }
 0xb07   : > { %v2889_v15 = vadd.f32 %v2888_v58, %v2887_v43  ;;  %v3074_v0 = vadd.f32 %v3073_v49, %v3072_v37  ;;  %v3473_v43 = vadd.f32 %v3471_v18, %v16717_v35 }
 0xb09   : > { %v3075_v1 = vrot.slane %v3074_v0, 2  ;;  %v3487_v12 = vmul.f32 2.0, %v2889_v15 }
 0xb0b   : > { %v3076_v6 = vadd.f32 %v3075_v1, %v3074_v0  ;;  %v16831_v29 = vadd.f32 %v3487_v12, %v16766_v55 }
 0xb0d   : > { %v3077_v4 = vrot.slane %v3076_v6, 1 }
 0xb0f   : > { %v3078_v7 = vadd.f32 %v3077_v4, %v3076_v6 }
 0xb11   : > { %v3494_v17 = vmul.f32 2.0, %v3078_v7 }
 0xb13   : > { %v16834_v19 = vadd.f32 %v3494_v17, %v16768_v63 }
 0xbb9   : > { %v14365_v32 = vpop.f32.mrf.mxu1 }
 0xbba   : > { %v2866_v3 = vadd.f32 %v14365_v32, %v16358_v42 }
 0xbbb   : > { %v2860_v23 = vpop.f32.mrf.mxu1 }
 0xbbc   : > { %v3080_v38 = vmul.f32 0.125, %v2866_v3  ;;  %v3462_v40 = vmul.f32 2.0, %v2866_v3  ;;  %v2861_v55 = vadd.f32 %v2860_v23, %v16361_v46 }
 0xbbe   : > { %v3079_v14 = vmul.f32 0.125, %v2861_v55  ;;  %v3461_v21 = vmul.f32 2.0, %v2861_v55  ;;  %v3082_v63 = vadd.f32 %v3080_v38, %v16605_v44  ;;  %v16843_v45 = vadd.f32 %v3462_v40, %v3460_v36 }
 0xbc0   : > { %14387 = vmatprep.subr.mxu0 %v3082_v63  ;;  %v3081_v13 = vadd.f32 %v3079_v14, %v16608_v30  ;;  %v16847_v47 = vadd.f32 %v3461_v21, %v3459_v41 }
 0xbc1   : > { %v14386_v61 = vpop.f32.mrf.mxu1  ;;  %14388 = vmatpush3.msra.mxu0 %v3082_v63 }
 0xbc2   : > { %v3055_v48 = vadd.f32 %v14386_v61, %v16358_v42  ;;  %14389 = vmatprep.subr.mxu0 %v3081_v13 }
 0xbc3   : > { %v3049_v10 = vpop.f32.mrf.mxu1  ;;  %14390 = vmatpush3.msra.mxu0 %v3081_v13 }
 0xbc4   : > { %v3269_v39 = vmul.f32 0.125, %v3055_v48  ;;  %v3476_v51 = vmul.f32 2.0, %v3055_v48  ;;  %v3050_v59 = vadd.f32 %v3049_v10, %v16361_v46  ;;  %14392 = vmatmul.mubr.msk.f32.vlgmr.msra.gmra.mxu0 %vm387_vm0, %v16621_v54 }
 0xbc5   : > { %14394 = vmatprep.mubr.msk.f32.mxu0 %vm387_vm0, %v16628_v60 }
 0xbc6   : > { %v3268_v53 = vmul.f32 0.125, %v3050_v59  ;;  %v3475_v37 = vmul.f32 2.0, %v3050_v59  ;;  %v3271_v58 = vadd.f32 %v3269_v39, %v16633_v8  ;;  %v16859_v49 = vadd.f32 %v3476_v51, %v3474_v50 }
 0xbc8   : > { %14395 = vmatmul.mubr.msk.f32.gmra.mxu0 %vm387_vm0, %v16641_v16  ;;  %14408 = vmatprep.subr.mxu0 %v3271_v58  ;;  %v3270_v31 = vadd.f32 %v3268_v53, %v16636_v57  ;;  %v16864_v15 = vadd.f32 %v3475_v37, %v3473_v43 }
 0xbc9   : > { %14409 = vmatpush3.msra.mxu0 %v3271_v58  ;;  %14412 = vmatprep.mubr.msk.f32.mxu0 %vm387_vm0, %v16650_v9 }
 0xbca   : > { %14410 = vmatprep.subr.mxu0 %v3270_v31 }
 0xbcb   : > { %14411 = vmatpush3.msra.mxu0 %v3270_v31 }
 0xbcc   : > { %14413 = vmatmul.mubr.msk.f32.vlgmr.msra.gmra.mxu0 %vm387_vm0, %v16621_v54 }
 0xbcd   : > { %14415 = vmatprep.mubr.msk.f32.mxu0 %vm387_vm0, %v16628_v60 }
 0xbd0   : > { %14416 = vmatmul.mubr.msk.f32.gmra.mxu0 %vm387_vm0, %v16641_v16 }
 0xbd1   : > { %14433 = vmatprep.mubr.msk.f32.mxu0 %vm387_vm0, %v16650_v9 }
 0xc84   : > { %v14393_v35 = vpop.f32.mrf.mxu0 }
 0xc85   : > { %v3155_v0 = vadd.f32 %v14393_v35, %v16343_v24 }
 0xc86   : > { %v3149_v1 = vpop.f32.mrf.mxu0 }
 0xc87   : > { %15599 = vtanh.f32 %v3155_v0  ;;  %v3150_v12 = vadd.f32 %v3149_v1, %v16348_v28 }
 0xc88   : > { %v14396_v6 = vpop.f32.mrf.mxu0 }
 0xc89   : > { %15601 = vtanh.f32 %v3150_v12  ;;  %v3165_v54 = vadd.f32 %v14396_v6, %v16345_v25 }
 0xc8a   : > { %v3159_v4 = vpop.f32.mrf.mxu0 }
 0xc8b   : > { %15603 = vtanh.f32 %v3165_v54  ;;  %v3160_v60 = vadd.f32 %v3159_v4, %v16352_v33 }
 0xc8c   : > { %v14414_v7 = vpop.f32.mrf.mxu0 }
 0xc8d   : > { %15605 = vtanh.f32 %v3160_v60  ;;  %v3344_v16 = vadd.f32 %v14414_v7, %v16343_v24 }
 0xc8e   : > { %v3338_v9 = vpop.f32.mrf.mxu0 }
 0xc8f   : > { %15607 = vtanh.f32 %v3344_v16  ;;  %v3339_v17 = vadd.f32 %v3338_v9, %v16348_v28 }
 0xc90   : > { %v14417_v22 = vpop.f32.mrf.mxu0 }
 0xc91   : > { %15609 = vtanh.f32 %v3339_v17  ;;  %v3354_v26 = vadd.f32 %v14417_v22, %v16345_v25 }
 0xc92   : > { %v3348_v32 = vpop.f32.mrf.mxu0 }
 0xc93   : > { %15611 = vtanh.f32 %v3354_v26  ;;  %v3349_v3 = vadd.f32 %v3348_v32, %v16352_v33 }
 0xc94   : > { %v15600_v23 = vpop.eup %15599 }
 0xc95   : > { %v3248_v36 = vmul.f32 %v15600_v23, %v15600_v23  ;;  %15613 = vtanh.f32 %v3349_v3 }
 0xc96   : > { %v15602_v38 = vpop.eup %15601 }
 0xc97   : > { %v3252_v40 = vsub.f32 1.0, %v3248_v36  ;;  %v3247_v55 = vmul.f32 %v15602_v38, %v15602_v38 }
 0xc98   : > { %v15604_v41 = vpop.eup %15603 }
 0xc99   : > { %v3251_v14 = vsub.f32 1.0, %v3247_v55  ;;  %v3250_v21 = vmul.f32 %v15604_v41, %v15604_v41  ;;  %14397 = vmatprep.subr.mxu1 %v15604_v41  ;;  %v3256_v5 = vmul.f32 %v3252_v40, %v16365_v56 }
 0xc9a   : > { %v15606_v63 = vpop.eup %15605  ;;  %14398 = vmatpush3.msra.mxu1 %v15604_v41 }
 0xc9b   : > { %v3255_v13 = vmul.f32 %v3251_v14, %v16363_v52  ;;  %v3249_v18 = vmul.f32 %v15606_v63, %v15606_v63  ;;  %14399 = vmatprep.subr.mxu1 %v15606_v63  ;;  %v3254_v48 = vsub.f32 1.0, %v3250_v21 }
 0xc9c   : > { %v15608_v61 = vpop.eup %15607  ;;  %14400 = vmatpush3.msra.mxu1 %v15606_v63  ;;  %v1944_v63 = vmul.f32 0.020833334, %v16595_v27 }
 0xc9d   : > { %v3253_v10 = vsub.f32 1.0, %v3249_v18  ;;  %v3437_v50 = vmul.f32 %v15608_v61, %v15608_v61  ;;  %14401 = vmatprep.subr.mxu1 %v15600_v23  ;;  %v3259_v39 = vadd.f32 %v3256_v5, %v3255_v13  ;;  %v3258_v58 = vmul.f32 %v3254_v48, %v16377_v11 }
 0xc9e   : > { %v15610_v51 = vpop.eup %15609  ;;  %14402 = vmatpush3.msra.mxu1 %v15600_v23 }
 0xc9f   : > { %v3257_v59 = vmul.f32 %v3253_v10, %v16369_v2  ;;  %v3441_v43 = vsub.f32 1.0, %v3437_v50  ;;  %v3436_v53 = vmul.f32 %v15610_v51, %v15610_v51  ;;  %14403 = vmatprep.subr.mxu1 %v15602_v38 }
 0xca0   : > { %v15612_v37 = vpop.eup %15611  ;;  %14404 = vmatpush3.msra.mxu1 %v15602_v38 }
 0xca1   : > { %v3440_v31 = vsub.f32 1.0, %v3436_v53  ;;  %v3439_v35 = vmul.f32 %v15612_v37, %v15612_v37  ;;  %14406 = vmatmul.mubr.msk.f32.vlgmr.msra.gmra.mxu1 %vm489_vm1, %v16679_v62  ;;  %14418 = vmatprep.subr.mxu1 %v15612_v37  ;;  %v3260_v0 = vadd.f32 %v3259_v39, %v3257_v59  ;;  %v3445_v12 = vmul.f32 %v3441_v43, %v16365_v56 }
 0xca2   : > { %v15614_v1 = vpop.eup %15613  ;;  %14419 = vmatpush3.msra.mxu1 %v15612_v37  ;;  %14426 = vmatprep.mubr.msk.f32.mxu1 %vm489_vm1, %v16686_v20 }
 0xca3   : > { %v3444_v6 = vmul.f32 %v3440_v31, %v16363_v52  ;;  %v3438_v54 = vmul.f32 %v15614_v1, %v15614_v1  ;;  %14420 = vmatprep.subr.mxu1 %v15614_v1  ;;  %v3261_v4 = vadd.f32 %v3260_v0, %v3258_v58  ;;  %v3443_v60 = vsub.f32 1.0, %v3439_v35 }
 0xca4   : > { %14421 = vmatpush3.msra.mxu1 %v15614_v1 }
 0xca5   : > { %v3442_v7 = vsub.f32 1.0, %v3438_v54  ;;  %14422 = vmatprep.subr.mxu1 %v15608_v61  ;;  %v3262_v16 = vrot.slane %v3261_v4, 4  ;;  %v3448_v9 = vadd.f32 %v3445_v12, %v3444_v6  ;;  %v3447_v26 = vmul.f32 %v3443_v60, %v16377_v11  ;;  %v16949_v6 = vld [vmem:[%s18830_s1 + $0x18] sm:$0xff] }
 0xca6   : > { %14423 = vmatpush3.msra.mxu1 %v15608_v61 }
 0xca7   : > { %v3446_v17 = vmul.f32 %v3442_v7, %v16369_v2  ;;  %14424 = vmatprep.subr.mxu1 %v15610_v51  ;;  %v3263_v22 = vadd.f32 %v3262_v16, %v3261_v4 }
 0xca8   : > { %14425 = vmatpush3.msra.mxu1 %v15610_v51 }
 0xca9   : > { %14427 = vmatmul.mubr.msk.f32.vlgmr.msra.gmra.mxu1 %vm489_vm1, %v16679_v62  ;;  %v3264_v32 = vrot.slane %v3263_v22, 2  ;;  %v3449_v3 = vadd.f32 %v3448_v9, %v3446_v17 }
 0xcaa   : > { %14447 = vmatprep.mubr.msk.f32.mxu1 %vm489_vm1, %v16686_v20  ;;  %v1951_v20 = vmul.f32 0.020833334, %v16598_v34 }
 0xcab   : > { %v3265_v23 = vadd.f32 %v3264_v32, %v3263_v22  ;;  %v3450_v36 = vadd.f32 %v3449_v3, %v3447_v26 }
 0xcad   : > { %v3266_v38 = vrot.slane %v3265_v23, 1  ;;  %v3451_v40 = vrot.slane %v3450_v36, 4 }
 0xcaf   : > { %v3267_v55 = vadd.f32 %v3266_v38, %v3265_v23  ;;  %v3452_v41 = vadd.f32 %v3451_v40, %v3450_v36 }
 0xcb1   : > { %v3453_v14 = vrot.slane %v3452_v41, 2  ;;  %v3489_v21 = vadd.f32 %v16831_v29, %v3267_v55 }
 0xcb3   : > { %v3454_v5 = vadd.f32 %v3453_v14, %v3452_v41  ;;  %v3490_v13 = vmul.f32 0.020833334, %v3489_v21 }
 0xcb5   : > { %v3455_v18 = vrot.slane %v3454_v5, 1  ;;  %v16902_v62 = vadd.f32 %v3490_v13, %v1944_v63 }
 0xcb7   : > { %v3456_v61 = vadd.f32 %v3455_v18, %v3454_v5 }
 0xcb9   : > { %v3496_v48 = vadd.f32 %v16834_v19, %v3456_v61 }
 0xcbb   : > { %v3497_v10 = vmul.f32 0.020833334, %v3496_v48 }
 0xcbd   : > { %v16906_v50 = vadd.f32 %v3497_v10, %v1951_v20 }
 0xd61   : > { %v14407_v39 = vpop.f32.mrf.mxu1 }
 0xd62   : > { %v3244_v51 = vadd.f32 %v14407_v39, %v16358_v42 }
 0xd63   : > { %v3238_v59 = vpop.f32.mrf.mxu1 }
 0xd64   : > { %v3466_v29 = vadd.f32 %v16843_v45, %v3244_v51  ;;  %v3239_v27 = vadd.f32 %v3238_v59, %v16361_v46 }
 0xd66   : > { %v3468_v43 = vmul.f32 0.020833334, %v3466_v29  ;;  %v3465_v53 = vadd.f32 %v16847_v47, %v3239_v27 }
 0xd68   : > { %v16913_v37 = vadd.f32 %v3468_v43, %v16605_v44  ;;  %v3467_v19 = vmul.f32 0.020833334, %v3465_v53 }
 0xd69   : > { %v14428_v58 = vpop.f32.mrf.mxu1 }
 0xd6a   : > { %v16916_v34 = vadd.f32 %v3467_v19, %v16608_v30  ;;  %v3433_v31 = vadd.f32 %v14428_v58, %v16358_v42  ;;  %14429 = vmatprep.subr.mxu0 %v16913_v37  ;;  %v16929_v30 = vld [vmem:[%s18830_s1 + $0x8] sm:$0xff] }
 0xd6b   : > { %v3427_v35 = vpop.f32.mrf.mxu1  ;;  %14430 = vmatpush3.msra.mxu0 %v16913_v37 }
 0xd6c   : > { %v3480_v45 = vadd.f32 %v16859_v49, %v3433_v31  ;;  %v3428_v0 = vadd.f32 %v3427_v35, %v16361_v46  ;;  %14431 = vmatprep.subr.mxu0 %v16916_v34  ;;  %v16936_v49 = vld [vmem:[%s18830_s1 + $0x10] sm:$0xff] }
 0xd6d   : > { %14432 = vmatpush3.msra.mxu0 %v16916_v34 }
 0xd6e   : > { %v3482_v44 = vmul.f32 0.020833334, %v3480_v45  ;;  %v3479_v47 = vadd.f32 %v16864_v15, %v3428_v0  ;;  %14434 = vmatmul.mubr.msk.f32.vlgmr.msra.gmra.mxu0 %vm387_vm0, %v16929_v30 }
 0xd6f   : > { %14436 = vmatprep.mubr.msk.f32.mxu0 %vm387_vm0, %v16936_v49 }
 0xd70   : > { %v16941_v1 = vadd.f32 %v3482_v44, %v16633_v8  ;;  %v3481_v15 = vmul.f32 0.020833334, %v3479_v47  ;;  %v16958_v8 = vld [vmem:[%s18830_s1] sm:$0xff]  ;;  %v16987_v44 = vld [vmem:[%s18832_s3 + $0x8] sm:$0xff] }
 0xd72   : > { %v16944_v12 = vadd.f32 %v3481_v15, %v16636_v57  ;;  %14437 = vmatmul.mubr.msk.f32.gmra.mxu0 %vm387_vm0, %v16949_v6  ;;  %14450 = vmatprep.subr.mxu0 %v16941_v1 }
 0xd73   : > { %14451 = vmatpush3.msra.mxu0 %v16941_v1  ;;  %14454 = vmatprep.mubr.msk.f32.mxu0 %vm387_vm0, %v16958_v8 }
 0xd74   : > { %14452 = vmatprep.subr.mxu0 %v16944_v12 }
 0xd75   : > { %14453 = vmatpush3.msra.mxu0 %v16944_v12 }
 0xd76   : > { %14455 = vmatmul.mubr.msk.f32.vlgmr.msra.gmra.mxu0 %vm387_vm0, %v16929_v30 }
 0xd77   : > { %14457 = vmatprep.mubr.msk.f32.mxu0 %vm387_vm0, %v16936_v49 }
 0xd7a   : > { %14458 = vmatmul.mubr.msk.f32.gmra.mxu0 %vm387_vm0, %v16949_v6 }
 0xd7b   : > { %14475 = vmatprep.mubr.msk.f32.mxu0 %vm387_vm0, %v16958_v8 }
 0xe2e   : > { %v14435_v57 = vpop.f32.mrf.mxu0 }
 0xe2f   : > { %v3571_v54 = vadd.f32 %v14435_v57, %v16343_v24  ;;  %v16994_v57 = vld [vmem:[%s18832_s3] sm:$0xff] }
 0xe30   : > { %v3565_v4 = vpop.f32.mrf.mxu0 }
 0xe31   : > { %15615 = vtanh.f32 %v3571_v54  ;;  %v3566_v60 = vadd.f32 %v3565_v4, %v16348_v28 }
 0xe32   : > { %v14438_v7 = vpop.f32.mrf.mxu0 }
 0xe33   : > { %15617 = vtanh.f32 %v3566_v60  ;;  %v3581_v16 = vadd.f32 %v14438_v7, %v16345_v25 }
 0xe34   : > { %v3575_v9 = vpop.f32.mrf.mxu0 }
 0xe35   : > { %15619 = vtanh.f32 %v3581_v16  ;;  %v3576_v17 = vadd.f32 %v3575_v9, %v16352_v33 }
 0xe36   : > { %v14456_v22 = vpop.f32.mrf.mxu0 }
 0xe37   : > { %15621 = vtanh.f32 %v3576_v17  ;;  %v3756_v26 = vadd.f32 %v14456_v22, %v16343_v24 }
 0xe38   : > { %v3750_v32 = vpop.f32.mrf.mxu0 }
 0xe39   : > { %15623 = vtanh.f32 %v3756_v26  ;;  %v3751_v3 = vadd.f32 %v3750_v32, %v16348_v28 }
 0xe3a   : > { %v14459_v23 = vpop.f32.mrf.mxu0 }
 0xe3b   : > { %15625 = vtanh.f32 %v3751_v3  ;;  %v3766_v36 = vadd.f32 %v14459_v23, %v16345_v25 }
 0xe3c   : > { %v3760_v38 = vpop.f32.mrf.mxu0 }
 0xe3d   : > { %15627 = vtanh.f32 %v3766_v36  ;;  %v3761_v40 = vadd.f32 %v3760_v38, %v16352_v33 }
 0xe3e   : > { %v15616_v55 = vpop.eup %15615 }
 0xe3f   : > { %v3664_v41 = vmul.f32 %v15616_v55, %v15616_v55  ;;  %15629 = vtanh.f32 %v3761_v40 }
 0xe40   : > { %v15618_v14 = vpop.eup %15617 }
 0xe41   : > { %v3668_v21 = vsub.f32 1.0, %v3664_v41  ;;  %v3663_v63 = vmul.f32 %v15618_v14, %v15618_v14 }
 0xe42   : > { %v15620_v5 = vpop.eup %15619 }
 0xe43   : > { %v3667_v13 = vsub.f32 1.0, %v3663_v63  ;;  %v3666_v18 = vmul.f32 %v15620_v5, %v15620_v5  ;;  %14439 = vmatprep.subr.mxu1 %v15620_v5  ;;  %v3672_v48 = vmul.f32 %v3668_v21, %v16365_v56 }
 0xe44   : > { %v15622_v61 = vpop.eup %15621  ;;  %14440 = vmatpush3.msra.mxu1 %v15620_v5 }
 0xe45   : > { %v3671_v20 = vmul.f32 %v3667_v13, %v16363_v52  ;;  %v3665_v10 = vmul.f32 %v15622_v61, %v15622_v61  ;;  %14441 = vmatprep.subr.mxu1 %v15622_v61  ;;  %v3670_v59 = vsub.f32 1.0, %v3666_v18 }
 0xe46   : > { %v15624_v39 = vpop.eup %15623  ;;  %14442 = vmatpush3.msra.mxu1 %v15622_v61 }
 0xe47   : > { %v3675_v51 = vadd.f32 %v3672_v48, %v3671_v20  ;;  %v3669_v29 = vsub.f32 1.0, %v3665_v10  ;;  %v3849_v27 = vmul.f32 %v15624_v39, %v15624_v39  ;;  %14443 = vmatprep.subr.mxu1 %v15616_v55  ;;  %v3674_v35 = vmul.f32 %v3670_v59, %v16377_v11 }
 0xe48   : > { %v15626_v43 = vpop.eup %15625  ;;  %14444 = vmatpush3.msra.mxu1 %v15616_v55 }
 0xe49   : > { %v3673_v53 = vmul.f32 %v3669_v29, %v16369_v2  ;;  %v3853_v19 = vsub.f32 1.0, %v3849_v27  ;;  %v3848_v58 = vmul.f32 %v15626_v43, %v15626_v43  ;;  %14445 = vmatprep.subr.mxu1 %v15618_v14 }
 0xe4a   : > { %v15628_v31 = vpop.eup %15627  ;;  %14446 = vmatpush3.msra.mxu1 %v15618_v14 }
 0xe4b   : > { %v3852_v45 = vsub.f32 1.0, %v3848_v58  ;;  %v3851_v0 = vmul.f32 %v15628_v31, %v15628_v31  ;;  %14448 = vmatmul.mubr.msk.f32.vlgmr.msra.gmra.mxu1 %vm489_vm1, %v16987_v44  ;;  %14460 = vmatprep.subr.mxu1 %v15628_v31  ;;  %v3676_v47 = vadd.f32 %v3675_v51, %v3673_v53  ;;  %v3857_v54 = vmul.f32 %v3853_v19, %v16365_v56 }
 0xe4c   : > { %v15630_v15 = vpop.eup %15629  ;;  %14461 = vmatpush3.msra.mxu1 %v15628_v31  ;;  %14468 = vmatprep.mubr.msk.f32.mxu1 %vm489_vm1, %v16994_v57 }
 0xe4d   : > { %v3856_v4 = vmul.f32 %v3852_v45, %v16363_v52  ;;  %v3850_v60 = vmul.f32 %v15630_v15, %v15630_v15  ;;  %14462 = vmatprep.subr.mxu1 %v15630_v15  ;;  %v17000_v7 = vadd.f32 %v3676_v47, %v3674_v35  ;;  %v3855_v9 = vsub.f32 1.0, %v3851_v0 }
 0xe4e   : > { %14463 = vmatpush3.msra.mxu1 %v15630_v15 }
 0xe4f   : > { %v3860_v16 = vadd.f32 %v3857_v54, %v3856_v4  ;;  %v3854_v17 = vsub.f32 1.0, %v3850_v60  ;;  %14464 = vmatprep.subr.mxu1 %v15624_v39  ;;  %v3859_v26 = vmul.f32 %v3855_v9, %v16377_v11 }
 0xe50   : > { %14465 = vmatpush3.msra.mxu1 %v15624_v39 }
 0xe51   : > { %v3858_v22 = vmul.f32 %v3854_v17, %v16369_v2  ;;  %14466 = vmatprep.subr.mxu1 %v15626_v43 }
 0xe52   : > { %14467 = vmatpush3.msra.mxu1 %v15626_v43 }
 0xe53   : > { %14469 = vmatmul.mubr.msk.f32.vlgmr.msra.gmra.mxu1 %vm489_vm1, %v16987_v44  ;;  %v3861_v32 = vadd.f32 %v3860_v16, %v3858_v22 }
 0xe54   : > { %14489 = vmatprep.mubr.msk.f32.mxu1 %vm489_vm1, %v16994_v57 }
 0xe55   : > { %v17008_v3 = vadd.f32 %v3861_v32, %v3859_v26 }
 0xf0b   : > { %v14449_v23 = vpop.f32.mrf.mxu1 }
 0xf0c   : > { %v17011_v36 = vadd.f32 %v14449_v23, %v16358_v42 }
 0xf0d   : > { %v3654_v38 = vpop.f32.mrf.mxu1 }
 0xf0e   : > { %v3870_v40 = vmul.f32 0.0625, %v17011_v36  ;;  %v17015_v55 = vadd.f32 %v3654_v38, %v16361_v46 }
 0xf10   : > { %v3869_v41 = vmul.f32 0.0625, %v17015_v55  ;;  %v3872_v14 = vadd.f32 %v3870_v40, %v16913_v37 }
 0xf12   : > { %14471 = vmatprep.subr.mxu0 %v3872_v14  ;;  %v3871_v21 = vadd.f32 %v3869_v41, %v16916_v34 }
 0xf13   : > { %v14470_v63 = vpop.f32.mrf.mxu1  ;;  %14472 = vmatpush3.msra.mxu0 %v3872_v14 }
 0xf14   : > { %v17021_v5 = vadd.f32 %v14470_v63, %v16358_v42  ;;  %14473 = vmatprep.subr.mxu0 %v3871_v21 }
 0xf15   : > { %v3839_v13 = vpop.f32.mrf.mxu1  ;;  %14474 = vmatpush3.msra.mxu0 %v3871_v21  ;;  %v3678_v21 = vrot.slane %v17000_v7, 4 }
 0xf16   : > { %v4059_v18 = vmul.f32 0.0625, %v17021_v5  ;;  %v17025_v61 = vadd.f32 %v3839_v13, %v16361_v46  ;;  %14476 = vmatmul.mubr.msk.f32.vlgmr.msra.gmra.mxu0 %vm387_vm0, %v16929_v30 }
 0xf17   : > { %14478 = vmatprep.mubr.msk.f32.mxu0 %vm387_vm0, %v16936_v49 }
 0xf18   : > { %v4058_v48 = vmul.f32 0.0625, %v17025_v61  ;;  %v4061_v20 = vadd.f32 %v4059_v18, %v16941_v1 }
 0xf1a   : > { %14479 = vmatmul.mubr.msk.f32.gmra.mxu0 %vm387_vm0, %v16949_v6  ;;  %14492 = vmatprep.subr.mxu0 %v4061_v20  ;;  %v4060_v10 = vadd.f32 %v4058_v48, %v16944_v12 }
 0xf1b   : > { %14493 = vmatpush3.msra.mxu0 %v4061_v20  ;;  %14496 = vmatprep.mubr.msk.f32.mxu0 %vm387_vm0, %v16958_v8 }
 0xf1c   : > { %14494 = vmatprep.subr.mxu0 %v4060_v10 }
 0xf1d   : > { %14495 = vmatpush3.msra.mxu0 %v4060_v10 }
 0xf1e   : > { %14497 = vmatmul.mubr.msk.f32.vlgmr.msra.gmra.mxu0 %vm387_vm0, %v16929_v30 }
 0xf1f   : > { %14499 = vmatprep.mubr.msk.f32.mxu0 %vm387_vm0, %v16936_v49 }
 0xf22   : > { %14500 = vmatmul.mubr.msk.f32.gmra.mxu0 %vm387_vm0, %v16949_v6 }
 0xf23   : > { %14517 = vmatprep.mubr.msk.f32.mxu0 %vm387_vm0, %v16958_v8 }
 0xfd6   : > { %v14477_v39 = vpop.f32.mrf.mxu0 }
 0xfd7   : > { %v3945_v51 = vadd.f32 %v14477_v39, %v16343_v24 }
 0xfd8   : > { %v3939_v59 = vpop.f32.mrf.mxu0 }
 0xfd9   : > { %15631 = vtanh.f32 %v3945_v51  ;;  %v3940_v29 = vadd.f32 %v3939_v59, %v16348_v28 }
 0xfda   : > { %v14480_v27 = vpop.f32.mrf.mxu0 }
 0xfdb   : > { %15633 = vtanh.f32 %v3940_v29  ;;  %v3955_v43 = vadd.f32 %v14480_v27, %v16345_v25  ;;  %v3679_v29 = vadd.f32 %v3678_v21, %v17000_v7 }
 0xfdc   : > { %v3949_v53 = vpop.f32.mrf.mxu0 }
 0xfdd   : > { %15635 = vtanh.f32 %v3955_v43  ;;  %v3950_v19 = vadd.f32 %v3949_v53, %v16352_v33 }
 0xfde   : > { %v14498_v58 = vpop.f32.mrf.mxu0 }
 0xfdf   : > { %15637 = vtanh.f32 %v3950_v19  ;;  %v4134_v31 = vadd.f32 %v14498_v58, %v16343_v24 }
 0xfe0   : > { %v4128_v35 = vpop.f32.mrf.mxu0 }
 0xfe1   : > { %15639 = vtanh.f32 %v4134_v31  ;;  %v4129_v45 = vadd.f32 %v4128_v35, %v16348_v28 }
 0xfe2   : > { %v14501_v0 = vpop.f32.mrf.mxu0 }
 0xfe3   : > { %15641 = vtanh.f32 %v4129_v45  ;;  %v4144_v47 = vadd.f32 %v14501_v0, %v16345_v25  ;;  %v3680_v0 = vrot.slane %v3679_v29, 2 }
 0xfe4   : > { %v4138_v15 = vpop.f32.mrf.mxu0 }
 0xfe5   : > { %15643 = vtanh.f32 %v4144_v47  ;;  %v4139_v54 = vadd.f32 %v4138_v15, %v16352_v33  ;;  %v3863_v47 = vrot.slane %v17008_v3, 4 }
 0xfe6   : > { %v15632_v4 = vpop.eup %15631 }
 0xfe7   : > { %v4038_v60 = vmul.f32 %v15632_v4, %v15632_v4  ;;  %15645 = vtanh.f32 %v4139_v54 }
 0xfe8   : > { %v15634_v16 = vpop.eup %15633 }
 0xfe9   : > { %v4042_v9 = vsub.f32 1.0, %v4038_v60  ;;  %v4037_v17 = vmul.f32 %v15634_v16, %v15634_v16 }
 0xfea   : > { %v15636_v22 = vpop.eup %15635 }
 0xfeb   : > { %v4041_v26 = vsub.f32 1.0, %v4037_v17  ;;  %v4040_v32 = vmul.f32 %v15636_v22, %v15636_v22  ;;  %14481 = vmatprep.subr.mxu1 %v15636_v22  ;;  %v4046_v38 = vmul.f32 %v4042_v9, %v16365_v56  ;;  %v3681_v17 = vadd.f32 %v3680_v0, %v3679_v29 }
 0xfec   : > { %v15638_v23 = vpop.eup %15637  ;;  %14482 = vmatpush3.msra.mxu1 %v15636_v22 }
 0xfed   : > { %v4045_v40 = vmul.f32 %v4041_v26, %v16363_v52  ;;  %v4039_v41 = vmul.f32 %v15638_v23, %v15638_v23  ;;  %14483 = vmatprep.subr.mxu1 %v15638_v23  ;;  %v4044_v13 = vsub.f32 1.0, %v4040_v32  ;;  %v3864_v26 = vadd.f32 %v3863_v47, %v17008_v3 }
 0xfee   : > { %v15640_v14 = vpop.eup %15639  ;;  %14484 = vmatpush3.msra.mxu1 %v15638_v23 }
 0xfef   : > { %v4049_v63 = vadd.f32 %v4046_v38, %v4045_v40  ;;  %v4043_v18 = vsub.f32 1.0, %v4039_v41  ;;  %v4227_v48 = vmul.f32 %v15640_v14, %v15640_v14  ;;  %14485 = vmatprep.subr.mxu1 %v15632_v4  ;;  %v4048_v27 = vmul.f32 %v4044_v13, %v16377_v11 }
 0xff0   : > { %v15642_v20 = vpop.eup %15641  ;;  %14486 = vmatpush3.msra.mxu1 %v15632_v4  ;;  %v3682_v41 = vrot.slane %v3681_v17, 1 }
 0xff1   : > { %v4047_v10 = vmul.f32 %v4043_v18, %v16369_v2  ;;  %v4231_v39 = vsub.f32 1.0, %v4227_v48  ;;  %v4226_v51 = vmul.f32 %v15642_v20, %v15642_v20  ;;  %14487 = vmatprep.subr.mxu1 %v15634_v16 }
 0xff2   : > { %v15644_v59 = vpop.eup %15643  ;;  %14488 = vmatpush3.msra.mxu1 %v15634_v16  ;;  %v3683_v48 = vadd.f32 %v3682_v41, %v3681_v17 }
 0xff3   : > { %v4230_v43 = vsub.f32 1.0, %v4226_v51  ;;  %v4229_v53 = vmul.f32 %v15644_v59, %v15644_v59  ;;  %14490 = vmatmul.mubr.msk.f32.vlgmr.msra.gmra.mxu1 %vm489_vm1, %v16987_v44  ;;  %14502 = vmatprep.subr.mxu1 %v15644_v59  ;;  %v4050_v19 = vadd.f32 %v4049_v63, %v4047_v10  ;;  %v4235_v31 = vmul.f32 %v4231_v39, %v16365_v56 }
 0xff4   : > { %v15646_v58 = vpop.eup %15645  ;;  %14503 = vmatpush3.msra.mxu1 %v15644_v59  ;;  %14510 = vmatprep.mubr.msk.f32.mxu1 %vm489_vm1, %v16994_v57 }
 0xff5   : > { %v4234_v35 = vmul.f32 %v4230_v43, %v16363_v52  ;;  %v4228_v45 = vmul.f32 %v15646_v58, %v15646_v58  ;;  %14504 = vmatprep.subr.mxu1 %v15646_v58  ;;  %v4051_v7 = vadd.f32 %v4050_v19, %v4048_v27  ;;  %v4233_v54 = vsub.f32 1.0, %v4229_v53 }
 0xff6   : > { %14505 = vmatpush3.msra.mxu1 %v15646_v58 }
 0xff7   : > { %v4238_v15 = vadd.f32 %v4235_v31, %v4234_v35  ;;  %v4232_v4 = vsub.f32 1.0, %v4228_v45  ;;  %14506 = vmatprep.subr.mxu1 %v15640_v14  ;;  %v4052_v60 = vrot.slane %v4051_v7, 4  ;;  %v4237_v22 = vmul.f32 %v4233_v54, %v16377_v11 }
 0xff8   : > { %14507 = vmatpush3.msra.mxu1 %v15640_v14  ;;  %v3865_v14 = vrot.slane %v3864_v26, 2 }
 0xff9   : > { %v4236_v16 = vmul.f32 %v4232_v4, %v16369_v2  ;;  %14508 = vmatprep.subr.mxu1 %v15642_v20  ;;  %v4053_v9 = vadd.f32 %v4052_v60, %v4051_v7 }
 0xffa   : > { %14509 = vmatpush3.msra.mxu1 %v15642_v20  ;;  %v3866_v20 = vadd.f32 %v3865_v14, %v3864_v26 }
 0xffb   : > { %14511 = vmatmul.mubr.msk.f32.vlgmr.msra.gmra.mxu1 %vm489_vm1, %v16987_v44  ;;  %v4054_v32 = vrot.slane %v4053_v9, 2  ;;  %v4239_v23 = vadd.f32 %v4238_v15, %v4236_v16 }
 0xffc   : > { %14531 = vmatprep.mubr.msk.f32.mxu1 %vm489_vm1, %v16994_v57  ;;  %v3867_v3 = vrot.slane %v3866_v20, 1 }
 0xffd   : > { %v4055_v38 = vadd.f32 %v4054_v32, %v4053_v9  ;;  %v4240_v40 = vadd.f32 %v4239_v23, %v4237_v22 }
 0xffe   : > { %v3868_v43 = vadd.f32 %v3867_v3, %v3866_v20 }
 0xfff   : > { %v4056_v21 = vrot.slane %v4055_v38, 1  ;;  %v4241_v63 = vrot.slane %v4240_v40, 4 }
0x1001   : > { %v4057_v13 = vadd.f32 %v4056_v21, %v4055_v38  ;;  %v4242_v18 = vadd.f32 %v4241_v63, %v4240_v40 }
0x1003   : > { %v4243_v10 = vrot.slane %v4242_v18, 2  ;;  %v5031_v39 = vmul.f32 2.0, %v4057_v13 }
0x1005   : > { %v4244_v51 = vadd.f32 %v4243_v10, %v4242_v18  ;;  %v17074_v59 = vadd.f32 %v5031_v39, %v3683_v48 }
0x1007   : > { %v4245_v29 = vrot.slane %v4244_v51, 1 }
0x1009   : > { %v4246_v27 = vadd.f32 %v4245_v29, %v4244_v51 }
0x100b   : > { %v5038_v53 = vmul.f32 2.0, %v4246_v27 }
0x100d   : > { %v17076_v19 = vadd.f32 %v5038_v53, %v3868_v43 }
0x10b3   : > { %v14491_v58 = vpop.f32.mrf.mxu1 }
0x10b4   : > { %v17079_v31 = vadd.f32 %v14491_v58, %v16358_v42 }
0x10b5   : > { %v4028_v35 = vpop.f32.mrf.mxu1 }
0x10b6   : > { %v4248_v45 = vmul.f32 0.0625, %v17079_v31  ;;  %v17083_v7 = vadd.f32 %v4028_v35, %v16361_v46 }
0x10b8   : > { %v4247_v0 = vmul.f32 0.0625, %v17083_v7  ;;  %v4250_v47 = vadd.f32 %v4248_v45, %v16913_v37 }
0x10ba   : > { %14513 = vmatprep.subr.mxu0 %v4250_v47  ;;  %v4249_v15 = vadd.f32 %v4247_v0, %v16916_v34 }
0x10bb   : > { %v14512_v54 = vpop.f32.mrf.mxu1  ;;  %14514 = vmatpush3.msra.mxu0 %v4250_v47 }
0x10bc   : > { %v17089_v4 = vadd.f32 %v14512_v54, %v16358_v42  ;;  %14515 = vmatprep.subr.mxu0 %v4249_v15 }
0x10bd   : > { %v4217_v60 = vpop.f32.mrf.mxu1  ;;  %14516 = vmatpush3.msra.mxu0 %v4249_v15 }
0x10be   : > { %v4437_v16 = vmul.f32 0.0625, %v17089_v4  ;;  %v17093_v9 = vadd.f32 %v4217_v60, %v16361_v46  ;;  %14518 = vmatmul.mubr.msk.f32.vlgmr.msra.gmra.mxu0 %vm387_vm0, %v16929_v30 }
0x10bf   : > { %14520 = vmatprep.mubr.msk.f32.mxu0 %vm387_vm0, %v16936_v49 }
0x10c0   : > { %v4436_v17 = vmul.f32 0.0625, %v17093_v9  ;;  %v4439_v22 = vadd.f32 %v4437_v16, %v16941_v1 }
0x10c2   : > { %14521 = vmatmul.mubr.msk.f32.gmra.mxu0 %vm387_vm0, %v16949_v6  ;;  %14534 = vmatprep.subr.mxu0 %v4439_v22  ;;  %v4438_v26 = vadd.f32 %v4436_v17, %v16944_v12 }
0x10c3   : > { %14535 = vmatpush3.msra.mxu0 %v4439_v22  ;;  %14538 = vmatprep.mubr.msk.f32.mxu0 %vm387_vm0, %v16958_v8 }
0x10c4   : > { %14536 = vmatprep.subr.mxu0 %v4438_v26 }
0x10c5   : > { %14537 = vmatpush3.msra.mxu0 %v4438_v26 }
0x10c6   : > { %14539 = vmatmul.mubr.msk.f32.vlgmr.msra.gmra.mxu0 %vm387_vm0, %v16929_v30 }
0x10c7   : > { %14541 = vmatprep.mubr.msk.f32.mxu0 %vm387_vm0, %v16936_v49 }
0x10ca   : > { %14542 = vmatmul.mubr.msk.f32.gmra.mxu0 %vm387_vm0, %v16949_v6 }
0x10cb   : > { %14559 = vmatprep.mubr.msk.f32.mxu0 %vm387_vm0, %v16958_v8 }
0x117e   : > { %v14519_v32 = vpop.f32.mrf.mxu0 }
0x117f   : > { %v4323_v23 = vadd.f32 %v14519_v32, %v16343_v24 }
0x1180   : > { %v4317_v38 = vpop.f32.mrf.mxu0 }
0x1181   : > { %15647 = vtanh.f32 %v4323_v23  ;;  %v4318_v40 = vadd.f32 %v4317_v38, %v16348_v28 }
0x1182   : > { %v14522_v41 = vpop.f32.mrf.mxu0 }
0x1183   : > { %15649 = vtanh.f32 %v4318_v40  ;;  %v4333_v14 = vadd.f32 %v14522_v41, %v16345_v25 }
0x1184   : > { %v4327_v21 = vpop.f32.mrf.mxu0 }
0x1185   : > { %15651 = vtanh.f32 %v4333_v14  ;;  %v4328_v63 = vadd.f32 %v4327_v21, %v16352_v33 }
0x1186   : > { %v14540_v13 = vpop.f32.mrf.mxu0 }
0x1187   : > { %15653 = vtanh.f32 %v4328_v63  ;;  %v4512_v18 = vadd.f32 %v14540_v13, %v16343_v24 }
0x1188   : > { %v4506_v48 = vpop.f32.mrf.mxu0 }
0x1189   : > { %15655 = vtanh.f32 %v4512_v18  ;;  %v4507_v20 = vadd.f32 %v4506_v48, %v16348_v28 }
0x118a   : > { %v14543_v10 = vpop.f32.mrf.mxu0 }
0x118b   : > { %15657 = vtanh.f32 %v4507_v20  ;;  %v4522_v39 = vadd.f32 %v14543_v10, %v16345_v25 }
0x118c   : > { %v4516_v51 = vpop.f32.mrf.mxu0 }
0x118d   : > { %15659 = vtanh.f32 %v4522_v39  ;;  %v4517_v3 = vadd.f32 %v4516_v51, %v16352_v33 }
0x118e   : > { %v15648_v29 = vpop.eup %15647 }
0x118f   : > { %v4416_v27 = vmul.f32 %v15648_v29, %v15648_v29  ;;  %15661 = vtanh.f32 %v4517_v3 }
0x1190   : > { %v15650_v43 = vpop.eup %15649 }
0x1191   : > { %v4420_v53 = vsub.f32 1.0, %v4416_v27  ;;  %v4415_v58 = vmul.f32 %v15650_v43, %v15650_v43 }
0x1192   : > { %v15652_v35 = vpop.eup %15651 }
0x1193   : > { %v4419_v45 = vsub.f32 1.0, %v4415_v58  ;;  %v4418_v0 = vmul.f32 %v15652_v35, %v15652_v35  ;;  %14523 = vmatprep.subr.mxu1 %v15652_v35  ;;  %v4424_v15 = vmul.f32 %v4420_v53, %v16365_v56 }
0x1194   : > { %v15654_v47 = vpop.eup %15653  ;;  %14524 = vmatpush3.msra.mxu1 %v15652_v35 }
0x1195   : > { %v4423_v54 = vmul.f32 %v4419_v45, %v16363_v52  ;;  %v4417_v60 = vmul.f32 %v15654_v47, %v15654_v47  ;;  %14525 = vmatprep.subr.mxu1 %v15654_v47  ;;  %v4422_v17 = vsub.f32 1.0, %v4418_v0 }
0x1196   : > { %v15656_v16 = vpop.eup %15655  ;;  %14526 = vmatpush3.msra.mxu1 %v15654_v47 }
0x1197   : > { %v4421_v22 = vsub.f32 1.0, %v4417_v60  ;;  %v4605_v26 = vmul.f32 %v15656_v16, %v15656_v16  ;;  %14527 = vmatprep.subr.mxu1 %v15648_v29  ;;  %v4427_v32 = vadd.f32 %v4424_v15, %v4423_v54  ;;  %v4426_v21 = vmul.f32 %v4422_v17, %v16377_v11 }
0x1198   : > { %v15658_v23 = vpop.eup %15657  ;;  %14528 = vmatpush3.msra.mxu1 %v15648_v29 }
0x1199   : > { %v4425_v38 = vmul.f32 %v4421_v22, %v16369_v2  ;;  %v4609_v40 = vsub.f32 1.0, %v4605_v26  ;;  %v4604_v41 = vmul.f32 %v15658_v23, %v15658_v23  ;;  %14529 = vmatprep.subr.mxu1 %v15650_v43 }
0x119a   : > { %v15660_v14 = vpop.eup %15659  ;;  %14530 = vmatpush3.msra.mxu1 %v15650_v43 }
0x119b   : > { %v4608_v63 = vsub.f32 1.0, %v4604_v41  ;;  %v4607_v13 = vmul.f32 %v15660_v14, %v15660_v14  ;;  %14532 = vmatmul.mubr.msk.f32.vlgmr.msra.gmra.mxu1 %vm489_vm1, %v16987_v44  ;;  %14544 = vmatprep.subr.mxu1 %v15660_v14  ;;  %v4428_v18 = vadd.f32 %v4427_v32, %v4425_v38  ;;  %v4613_v20 = vmul.f32 %v4609_v40, %v16365_v56 }
0x119c   : > { %v15662_v48 = vpop.eup %15661  ;;  %14545 = vmatpush3.msra.mxu1 %v15660_v14  ;;  %14552 = vmatprep.mubr.msk.f32.mxu1 %vm489_vm1, %v16994_v57 }
0x119d   : > { %v4612_v10 = vmul.f32 %v4608_v63, %v16363_v52  ;;  %v4606_v39 = vmul.f32 %v15662_v48, %v15662_v48  ;;  %14546 = vmatprep.subr.mxu1 %v15662_v48  ;;  %v4429_v51 = vadd.f32 %v4428_v18, %v4426_v21  ;;  %v4611_v3 = vsub.f32 1.0, %v4607_v13 }
0x119e   : > { %14547 = vmatpush3.msra.mxu1 %v15662_v48  ;;  %v5004_v21 = vmul.f32 2.0, %v17079_v31  ;;  %v5003_v63 = vmul.f32 2.0, %v17083_v7  ;;  %v5018_v31 = vmul.f32 2.0, %v17089_v4 }
0x119f   : > { %v4610_v29 = vsub.f32 1.0, %v4606_v39  ;;  %14548 = vmatprep.subr.mxu1 %v15656_v16  ;;  %v4430_v27 = vrot.slane %v4429_v51, 4  ;;  %v4616_v43 = vadd.f32 %v4613_v20, %v4612_v10  ;;  %v4615_v35 = vmul.f32 %v4611_v3, %v16377_v11 }
0x11a0   : > { %14549 = vmatpush3.msra.mxu1 %v15656_v16  ;;  %v5006_v20 = vadd.f32 %v5004_v21, %v17011_v36  ;;  %v5017_v36 = vmul.f32 2.0, %v17093_v9 }
0x11a1   : > { %v4614_v53 = vmul.f32 %v4610_v29, %v16369_v2  ;;  %14550 = vmatprep.subr.mxu1 %v15658_v23  ;;  %v4431_v58 = vadd.f32 %v4430_v27, %v4429_v51  ;;  %v5005_v51 = vadd.f32 %v5003_v63, %v17015_v55 }
0x11a2   : > { %14551 = vmatpush3.msra.mxu1 %v15658_v23 }
0x11a3   : > { %14553 = vmatmul.mubr.msk.f32.vlgmr.msra.gmra.mxu1 %vm489_vm1, %v16987_v44  ;;  %v4432_v45 = vrot.slane %v4431_v58, 2  ;;  %v4617_v0 = vadd.f32 %v4616_v43, %v4614_v53 }
0x11a4   : > { %14573 = vmatprep.mubr.msk.f32.mxu1 %vm489_vm1, %v16994_v57 }
0x11a5   : > { %v4433_v47 = vadd.f32 %v4432_v45, %v4431_v58  ;;  %v4618_v15 = vadd.f32 %v4617_v0, %v4615_v35  ;;  %v5020_v35 = vadd.f32 %v5018_v31, %v17021_v5 }
0x11a7   : > { %v4434_v54 = vrot.slane %v4433_v47, 1  ;;  %v4619_v60 = vrot.slane %v4618_v15, 4 }
0x11a9   : > { %v4435_v16 = vadd.f32 %v4434_v54, %v4433_v47  ;;  %v4620_v17 = vadd.f32 %v4619_v60, %v4618_v15  ;;  %v5019_v47 = vadd.f32 %v5017_v36, %v17025_v61 }
0x11ab   : > { %v4621_v22 = vrot.slane %v4620_v17, 2  ;;  %v5033_v26 = vmul.f32 2.0, %v4435_v16 }
0x11ad   : > { %v4622_v32 = vadd.f32 %v4621_v22, %v4620_v17  ;;  %v17139_v23 = vadd.f32 %v5033_v26, %v17074_v59 }
0x11af   : > { %v4623_v38 = vrot.slane %v4622_v32, 1 }
0x11b1   : > { %v4624_v40 = vadd.f32 %v4623_v38, %v4622_v32 }
0x11b3   : > { %v5040_v41 = vmul.f32 2.0, %v4624_v40 }
0x11b5   : > { %v17142_v14 = vadd.f32 %v5040_v41, %v17076_v19 }
0x125b   : > { %v14533_v13 = vpop.f32.mrf.mxu1 }
0x125c   : > { %v4412_v18 = vadd.f32 %v14533_v13, %v16358_v42 }
0x125d   : > { %v4406_v48 = vpop.f32.mrf.mxu1 }
0x125e   : > { %v4626_v10 = vmul.f32 0.125, %v4412_v18  ;;  %v5008_v39 = vmul.f32 2.0, %v4412_v18  ;;  %v4407_v59 = vadd.f32 %v4406_v48, %v16361_v46 }
0x1260   : > { %v4625_v3 = vmul.f32 0.125, %v4407_v59  ;;  %v5007_v29 = vmul.f32 2.0, %v4407_v59  ;;  %v4628_v19 = vadd.f32 %v4626_v10, %v16913_v37  ;;  %v17151_v27 = vadd.f32 %v5008_v39, %v5006_v20 }
0x1262   : > { %14555 = vmatprep.subr.mxu0 %v4628_v19  ;;  %v4627_v7 = vadd.f32 %v4625_v3, %v16916_v34  ;;  %v17155_v43 = vadd.f32 %v5007_v29, %v5005_v51 }
0x1263   : > { %v14554_v53 = vpop.f32.mrf.mxu1  ;;  %14556 = vmatpush3.msra.mxu0 %v4628_v19 }
0x1264   : > { %v4601_v58 = vadd.f32 %v14554_v53, %v16358_v42  ;;  %14557 = vmatprep.subr.mxu0 %v4627_v7 }
0x1265   : > { %v4595_v55 = vpop.f32.mrf.mxu1  ;;  %14558 = vmatpush3.msra.mxu0 %v4627_v7 }
0x1266   : > { %v4815_v45 = vmul.f32 0.125, %v4601_v58  ;;  %v5022_v0 = vmul.f32 2.0, %v4601_v58  ;;  %v4596_v4 = vadd.f32 %v4595_v55, %v16361_v46  ;;  %14560 = vmatmul.mubr.msk.f32.vlgmr.msra.gmra.mxu0 %vm387_vm0, %v16929_v30 }
0x1267   : > { %14562 = vmatprep.mubr.msk.f32.mxu0 %vm387_vm0, %v16936_v49 }
0x1268   : > { %v4814_v9 = vmul.f32 0.125, %v4596_v4  ;;  %v5021_v15 = vmul.f32 2.0, %v4596_v4  ;;  %v4817_v54 = vadd.f32 %v4815_v45, %v16941_v1  ;;  %v17167_v60 = vadd.f32 %v5022_v0, %v5020_v35 }
0x126a   : > { %14563 = vmatmul.mubr.msk.f32.gmra.mxu0 %vm387_vm0, %v16949_v6  ;;  %14576 = vmatprep.subr.mxu0 %v4817_v54  ;;  %v4816_v5 = vadd.f32 %v4814_v9, %v16944_v12  ;;  %v17172_v16 = vadd.f32 %v5021_v15, %v5019_v47 }
0x126b   : > { %14577 = vmatpush3.msra.mxu0 %v4817_v54  ;;  %14580 = vmatprep.mubr.msk.f32.mxu0 %vm387_vm0, %v16958_v8 }
0x126c   : > { %14578 = vmatprep.subr.mxu0 %v4816_v5 }
0x126d   : > { %14579 = vmatpush3.msra.mxu0 %v4816_v5 }
0x126e   : > { %14581 = vmatmul.mubr.msk.f32.vlgmr.msra.gmra.mxu0 %vm387_vm0, %v16929_v30 }
0x126f   : > { %14583 = vmatprep.mubr.msk.f32.mxu0 %vm387_vm0, %v16936_v49 }
0x1272   : > { %14584 = vmatmul.mubr.msk.f32.gmra.mxu0 %vm387_vm0, %v16949_v6 }
0x1273   : > { %14601 = vmatprep.mubr.msk.f32.mxu0 %vm387_vm0, %v16958_v8 }
0x1326   : > { %v14561_v61 = vpop.f32.mrf.mxu0 }
0x1327   : > { %v4701_v17 = vadd.f32 %v14561_v61, %v16343_v24 }
0x1328   : > { %v4695_v22 = vpop.f32.mrf.mxu0 }
0x1329   : > { %15663 = vtanh.f32 %v4701_v17  ;;  %v4696_v26 = vadd.f32 %v4695_v22, %v16348_v28 }
0x132a   : > { %v14564_v32 = vpop.f32.mrf.mxu0 }
0x132b   : > { %15665 = vtanh.f32 %v4696_v26  ;;  %v4711_v30 = vadd.f32 %v14564_v32, %v16345_v25 }
0x132c   : > { %v4705_v38 = vpop.f32.mrf.mxu0 }
0x132d   : > { %15667 = vtanh.f32 %v4711_v30  ;;  %v4706_v49 = vadd.f32 %v4705_v38, %v16352_v33 }
0x132e   : > { %v14582_v40 = vpop.f32.mrf.mxu0 }
0x132f   : > { %15669 = vtanh.f32 %v4706_v49  ;;  %v4890_v6 = vadd.f32 %v14582_v40, %v16343_v24 }
0x1330   : > { %v4884_v8 = vpop.f32.mrf.mxu0 }
0x1331   : > { %15671 = vtanh.f32 %v4890_v6  ;;  %v4885_v41 = vadd.f32 %v4884_v8, %v16348_v28 }
0x1332   : > { %v14585_v21 = vpop.f32.mrf.mxu0 }
0x1333   : > { %15673 = vtanh.f32 %v4885_v41  ;;  %v4900_v63 = vadd.f32 %v14585_v21, %v16345_v25 }
0x1334   : > { %v4894_v13 = vpop.f32.mrf.mxu0 }
0x1335   : > { %15675 = vtanh.f32 %v4900_v63  ;;  %v4895_v18 = vadd.f32 %v4894_v13, %v16352_v33 }
0x1336   : > { %v15664_v48 = vpop.eup %15663 }
0x1337   : > { %v4794_v20 = vmul.f32 %v15664_v48, %v15664_v48  ;;  %15677 = vtanh.f32 %v4895_v18 }
0x1338   : > { %v15666_v10 = vpop.eup %15665 }
0x1339   : > { %v4798_v39 = vsub.f32 1.0, %v4794_v20  ;;  %v4793_v59 = vmul.f32 %v15666_v10, %v15666_v10 }
0x133a   : > { %v15668_v51 = vpop.eup %15667 }
0x133b   : > { %v4797_v3 = vsub.f32 1.0, %v4793_v59  ;;  %v4796_v29 = vmul.f32 %v15668_v51, %v15668_v51  ;;  %14565 = vmatprep.subr.mxu1 %v15668_v51  ;;  %v4802_v31 = vmul.f32 %v4798_v39, %v16365_v56 }
0x133c   : > { %v15670_v19 = vpop.eup %15669  ;;  %14566 = vmatpush3.msra.mxu1 %v15668_v51 }
0x133d   : > { %v4801_v7 = vmul.f32 %v4797_v3, %v16363_v52  ;;  %v4795_v36 = vmul.f32 %v15670_v19, %v15670_v19  ;;  %14567 = vmatprep.subr.mxu1 %v15670_v19  ;;  %v4800_v58 = vsub.f32 1.0, %v4796_v29 }
0x133e   : > { %v15672_v53 = vpop.eup %15671  ;;  %14568 = vmatpush3.msra.mxu1 %v15670_v19 }
0x133f   : > { %v4799_v55 = vsub.f32 1.0, %v4795_v36  ;;  %v4983_v35 = vmul.f32 %v15672_v53, %v15672_v53  ;;  %14569 = vmatprep.subr.mxu1 %v15664_v48  ;;  %v4805_v45 = vadd.f32 %v4802_v31, %v4801_v7  ;;  %v4804_v61 = vmul.f32 %v4800_v58, %v16377_v11 }
0x1340   : > { %v15674_v0 = vpop.eup %15673  ;;  %14570 = vmatpush3.msra.mxu1 %v15664_v48 }
0x1341   : > { %v4987_v4 = vsub.f32 1.0, %v4983_v35  ;;  %v4982_v47 = vmul.f32 %v15674_v0, %v15674_v0  ;;  %14571 = vmatprep.subr.mxu1 %v15666_v10  ;;  %v4803_v9 = vmul.f32 %v4799_v55, %v16369_v2 }
0x1342   : > { %v15676_v15 = vpop.eup %15675  ;;  %14572 = vmatpush3.msra.mxu1 %v15666_v10 }
0x1343   : > { %v4986_v54 = vsub.f32 1.0, %v4982_v47  ;;  %v4985_v5 = vmul.f32 %v15676_v15, %v15676_v15  ;;  %14574 = vmatmul.mubr.msk.f32.vlgmr.msra.gmra.mxu1 %vm489_vm1, %v16987_v44  ;;  %14586 = vmatprep.subr.mxu1 %v15676_v15  ;;  %v4806_v17 = vadd.f32 %v4805_v45, %v4803_v9  ;;  %v4991_v26 = vmul.f32 %v4987_v4, %v16365_v56 }
0x1344   : > { %v15678_v22 = vpop.eup %15677  ;;  %14587 = vmatpush3.msra.mxu1 %v15676_v15  ;;  %14594 = vmatprep.mubr.msk.f32.mxu1 %vm489_vm1, %v16994_v57 }
0x1345   : > { %v4990_v32 = vmul.f32 %v4986_v54, %v16363_v52  ;;  %v4984_v30 = vmul.f32 %v15678_v22, %v15678_v22  ;;  %14588 = vmatprep.subr.mxu1 %v15678_v22  ;;  %v4807_v38 = vadd.f32 %v4806_v17, %v4804_v61  ;;  %v4989_v49 = vsub.f32 1.0, %v4985_v5 }
0x1346   : > { %14589 = vmatpush3.msra.mxu1 %v15678_v22  ;;  %v17257_v22 = vld [vmem:[%s18830_s1 + $0x18] sm:$0xff] }
0x1347   : > { %v4988_v40 = vsub.f32 1.0, %v4984_v30  ;;  %14590 = vmatprep.subr.mxu1 %v15672_v53  ;;  %v4808_v6 = vrot.slane %v4807_v38, 4  ;;  %v4994_v8 = vadd.f32 %v4991_v26, %v4990_v32  ;;  %v4993_v13 = vmul.f32 %v4989_v49, %v16377_v11 }
0x1348   : > { %14591 = vmatpush3.msra.mxu1 %v15672_v53 }
0x1349   : > { %14592 = vmatprep.subr.mxu1 %v15674_v0  ;;  %v4809_v41 = vadd.f32 %v4808_v6, %v4807_v38  ;;  %v4992_v21 = vmul.f32 %v4988_v40, %v16369_v2 }
0x134a   : > { %14593 = vmatpush3.msra.mxu1 %v15674_v0 }
0x134b   : > { %14595 = vmatmul.mubr.msk.f32.vlgmr.msra.gmra.mxu1 %vm489_vm1, %v16987_v44  ;;  %v4810_v63 = vrot.slane %v4809_v41, 2  ;;  %v4995_v18 = vadd.f32 %v4994_v8, %v4992_v21 }
0x134c   : > { %14615 = vmatprep.mubr.msk.f32.mxu1 %vm489_vm1, %v16994_v57 }
0x134d   : > { %v4811_v48 = vadd.f32 %v4810_v63, %v4809_v41  ;;  %v4996_v20 = vadd.f32 %v4995_v18, %v4993_v13 }
0x134f   : > { %v4812_v10 = vrot.slane %v4811_v48, 1  ;;  %v4997_v39 = vrot.slane %v4996_v20, 4 }
0x1351   : > { %v4813_v59 = vadd.f32 %v4812_v10, %v4811_v48  ;;  %v4998_v51 = vadd.f32 %v4997_v39, %v4996_v20 }
0x1353   : > { %v4999_v3 = vrot.slane %v4998_v51, 2  ;;  %v5035_v29 = vadd.f32 %v17139_v23, %v4813_v59 }
0x1355   : > { %v5000_v19 = vadd.f32 %v4999_v3, %v4998_v51  ;;  %v5036_v31 = vmul.f32 0.020833334, %v5035_v29 }
0x1357   : > { %v5001_v7 = vrot.slane %v5000_v19, 1  ;;  %v17210_v44 = vadd.f32 %v5036_v31, %v16902_v62 }
0x1359   : > { %v5002_v36 = vadd.f32 %v5001_v7, %v5000_v19 }
0x135b   : > { %v5042_v53 = vadd.f32 %v17142_v14, %v5002_v36 }
0x135d   : > { %v5043_v58 = vmul.f32 0.020833334, %v5042_v53 }
0x135f   : > { %v17214_v57 = vadd.f32 %v5043_v58, %v16906_v50 }
0x1403   : > { %v14575_v55 = vpop.f32.mrf.mxu1 }
0x1404   : > { %v4790_v35 = vadd.f32 %v14575_v55, %v16358_v42 }
0x1405   : > { %v4784_v45 = vpop.f32.mrf.mxu1 }
0x1406   : > { %v5012_v0 = vadd.f32 %v17151_v27, %v4790_v35  ;;  %v4785_v23 = vadd.f32 %v4784_v45, %v16361_v46 }
0x1408   : > { %v5014_v4 = vmul.f32 0.020833334, %v5012_v0  ;;  %v5011_v47 = vadd.f32 %v17155_v43, %v4785_v23 }
0x140a   : > { %v17221_v62 = vadd.f32 %v5014_v4, %v16913_v37  ;;  %v5013_v9 = vmul.f32 0.020833334, %v5011_v47 }
0x140b   : > { %v14596_v14 = vpop.f32.mrf.mxu1 }
0x140c   : > { %v17224_v15 = vadd.f32 %v5013_v9, %v16916_v34  ;;  %v4979_v50 = vadd.f32 %v14596_v14, %v16358_v42  ;;  %14597 = vmatprep.subr.mxu0 %v17221_v62  ;;  %v17237_v34 = vld [vmem:[%s18830_s1 + $0x8] sm:$0xff] }
0x140d   : > { %v4973_v54 = vpop.f32.mrf.mxu1  ;;  %14598 = vmatpush3.msra.mxu0 %v17221_v62 }
0x140e   : > { %v5026_v27 = vadd.f32 %v17167_v60, %v4979_v50  ;;  %v4974_v5 = vadd.f32 %v4973_v54, %v16361_v46  ;;  %14599 = vmatprep.subr.mxu0 %v17224_v15  ;;  %v17244_v60 = vld [vmem:[%s18830_s1 + $0x10] sm:$0xff] }
0x140f   : > { %14600 = vmatpush3.msra.mxu0 %v17224_v15 }
0x1410   : > { %v5028_v37 = vmul.f32 0.020833334, %v5026_v27  ;;  %v5025_v43 = vadd.f32 %v17172_v16, %v4974_v5  ;;  %14602 = vmatmul.mubr.msk.f32.vlgmr.msra.gmra.mxu0 %vm387_vm0, %v17237_v34 }
0x1411   : > { %14604 = vmatprep.mubr.msk.f32.mxu0 %vm387_vm0, %v17244_v60 }
0x1412   : > { %v17249_v61 = vadd.f32 %v5028_v37, %v16941_v1  ;;  %v5027_v16 = vmul.f32 0.020833334, %v5025_v43  ;;  %v17266_v1 = vld [vmem:[%s18830_s1] sm:$0xff]  ;;  %v17295_v37 = vld [vmem:[%s18832_s3 + $0x8] sm:$0xff] }
0x1414   : > { %v17252_v17 = vadd.f32 %v5027_v16, %v16944_v12  ;;  %14605 = vmatmul.mubr.msk.f32.gmra.mxu0 %vm387_vm0, %v17257_v22  ;;  %14618 = vmatprep.subr.mxu0 %v17249_v61 }
0x1415   : > { %14619 = vmatpush3.msra.mxu0 %v17249_v61  ;;  %14622 = vmatprep.mubr.msk.f32.mxu0 %vm387_vm0, %v17266_v1 }
0x1416   : > { %14620 = vmatprep.subr.mxu0 %v17252_v17 }
0x1417   : > { %14621 = vmatpush3.msra.mxu0 %v17252_v17 }
0x1418   : > { %14623 = vmatmul.mubr.msk.f32.vlgmr.msra.gmra.mxu0 %vm387_vm0, %v17237_v34 }
0x1419   : > { %14625 = vmatprep.mubr.msk.f32.mxu0 %vm387_vm0, %v17244_v60 }
0x141c   : > { %14626 = vmatmul.mubr.msk.f32.gmra.mxu0 %vm387_vm0, %v17257_v22 }
0x141d   : > { %14643 = vmatprep.mubr.msk.f32.mxu0 %vm387_vm0, %v17266_v1 }
0x14d0   : > { %v14603_v12 = vpop.f32.mrf.mxu0 }
0x14d1   : > { %v5117_v26 = vadd.f32 %v14603_v12, %v16343_v24  ;;  %v17302_v12 = vld [vmem:[%s18832_s3] sm:$0xff] }
0x14d2   : > { %v5111_v32 = vpop.f32.mrf.mxu0 }
0x14d3   : > { %15679 = vtanh.f32 %v5117_v26  ;;  %v5112_v30 = vadd.f32 %v5111_v32, %v16348_v28 }
0x14d4   : > { %v14606_v38 = vpop.f32.mrf.mxu0 }
0x14d5   : > { %15681 = vtanh.f32 %v5112_v30  ;;  %v5127_v49 = vadd.f32 %v14606_v38, %v16345_v25 }
0x14d6   : > { %v5121_v40 = vpop.f32.mrf.mxu0 }
0x14d7   : > { %15683 = vtanh.f32 %v5127_v49  ;;  %v5122_v6 = vadd.f32 %v5121_v40, %v16352_v33 }
0x14d8   : > { %v14624_v8 = vpop.f32.mrf.mxu0 }
0x14d9   : > { %15685 = vtanh.f32 %v5122_v6  ;;  %v5302_v41 = vadd.f32 %v14624_v8, %v16343_v24 }
0x14da   : > { %v5296_v21 = vpop.f32.mrf.mxu0 }
0x14db   : > { %15687 = vtanh.f32 %v5302_v41  ;;  %v5297_v63 = vadd.f32 %v5296_v21, %v16348_v28 }
0x14dc   : > { %v14627_v13 = vpop.f32.mrf.mxu0 }
0x14dd   : > { %15689 = vtanh.f32 %v5297_v63  ;;  %v5312_v18 = vadd.f32 %v14627_v13, %v16345_v25 }
0x14de   : > { %v5306_v48 = vpop.f32.mrf.mxu0 }
0x14df   : > { %15691 = vtanh.f32 %v5312_v18  ;;  %v5307_v20 = vadd.f32 %v5306_v48, %v16352_v33 }
0x14e0   : > { %v15680_v10 = vpop.eup %15679 }
0x14e1   : > { %v5210_v39 = vmul.f32 %v15680_v10, %v15680_v10  ;;  %15693 = vtanh.f32 %v5307_v20 }
0x14e2   : > { %v15682_v59 = vpop.eup %15681 }
0x14e3   : > { %v5214_v51 = vsub.f32 1.0, %v5210_v39  ;;  %v5209_v3 = vmul.f32 %v15682_v59, %v15682_v59 }
0x14e4   : > { %v15684_v29 = vpop.eup %15683 }
0x14e5   : > { %v5213_v19 = vsub.f32 1.0, %v5209_v3  ;;  %v5212_v31 = vmul.f32 %v15684_v29, %v15684_v29  ;;  %14607 = vmatprep.subr.mxu1 %v15684_v29  ;;  %v5218_v36 = vmul.f32 %v5214_v51, %v16365_v56 }
0x14e6   : > { %v15686_v7 = vpop.eup %15685  ;;  %14608 = vmatpush3.msra.mxu1 %v15684_v29 }
0x14e7   : > { %v5217_v53 = vmul.f32 %v5213_v19, %v16363_v52  ;;  %v5211_v58 = vmul.f32 %v15686_v7, %v15686_v7  ;;  %14609 = vmatprep.subr.mxu1 %v15686_v7  ;;  %v5216_v35 = vsub.f32 1.0, %v5212_v31 }
0x14e8   : > { %v15688_v55 = vpop.eup %15687  ;;  %14610 = vmatpush3.msra.mxu1 %v15686_v7 }
0x14e9   : > { %v5215_v45 = vsub.f32 1.0, %v5211_v58  ;;  %v5395_v0 = vmul.f32 %v15688_v55, %v15688_v55  ;;  %14611 = vmatprep.subr.mxu1 %v15680_v10  ;;  %v5221_v23 = vadd.f32 %v5218_v36, %v5217_v53  ;;  %v5220_v54 = vmul.f32 %v5216_v35, %v16377_v11 }
0x14ea   : > { %v15690_v4 = vpop.eup %15689  ;;  %14612 = vmatpush3.msra.mxu1 %v15680_v10 }
0x14eb   : > { %v5219_v47 = vmul.f32 %v5215_v45, %v16369_v2  ;;  %v5399_v9 = vsub.f32 1.0, %v5395_v0  ;;  %v5394_v14 = vmul.f32 %v15690_v4, %v15690_v4  ;;  %14613 = vmatprep.subr.mxu1 %v15682_v59 }
0x14ec   : > { %v15692_v50 = vpop.eup %15691  ;;  %14614 = vmatpush3.msra.mxu1 %v15682_v59 }
0x14ed   : > { %v5398_v27 = vsub.f32 1.0, %v5394_v14  ;;  %v5397_v5 = vmul.f32 %v15692_v50, %v15692_v50  ;;  %14616 = vmatmul.mubr.msk.f32.vlgmr.msra.gmra.mxu1 %vm489_vm1, %v17295_v37  ;;  %14628 = vmatprep.subr.mxu1 %v15692_v50  ;;  %v5222_v43 = vadd.f32 %v5221_v23, %v5219_v47  ;;  %v5403_v26 = vmul.f32 %v5399_v9, %v16365_v56 }
0x14ee   : > { %v15694_v16 = vpop.eup %15693  ;;  %14629 = vmatpush3.msra.mxu1 %v15692_v50  ;;  %14636 = vmatprep.mubr.msk.f32.mxu1 %vm489_vm1, %v17302_v12 }
0x14ef   : > { %v5402_v32 = vmul.f32 %v5398_v27, %v16363_v52  ;;  %v5396_v30 = vmul.f32 %v15694_v16, %v15694_v16  ;;  %14630 = vmatprep.subr.mxu1 %v15694_v16  ;;  %v17308_v38 = vadd.f32 %v5222_v43, %v5220_v54  ;;  %v5401_v49 = vsub.f32 1.0, %v5397_v5 }
0x14f0   : > { %14631 = vmatpush3.msra.mxu1 %v15694_v16 }
0x14f1   : > { %v5400_v40 = vsub.f32 1.0, %v5396_v30  ;;  %14632 = vmatprep.subr.mxu1 %v15688_v55  ;;  %v5406_v6 = vadd.f32 %v5403_v26, %v5402_v32  ;;  %v5405_v41 = vmul.f32 %v5401_v49, %v16377_v11 }
0x14f2   : > { %14633 = vmatpush3.msra.mxu1 %v15688_v55 }
0x14f3   : > { %v5404_v8 = vmul.f32 %v5400_v40, %v16369_v2  ;;  %14634 = vmatprep.subr.mxu1 %v15690_v4 }
0x14f4   : > { %14635 = vmatpush3.msra.mxu1 %v15690_v4 }
0x14f5   : > { %14637 = vmatmul.mubr.msk.f32.vlgmr.msra.gmra.mxu1 %vm489_vm1, %v17295_v37  ;;  %v5407_v21 = vadd.f32 %v5406_v6, %v5404_v8 }
0x14f6   : > { %14657 = vmatprep.mubr.msk.f32.mxu1 %vm489_vm1, %v17302_v12 }
0x14f7   : > { %v17316_v63 = vadd.f32 %v5407_v21, %v5405_v41 }
0x15ad   : > { %v14617_v13 = vpop.f32.mrf.mxu1 }
0x15ae   : > { %v17319_v18 = vadd.f32 %v14617_v13, %v16358_v42 }
0x15af   : > { %v5200_v48 = vpop.f32.mrf.mxu1 }
0x15b0   : > { %v5416_v20 = vmul.f32 0.0625, %v17319_v18  ;;  %v17323_v10 = vadd.f32 %v5200_v48, %v16361_v46 }
0x15b2   : > { %v5415_v39 = vmul.f32 0.0625, %v17323_v10  ;;  %v5418_v59 = vadd.f32 %v5416_v20, %v17221_v62 }
0x15b4   : > { %14639 = vmatprep.subr.mxu0 %v5418_v59  ;;  %v5417_v51 = vadd.f32 %v5415_v39, %v17224_v15 }
0x15b5   : > { %v14638_v3 = vpop.f32.mrf.mxu1  ;;  %14640 = vmatpush3.msra.mxu0 %v5418_v59 }
0x15b6   : > { %v17329_v29 = vadd.f32 %v14638_v3, %v16358_v42  ;;  %14641 = vmatprep.subr.mxu0 %v5417_v51 }
0x15b7   : > { %v5385_v19 = vpop.f32.mrf.mxu1  ;;  %14642 = vmatpush3.msra.mxu0 %v5417_v51  ;;  %v5224_v51 = vrot.slane %v17308_v38, 4 }
0x15b8   : > { %v5605_v31 = vmul.f32 0.0625, %v17329_v29  ;;  %v17333_v7 = vadd.f32 %v5385_v19, %v16361_v46  ;;  %14644 = vmatmul.mubr.msk.f32.vlgmr.msra.gmra.mxu0 %vm387_vm0, %v17237_v34 }
0x15b9   : > { %14646 = vmatprep.mubr.msk.f32.mxu0 %vm387_vm0, %v17244_v60 }
0x15ba   : > { %v5604_v36 = vmul.f32 0.0625, %v17333_v7  ;;  %v5607_v53 = vadd.f32 %v5605_v31, %v17249_v61 }
0x15bc   : > { %14647 = vmatmul.mubr.msk.f32.gmra.mxu0 %vm387_vm0, %v17257_v22  ;;  %14660 = vmatprep.subr.mxu0 %v5607_v53  ;;  %v5606_v58 = vadd.f32 %v5604_v36, %v17252_v17 }
0x15bd   : > { %14661 = vmatpush3.msra.mxu0 %v5607_v53  ;;  %14664 = vmatprep.mubr.msk.f32.mxu0 %vm387_vm0, %v17266_v1 }
0x15be   : > { %14662 = vmatprep.subr.mxu0 %v5606_v58 }
0x15bf   : > { %14663 = vmatpush3.msra.mxu0 %v5606_v58 }
0x15c0   : > { %14665 = vmatmul.mubr.msk.f32.vlgmr.msra.gmra.mxu0 %vm387_vm0, %v17237_v34 }
0x15c1   : > { %14667 = vmatprep.mubr.msk.f32.mxu0 %vm387_vm0, %v17244_v60 }
0x15c4   : > { %14668 = vmatmul.mubr.msk.f32.gmra.mxu0 %vm387_vm0, %v17257_v22 }
0x15c5   : > { %14685 = vmatprep.mubr.msk.f32.mxu0 %vm387_vm0, %v17266_v1 }
0x1678   : > { %v14645_v55 = vpop.f32.mrf.mxu0 }
0x1679   : > { %v5491_v35 = vadd.f32 %v14645_v55, %v16343_v24 }
0x167a   : > { %v5485_v45 = vpop.f32.mrf.mxu0 }
0x167b   : > { %15695 = vtanh.f32 %v5491_v35  ;;  %v5486_v0 = vadd.f32 %v5485_v45, %v16348_v28 }
0x167c   : > { %v14648_v23 = vpop.f32.mrf.mxu0 }
0x167d   : > { %15697 = vtanh.f32 %v5486_v0  ;;  %v5501_v4 = vadd.f32 %v14648_v23, %v16345_v25  ;;  %v5225_v0 = vadd.f32 %v5224_v51, %v17308_v38 }
0x167e   : > { %v5495_v47 = vpop.f32.mrf.mxu0 }
0x167f   : > { %15699 = vtanh.f32 %v5501_v4  ;;  %v5496_v9 = vadd.f32 %v5495_v47, %v16352_v33 }
0x1680   : > { %v14666_v14 = vpop.f32.mrf.mxu0 }
0x1681   : > { %15701 = vtanh.f32 %v5496_v9  ;;  %v5680_v50 = vadd.f32 %v14666_v14, %v16343_v24 }
0x1682   : > { %v5674_v54 = vpop.f32.mrf.mxu0 }
0x1683   : > { %15703 = vtanh.f32 %v5680_v50  ;;  %v5675_v27 = vadd.f32 %v5674_v54, %v16348_v28 }
0x1684   : > { %v14669_v5 = vpop.f32.mrf.mxu0 }
0x1685   : > { %15705 = vtanh.f32 %v5675_v27  ;;  %v5690_v43 = vadd.f32 %v14669_v5, %v16345_v25  ;;  %v5226_v5 = vrot.slane %v5225_v0, 2 }
0x1686   : > { %v5684_v16 = vpop.f32.mrf.mxu0 }
0x1687   : > { %15707 = vtanh.f32 %v5690_v43  ;;  %v5685_v26 = vadd.f32 %v5684_v16, %v16352_v33  ;;  %v5409_v43 = vrot.slane %v17316_v63, 4 }
0x1688   : > { %v15696_v32 = vpop.eup %15695 }
0x1689   : > { %v5584_v30 = vmul.f32 %v15696_v32, %v15696_v32  ;;  %15709 = vtanh.f32 %v5685_v26 }
0x168a   : > { %v15698_v49 = vpop.eup %15697 }
0x168b   : > { %v5588_v40 = vsub.f32 1.0, %v5584_v30  ;;  %v5583_v6 = vmul.f32 %v15698_v49, %v15698_v49 }
0x168c   : > { %v15700_v8 = vpop.eup %15699 }
0x168d   : > { %v5587_v41 = vsub.f32 1.0, %v5583_v6  ;;  %v5586_v21 = vmul.f32 %v15700_v8, %v15700_v8  ;;  %14649 = vmatprep.subr.mxu1 %v15700_v8  ;;  %v5592_v48 = vmul.f32 %v5588_v40, %v16365_v56  ;;  %v5227_v6 = vadd.f32 %v5226_v5, %v5225_v0 }
0x168e   : > { %v15702_v13 = vpop.eup %15701  ;;  %14650 = vmatpush3.msra.mxu1 %v15700_v8 }
0x168f   : > { %v5591_v20 = vmul.f32 %v5587_v41, %v16363_v52  ;;  %v5585_v39 = vmul.f32 %v15702_v13, %v15702_v13  ;;  %14651 = vmatprep.subr.mxu1 %v15702_v13  ;;  %v5590_v3 = vsub.f32 1.0, %v5586_v21  ;;  %v5410_v41 = vadd.f32 %v5409_v43, %v17316_v63 }
0x1690   : > { %v15704_v59 = vpop.eup %15703  ;;  %14652 = vmatpush3.msra.mxu1 %v15702_v13 }
0x1691   : > { %v5589_v19 = vsub.f32 1.0, %v5585_v39  ;;  %v5773_v31 = vmul.f32 %v15704_v59, %v15704_v59  ;;  %14653 = vmatprep.subr.mxu1 %v15696_v32  ;;  %v5595_v36 = vadd.f32 %v5592_v48, %v5591_v20  ;;  %v5594_v23 = vmul.f32 %v5590_v3, %v16377_v11 }
0x1692   : > { %v15706_v53 = vpop.eup %15705  ;;  %14654 = vmatpush3.msra.mxu1 %v15696_v32  ;;  %v5228_v39 = vrot.slane %v5227_v6, 1 }
0x1693   : > { %v5593_v58 = vmul.f32 %v5589_v19, %v16369_v2  ;;  %v5777_v55 = vsub.f32 1.0, %v5773_v31  ;;  %v5772_v35 = vmul.f32 %v15706_v53, %v15706_v53  ;;  %14655 = vmatprep.subr.mxu1 %v15698_v49 }
0x1694   : > { %v15708_v45 = vpop.eup %15707  ;;  %14656 = vmatpush3.msra.mxu1 %v15698_v49 }
0x1695   : > { %v5776_v4 = vsub.f32 1.0, %v5772_v35  ;;  %v5775_v47 = vmul.f32 %v15708_v45, %v15708_v45  ;;  %14658 = vmatmul.mubr.msk.f32.vlgmr.msra.gmra.mxu1 %vm489_vm1, %v17295_v37  ;;  %14670 = vmatprep.subr.mxu1 %v15708_v45  ;;  %v5596_v9 = vadd.f32 %v5595_v36, %v5593_v58  ;;  %v5781_v50 = vmul.f32 %v5777_v55, %v16365_v56 }
0x1696   : > { %v15710_v14 = vpop.eup %15709  ;;  %14671 = vmatpush3.msra.mxu1 %v15708_v45  ;;  %14678 = vmatprep.mubr.msk.f32.mxu1 %vm489_vm1, %v17302_v12  ;;  %v5229_v36 = vadd.f32 %v5228_v39, %v5227_v6 }
0x1697   : > { %v5780_v54 = vmul.f32 %v5776_v4, %v16363_v52  ;;  %v5774_v27 = vmul.f32 %v15710_v14, %v15710_v14  ;;  %14672 = vmatprep.subr.mxu1 %v15710_v14  ;;  %v5597_v38 = vadd.f32 %v5596_v9, %v5594_v23  ;;  %v5779_v16 = vsub.f32 1.0, %v5775_v47 }
0x1698   : > { %14673 = vmatpush3.msra.mxu1 %v15710_v14 }
0x1699   : > { %v5778_v26 = vsub.f32 1.0, %v5774_v27  ;;  %14674 = vmatprep.subr.mxu1 %v15704_v59  ;;  %v5598_v32 = vrot.slane %v5597_v38, 4  ;;  %v5784_v30 = vadd.f32 %v5781_v50, %v5780_v54  ;;  %v5783_v8 = vmul.f32 %v5779_v16, %v16377_v11 }
0x169a   : > { %14675 = vmatpush3.msra.mxu1 %v15704_v59  ;;  %v5411_v59 = vrot.slane %v5410_v41, 2 }
0x169b   : > { %v5782_v49 = vmul.f32 %v5778_v26, %v16369_v2  ;;  %14676 = vmatprep.subr.mxu1 %v15706_v53  ;;  %v5599_v40 = vadd.f32 %v5598_v32, %v5597_v38 }
0x169c   : > { %14677 = vmatpush3.msra.mxu1 %v15706_v53  ;;  %v5412_v53 = vadd.f32 %v5411_v59, %v5410_v41 }
0x169d   : > { %14679 = vmatmul.mubr.msk.f32.vlgmr.msra.gmra.mxu1 %vm489_vm1, %v17295_v37  ;;  %v5600_v21 = vrot.slane %v5599_v40, 2  ;;  %v5785_v13 = vadd.f32 %v5784_v30, %v5782_v49 }
0x169e   : > { %14699 = vmatprep.mubr.msk.f32.mxu1 %vm489_vm1, %v17302_v12  ;;  %v5413_v63 = vrot.slane %v5412_v53, 1 }
0x169f   : > { %v5601_v48 = vadd.f32 %v5600_v21, %v5599_v40  ;;  %v5786_v20 = vadd.f32 %v5785_v13, %v5783_v8 }
0x16a0   : > { %v5414_v4 = vadd.f32 %v5413_v63, %v5412_v53 }
0x16a1   : > { %v5602_v51 = vrot.slane %v5601_v48, 1  ;;  %v5787_v3 = vrot.slane %v5786_v20, 4 }
0x16a3   : > { %v5603_v19 = vadd.f32 %v5602_v51, %v5601_v48  ;;  %v5788_v31 = vadd.f32 %v5787_v3, %v5786_v20 }
0x16a5   : > { %v5789_v58 = vrot.slane %v5788_v31, 2  ;;  %v6577_v55 = vmul.f32 2.0, %v5603_v19 }
0x16a7   : > { %v5790_v35 = vadd.f32 %v5789_v58, %v5788_v31  ;;  %v17382_v45 = vadd.f32 %v6577_v55, %v5229_v36 }
0x16a9   : > { %v5791_v0 = vrot.slane %v5790_v35, 1 }
0x16ab   : > { %v5792_v23 = vadd.f32 %v5791_v0, %v5790_v35 }
0x16ad   : > { %v6584_v47 = vmul.f32 2.0, %v5792_v23 }
0x16af   : > { %v17384_v9 = vadd.f32 %v6584_v47, %v5414_v4 }
0x1755   : > { %v14659_v14 = vpop.f32.mrf.mxu1 }
0x1756   : > { %v17387_v50 = vadd.f32 %v14659_v14, %v16358_v42 }
0x1757   : > { %v5574_v54 = vpop.f32.mrf.mxu1 }
0x1758   : > { %v5794_v27 = vmul.f32 0.0625, %v17387_v50  ;;  %v17391_v38 = vadd.f32 %v5574_v54, %v16361_v46 }
0x175a   : > { %v5793_v5 = vmul.f32 0.0625, %v17391_v38  ;;  %v5796_v43 = vadd.f32 %v5794_v27, %v17221_v62 }
0x175c   : > { %14681 = vmatprep.subr.mxu0 %v5796_v43  ;;  %v5795_v16 = vadd.f32 %v5793_v5, %v17224_v15 }
0x175d   : > { %v14680_v26 = vpop.f32.mrf.mxu1  ;;  %14682 = vmatpush3.msra.mxu0 %v5796_v43 }
0x175e   : > { %v17397_v32 = vadd.f32 %v14680_v26, %v16358_v42  ;;  %14683 = vmatprep.subr.mxu0 %v5795_v16 }
0x175f   : > { %v5763_v30 = vpop.f32.mrf.mxu1  ;;  %14684 = vmatpush3.msra.mxu0 %v5795_v16 }
0x1760   : > { %v5983_v49 = vmul.f32 0.0625, %v17397_v32  ;;  %v17401_v40 = vadd.f32 %v5763_v30, %v16361_v46  ;;  %14686 = vmatmul.mubr.msk.f32.vlgmr.msra.gmra.mxu0 %vm387_vm0, %v17237_v34 }
0x1761   : > { %14688 = vmatprep.mubr.msk.f32.mxu0 %vm387_vm0, %v17244_v60 }
0x1762   : > { %v5982_v6 = vmul.f32 0.0625, %v17401_v40  ;;  %v5985_v8 = vadd.f32 %v5983_v49, %v17249_v61 }
0x1764   : > { %14689 = vmatmul.mubr.msk.f32.gmra.mxu0 %vm387_vm0, %v17257_v22  ;;  %14702 = vmatprep.subr.mxu0 %v5985_v8  ;;  %v5984_v41 = vadd.f32 %v5982_v6, %v17252_v17 }
0x1765   : > { %14703 = vmatpush3.msra.mxu0 %v5985_v8  ;;  %14706 = vmatprep.mubr.msk.f32.mxu0 %vm387_vm0, %v17266_v1 }
0x1766   : > { %14704 = vmatprep.subr.mxu0 %v5984_v41 }
0x1767   : > { %14705 = vmatpush3.msra.mxu0 %v5984_v41 }
0x1768   : > { %14707 = vmatmul.mubr.msk.f32.vlgmr.msra.gmra.mxu0 %vm387_vm0, %v17237_v34 }
0x1769   : > { %14709 = vmatprep.mubr.msk.f32.mxu0 %vm387_vm0, %v17244_v60 }
0x176c   : > { %14710 = vmatmul.mubr.msk.f32.gmra.mxu0 %vm387_vm0, %v17257_v22 }
0x176d   : > { %14727 = vmatprep.mubr.msk.f32.mxu0 %vm387_vm0, %v17266_v1 }
0x1820   : > { %v14687_v21 = vpop.f32.mrf.mxu0 }
0x1821   : > { %v5869_v13 = vadd.f32 %v14687_v21, %v16343_v24 }
0x1822   : > { %v5863_v48 = vpop.f32.mrf.mxu0 }
0x1823   : > { %15711 = vtanh.f32 %v5869_v13  ;;  %v5864_v20 = vadd.f32 %v5863_v48, %v16348_v28 }
0x1824   : > { %v14690_v39 = vpop.f32.mrf.mxu0 }
0x1825   : > { %15713 = vtanh.f32 %v5864_v20  ;;  %v5879_v59 = vadd.f32 %v14690_v39, %v16345_v25 }
0x1826   : > { %v5873_v51 = vpop.f32.mrf.mxu0 }
0x1827   : > { %15715 = vtanh.f32 %v5879_v59  ;;  %v5874_v3 = vadd.f32 %v5873_v51, %v16352_v33 }
0x1828   : > { %v14708_v19 = vpop.f32.mrf.mxu0 }
0x1829   : > { %15717 = vtanh.f32 %v5874_v3  ;;  %v6058_v31 = vadd.f32 %v14708_v19, %v16343_v24 }
0x182a   : > { %v6052_v36 = vpop.f32.mrf.mxu0 }
0x182b   : > { %15719 = vtanh.f32 %v6058_v31  ;;  %v6053_v53 = vadd.f32 %v6052_v36, %v16348_v28 }
0x182c   : > { %v14711_v58 = vpop.f32.mrf.mxu0 }
0x182d   : > { %15721 = vtanh.f32 %v6053_v53  ;;  %v6068_v55 = vadd.f32 %v14711_v58, %v16345_v25 }
0x182e   : > { %v6062_v35 = vpop.f32.mrf.mxu0 }
0x182f   : > { %15723 = vtanh.f32 %v6068_v55  ;;  %v6063_v63 = vadd.f32 %v6062_v35, %v16352_v33 }
0x1830   : > { %v15712_v0 = vpop.eup %15711 }
0x1831   : > { %v5962_v23 = vmul.f32 %v15712_v0, %v15712_v0  ;;  %15725 = vtanh.f32 %v6063_v63 }
0x1832   : > { %v15714_v4 = vpop.eup %15713 }
0x1833   : > { %v5966_v47 = vsub.f32 1.0, %v5962_v23  ;;  %v5961_v14 = vmul.f32 %v15714_v4, %v15714_v4 }
0x1834   : > { %v15716_v54 = vpop.eup %15715 }
0x1835   : > { %v5965_v27 = vsub.f32 1.0, %v5961_v14  ;;  %v5964_v5 = vmul.f32 %v15716_v54, %v15716_v54  ;;  %14691 = vmatprep.subr.mxu1 %v15716_v54  ;;  %v5970_v16 = vmul.f32 %v5966_v47, %v16365_v56 }
0x1836   : > { %v15718_v43 = vpop.eup %15717  ;;  %14692 = vmatpush3.msra.mxu1 %v15716_v54 }
0x1837   : > { %v5969_v26 = vmul.f32 %v5965_v27, %v16363_v52  ;;  %v5963_v30 = vmul.f32 %v15718_v43, %v15718_v43  ;;  %14693 = vmatprep.subr.mxu1 %v15718_v43  ;;  %v5968_v6 = vsub.f32 1.0, %v5964_v5 }
0x1838   : > { %v15720_v49 = vpop.eup %15719  ;;  %14694 = vmatpush3.msra.mxu1 %v15718_v43 }
0x1839   : > { %v5967_v8 = vsub.f32 1.0, %v5963_v30  ;;  %v6151_v41 = vmul.f32 %v15720_v49, %v15720_v49  ;;  %14695 = vmatprep.subr.mxu1 %v15712_v0  ;;  %v5973_v21 = vadd.f32 %v5970_v16, %v5969_v26  ;;  %v5972_v19 = vmul.f32 %v5968_v6, %v16377_v11 }
0x183a   : > { %v15722_v13 = vpop.eup %15721  ;;  %14696 = vmatpush3.msra.mxu1 %v15712_v0 }
0x183b   : > { %v6155_v48 = vsub.f32 1.0, %v6151_v41  ;;  %v6150_v20 = vmul.f32 %v15722_v13, %v15722_v13  ;;  %14697 = vmatprep.subr.mxu1 %v15714_v4  ;;  %v5971_v39 = vmul.f32 %v5967_v8, %v16369_v2 }
0x183c   : > { %v15724_v59 = vpop.eup %15723  ;;  %14698 = vmatpush3.msra.mxu1 %v15714_v4 }
0x183d   : > { %v6154_v51 = vsub.f32 1.0, %v6150_v20  ;;  %v6153_v3 = vmul.f32 %v15724_v59, %v15724_v59  ;;  %14700 = vmatmul.mubr.msk.f32.vlgmr.msra.gmra.mxu1 %vm489_vm1, %v17295_v37  ;;  %14712 = vmatprep.subr.mxu1 %v15724_v59  ;;  %v5974_v31 = vadd.f32 %v5973_v21, %v5971_v39  ;;  %v6159_v53 = vmul.f32 %v6155_v48, %v16365_v56 }
0x183e   : > { %v15726_v36 = vpop.eup %15725  ;;  %14713 = vmatpush3.msra.mxu1 %v15724_v59  ;;  %14720 = vmatprep.mubr.msk.f32.mxu1 %vm489_vm1, %v17302_v12 }
0x183f   : > { %v6158_v58 = vmul.f32 %v6154_v51, %v16363_v52  ;;  %v6152_v55 = vmul.f32 %v15726_v36, %v15726_v36  ;;  %14714 = vmatprep.subr.mxu1 %v15726_v36  ;;  %v5975_v35 = vadd.f32 %v5974_v31, %v5972_v19  ;;  %v6157_v63 = vsub.f32 1.0, %v6153_v3 }
0x1840   : > { %14715 = vmatpush3.msra.mxu1 %v15726_v36  ;;  %v6550_v51 = vmul.f32 2.0, %v17387_v50  ;;  %v6549_v3 = vmul.f32 2.0, %v17391_v38  ;;  %v6564_v50 = vmul.f32 2.0, %v17397_v32 }
0x1841   : > { %v6156_v0 = vsub.f32 1.0, %v6152_v55  ;;  %14716 = vmatprep.subr.mxu1 %v15720_v49  ;;  %v5976_v23 = vrot.slane %v5975_v35, 4  ;;  %v6162_v4 = vadd.f32 %v6159_v53, %v6158_v58  ;;  %v6161_v27 = vmul.f32 %v6157_v63, %v16377_v11 }
0x1842   : > { %14717 = vmatpush3.msra.mxu1 %v15720_v49  ;;  %v6552_v53 = vadd.f32 %v6550_v51, %v17319_v18  ;;  %v6563_v18 = vmul.f32 2.0, %v17401_v40 }
0x1843   : > { %14718 = vmatprep.subr.mxu1 %v15722_v13  ;;  %v5977_v47 = vadd.f32 %v5976_v23, %v5975_v35  ;;  %v6160_v14 = vmul.f32 %v6156_v0, %v16369_v2  ;;  %v6551_v35 = vadd.f32 %v6549_v3, %v17323_v10 }
0x1844   : > { %14719 = vmatpush3.msra.mxu1 %v15722_v13 }
0x1845   : > { %14721 = vmatmul.mubr.msk.f32.vlgmr.msra.gmra.mxu1 %vm489_vm1, %v17295_v37  ;;  %v5978_v54 = vrot.slane %v5977_v47, 2  ;;  %v6163_v5 = vadd.f32 %v6162_v4, %v6160_v14 }
0x1846   : > { %14741 = vmatprep.mubr.msk.f32.mxu1 %vm489_vm1, %v17302_v12 }
0x1847   : > { %v5979_v43 = vadd.f32 %v5978_v54, %v5977_v47  ;;  %v6164_v16 = vadd.f32 %v6163_v5, %v6161_v27  ;;  %v6566_v54 = vadd.f32 %v6564_v50, %v17329_v29 }
0x1849   : > { %v5980_v26 = vrot.slane %v5979_v43, 1  ;;  %v6165_v30 = vrot.slane %v6164_v16, 4 }
0x184b   : > { %v5981_v49 = vadd.f32 %v5980_v26, %v5979_v43  ;;  %v6166_v6 = vadd.f32 %v6165_v30, %v6164_v16  ;;  %v6565_v43 = vadd.f32 %v6563_v18, %v17333_v7 }
0x184d   : > { %v6167_v8 = vrot.slane %v6166_v6, 2  ;;  %v6579_v41 = vmul.f32 2.0, %v5981_v49 }
0x184f   : > { %v6168_v21 = vadd.f32 %v6167_v8, %v6166_v6  ;;  %v17447_v13 = vadd.f32 %v6579_v41, %v17382_v45 }
0x1851   : > { %v6169_v48 = vrot.slane %v6168_v21, 1 }
0x1853   : > { %v6170_v20 = vadd.f32 %v6169_v48, %v6168_v21 }
0x1855   : > { %v6586_v39 = vmul.f32 2.0, %v6170_v20 }
0x1857   : > { %v17450_v59 = vadd.f32 %v6586_v39, %v17384_v9 }
0x18fd   : > { %v14701_v19 = vpop.f32.mrf.mxu1 }
0x18fe   : > { %v5958_v31 = vadd.f32 %v14701_v19, %v16358_v42 }
0x18ff   : > { %v5952_v36 = vpop.f32.mrf.mxu1 }
0x1900   : > { %v6172_v58 = vmul.f32 0.125, %v5958_v31  ;;  %v6554_v55 = vmul.f32 2.0, %v5958_v31  ;;  %v5953_v45 = vadd.f32 %v5952_v36, %v16361_v46 }
0x1902   : > { %v6171_v63 = vmul.f32 0.125, %v5953_v45  ;;  %v6553_v0 = vmul.f32 2.0, %v5953_v45  ;;  %v6174_v9 = vadd.f32 %v6172_v58, %v17221_v62  ;;  %v17459_v23 = vadd.f32 %v6554_v55, %v6552_v53 }
0x1904   : > { %14723 = vmatprep.subr.mxu0 %v6174_v9  ;;  %v6173_v38 = vadd.f32 %v6171_v63, %v17224_v15  ;;  %v17463_v4 = vadd.f32 %v6553_v0, %v6551_v35 }
0x1905   : > { %v14722_v47 = vpop.f32.mrf.mxu1  ;;  %14724 = vmatpush3.msra.mxu0 %v6174_v9 }
0x1906   : > { %v6147_v14 = vadd.f32 %v14722_v47, %v16358_v42  ;;  %14725 = vmatprep.subr.mxu0 %v6173_v38 }
0x1907   : > { %v6141_v10 = vpop.f32.mrf.mxu1  ;;  %14726 = vmatpush3.msra.mxu0 %v6173_v38 }
0x1908   : > { %v6361_v27 = vmul.f32 0.125, %v6147_v14  ;;  %v6568_v5 = vmul.f32 2.0, %v6147_v14  ;;  %v6142_v32 = vadd.f32 %v6141_v10, %v16361_v46  ;;  %14728 = vmatmul.mubr.msk.f32.vlgmr.msra.gmra.mxu0 %vm387_vm0, %v17237_v34 }
0x1909   : > { %14730 = vmatprep.mubr.msk.f32.mxu0 %vm387_vm0, %v17244_v60 }
0x190a   : > { %v6360_v40 = vmul.f32 0.125, %v6142_v32  ;;  %v6567_v16 = vmul.f32 2.0, %v6142_v32  ;;  %v6363_v26 = vadd.f32 %v6361_v27, %v17249_v61  ;;  %v17475_v30 = vadd.f32 %v6568_v5, %v6566_v54 }
0x190c   : > { %14731 = vmatmul.mubr.msk.f32.gmra.mxu0 %vm387_vm0, %v17257_v22  ;;  %14744 = vmatprep.subr.mxu0 %v6363_v26  ;;  %v6362_v29 = vadd.f32 %v6360_v40, %v17252_v17  ;;  %v17480_v49 = vadd.f32 %v6567_v16, %v6565_v43 }
0x190d   : > { %14745 = vmatpush3.msra.mxu0 %v6363_v26  ;;  %14748 = vmatprep.mubr.msk.f32.mxu0 %vm387_vm0, %v17266_v1 }
0x190e   : > { %14746 = vmatprep.subr.mxu0 %v6362_v29 }
0x190f   : > { %14747 = vmatpush3.msra.mxu0 %v6362_v29 }
0x1910   : > { %14749 = vmatmul.mubr.msk.f32.vlgmr.msra.gmra.mxu0 %vm387_vm0, %v17237_v34 }
0x1911   : > { %14751 = vmatprep.mubr.msk.f32.mxu0 %vm387_vm0, %v17244_v60 }
0x1914   : > { %14752 = vmatmul.mubr.msk.f32.gmra.mxu0 %vm387_vm0, %v17257_v22 }
0x1915   : > { %14769 = vmatprep.mubr.msk.f32.mxu0 %vm387_vm0, %v17266_v1 }
0x19c8   : > { %v14729_v7 = vpop.f32.mrf.mxu0 }
0x19c9   : > { %v6247_v6 = vadd.f32 %v14729_v7, %v16343_v24 }
0x19ca   : > { %v6241_v8 = vpop.f32.mrf.mxu0 }
0x19cb   : > { %15727 = vtanh.f32 %v6247_v6  ;;  %v6242_v41 = vadd.f32 %v6241_v8, %v16348_v28 }
0x19cc   : > { %v14732_v21 = vpop.f32.mrf.mxu0 }
0x19cd   : > { %15729 = vtanh.f32 %v6242_v41  ;;  %v6257_v34 = vadd.f32 %v14732_v21, %v16345_v25 }
0x19ce   : > { %v6251_v48 = vpop.f32.mrf.mxu0 }
0x19cf   : > { %15731 = vtanh.f32 %v6257_v34  ;;  %v6252_v60 = vadd.f32 %v6251_v48, %v16352_v33 }
0x19d0   : > { %v14750_v20 = vpop.f32.mrf.mxu0 }
0x19d1   : > { %15733 = vtanh.f32 %v6252_v60  ;;  %v6436_v22 = vadd.f32 %v14750_v20, %v16343_v24 }
0x19d2   : > { %v6430_v1 = vpop.f32.mrf.mxu0 }
0x19d3   : > { %15735 = vtanh.f32 %v6436_v22  ;;  %v6431_v39 = vadd.f32 %v6430_v1, %v16348_v28 }
0x19d4   : > { %v14753_v51 = vpop.f32.mrf.mxu0 }
0x19d5   : > { %15737 = vtanh.f32 %v6431_v39  ;;  %v6446_v3 = vadd.f32 %v14753_v51, %v16345_v25 }
0x19d6   : > { %v6440_v19 = vpop.f32.mrf.mxu0 }
0x19d7   : > { %15739 = vtanh.f32 %v6446_v3  ;;  %v6441_v31 = vadd.f32 %v6440_v19, %v16352_v33 }
0x19d8   : > { %v15728_v36 = vpop.eup %15727 }
0x19d9   : > { %v6340_v53 = vmul.f32 %v15728_v36, %v15728_v36  ;;  %15741 = vtanh.f32 %v6441_v31 }
0x19da   : > { %v15730_v58 = vpop.eup %15729 }
0x19db   : > { %v6344_v55 = vsub.f32 1.0, %v6340_v53  ;;  %v6339_v45 = vmul.f32 %v15730_v58, %v15730_v58 }
0x19dc   : > { %v15732_v35 = vpop.eup %15731 }
0x19dd   : > { %v6343_v63 = vsub.f32 1.0, %v6339_v45  ;;  %v6342_v0 = vmul.f32 %v15732_v35, %v15732_v35  ;;  %14733 = vmatprep.subr.mxu1 %v15732_v35  ;;  %v6348_v50 = vmul.f32 %v6344_v55, %v16365_v56 }
0x19de   : > { %v15734_v9 = vpop.eup %15733  ;;  %14734 = vmatpush3.msra.mxu1 %v15732_v35 }
0x19df   : > { %v6341_v38 = vmul.f32 %v15734_v9, %v15734_v9  ;;  %14735 = vmatprep.subr.mxu1 %v15734_v9  ;;  %v6347_v18 = vmul.f32 %v6343_v63, %v16363_v52  ;;  %v6346_v14 = vsub.f32 1.0, %v6342_v0 }
0x19e0   : > { %v15736_v47 = vpop.eup %15735  ;;  %14736 = vmatpush3.msra.mxu1 %v15734_v9 }
0x19e1   : > { %v6345_v10 = vsub.f32 1.0, %v6341_v38  ;;  %v6529_v54 = vmul.f32 %v15736_v47, %v15736_v47  ;;  %14737 = vmatprep.subr.mxu1 %v15728_v36  ;;  %v6351_v27 = vadd.f32 %v6348_v50, %v6347_v18  ;;  %v6350_v7 = vmul.f32 %v6346_v14, %v16377_v11 }
0x19e2   : > { %v15738_v5 = vpop.eup %15737  ;;  %14738 = vmatpush3.msra.mxu1 %v15728_v36 }
0x19e3   : > { %v6533_v32 = vsub.f32 1.0, %v6529_v54  ;;  %v6528_v43 = vmul.f32 %v15738_v5, %v15738_v5  ;;  %14739 = vmatprep.subr.mxu1 %v15730_v58  ;;  %v6349_v40 = vmul.f32 %v6345_v10, %v16369_v2 }
0x19e4   : > { %v15740_v16 = vpop.eup %15739  ;;  %14740 = vmatpush3.msra.mxu1 %v15730_v58 }
0x19e5   : > { %v6532_v26 = vsub.f32 1.0, %v6528_v43  ;;  %v6531_v29 = vmul.f32 %v15740_v16, %v15740_v16  ;;  %14742 = vmatmul.mubr.msk.f32.vlgmr.msra.gmra.mxu1 %vm489_vm1, %v17295_v37  ;;  %14754 = vmatprep.subr.mxu1 %v15740_v16  ;;  %v6352_v6 = vadd.f32 %v6351_v27, %v6349_v40  ;;  %v6537_v41 = vmul.f32 %v6533_v32, %v16365_v56 }
0x19e6   : > { %v15742_v8 = vpop.eup %15741  ;;  %14755 = vmatpush3.msra.mxu1 %v15740_v16  ;;  %14762 = vmatprep.mubr.msk.f32.mxu1 %vm489_vm1, %v17302_v12 }
0x19e7   : > { %v6530_v21 = vmul.f32 %v15742_v8, %v15742_v8  ;;  %14756 = vmatprep.subr.mxu1 %v15742_v8  ;;  %v6353_v34 = vadd.f32 %v6352_v6, %v6350_v7  ;;  %v6536_v48 = vmul.f32 %v6532_v26, %v16363_v52  ;;  %v6535_v60 = vsub.f32 1.0, %v6531_v29 }
0x19e8   : > { %14757 = vmatpush3.msra.mxu1 %v15742_v8  ;;  %v17565_v8 = vld [vmem:[%s18830_s1 + $0x18] sm:$0xff] }
0x19e9   : > { %v6534_v20 = vsub.f32 1.0, %v6530_v21  ;;  %14758 = vmatprep.subr.mxu1 %v15736_v47  ;;  %v6354_v22 = vrot.slane %v6353_v34, 4  ;;  %v6540_v1 = vadd.f32 %v6537_v41, %v6536_v48  ;;  %v6539_v19 = vmul.f32 %v6535_v60, %v16377_v11 }
0x19ea   : > { %14759 = vmatpush3.msra.mxu1 %v15736_v47 }
0x19eb   : > { %14760 = vmatprep.subr.mxu1 %v15738_v5  ;;  %v6355_v39 = vadd.f32 %v6354_v22, %v6353_v34  ;;  %v6538_v51 = vmul.f32 %v6534_v20, %v16369_v2 }
0x19ec   : > { %14761 = vmatpush3.msra.mxu1 %v15738_v5 }
0x19ed   : > { %14763 = vmatmul.mubr.msk.f32.vlgmr.msra.gmra.mxu1 %vm489_vm1, %v17295_v37  ;;  %v6356_v3 = vrot.slane %v6355_v39, 2  ;;  %v6541_v31 = vadd.f32 %v6540_v1, %v6538_v51 }
0x19ee   : > { %14783 = vmatprep.mubr.msk.f32.mxu1 %vm489_vm1, %v17302_v12 }
0x19ef   : > { %v6357_v36 = vadd.f32 %v6356_v3, %v6355_v39  ;;  %v6542_v53 = vadd.f32 %v6541_v31, %v6539_v19 }
0x19f1   : > { %v6358_v58 = vrot.slane %v6357_v36, 1  ;;  %v6543_v55 = vrot.slane %v6542_v53, 4 }
0x19f3   : > { %v6359_v45 = vadd.f32 %v6358_v58, %v6357_v36  ;;  %v6544_v35 = vadd.f32 %v6543_v55, %v6542_v53 }
0x19f5   : > { %v6545_v63 = vrot.slane %v6544_v35, 2  ;;  %v6581_v0 = vadd.f32 %v17447_v13, %v6359_v45 }
0x19f7   : > { %v6546_v9 = vadd.f32 %v6545_v63, %v6544_v35  ;;  %v6582_v50 = vmul.f32 0.020833334, %v6581_v0 }
0x19f9   : > { %v6547_v38 = vrot.slane %v6546_v9, 1  ;;  %v17518_v37 = vadd.f32 %v6582_v50, %v17210_v44 }
0x19fb   : > { %v6548_v18 = vadd.f32 %v6547_v38, %v6546_v9 }
0x19fd   : > { %v6588_v47 = vadd.f32 %v17450_v59, %v6548_v18 }
0x19ff   : > { %v6589_v14 = vmul.f32 0.020833334, %v6588_v47 }
0x1a01   : > { %v17522_v12 = vadd.f32 %v6589_v14, %v17214_v57 }
0x1aa5   : > { %v14743_v10 = vpop.f32.mrf.mxu1 }
0x1aa6   : > { %v6336_v54 = vadd.f32 %v14743_v10, %v16358_v42 }
0x1aa7   : > { %v6330_v27 = vpop.f32.mrf.mxu1 }
0x1aa8   : > { %v6558_v5 = vadd.f32 %v17459_v23, %v6336_v54  ;;  %v6331_v13 = vadd.f32 %v6330_v27, %v16361_v46 }
0x1aaa   : > { %v6560_v32 = vmul.f32 0.020833334, %v6558_v5  ;;  %v6557_v43 = vadd.f32 %v17463_v4, %v6331_v13 }
0x1aac   : > { %v17529_v44 = vadd.f32 %v6560_v32, %v17221_v62  ;;  %v6559_v40 = vmul.f32 0.020833334, %v6557_v43 }
0x1aad   : > { %v14764_v59 = vpop.f32.mrf.mxu1 }
0x1aae   : > { %v17532_v16 = vadd.f32 %v6559_v40, %v17224_v15  ;;  %v6525_v57 = vadd.f32 %v14764_v59, %v16358_v42  ;;  %14765 = vmatprep.subr.mxu0 %v17529_v44  ;;  %v17545_v15 = vld [vmem:[%s18830_s1 + $0x8] sm:$0xff] }
0x1aaf   : > { %v6519_v26 = vpop.f32.mrf.mxu1  ;;  %14766 = vmatpush3.msra.mxu0 %v17529_v44 }
0x1ab0   : > { %v6572_v23 = vadd.f32 %v17475_v30, %v6525_v57  ;;  %v6520_v29 = vadd.f32 %v6519_v26, %v16361_v46  ;;  %14767 = vmatprep.subr.mxu0 %v17532_v16  ;;  %v17552_v30 = vld [vmem:[%s18830_s1 + $0x10] sm:$0xff] }
0x1ab1   : > { %14768 = vmatpush3.msra.mxu0 %v17532_v16 }
0x1ab2   : > { %v6574_v62 = vmul.f32 0.020833334, %v6572_v23  ;;  %v6571_v4 = vadd.f32 %v17480_v49, %v6520_v29  ;;  %14770 = vmatmul.mubr.msk.f32.vlgmr.msra.gmra.mxu0 %vm387_vm0, %v17545_v15  ;;  %v17602_v29 = vld [vmem:[%s18832_s3 + $0x8] sm:$0xff] }
0x1ab3   : > { %14772 = vmatprep.mubr.msk.f32.mxu0 %vm387_vm0, %v17552_v30 }
0x1ab4   : > { %v17557_v7 = vadd.f32 %v6574_v62, %v17249_v61  ;;  %v6573_v49 = vmul.f32 0.020833334, %v6571_v4  ;;  %v17574_v61 = vld [vmem:[%s18830_s1] sm:$0xff] }
0x1ab6   : > { %v17560_v6 = vadd.f32 %v6573_v49, %v17252_v17  ;;  %14773 = vmatmul.mubr.msk.f32.gmra.mxu0 %vm387_vm0, %v17565_v8  ;;  %14786 = vmatprep.subr.mxu0 %v17557_v7 }
0x1ab7   : > { %14787 = vmatpush3.msra.mxu0 %v17557_v7  ;;  %14790 = vmatprep.mubr.msk.f32.mxu0 %vm387_vm0, %v17574_v61 }
0x1ab8   : > { %14788 = vmatprep.subr.mxu0 %v17560_v6 }
0x1ab9   : > { %14789 = vmatpush3.msra.mxu0 %v17560_v6 }
0x1aba   : > { %14791 = vmatmul.mubr.msk.f32.vlgmr.msra.gmra.mxu0 %vm387_vm0, %v17545_v15 }
0x1abb   : > { %14793 = vmatprep.mubr.msk.f32.mxu0 %vm387_vm0, %v17552_v30 }
0x1abe   : > { %14794 = vmatmul.mubr.msk.f32.gmra.mxu0 %vm387_vm0, %v17565_v8 }
0x1abf   : > { %14811 = vmatprep.mubr.msk.f32.mxu0 %vm387_vm0, %v17574_v61 }
0x1b72   : > { %v14771_v17 = vpop.f32.mrf.mxu0 }
0x1b73   : > { %v6663_v41 = vadd.f32 %v14771_v17, %v16343_v24  ;;  %v17610_v17 = vld [vmem:[%s18832_s3] sm:$0xff] }
0x1b74   : > { %v6657_v21 = vpop.f32.mrf.mxu0 }
0x1b75   : > { %15743 = vtanh.f32 %v6663_v41  ;;  %v6658_v34 = vadd.f32 %v6657_v21, %v16348_v28 }
0x1b76   : > { %v14774_v48 = vpop.f32.mrf.mxu0 }
0x1b77   : > { %15745 = vtanh.f32 %v6658_v34  ;;  %v6673_v60 = vadd.f32 %v14774_v48, %v16345_v25 }
0x1b78   : > { %v6667_v20 = vpop.f32.mrf.mxu0 }
0x1b79   : > { %15747 = vtanh.f32 %v6673_v60  ;;  %v6668_v22 = vadd.f32 %v6667_v20, %v16352_v33 }
0x1b7a   : > { %v14792_v1 = vpop.f32.mrf.mxu0 }
0x1b7b   : > { %15749 = vtanh.f32 %v6668_v22  ;;  %v6848_v39 = vadd.f32 %v14792_v1, %v16343_v24 }
0x1b7c   : > { %v6842_v51 = vpop.f32.mrf.mxu0 }
0x1b7d   : > { %15751 = vtanh.f32 %v6848_v39  ;;  %v6843_v3 = vadd.f32 %v6842_v51, %v16348_v28 }
0x1b7e   : > { %v14795_v19 = vpop.f32.mrf.mxu0 }
0x1b7f   : > { %15753 = vtanh.f32 %v6843_v3  ;;  %v6858_v31 = vadd.f32 %v14795_v19, %v16345_v25 }
0x1b80   : > { %v6852_v36 = vpop.f32.mrf.mxu0 }
0x1b81   : > { %15755 = vtanh.f32 %v6858_v31  ;;  %v6853_v53 = vadd.f32 %v6852_v36, %v16352_v33 }
0x1b82   : > { %v15744_v58 = vpop.eup %15743 }
0x1b83   : > { %v6756_v55 = vmul.f32 %v15744_v58, %v15744_v58  ;;  %15757 = vtanh.f32 %v6853_v53 }
0x1b84   : > { %v15746_v45 = vpop.eup %15745 }
0x1b85   : > { %v6760_v35 = vsub.f32 1.0, %v6756_v55  ;;  %v6755_v63 = vmul.f32 %v15746_v45, %v15746_v45 }
0x1b86   : > { %v15748_v0 = vpop.eup %15747 }
0x1b87   : > { %v6759_v9 = vsub.f32 1.0, %v6755_v63  ;;  %v6758_v50 = vmul.f32 %v15748_v0, %v15748_v0  ;;  %14775 = vmatprep.subr.mxu1 %v15748_v0  ;;  %v6764_v18 = vmul.f32 %v6760_v35, %v16365_v56 }
0x1b88   : > { %v15750_v38 = vpop.eup %15749  ;;  %14776 = vmatpush3.msra.mxu1 %v15748_v0 }
0x1b89   : > { %v6763_v47 = vmul.f32 %v6759_v9, %v16363_v52  ;;  %v6757_v14 = vmul.f32 %v15750_v38, %v15750_v38  ;;  %14777 = vmatprep.subr.mxu1 %v15750_v38  ;;  %v6762_v54 = vsub.f32 1.0, %v6758_v50 }
0x1b8a   : > { %v15752_v10 = vpop.eup %15751  ;;  %14778 = vmatpush3.msra.mxu1 %v15750_v38 }
0x1b8b   : > { %v6761_v27 = vsub.f32 1.0, %v6757_v14  ;;  %v6941_v5 = vmul.f32 %v15752_v10, %v15752_v10  ;;  %14779 = vmatprep.subr.mxu1 %v15744_v58  ;;  %v6767_v13 = vadd.f32 %v6764_v18, %v6763_v47  ;;  %v6766_v62 = vmul.f32 %v6762_v54, %v16377_v11 }
0x1b8c   : > { %v15754_v32 = vpop.eup %15753  ;;  %14780 = vmatpush3.msra.mxu1 %v15744_v58 }
0x1b8d   : > { %v6945_v43 = vsub.f32 1.0, %v6941_v5  ;;  %v6940_v40 = vmul.f32 %v15754_v32, %v15754_v32  ;;  %14781 = vmatprep.subr.mxu1 %v15746_v45  ;;  %v6765_v59 = vmul.f32 %v6761_v27, %v16369_v2 }
0x1b8e   : > { %v15756_v57 = vpop.eup %15755  ;;  %14782 = vmatpush3.msra.mxu1 %v15746_v45 }
0x1b8f   : > { %v6944_v26 = vsub.f32 1.0, %v6940_v40  ;;  %v6943_v23 = vmul.f32 %v15756_v57, %v15756_v57  ;;  %14784 = vmatmul.mubr.msk.f32.vlgmr.msra.gmra.mxu1 %vm489_vm1, %v17602_v29  ;;  %14796 = vmatprep.subr.mxu1 %v15756_v57  ;;  %v6768_v4 = vadd.f32 %v6767_v13, %v6765_v59  ;;  %v6949_v41 = vmul.f32 %v6945_v43, %v16365_v56 }
0x1b90   : > { %v15758_v49 = vpop.eup %15757  ;;  %14797 = vmatpush3.msra.mxu1 %v15756_v57  ;;  %14804 = vmatprep.mubr.msk.f32.mxu1 %vm489_vm1, %v17610_v17 }
0x1b91   : > { %v6948_v21 = vmul.f32 %v6944_v26, %v16363_v52  ;;  %v6942_v34 = vmul.f32 %v15758_v49, %v15758_v49  ;;  %14798 = vmatprep.subr.mxu1 %v15758_v49  ;;  %v17616_v48 = vadd.f32 %v6768_v4, %v6766_v62  ;;  %v6947_v60 = vsub.f32 1.0, %v6943_v23 }
0x1b92   : > { %14799 = vmatpush3.msra.mxu1 %v15758_v49 }
0x1b93   : > { %v6946_v20 = vsub.f32 1.0, %v6942_v34  ;;  %14800 = vmatprep.subr.mxu1 %v15752_v10  ;;  %v6952_v22 = vadd.f32 %v6949_v41, %v6948_v21  ;;  %v6951_v39 = vmul.f32 %v6947_v60, %v16377_v11 }
0x1b94   : > { %14801 = vmatpush3.msra.mxu1 %v15752_v10 }
0x1b95   : > { %14802 = vmatprep.subr.mxu1 %v15754_v32  ;;  %v6950_v1 = vmul.f32 %v6946_v20, %v16369_v2 }
0x1b96   : > { %14803 = vmatpush3.msra.mxu1 %v15754_v32 }
0x1b97   : > { %14805 = vmatmul.mubr.msk.f32.vlgmr.msra.gmra.mxu1 %vm489_vm1, %v17602_v29  ;;  %v6953_v51 = vadd.f32 %v6952_v22, %v6950_v1 }
0x1b98   : > { %14825 = vmatprep.mubr.msk.f32.mxu1 %vm489_vm1, %v17610_v17 }
0x1b99   : > { %v17624_v3 = vadd.f32 %v6953_v51, %v6951_v39 }
0x1c4f   : > { %v14785_v19 = vpop.f32.mrf.mxu1 }
0x1c50   : > { %v17627_v31 = vadd.f32 %v14785_v19, %v16358_v42 }
0x1c51   : > { %v6746_v36 = vpop.f32.mrf.mxu1 }
0x1c52   : > { %v6962_v53 = vmul.f32 0.0625, %v17627_v31  ;;  %v17631_v58 = vadd.f32 %v6746_v36, %v16361_v46 }
0x1c54   : > { %v6961_v55 = vmul.f32 0.0625, %v17631_v58  ;;  %v6964_v45 = vadd.f32 %v6962_v53, %v17529_v44 }
0x1c56   : > { %14807 = vmatprep.subr.mxu0 %v6964_v45  ;;  %v6963_v35 = vadd.f32 %v6961_v55, %v17532_v16 }
0x1c57   : > { %v14806_v63 = vpop.f32.mrf.mxu1  ;;  %14808 = vmatpush3.msra.mxu0 %v6964_v45 }
0x1c58   : > { %v17637_v0 = vadd.f32 %v14806_v63, %v16358_v42  ;;  %14809 = vmatprep.subr.mxu0 %v6963_v35 }
0x1c59   : > { %v6931_v9 = vpop.f32.mrf.mxu1  ;;  %14810 = vmatpush3.msra.mxu0 %v6963_v35  ;;  %v6770_v35 = vrot.slane %v17616_v48, 4 }
0x1c5a   : > { %v7151_v50 = vmul.f32 0.0625, %v17637_v0  ;;  %v17641_v38 = vadd.f32 %v6931_v9, %v16361_v46  ;;  %14812 = vmatmul.mubr.msk.f32.vlgmr.msra.gmra.mxu0 %vm387_vm0, %v17545_v15 }
0x1c5b   : > { %14814 = vmatprep.mubr.msk.f32.mxu0 %vm387_vm0, %v17552_v30 }
0x1c5c   : > { %v7150_v18 = vmul.f32 0.0625, %v17641_v38  ;;  %v7153_v47 = vadd.f32 %v7151_v50, %v17557_v7 }
0x1c5e   : > { %14815 = vmatmul.mubr.msk.f32.gmra.mxu0 %vm387_vm0, %v17565_v8  ;;  %14828 = vmatprep.subr.mxu0 %v7153_v47  ;;  %v7152_v14 = vadd.f32 %v7150_v18, %v17560_v6 }
0x1c5f   : > { %14829 = vmatpush3.msra.mxu0 %v7153_v47  ;;  %14832 = vmatprep.mubr.msk.f32.mxu0 %vm387_vm0, %v17574_v61 }
0x1c60   : > { %14830 = vmatprep.subr.mxu0 %v7152_v14 }
0x1c61   : > { %14831 = vmatpush3.msra.mxu0 %v7152_v14 }
0x1c62   : > { %14833 = vmatmul.mubr.msk.f32.vlgmr.msra.gmra.mxu0 %vm387_vm0, %v17545_v15 }
0x1c63   : > { %14835 = vmatprep.mubr.msk.f32.mxu0 %vm387_vm0, %v17552_v30 }
0x1c66   : > { %14836 = vmatmul.mubr.msk.f32.gmra.mxu0 %vm387_vm0, %v17565_v8 }
0x1c67   : > { %14853 = vmatprep.mubr.msk.f32.mxu0 %vm387_vm0, %v17574_v61 }
0x1d1a   : > { %v14813_v10 = vpop.f32.mrf.mxu0 }
0x1d1b   : > { %v7037_v54 = vadd.f32 %v14813_v10, %v16343_v24 }
0x1d1c   : > { %v7031_v27 = vpop.f32.mrf.mxu0 }
0x1d1d   : > { %15759 = vtanh.f32 %v7037_v54  ;;  %v7032_v5 = vadd.f32 %v7031_v27, %v16348_v28 }
0x1d1e   : > { %v14816_v13 = vpop.f32.mrf.mxu0 }
0x1d1f   : > { %15761 = vtanh.f32 %v7032_v5  ;;  %v7047_v32 = vadd.f32 %v14816_v13, %v16345_v25  ;;  %v6771_v5 = vadd.f32 %v6770_v35, %v17616_v48 }
0x1d20   : > { %v7041_v43 = vpop.f32.mrf.mxu0 }
0x1d21   : > { %15763 = vtanh.f32 %v7047_v32  ;;  %v7042_v40 = vadd.f32 %v7041_v43, %v16352_v33 }
0x1d22   : > { %v14834_v59 = vpop.f32.mrf.mxu0 }
0x1d23   : > { %15765 = vtanh.f32 %v7042_v40  ;;  %v7226_v57 = vadd.f32 %v14834_v59, %v16343_v24 }
0x1d24   : > { %v7220_v26 = vpop.f32.mrf.mxu0 }
0x1d25   : > { %15767 = vtanh.f32 %v7226_v57  ;;  %v7221_v23 = vadd.f32 %v7220_v26, %v16348_v28 }
0x1d26   : > { %v14837_v62 = vpop.f32.mrf.mxu0 }
0x1d27   : > { %15769 = vtanh.f32 %v7221_v23  ;;  %v7236_v4 = vadd.f32 %v14837_v62, %v16345_v25  ;;  %v6772_v62 = vrot.slane %v6771_v5, 2 }
0x1d28   : > { %v7230_v49 = vpop.f32.mrf.mxu0 }
0x1d29   : > { %15771 = vtanh.f32 %v7236_v4  ;;  %v7231_v41 = vadd.f32 %v7230_v49, %v16352_v33  ;;  %v6955_v4 = vrot.slane %v17624_v3, 4 }
0x1d2a   : > { %v15760_v21 = vpop.eup %15759 }
0x1d2b   : > { %v7130_v34 = vmul.f32 %v15760_v21, %v15760_v21  ;;  %15773 = vtanh.f32 %v7231_v41 }
0x1d2c   : > { %v15762_v60 = vpop.eup %15761 }
0x1d2d   : > { %v7134_v20 = vsub.f32 1.0, %v7130_v34  ;;  %v7129_v22 = vmul.f32 %v15762_v60, %v15762_v60 }
0x1d2e   : > { %v15764_v1 = vpop.eup %15763 }
0x1d2f   : > { %v7133_v39 = vsub.f32 1.0, %v7129_v22  ;;  %v7132_v51 = vmul.f32 %v15764_v1, %v15764_v1  ;;  %14817 = vmatprep.subr.mxu1 %v15764_v1  ;;  %v7138_v36 = vmul.f32 %v7134_v20, %v16365_v56  ;;  %v6773_v22 = vadd.f32 %v6772_v62, %v6771_v5 }
0x1d30   : > { %v15766_v19 = vpop.eup %15765  ;;  %14818 = vmatpush3.msra.mxu1 %v15764_v1  ;;  %v6956_v1 = vadd.f32 %v6955_v4, %v17624_v3 }
0x1d31   : > { %v7137_v53 = vmul.f32 %v7133_v39, %v16363_v52  ;;  %v7131_v55 = vmul.f32 %v15766_v19, %v15766_v19  ;;  %14819 = vmatprep.subr.mxu1 %v15766_v19  ;;  %v7136_v63 = vsub.f32 1.0, %v7132_v51 }
0x1d32   : > { %v15768_v45 = vpop.eup %15767  ;;  %14820 = vmatpush3.msra.mxu1 %v15766_v19 }
0x1d33   : > { %v7135_v9 = vsub.f32 1.0, %v7131_v55  ;;  %v7319_v50 = vmul.f32 %v15768_v45, %v15768_v45  ;;  %14821 = vmatprep.subr.mxu1 %v15760_v21  ;;  %v7141_v18 = vadd.f32 %v7138_v36, %v7137_v53  ;;  %v7140_v43 = vmul.f32 %v7136_v63, %v16377_v11 }
0x1d34   : > { %v15770_v47 = vpop.eup %15769  ;;  %14822 = vmatpush3.msra.mxu1 %v15760_v21  ;;  %v6774_v55 = vrot.slane %v6773_v22, 1 }
0x1d35   : > { %v7323_v14 = vsub.f32 1.0, %v7319_v50  ;;  %v7318_v10 = vmul.f32 %v15770_v47, %v15770_v47  ;;  %14823 = vmatprep.subr.mxu1 %v15762_v60  ;;  %v7139_v54 = vmul.f32 %v7135_v9, %v16369_v2 }
0x1d36   : > { %v15772_v27 = vpop.eup %15771  ;;  %14824 = vmatpush3.msra.mxu1 %v15762_v60 }
0x1d37   : > { %v7322_v13 = vsub.f32 1.0, %v7318_v10  ;;  %v7321_v32 = vmul.f32 %v15772_v27, %v15772_v27  ;;  %14826 = vmatmul.mubr.msk.f32.vlgmr.msra.gmra.mxu1 %vm489_vm1, %v17602_v29  ;;  %14838 = vmatprep.subr.mxu1 %v15772_v27  ;;  %v7142_v40 = vadd.f32 %v7141_v18, %v7139_v54  ;;  %v7327_v57 = vmul.f32 %v7323_v14, %v16365_v56 }
0x1d38   : > { %v15774_v59 = vpop.eup %15773  ;;  %14839 = vmatpush3.msra.mxu1 %v15772_v27  ;;  %14846 = vmatprep.mubr.msk.f32.mxu1 %vm489_vm1, %v17610_v17  ;;  %v6775_v18 = vadd.f32 %v6774_v55, %v6773_v22 }
0x1d39   : > { %v7326_v26 = vmul.f32 %v7322_v13, %v16363_v52  ;;  %v7320_v23 = vmul.f32 %v15774_v59, %v15774_v59  ;;  %14840 = vmatprep.subr.mxu1 %v15774_v59  ;;  %v7143_v48 = vadd.f32 %v7142_v40, %v7140_v43  ;;  %v7325_v49 = vsub.f32 1.0, %v7321_v32 }
0x1d3a   : > { %14841 = vmatpush3.msra.mxu1 %v15774_v59 }
0x1d3b   : > { %v7324_v41 = vsub.f32 1.0, %v7320_v23  ;;  %14842 = vmatprep.subr.mxu1 %v15768_v45  ;;  %v7144_v21 = vrot.slane %v7143_v48, 4  ;;  %v7330_v34 = vadd.f32 %v7327_v57, %v7326_v26  ;;  %v7329_v51 = vmul.f32 %v7325_v49, %v16377_v11 }
0x1d3c   : > { %14843 = vmatpush3.msra.mxu1 %v15768_v45  ;;  %v6957_v45 = vrot.slane %v6956_v1, 2 }
0x1d3d   : > { %14844 = vmatprep.subr.mxu1 %v15770_v47  ;;  %v7145_v60 = vadd.f32 %v7144_v21, %v7143_v48  ;;  %v7328_v20 = vmul.f32 %v7324_v41, %v16369_v2 }
0x1d3e   : > { %14845 = vmatpush3.msra.mxu1 %v15770_v47  ;;  %v6958_v47 = vadd.f32 %v6957_v45, %v6956_v1 }
0x1d3f   : > { %14847 = vmatmul.mubr.msk.f32.vlgmr.msra.gmra.mxu1 %vm489_vm1, %v17602_v29  ;;  %v7146_v39 = vrot.slane %v7145_v60, 2  ;;  %v7331_v19 = vadd.f32 %v7330_v34, %v7328_v20 }
0x1d40   : > { %14867 = vmatprep.mubr.msk.f32.mxu1 %vm489_vm1, %v17610_v17  ;;  %v6959_v27 = vrot.slane %v6958_v47, 1 }
0x1d41   : > { %v7147_v36 = vadd.f32 %v7146_v39, %v7145_v60  ;;  %v7332_v53 = vadd.f32 %v7331_v19, %v7329_v51 }
0x1d42   : > { %v6960_v32 = vadd.f32 %v6959_v27, %v6958_v47 }
0x1d43   : > { %v7148_v35 = vrot.slane %v7147_v36, 1  ;;  %v7333_v63 = vrot.slane %v7332_v53, 4 }
0x1d45   : > { %v7149_v9 = vadd.f32 %v7148_v35, %v7147_v36  ;;  %v7334_v50 = vadd.f32 %v7333_v63, %v7332_v53 }
0x1d47   : > { %v7335_v14 = vrot.slane %v7334_v50, 2  ;;  %v8123_v10 = vmul.f32 2.0, %v7149_v9 }
0x1d49   : > { %v7336_v3 = vadd.f32 %v7335_v14, %v7334_v50  ;;  %v17690_v54 = vadd.f32 %v8123_v10, %v6775_v18 }
0x1d4b   : > { %v7337_v5 = vrot.slane %v7336_v3, 1 }
0x1d4d   : > { %v7338_v13 = vadd.f32 %v7337_v5, %v7336_v3 }
0x1d4f   : > { %v8130_v43 = vmul.f32 2.0, %v7338_v13 }
0x1d51   : > { %v17692_v40 = vadd.f32 %v8130_v43, %v6960_v32 }
0x1df7   : > { %v14827_v59 = vpop.f32.mrf.mxu1 }
0x1df8   : > { %v17695_v57 = vadd.f32 %v14827_v59, %v16358_v42 }
0x1df9   : > { %v7120_v26 = vpop.f32.mrf.mxu1 }
0x1dfa   : > { %v7340_v23 = vmul.f32 0.0625, %v17695_v57  ;;  %v17699_v48 = vadd.f32 %v7120_v26, %v16361_v46 }
0x1dfc   : > { %v7339_v62 = vmul.f32 0.0625, %v17699_v48  ;;  %v7342_v4 = vadd.f32 %v7340_v23, %v17529_v44 }
0x1dfe   : > { %14849 = vmatprep.subr.mxu0 %v7342_v4  ;;  %v7341_v49 = vadd.f32 %v7339_v62, %v17532_v16 }
0x1dff   : > { %v14848_v41 = vpop.f32.mrf.mxu1  ;;  %14850 = vmatpush3.msra.mxu0 %v7342_v4 }
0x1e00   : > { %v17705_v21 = vadd.f32 %v14848_v41, %v16358_v42  ;;  %14851 = vmatprep.subr.mxu0 %v7341_v49 }
0x1e01   : > { %v7309_v34 = vpop.f32.mrf.mxu1  ;;  %14852 = vmatpush3.msra.mxu0 %v7341_v49 }
0x1e02   : > { %v7529_v60 = vmul.f32 0.0625, %v17705_v21  ;;  %v17709_v20 = vadd.f32 %v7309_v34, %v16361_v46  ;;  %14854 = vmatmul.mubr.msk.f32.vlgmr.msra.gmra.mxu0 %vm387_vm0, %v17545_v15 }
0x1e03   : > { %14856 = vmatprep.mubr.msk.f32.mxu0 %vm387_vm0, %v17552_v30 }
0x1e04   : > { %v7528_v22 = vmul.f32 0.0625, %v17709_v20  ;;  %v7531_v1 = vadd.f32 %v7529_v60, %v17557_v7 }
0x1e06   : > { %14857 = vmatmul.mubr.msk.f32.gmra.mxu0 %vm387_vm0, %v17565_v8  ;;  %14870 = vmatprep.subr.mxu0 %v7531_v1  ;;  %v7530_v39 = vadd.f32 %v7528_v22, %v17560_v6 }
0x1e07   : > { %14871 = vmatpush3.msra.mxu0 %v7531_v1  ;;  %14874 = vmatprep.mubr.msk.f32.mxu0 %vm387_vm0, %v17574_v61 }
0x1e08   : > { %14872 = vmatprep.subr.mxu0 %v7530_v39 }
0x1e09   : > { %14873 = vmatpush3.msra.mxu0 %v7530_v39 }
0x1e0a   : > { %14875 = vmatmul.mubr.msk.f32.vlgmr.msra.gmra.mxu0 %vm387_vm0, %v17545_v15 }
0x1e0b   : > { %14877 = vmatprep.mubr.msk.f32.mxu0 %vm387_vm0, %v17552_v30 }
0x1e0e   : > { %14878 = vmatmul.mubr.msk.f32.gmra.mxu0 %vm387_vm0, %v17565_v8 }
0x1e0f   : > { %14895 = vmatprep.mubr.msk.f32.mxu0 %vm387_vm0, %v17574_v61 }
0x1ec2   : > { %v14855_v51 = vpop.f32.mrf.mxu0 }
0x1ec3   : > { %v7415_v19 = vadd.f32 %v14855_v51, %v16343_v24 }
0x1ec4   : > { %v7409_v36 = vpop.f32.mrf.mxu0 }
0x1ec5   : > { %15775 = vtanh.f32 %v7415_v19  ;;  %v7410_v53 = vadd.f32 %v7409_v36, %v16348_v28 }
0x1ec6   : > { %v14858_v55 = vpop.f32.mrf.mxu0 }
0x1ec7   : > { %15777 = vtanh.f32 %v7410_v53  ;;  %v7425_v45 = vadd.f32 %v14858_v55, %v16345_v25 }
0x1ec8   : > { %v7419_v35 = vpop.f32.mrf.mxu0 }
0x1ec9   : > { %15779 = vtanh.f32 %v7425_v45  ;;  %v7420_v63 = vadd.f32 %v7419_v35, %v16352_v33 }
0x1eca   : > { %v14876_v9 = vpop.f32.mrf.mxu0 }
0x1ecb   : > { %15781 = vtanh.f32 %v7420_v63  ;;  %v7604_v50 = vadd.f32 %v14876_v9, %v16343_v24 }
0x1ecc   : > { %v7598_v18 = vpop.f32.mrf.mxu0 }
0x1ecd   : > { %15783 = vtanh.f32 %v7604_v50  ;;  %v7599_v47 = vadd.f32 %v7598_v18, %v16348_v28 }
0x1ece   : > { %v14879_v14 = vpop.f32.mrf.mxu0 }
0x1ecf   : > { %15785 = vtanh.f32 %v7599_v47  ;;  %v7614_v10 = vadd.f32 %v14879_v14, %v16345_v25 }
0x1ed0   : > { %v7608_v3 = vpop.f32.mrf.mxu0 }
0x1ed1   : > { %15787 = vtanh.f32 %v7614_v10  ;;  %v7609_v27 = vadd.f32 %v7608_v3, %v16352_v33 }
0x1ed2   : > { %v15776_v5 = vpop.eup %15775 }
0x1ed3   : > { %v7508_v13 = vmul.f32 %v15776_v5, %v15776_v5  ;;  %15789 = vtanh.f32 %v7609_v27 }
0x1ed4   : > { %v15778_v32 = vpop.eup %15777 }
0x1ed5   : > { %v7512_v43 = vsub.f32 1.0, %v7508_v13  ;;  %v7507_v59 = vmul.f32 %v15778_v32, %v15778_v32 }
0x1ed6   : > { %v15780_v26 = vpop.eup %15779 }
0x1ed7   : > { %v7511_v23 = vsub.f32 1.0, %v7507_v59  ;;  %v7510_v62 = vmul.f32 %v15780_v26, %v15780_v26  ;;  %14859 = vmatprep.subr.mxu1 %v15780_v26  ;;  %v7516_v49 = vmul.f32 %v7512_v43, %v16365_v56 }
0x1ed8   : > { %v15782_v4 = vpop.eup %15781  ;;  %14860 = vmatpush3.msra.mxu1 %v15780_v26 }
0x1ed9   : > { %v7515_v41 = vmul.f32 %v7511_v23, %v16363_v52  ;;  %v7509_v34 = vmul.f32 %v15782_v4, %v15782_v4  ;;  %14861 = vmatprep.subr.mxu1 %v15782_v4  ;;  %v7514_v22 = vsub.f32 1.0, %v7510_v62 }
0x1eda   : > { %v15784_v60 = vpop.eup %15783  ;;  %14862 = vmatpush3.msra.mxu1 %v15782_v4 }
0x1edb   : > { %v7513_v1 = vsub.f32 1.0, %v7509_v34  ;;  %v7697_v39 = vmul.f32 %v15784_v60, %v15784_v60  ;;  %14863 = vmatprep.subr.mxu1 %v15776_v5  ;;  %v7519_v51 = vadd.f32 %v7516_v49, %v7515_v41  ;;  %v7518_v9 = vmul.f32 %v7514_v22, %v16377_v11 }
0x1edc   : > { %v15786_v19 = vpop.eup %15785  ;;  %14864 = vmatpush3.msra.mxu1 %v15776_v5 }
0x1edd   : > { %v7701_v36 = vsub.f32 1.0, %v7697_v39  ;;  %v7696_v53 = vmul.f32 %v15786_v19, %v15786_v19  ;;  %14865 = vmatprep.subr.mxu1 %v15778_v32  ;;  %v7517_v55 = vmul.f32 %v7513_v1, %v16369_v2 }
0x1ede   : > { %v15788_v45 = vpop.eup %15787  ;;  %14866 = vmatpush3.msra.mxu1 %v15778_v32 }
0x1edf   : > { %v7700_v35 = vsub.f32 1.0, %v7696_v53  ;;  %v7699_v63 = vmul.f32 %v15788_v45, %v15788_v45  ;;  %14868 = vmatmul.mubr.msk.f32.vlgmr.msra.gmra.mxu1 %vm489_vm1, %v17602_v29  ;;  %14880 = vmatprep.subr.mxu1 %v15788_v45  ;;  %v7520_v50 = vadd.f32 %v7519_v51, %v7517_v55  ;;  %v7705_v47 = vmul.f32 %v7701_v36, %v16365_v56 }
0x1ee0   : > { %v15790_v18 = vpop.eup %15789  ;;  %14881 = vmatpush3.msra.mxu1 %v15788_v45  ;;  %14888 = vmatprep.mubr.msk.f32.mxu1 %vm489_vm1, %v17610_v17 }
0x1ee1   : > { %v7704_v14 = vmul.f32 %v7700_v35, %v16363_v52  ;;  %v7698_v10 = vmul.f32 %v15790_v18, %v15790_v18  ;;  %14882 = vmatprep.subr.mxu1 %v15790_v18  ;;  %v7521_v3 = vadd.f32 %v7520_v50, %v7518_v9  ;;  %v7703_v27 = vsub.f32 1.0, %v7699_v63 }
0x1ee2   : > { %14883 = vmatpush3.msra.mxu1 %v15790_v18  ;;  %v8096_v35 = vmul.f32 2.0, %v17695_v57  ;;  %v8095_v63 = vmul.f32 2.0, %v17699_v48  ;;  %v8110_v57 = vmul.f32 2.0, %v17705_v21 }
0x1ee3   : > { %v7702_v5 = vsub.f32 1.0, %v7698_v10  ;;  %14884 = vmatprep.subr.mxu1 %v15784_v60  ;;  %v7522_v13 = vrot.slane %v7521_v3, 4  ;;  %v7708_v32 = vadd.f32 %v7705_v47, %v7704_v14  ;;  %v7707_v23 = vmul.f32 %v7703_v27, %v16377_v11 }
0x1ee4   : > { %14885 = vmatpush3.msra.mxu1 %v15784_v60  ;;  %v8098_v47 = vadd.f32 %v8096_v35, %v17627_v31  ;;  %v8109_v31 = vmul.f32 2.0, %v17709_v20 }
0x1ee5   : > { %14886 = vmatprep.subr.mxu1 %v15786_v19  ;;  %v7523_v43 = vadd.f32 %v7522_v13, %v7521_v3  ;;  %v7706_v59 = vmul.f32 %v7702_v5, %v16369_v2  ;;  %v8097_v3 = vadd.f32 %v8095_v63, %v17631_v58 }
0x1ee6   : > { %14887 = vmatpush3.msra.mxu1 %v15786_v19 }
0x1ee7   : > { %14889 = vmatmul.mubr.msk.f32.vlgmr.msra.gmra.mxu1 %vm489_vm1, %v17602_v29  ;;  %v7524_v26 = vrot.slane %v7523_v43, 2  ;;  %v7709_v62 = vadd.f32 %v7708_v32, %v7706_v59 }
0x1ee8   : > { %14909 = vmatprep.mubr.msk.f32.mxu1 %vm489_vm1, %v17610_v17 }
0x1ee9   : > { %v7525_v4 = vadd.f32 %v7524_v26, %v7523_v43  ;;  %v7710_v49 = vadd.f32 %v7709_v62, %v7707_v23  ;;  %v8112_v26 = vadd.f32 %v8110_v57, %v17637_v0 }
0x1eeb   : > { %v7526_v41 = vrot.slane %v7525_v4, 1  ;;  %v7711_v34 = vrot.slane %v7710_v49, 4 }
0x1eed   : > { %v7527_v60 = vadd.f32 %v7526_v41, %v7525_v4  ;;  %v7712_v22 = vadd.f32 %v7711_v34, %v7710_v49  ;;  %v8111_v4 = vadd.f32 %v8109_v31, %v17641_v38 }
0x1eef   : > { %v7713_v1 = vrot.slane %v7712_v22, 2  ;;  %v8125_v39 = vmul.f32 2.0, %v7527_v60 }
0x1ef1   : > { %v7714_v51 = vadd.f32 %v7713_v1, %v7712_v22  ;;  %v17755_v19 = vadd.f32 %v8125_v39, %v17690_v54 }
0x1ef3   : > { %v7715_v36 = vrot.slane %v7714_v51, 1 }
0x1ef5   : > { %v7716_v53 = vadd.f32 %v7715_v36, %v7714_v51 }
0x1ef7   : > { %v8132_v55 = vmul.f32 2.0, %v7716_v53 }
0x1ef9   : > { %v17758_v45 = vadd.f32 %v8132_v55, %v17692_v40 }
0x1f9f   : > { %v14869_v9 = vpop.f32.mrf.mxu1 }
0x1fa0   : > { %v7504_v50 = vadd.f32 %v14869_v9, %v16358_v42 }
0x1fa1   : > { %v7498_v18 = vpop.f32.mrf.mxu1 }
0x1fa2   : > { %v7718_v14 = vmul.f32 0.125, %v7504_v50  ;;  %v8100_v10 = vmul.f32 2.0, %v7504_v50  ;;  %v7499_v54 = vadd.f32 %v7498_v18, %v16361_v46 }
0x1fa4   : > { %v7717_v27 = vmul.f32 0.125, %v7499_v54  ;;  %v8099_v5 = vmul.f32 2.0, %v7499_v54  ;;  %v7720_v40 = vadd.f32 %v7718_v14, %v17529_v44  ;;  %v17767_v13 = vadd.f32 %v8100_v10, %v8098_v47 }
0x1fa6   : > { %14891 = vmatprep.subr.mxu0 %v7720_v40  ;;  %v7719_v48 = vadd.f32 %v7717_v27, %v17532_v16  ;;  %v17771_v32 = vadd.f32 %v8099_v5, %v8097_v3 }
0x1fa7   : > { %v14890_v43 = vpop.f32.mrf.mxu1  ;;  %14892 = vmatpush3.msra.mxu0 %v7720_v40 }
0x1fa8   : > { %v7693_v59 = vadd.f32 %v14890_v43, %v16358_v42  ;;  %14893 = vmatprep.subr.mxu0 %v7719_v48 }
0x1fa9   : > { %v7687_v58 = vpop.f32.mrf.mxu1  ;;  %14894 = vmatpush3.msra.mxu0 %v7719_v48 }
0x1faa   : > { %v7907_v23 = vmul.f32 0.125, %v7693_v59  ;;  %v8114_v62 = vmul.f32 2.0, %v7693_v59  ;;  %v7688_v21 = vadd.f32 %v7687_v58, %v16361_v46  ;;  %14896 = vmatmul.mubr.msk.f32.vlgmr.msra.gmra.mxu0 %vm387_vm0, %v17545_v15 }
0x1fab   : > { %14898 = vmatprep.mubr.msk.f32.mxu0 %vm387_vm0, %v17552_v30 }
0x1fac   : > { %v7906_v20 = vmul.f32 0.125, %v7688_v21  ;;  %v8113_v49 = vmul.f32 2.0, %v7688_v21  ;;  %v7909_v41 = vadd.f32 %v7907_v23, %v17557_v7  ;;  %v17783_v34 = vadd.f32 %v8114_v62, %v8112_v26 }
0x1fae   : > { %14899 = vmatmul.mubr.msk.f32.gmra.mxu0 %vm387_vm0, %v17565_v8  ;;  %14912 = vmatprep.subr.mxu0 %v7909_v41  ;;  %v7908_v0 = vadd.f32 %v7906_v20, %v17560_v6  ;;  %v17788_v60 = vadd.f32 %v8113_v49, %v8111_v4 }
0x1faf   : > { %14913 = vmatpush3.msra.mxu0 %v7909_v41  ;;  %14916 = vmatprep.mubr.msk.f32.mxu0 %vm387_vm0, %v17574_v61 }
0x1fb0   : > { %14914 = vmatprep.subr.mxu0 %v7908_v0 }
0x1fb1   : > { %14915 = vmatpush3.msra.mxu0 %v7908_v0 }
0x1fb2   : > { %14917 = vmatmul.mubr.msk.f32.vlgmr.msra.gmra.mxu0 %vm387_vm0, %v17545_v15 }
0x1fb3   : > { %14919 = vmatprep.mubr.msk.f32.mxu0 %vm387_vm0, %v17552_v30 }
0x1fb6   : > { %14920 = vmatmul.mubr.msk.f32.gmra.mxu0 %vm387_vm0, %v17565_v8 }
0x1fb7   : > { %14937 = vmatprep.mubr.msk.f32.mxu0 %vm387_vm0, %v17574_v61 }
0x206a   : > { %v14897_v38 = vpop.f32.mrf.mxu0 }
0x206b   : > { %v7793_v22 = vadd.f32 %v14897_v38, %v16343_v24 }
0x206c   : > { %v7787_v1 = vpop.f32.mrf.mxu0 }
0x206d   : > { %15791 = vtanh.f32 %v7793_v22  ;;  %v7788_v39 = vadd.f32 %v7787_v1, %v16348_v28 }
0x206e   : > { %v14900_v51 = vpop.f32.mrf.mxu0 }
0x206f   : > { %15793 = vtanh.f32 %v7788_v39  ;;  %v7803_v15 = vadd.f32 %v14900_v51, %v16345_v25 }
0x2070   : > { %v7797_v36 = vpop.f32.mrf.mxu0 }
0x2071   : > { %15795 = vtanh.f32 %v7803_v15  ;;  %v7798_v30 = vadd.f32 %v7797_v36, %v16352_v33 }
0x2072   : > { %v14918_v53 = vpop.f32.mrf.mxu0 }
0x2073   : > { %15797 = vtanh.f32 %v7798_v30  ;;  %v7982_v8 = vadd.f32 %v14918_v53, %v16343_v24 }
0x2074   : > { %v7976_v61 = vpop.f32.mrf.mxu0 }
0x2075   : > { %15799 = vtanh.f32 %v7982_v8  ;;  %v7977_v55 = vadd.f32 %v7976_v61, %v16348_v28 }
0x2076   : > { %v14921_v35 = vpop.f32.mrf.mxu0 }
0x2077   : > { %15801 = vtanh.f32 %v7977_v55  ;;  %v7992_v63 = vadd.f32 %v14921_v35, %v16345_v25 }
0x2078   : > { %v7986_v9 = vpop.f32.mrf.mxu0 }
0x2079   : > { %15803 = vtanh.f32 %v7992_v63  ;;  %v7987_v50 = vadd.f32 %v7986_v9, %v16352_v33 }
0x207a   : > { %v15792_v18 = vpop.eup %15791 }
0x207b   : > { %v7886_v47 = vmul.f32 %v15792_v18, %v15792_v18  ;;  %15805 = vtanh.f32 %v7987_v50 }
0x207c   : > { %v15794_v14 = vpop.eup %15793 }
0x207d   : > { %v7890_v10 = vsub.f32 1.0, %v7886_v47  ;;  %v7885_v54 = vmul.f32 %v15794_v14, %v15794_v14 }
0x207e   : > { %v15796_v3 = vpop.eup %15795 }
0x207f   : > { %v7889_v27 = vsub.f32 1.0, %v7885_v54  ;;  %14901 = vmatprep.subr.mxu1 %v15796_v3  ;;  %v7888_v5 = vmul.f32 %v15796_v3, %v15796_v3  ;;  %v7894_v31 = vmul.f32 %v7890_v10, %v16365_v56 }
0x2080   : > { %v15798_v40 = vpop.eup %15797  ;;  %14902 = vmatpush3.msra.mxu1 %v15796_v3 }
0x2081   : > { %v7887_v57 = vmul.f32 %v15798_v40, %v15798_v40  ;;  %14903 = vmatprep.subr.mxu1 %v15798_v40  ;;  %v7893_v48 = vmul.f32 %v7889_v27, %v16363_v52  ;;  %v7892_v26 = vsub.f32 1.0, %v7888_v5 }
0x2082   : > { %v15800_v43 = vpop.eup %15799  ;;  %14904 = vmatpush3.msra.mxu1 %v15798_v40 }
0x2083   : > { %v7891_v59 = vsub.f32 1.0, %v7887_v57  ;;  %v8075_v58 = vmul.f32 %v15800_v43, %v15800_v43  ;;  %14905 = vmatprep.subr.mxu1 %v15792_v18  ;;  %v7897_v23 = vadd.f32 %v7894_v31, %v7893_v48  ;;  %v7896_v0 = vmul.f32 %v7892_v26, %v16377_v11 }
0x2084   : > { %v15802_v62 = vpop.eup %15801  ;;  %14906 = vmatpush3.msra.mxu1 %v15792_v18 }
0x2085   : > { %v8079_v21 = vsub.f32 1.0, %v8075_v58  ;;  %v8074_v4 = vmul.f32 %v15802_v62, %v15802_v62  ;;  %14907 = vmatprep.subr.mxu1 %v15794_v14  ;;  %v7895_v20 = vmul.f32 %v7891_v59, %v16369_v2 }
0x2086   : > { %v15804_v49 = vpop.eup %15803  ;;  %14908 = vmatpush3.msra.mxu1 %v15794_v14 }
0x2087   : > { %v8078_v41 = vsub.f32 1.0, %v8074_v4  ;;  %14910 = vmatmul.mubr.msk.f32.vlgmr.msra.gmra.mxu1 %vm489_vm1, %v17602_v29  ;;  %14922 = vmatprep.subr.mxu1 %v15804_v49  ;;  %v7898_v38 = vadd.f32 %v7897_v23, %v7895_v20  ;;  %v8077_v22 = vmul.f32 %v15804_v49, %v15804_v49  ;;  %v8083_v36 = vmul.f32 %v8079_v21, %v16365_v56 }
0x2088   : > { %v15806_v1 = vpop.eup %15805  ;;  %14923 = vmatpush3.msra.mxu1 %v15804_v49  ;;  %14930 = vmatprep.mubr.msk.f32.mxu1 %vm489_vm1, %v17610_v17 }
0x2089   : > { %v8076_v39 = vmul.f32 %v15806_v1, %v15806_v1  ;;  %14924 = vmatprep.subr.mxu1 %v15806_v1  ;;  %v7899_v51 = vadd.f32 %v7898_v38, %v7896_v0  ;;  %v8082_v15 = vmul.f32 %v8078_v41, %v16363_v52  ;;  %v8081_v8 = vsub.f32 1.0, %v8077_v22 }
0x208a   : > { %14925 = vmatpush3.msra.mxu1 %v15806_v1  ;;  %v17873_v1 = vld [vmem:[%s18830_s1 + $0x18] sm:$0xff] }
0x208b   : > { %v8080_v30 = vsub.f32 1.0, %v8076_v39  ;;  %14926 = vmatprep.subr.mxu1 %v15800_v43  ;;  %v7900_v53 = vrot.slane %v7899_v51, 4  ;;  %v8086_v61 = vadd.f32 %v8083_v36, %v8082_v15  ;;  %v8085_v9 = vmul.f32 %v8081_v8, %v16377_v11 }
0x208c   : > { %14927 = vmatpush3.msra.mxu1 %v15800_v43 }
0x208d   : > { %14928 = vmatprep.subr.mxu1 %v15802_v62  ;;  %v7901_v55 = vadd.f32 %v7900_v53, %v7899_v51  ;;  %v8084_v35 = vmul.f32 %v8080_v30, %v16369_v2 }
0x208e   : > { %14929 = vmatpush3.msra.mxu1 %v15802_v62 }
0x208f   : > { %14931 = vmatmul.mubr.msk.f32.vlgmr.msra.gmra.mxu1 %vm489_vm1, %v17602_v29  ;;  %v7902_v63 = vrot.slane %v7901_v55, 2  ;;  %v8087_v50 = vadd.f32 %v8086_v61, %v8084_v35 }
0x2090   : > { %14951 = vmatprep.mubr.msk.f32.mxu1 %vm489_vm1, %v17610_v17 }
0x2091   : > { %v7903_v18 = vadd.f32 %v7902_v63, %v7901_v55  ;;  %v8088_v47 = vadd.f32 %v8087_v50, %v8085_v9 }
0x2093   : > { %v7904_v14 = vrot.slane %v7903_v18, 1  ;;  %v8089_v10 = vrot.slane %v8088_v47, 4 }
0x2095   : > { %v7905_v54 = vadd.f32 %v7904_v14, %v7903_v18  ;;  %v8090_v3 = vadd.f32 %v8089_v10, %v8088_v47 }
0x2097   : > { %v8091_v27 = vrot.slane %v8090_v3, 2  ;;  %v8127_v5 = vadd.f32 %v17755_v19, %v7905_v54 }
0x2099   : > { %v8092_v40 = vadd.f32 %v8091_v27, %v8090_v3  ;;  %v8128_v57 = vmul.f32 0.020833334, %v8127_v5 }
0x209b   : > { %v8093_v48 = vrot.slane %v8092_v40, 1  ;;  %v17826_v29 = vadd.f32 %v8128_v57, %v17518_v37 }
0x209d   : > { %v8094_v31 = vadd.f32 %v8093_v48, %v8092_v40 }
0x209f   : > { %v8134_v43 = vadd.f32 %v17758_v45, %v8094_v31 }
0x20a1   : > { %v8135_v59 = vmul.f32 0.020833334, %v8134_v43 }
0x20a3   : > { %v17830_v17 = vadd.f32 %v8135_v59, %v17522_v12 }
0x2147   : > { %v14911_v58 = vpop.f32.mrf.mxu1 }
0x2148   : > { %v7882_v26 = vadd.f32 %v14911_v58, %v16358_v42 }
0x2149   : > { %v7876_v23 = vpop.f32.mrf.mxu1 }
0x214a   : > { %v8104_v62 = vadd.f32 %v17767_v13, %v7882_v26  ;;  %v7877_v19 = vadd.f32 %v7876_v23, %v16361_v46 }
0x214c   : > { %v8106_v21 = vmul.f32 0.020833334, %v8104_v62  ;;  %v8103_v4 = vadd.f32 %v17771_v32, %v7877_v19 }
0x214e   : > { %v17837_v37 = vadd.f32 %v8106_v21, %v17529_v44  ;;  %v8105_v20 = vmul.f32 0.020833334, %v8103_v4 }
0x214f   : > { %v14932_v45 = vpop.f32.mrf.mxu1 }
0x2150   : > { %v17840_v49 = vadd.f32 %v8105_v20, %v17532_v16  ;;  %v8071_v12 = vadd.f32 %v14932_v45, %v16358_v42  ;;  %14933 = vmatprep.subr.mxu0 %v17837_v37  ;;  %v17853_v16 = vld [vmem:[%s18830_s1 + $0x8] sm:$0xff] }
0x2151   : > { %v8065_v41 = vpop.f32.mrf.mxu1  ;;  %14934 = vmatpush3.msra.mxu0 %v17837_v37 }
0x2152   : > { %v8118_v13 = vadd.f32 %v17783_v34, %v8071_v12  ;;  %v8066_v0 = vadd.f32 %v8065_v41, %v16361_v46  ;;  %14935 = vmatprep.subr.mxu0 %v17840_v49  ;;  %v17860_v34 = vld [vmem:[%s18830_s1 + $0x10] sm:$0xff] }
0x2153   : > { %14936 = vmatpush3.msra.mxu0 %v17840_v49 }
0x2154   : > { %v8120_v44 = vmul.f32 0.020833334, %v8118_v13  ;;  %v8117_v32 = vadd.f32 %v17788_v60, %v8066_v0  ;;  %14938 = vmatmul.mubr.msk.f32.vlgmr.msra.gmra.mxu0 %vm387_vm0, %v17853_v16  ;;  %v17910_v0 = vld [vmem:[%s18832_s3 + $0x8] sm:$0xff] }
0x2155   : > { %14940 = vmatprep.mubr.msk.f32.mxu0 %vm387_vm0, %v17860_v34 }
0x2156   : > { %v17865_v38 = vadd.f32 %v8120_v44, %v17557_v7  ;;  %v8119_v60 = vmul.f32 0.020833334, %v8117_v32  ;;  %v17882_v7 = vld [vmem:[%s18830_s1] sm:$0xff] }
0x2158   : > { %v17868_v22 = vadd.f32 %v8119_v60, %v17560_v6  ;;  %14941 = vmatmul.mubr.msk.f32.gmra.mxu0 %vm387_vm0, %v17873_v1  ;;  %14954 = vmatprep.subr.mxu0 %v17865_v38 }
0x2159   : > { %14955 = vmatpush3.msra.mxu0 %v17865_v38  ;;  %14958 = vmatprep.mubr.msk.f32.mxu0 %vm387_vm0, %v17882_v7 }
0x215a   : > { %14956 = vmatprep.subr.mxu0 %v17868_v22 }
0x215b   : > { %14957 = vmatpush3.msra.mxu0 %v17868_v22 }
0x215c   : > { %14959 = vmatmul.mubr.msk.f32.vlgmr.msra.gmra.mxu0 %vm387_vm0, %v17853_v16 }
0x215d   : > { %14961 = vmatprep.mubr.msk.f32.mxu0 %vm387_vm0, %v17860_v34 }
0x2160   : > { %14962 = vmatmul.mubr.msk.f32.gmra.mxu0 %vm387_vm0, %v17873_v1 }
0x2161   : > { %14979 = vmatprep.mubr.msk.f32.mxu0 %vm387_vm0, %v17882_v7 }
0x2214   : > { %v14939_v6 = vpop.f32.mrf.mxu0 }
0x2215   : > { %v8209_v39 = vadd.f32 %v14939_v6, %v16343_v24  ;;  %v17918_v6 = vld [vmem:[%s18832_s3] sm:$0xff] }
0x2216   : > { %v8203_v51 = vpop.f32.mrf.mxu0 }
0x2217   : > { %15807 = vtanh.f32 %v8209_v39  ;;  %v8204_v15 = vadd.f32 %v8203_v51, %v16348_v28 }
0x2218   : > { %v14942_v36 = vpop.f32.mrf.mxu0 }
0x2219   : > { %15809 = vtanh.f32 %v8204_v15  ;;  %v8219_v30 = vadd.f32 %v14942_v36, %v16345_v25 }
0x221a   : > { %v8213_v53 = vpop.f32.mrf.mxu0 }
0x221b   : > { %15811 = vtanh.f32 %v8219_v30  ;;  %v8214_v8 = vadd.f32 %v8213_v53, %v16352_v33 }
0x221c   : > { %v14960_v61 = vpop.f32.mrf.mxu0 }
0x221d   : > { %15813 = vtanh.f32 %v8214_v8  ;;  %v8394_v55 = vadd.f32 %v14960_v61, %v16343_v24 }
0x221e   : > { %v8388_v35 = vpop.f32.mrf.mxu0 }
0x221f   : > { %15815 = vtanh.f32 %v8394_v55  ;;  %v8389_v63 = vadd.f32 %v8388_v35, %v16348_v28 }
0x2220   : > { %v14963_v9 = vpop.f32.mrf.mxu0 }
0x2221   : > { %15817 = vtanh.f32 %v8389_v63  ;;  %v8404_v50 = vadd.f32 %v14963_v9, %v16345_v25 }
0x2222   : > { %v8398_v18 = vpop.f32.mrf.mxu0 }
0x2223   : > { %15819 = vtanh.f32 %v8404_v50  ;;  %v8399_v47 = vadd.f32 %v8398_v18, %v16352_v33 }
0x2224   : > { %v15808_v14 = vpop.eup %15807 }
0x2225   : > { %v8302_v10 = vmul.f32 %v15808_v14, %v15808_v14  ;;  %15821 = vtanh.f32 %v8399_v47 }
0x2226   : > { %v15810_v54 = vpop.eup %15809 }
0x2227   : > { %v8306_v3 = vsub.f32 1.0, %v8302_v10  ;;  %v8301_v27 = vmul.f32 %v15810_v54, %v15810_v54 }
0x2228   : > { %v15812_v5 = vpop.eup %15811 }
0x2229   : > { %v8305_v40 = vsub.f32 1.0, %v8301_v27  ;;  %v8304_v57 = vmul.f32 %v15812_v5, %v15812_v5  ;;  %14943 = vmatprep.subr.mxu1 %v15812_v5  ;;  %v8310_v31 = vmul.f32 %v8306_v3, %v16365_v56 }
0x222a   : > { %v15814_v48 = vpop.eup %15813  ;;  %14944 = vmatpush3.msra.mxu1 %v15812_v5 }
0x222b   : > { %v8309_v43 = vmul.f32 %v8305_v40, %v16363_v52  ;;  %v8303_v59 = vmul.f32 %v15814_v48, %v15814_v48  ;;  %14945 = vmatprep.subr.mxu1 %v15814_v48  ;;  %v8308_v26 = vsub.f32 1.0, %v8304_v57 }
0x222c   : > { %v15816_v58 = vpop.eup %15815  ;;  %14946 = vmatpush3.msra.mxu1 %v15814_v48 }
0x222d   : > { %v8307_v23 = vsub.f32 1.0, %v8303_v59  ;;  %v8487_v62 = vmul.f32 %v15816_v58, %v15816_v58  ;;  %14947 = vmatprep.subr.mxu1 %v15808_v14  ;;  %v8313_v19 = vadd.f32 %v8310_v31, %v8309_v43  ;;  %v8312_v44 = vmul.f32 %v8308_v26, %v16377_v11 }
0x222e   : > { %v15818_v21 = vpop.eup %15817  ;;  %14948 = vmatpush3.msra.mxu1 %v15808_v14 }
0x222f   : > { %v8491_v4 = vsub.f32 1.0, %v8487_v62  ;;  %v8486_v20 = vmul.f32 %v15818_v21, %v15818_v21  ;;  %14949 = vmatprep.subr.mxu1 %v15810_v54  ;;  %v8311_v45 = vmul.f32 %v8307_v23, %v16369_v2 }
0x2230   : > { %v15820_v12 = vpop.eup %15819  ;;  %14950 = vmatpush3.msra.mxu1 %v15810_v54 }
0x2231   : > { %v8490_v41 = vsub.f32 1.0, %v8486_v20  ;;  %v8489_v13 = vmul.f32 %v15820_v12, %v15820_v12  ;;  %14952 = vmatmul.mubr.msk.f32.vlgmr.msra.gmra.mxu1 %vm489_vm1, %v17910_v0  ;;  %14964 = vmatprep.subr.mxu1 %v15820_v12  ;;  %v8314_v32 = vadd.f32 %v8313_v19, %v8311_v45  ;;  %v8495_v39 = vmul.f32 %v8491_v4, %v16365_v56 }
0x2232   : > { %v15822_v60 = vpop.eup %15821  ;;  %14965 = vmatpush3.msra.mxu1 %v15820_v12  ;;  %14972 = vmatprep.mubr.msk.f32.mxu1 %vm489_vm1, %v17918_v6 }
0x2233   : > { %v8494_v51 = vmul.f32 %v8490_v41, %v16363_v52  ;;  %v8488_v15 = vmul.f32 %v15822_v60, %v15822_v60  ;;  %14966 = vmatprep.subr.mxu1 %v15822_v60  ;;  %v17924_v36 = vadd.f32 %v8314_v32, %v8312_v44  ;;  %v8493_v30 = vsub.f32 1.0, %v8489_v13 }
0x2234   : > { %14967 = vmatpush3.msra.mxu1 %v15822_v60 }
0x2235   : > { %v8492_v53 = vsub.f32 1.0, %v8488_v15  ;;  %14968 = vmatprep.subr.mxu1 %v15816_v58  ;;  %v8498_v8 = vadd.f32 %v8495_v39, %v8494_v51  ;;  %v8497_v55 = vmul.f32 %v8493_v30, %v16377_v11 }
0x2236   : > { %14969 = vmatpush3.msra.mxu1 %v15816_v58 }
0x2237   : > { %14970 = vmatprep.subr.mxu1 %v15818_v21  ;;  %v8496_v61 = vmul.f32 %v8492_v53, %v16369_v2 }
0x2238   : > { %14971 = vmatpush3.msra.mxu1 %v15818_v21 }
0x2239   : > { %14973 = vmatmul.mubr.msk.f32.vlgmr.msra.gmra.mxu1 %vm489_vm1, %v17910_v0  ;;  %v8499_v35 = vadd.f32 %v8498_v8, %v8496_v61 }
0x223a   : > { %14993 = vmatprep.mubr.msk.f32.mxu1 %vm489_vm1, %v17918_v6 }
0x223b   : > { %v17932_v63 = vadd.f32 %v8499_v35, %v8497_v55 }
0x22f1   : > { %v14953_v9 = vpop.f32.mrf.mxu1 }
0x22f2   : > { %v17935_v50 = vadd.f32 %v14953_v9, %v16358_v42 }
0x22f3   : > { %v8292_v18 = vpop.f32.mrf.mxu1 }
0x22f4   : > { %v8508_v47 = vmul.f32 0.0625, %v17935_v50  ;;  %v17939_v14 = vadd.f32 %v8292_v18, %v16361_v46 }
0x22f6   : > { %v8507_v10 = vmul.f32 0.0625, %v17939_v14  ;;  %v8510_v54 = vadd.f32 %v8508_v47, %v17837_v37 }
0x22f8   : > { %14975 = vmatprep.subr.mxu0 %v8510_v54  ;;  %v8509_v3 = vadd.f32 %v8507_v10, %v17840_v49 }
0x22f9   : > { %v14974_v27 = vpop.f32.mrf.mxu1  ;;  %14976 = vmatpush3.msra.mxu0 %v8510_v54 }
0x22fa   : > { %v17945_v5 = vadd.f32 %v14974_v27, %v16358_v42  ;;  %14977 = vmatprep.subr.mxu0 %v8509_v3 }
0x22fb   : > { %v8477_v40 = vpop.f32.mrf.mxu1  ;;  %14978 = vmatpush3.msra.mxu0 %v8509_v3  ;;  %v8316_v3 = vrot.slane %v17924_v36, 4 }
0x22fc   : > { %v8697_v57 = vmul.f32 0.0625, %v17945_v5  ;;  %v17949_v48 = vadd.f32 %v8477_v40, %v16361_v46  ;;  %14980 = vmatmul.mubr.msk.f32.vlgmr.msra.gmra.mxu0 %vm387_vm0, %v17853_v16 }
0x22fd   : > { %14982 = vmatprep.mubr.msk.f32.mxu0 %vm387_vm0, %v17860_v34 }
0x22fe   : > { %v8696_v31 = vmul.f32 0.0625, %v17949_v48  ;;  %v8699_v43 = vadd.f32 %v8697_v57, %v17865_v38 }
0x2300   : > { %14983 = vmatmul.mubr.msk.f32.gmra.mxu0 %vm387_vm0, %v17873_v1  ;;  %14996 = vmatprep.subr.mxu0 %v8699_v43  ;;  %v8698_v59 = vadd.f32 %v8696_v31, %v17868_v22 }
0x2301   : > { %14997 = vmatpush3.msra.mxu0 %v8699_v43  ;;  %15000 = vmatprep.mubr.msk.f32.mxu0 %vm387_vm0, %v17882_v7 }
0x2302   : > { %14998 = vmatprep.subr.mxu0 %v8698_v59 }
0x2303   : > { %14999 = vmatpush3.msra.mxu0 %v8698_v59 }
0x2304   : > { %15001 = vmatmul.mubr.msk.f32.vlgmr.msra.gmra.mxu0 %vm387_vm0, %v17853_v16 }
0x2305   : > { %15003 = vmatprep.mubr.msk.f32.mxu0 %vm387_vm0, %v17860_v34 }
0x2308   : > { %15004 = vmatmul.mubr.msk.f32.gmra.mxu0 %vm387_vm0, %v17873_v1 }
0x2309   : > { %15021 = vmatprep.mubr.msk.f32.mxu0 %vm387_vm0, %v17882_v7 }
0x23bc   : > { %v14981_v58 = vpop.f32.mrf.mxu0 }
0x23bd   : > { %v8583_v26 = vadd.f32 %v14981_v58, %v16343_v24 }
0x23be   : > { %v8577_v23 = vpop.f32.mrf.mxu0 }
0x23bf   : > { %15823 = vtanh.f32 %v8583_v26  ;;  %v8578_v62 = vadd.f32 %v8577_v23, %v16348_v28 }
0x23c0   : > { %v14984_v19 = vpop.f32.mrf.mxu0 }
0x23c1   : > { %15825 = vtanh.f32 %v8578_v62  ;;  %v8593_v21 = vadd.f32 %v14984_v19, %v16345_v25  ;;  %v8317_v62 = vadd.f32 %v8316_v3, %v17924_v36 }
0x23c2   : > { %v8587_v4 = vpop.f32.mrf.mxu0 }
0x23c3   : > { %15827 = vtanh.f32 %v8593_v21  ;;  %v8588_v20 = vadd.f32 %v8587_v4, %v16352_v33 }
0x23c4   : > { %v15002_v45 = vpop.f32.mrf.mxu0 }
0x23c5   : > { %15829 = vtanh.f32 %v8588_v20  ;;  %v8772_v12 = vadd.f32 %v15002_v45, %v16343_v24 }
0x23c6   : > { %v8766_v41 = vpop.f32.mrf.mxu0 }
0x23c7   : > { %15831 = vtanh.f32 %v8772_v12  ;;  %v8767_v13 = vadd.f32 %v8766_v41, %v16348_v28 }
0x23c8   : > { %v15005_v44 = vpop.f32.mrf.mxu0 }
0x23c9   : > { %15833 = vtanh.f32 %v8767_v13  ;;  %v8782_v32 = vadd.f32 %v15005_v44, %v16345_v25  ;;  %v8318_v44 = vrot.slane %v8317_v62, 2 }
0x23ca   : > { %v8776_v60 = vpop.f32.mrf.mxu0 }
0x23cb   : > { %15835 = vtanh.f32 %v8782_v32  ;;  %v8777_v39 = vadd.f32 %v8776_v60, %v16352_v33  ;;  %v8501_v32 = vrot.slane %v17932_v63, 4 }
0x23cc   : > { %v15824_v51 = vpop.eup %15823 }
0x23cd   : > { %v8676_v15 = vmul.f32 %v15824_v51, %v15824_v51  ;;  %15837 = vtanh.f32 %v8777_v39 }
0x23ce   : > { %v15826_v30 = vpop.eup %15825 }
0x23cf   : > { %v8680_v53 = vsub.f32 1.0, %v8676_v15  ;;  %v8675_v8 = vmul.f32 %v15826_v30, %v15826_v30 }
0x23d0   : > { %v15828_v61 = vpop.eup %15827 }
0x23d1   : > { %v8679_v55 = vsub.f32 1.0, %v8675_v8  ;;  %v8678_v35 = vmul.f32 %v15828_v61, %v15828_v61  ;;  %14985 = vmatprep.subr.mxu1 %v15828_v61  ;;  %v8684_v18 = vmul.f32 %v8680_v53, %v16365_v56  ;;  %v8319_v8 = vadd.f32 %v8318_v44, %v8317_v62 }
0x23d2   : > { %v15830_v9 = vpop.eup %15829  ;;  %14986 = vmatpush3.msra.mxu1 %v15828_v61  ;;  %v8502_v61 = vadd.f32 %v8501_v32, %v17932_v63 }
0x23d3   : > { %v8683_v47 = vmul.f32 %v8679_v55, %v16363_v52  ;;  %v8677_v10 = vmul.f32 %v15830_v9, %v15830_v9  ;;  %14987 = vmatprep.subr.mxu1 %v15830_v9  ;;  %v8682_v27 = vsub.f32 1.0, %v8678_v35 }
0x23d4   : > { %v15832_v54 = vpop.eup %15831  ;;  %14988 = vmatpush3.msra.mxu1 %v15830_v9 }
0x23d5   : > { %v8681_v40 = vsub.f32 1.0, %v8677_v10  ;;  %v8865_v57 = vmul.f32 %v15832_v54, %v15832_v54  ;;  %14989 = vmatprep.subr.mxu1 %v15824_v51  ;;  %v8687_v31 = vadd.f32 %v8684_v18, %v8683_v47  ;;  %v8686_v4 = vmul.f32 %v8682_v27, %v16377_v11 }
0x23d6   : > { %v15834_v43 = vpop.eup %15833  ;;  %14990 = vmatpush3.msra.mxu1 %v15824_v51  ;;  %v8320_v10 = vrot.slane %v8319_v8, 1 }
0x23d7   : > { %v8869_v59 = vsub.f32 1.0, %v8865_v57  ;;  %v8864_v58 = vmul.f32 %v15834_v43, %v15834_v43  ;;  %14991 = vmatprep.subr.mxu1 %v15826_v30  ;;  %v8685_v26 = vmul.f32 %v8681_v40, %v16369_v2 }
0x23d8   : > { %v15836_v23 = vpop.eup %15835  ;;  %14992 = vmatpush3.msra.mxu1 %v15826_v30 }
0x23d9   : > { %v8868_v19 = vsub.f32 1.0, %v8864_v58  ;;  %v8867_v21 = vmul.f32 %v15836_v23, %v15836_v23  ;;  %14994 = vmatmul.mubr.msk.f32.vlgmr.msra.gmra.mxu1 %vm489_vm1, %v17910_v0  ;;  %15006 = vmatprep.subr.mxu1 %v15836_v23  ;;  %v8688_v20 = vadd.f32 %v8687_v31, %v8685_v26  ;;  %v8873_v12 = vmul.f32 %v8869_v59, %v16365_v56 }
0x23da   : > { %v15838_v45 = vpop.eup %15837  ;;  %15007 = vmatpush3.msra.mxu1 %v15836_v23  ;;  %15014 = vmatprep.mubr.msk.f32.mxu1 %vm489_vm1, %v17918_v6  ;;  %v8321_v31 = vadd.f32 %v8320_v10, %v8319_v8 }
0x23db   : > { %v8872_v41 = vmul.f32 %v8868_v19, %v16363_v52  ;;  %v8866_v13 = vmul.f32 %v15838_v45, %v15838_v45  ;;  %15008 = vmatprep.subr.mxu1 %v15838_v45  ;;  %v8689_v36 = vadd.f32 %v8688_v20, %v8686_v4  ;;  %v8871_v60 = vsub.f32 1.0, %v8867_v21 }
0x23dc   : > { %15009 = vmatpush3.msra.mxu1 %v15838_v45 }
0x23dd   : > { %v8870_v39 = vsub.f32 1.0, %v8866_v13  ;;  %15010 = vmatprep.subr.mxu1 %v15832_v54  ;;  %v8690_v51 = vrot.slane %v8689_v36, 4  ;;  %v8876_v15 = vadd.f32 %v8873_v12, %v8872_v41  ;;  %v8875_v35 = vmul.f32 %v8871_v60, %v16377_v11 }
0x23de   : > { %15011 = vmatpush3.msra.mxu1 %v15832_v54  ;;  %v8503_v54 = vrot.slane %v8502_v61, 2 }
0x23df   : > { %15012 = vmatprep.subr.mxu1 %v15834_v43  ;;  %v8691_v30 = vadd.f32 %v8690_v51, %v8689_v36  ;;  %v8874_v53 = vmul.f32 %v8870_v39, %v16369_v2 }
0x23e0   : > { %15013 = vmatpush3.msra.mxu1 %v15834_v43  ;;  %v8504_v43 = vadd.f32 %v8503_v54, %v8502_v61 }
0x23e1   : > { %15015 = vmatmul.mubr.msk.f32.vlgmr.msra.gmra.mxu1 %vm489_vm1, %v17910_v0  ;;  %v8692_v55 = vrot.slane %v8691_v30, 2  ;;  %v8877_v9 = vadd.f32 %v8876_v15, %v8874_v53 }
0x23e2   : > { %15035 = vmatprep.mubr.msk.f32.mxu1 %vm489_vm1, %v17918_v6  ;;  %v8505_v23 = vrot.slane %v8504_v43, 1 }
0x23e3   : > { %v8693_v18 = vadd.f32 %v8692_v55, %v8691_v30  ;;  %v8878_v47 = vadd.f32 %v8877_v9, %v8875_v35 }
0x23e4   : > { %v8506_v21 = vadd.f32 %v8505_v23, %v8504_v43 }
0x23e5   : > { %v8694_v3 = vrot.slane %v8693_v18, 1  ;;  %v8879_v27 = vrot.slane %v8878_v47, 4 }
0x23e7   : > { %v8695_v40 = vadd.f32 %v8694_v3, %v8693_v18  ;;  %v8880_v57 = vadd.f32 %v8879_v27, %v8878_v47 }
0x23e9   : > { %v8881_v59 = vrot.slane %v8880_v57, 2  ;;  %v9669_v58 = vmul.f32 2.0, %v8695_v40 }
0x23eb   : > { %v8882_v63 = vadd.f32 %v8881_v59, %v8880_v57  ;;  %v17998_v26 = vadd.f32 %v9669_v58, %v8321_v31 }
0x23ed   : > { %v8883_v62 = vrot.slane %v8882_v63, 1 }
0x23ef   : > { %v8884_v19 = vadd.f32 %v8883_v62, %v8882_v63 }
0x23f1   : > { %v9676_v4 = vmul.f32 2.0, %v8884_v19 }
0x23f3   : > { %v18000_v20 = vadd.f32 %v9676_v4, %v8506_v21 }
0x2499   : > { %v14995_v45 = vpop.f32.mrf.mxu1 }
0x249a   : > { %v18003_v12 = vadd.f32 %v14995_v45, %v16358_v42 }
0x249b   : > { %v8666_v41 = vpop.f32.mrf.mxu1 }
0x249c   : > { %v8886_v13 = vmul.f32 0.0625, %v18003_v12  ;;  %v18007_v36 = vadd.f32 %v8666_v41, %v16361_v46 }
0x249e   : > { %v8885_v44 = vmul.f32 0.0625, %v18007_v36  ;;  %v8888_v32 = vadd.f32 %v8886_v13, %v17837_v37 }
0x24a0   : > { %15017 = vmatprep.subr.mxu0 %v8888_v32  ;;  %v8887_v60 = vadd.f32 %v8885_v44, %v17840_v49 }
0x24a1   : > { %v15016_v39 = vpop.f32.mrf.mxu1  ;;  %15018 = vmatpush3.msra.mxu0 %v8888_v32 }
0x24a2   : > { %v18013_v51 = vadd.f32 %v15016_v39, %v16358_v42  ;;  %15019 = vmatprep.subr.mxu0 %v8887_v60 }
0x24a3   : > { %v8855_v15 = vpop.f32.mrf.mxu1  ;;  %15020 = vmatpush3.msra.mxu0 %v8887_v60 }
0x24a4   : > { %v9075_v30 = vmul.f32 0.0625, %v18013_v51  ;;  %v18017_v53 = vadd.f32 %v8855_v15, %v16361_v46  ;;  %15022 = vmatmul.mubr.msk.f32.vlgmr.msra.gmra.mxu0 %vm387_vm0, %v17853_v16 }
0x24a5   : > { %15024 = vmatprep.mubr.msk.f32.mxu0 %vm387_vm0, %v17860_v34 }
0x24a6   : > { %v9074_v8 = vmul.f32 0.0625, %v18017_v53  ;;  %v9077_v61 = vadd.f32 %v9075_v30, %v17865_v38 }
0x24a8   : > { %15025 = vmatmul.mubr.msk.f32.gmra.mxu0 %vm387_vm0, %v17873_v1  ;;  %15038 = vmatprep.subr.mxu0 %v9077_v61  ;;  %v9076_v55 = vadd.f32 %v9074_v8, %v17868_v22 }
0x24a9   : > { %15039 = vmatpush3.msra.mxu0 %v9077_v61  ;;  %15042 = vmatprep.mubr.msk.f32.mxu0 %vm387_vm0, %v17882_v7 }
0x24aa   : > { %15040 = vmatprep.subr.mxu0 %v9076_v55 }
0x24ab   : > { %15041 = vmatpush3.msra.mxu0 %v9076_v55 }
0x24ac   : > { %15043 = vmatmul.mubr.msk.f32.vlgmr.msra.gmra.mxu0 %vm387_vm0, %v17853_v16 }
0x24ad   : > { %15045 = vmatprep.mubr.msk.f32.mxu0 %vm387_vm0, %v17860_v34 }
0x24b0   : > { %15046 = vmatmul.mubr.msk.f32.gmra.mxu0 %vm387_vm0, %v17873_v1 }
0x24b1   : > { %15063 = vmatprep.mubr.msk.f32.mxu0 %vm387_vm0, %v17882_v7 }
0x2564   : > { %v15023_v35 = vpop.f32.mrf.mxu0 }
0x2565   : > { %v8961_v9 = vadd.f32 %v15023_v35, %v16343_v24 }
0x2566   : > { %v8955_v18 = vpop.f32.mrf.mxu0 }
0x2567   : > { %15839 = vtanh.f32 %v8961_v9  ;;  %v8956_v47 = vadd.f32 %v8955_v18, %v16348_v28 }
0x2568   : > { %v15026_v10 = vpop.f32.mrf.mxu0 }
0x2569   : > { %15841 = vtanh.f32 %v8956_v47  ;;  %v8971_v54 = vadd.f32 %v15026_v10, %v16345_v25 }
0x256a   : > { %v8965_v3 = vpop.f32.mrf.mxu0 }
0x256b   : > { %15843 = vtanh.f32 %v8971_v54  ;;  %v8966_v27 = vadd.f32 %v8965_v3, %v16352_v33 }
0x256c   : > { %v15044_v40 = vpop.f32.mrf.mxu0 }
0x256d   : > { %15845 = vtanh.f32 %v8966_v27  ;;  %v9150_v57 = vadd.f32 %v15044_v40, %v16343_v24 }
0x256e   : > { %v9144_v31 = vpop.f32.mrf.mxu0 }
0x256f   : > { %15847 = vtanh.f32 %v9150_v57  ;;  %v9145_v43 = vadd.f32 %v9144_v31, %v16348_v28 }
0x2570   : > { %v15047_v59 = vpop.f32.mrf.mxu0 }
0x2571   : > { %15849 = vtanh.f32 %v9145_v43  ;;  %v9160_v58 = vadd.f32 %v15047_v59, %v16345_v25 }
0x2572   : > { %v9154_v63 = vpop.f32.mrf.mxu0 }
0x2573   : > { %15851 = vtanh.f32 %v9160_v58  ;;  %v9155_v23 = vadd.f32 %v9154_v63, %v16352_v33 }
0x2574   : > { %v15840_v62 = vpop.eup %15839 }
0x2575   : > { %v9054_v19 = vmul.f32 %v15840_v62, %v15840_v62  ;;  %15853 = vtanh.f32 %v9155_v23 }
0x2576   : > { %v15842_v21 = vpop.eup %15841 }
0x2577   : > { %v9058_v4 = vsub.f32 1.0, %v9054_v19  ;;  %v9053_v45 = vmul.f32 %v15842_v21, %v15842_v21 }
0x2578   : > { %v15844_v41 = vpop.eup %15843 }
0x2579   : > { %v9057_v13 = vsub.f32 1.0, %v9053_v45  ;;  %15027 = vmatprep.subr.mxu1 %v15844_v41  ;;  %v9056_v44 = vmul.f32 %v15844_v41, %v15844_v41  ;;  %v9062_v15 = vmul.f32 %v9058_v4, %v16365_v56 }
0x257a   : > { %v15846_v32 = vpop.eup %15845  ;;  %15028 = vmatpush3.msra.mxu1 %v15844_v41 }
0x257b   : > { %v9055_v60 = vmul.f32 %v15846_v32, %v15846_v32  ;;  %15029 = vmatprep.subr.mxu1 %v15846_v32  ;;  %v9061_v39 = vmul.f32 %v9057_v13, %v16363_v52  ;;  %v9060_v55 = vsub.f32 1.0, %v9056_v44 }
0x257c   : > { %v15848_v30 = vpop.eup %15847  ;;  %15030 = vmatpush3.msra.mxu1 %v15846_v32 }
0x257d   : > { %v9059_v8 = vsub.f32 1.0, %v9055_v60  ;;  %v9243_v61 = vmul.f32 %v15848_v30, %v15848_v30  ;;  %15031 = vmatprep.subr.mxu1 %v15840_v62  ;;  %v9065_v35 = vadd.f32 %v9062_v15, %v9061_v39  ;;  %v9064_v27 = vmul.f32 %v9060_v55, %v16377_v11 }
0x257e   : > { %v15850_v9 = vpop.eup %15849  ;;  %15032 = vmatpush3.msra.mxu1 %v15840_v62 }
0x257f   : > { %v9247_v18 = vsub.f32 1.0, %v9243_v61  ;;  %v9242_v47 = vmul.f32 %v15850_v9, %v15850_v9  ;;  %15033 = vmatprep.subr.mxu1 %v15842_v21  ;;  %v9063_v10 = vmul.f32 %v9059_v8, %v16369_v2 }
0x2580   : > { %v15852_v54 = vpop.eup %15851  ;;  %15034 = vmatpush3.msra.mxu1 %v15842_v21 }
0x2581   : > { %v9246_v3 = vsub.f32 1.0, %v9242_v47  ;;  %15036 = vmatmul.mubr.msk.f32.vlgmr.msra.gmra.mxu1 %vm489_vm1, %v17910_v0  ;;  %15048 = vmatprep.subr.mxu1 %v15852_v54  ;;  %v9066_v40 = vadd.f32 %v9065_v35, %v9063_v10  ;;  %v9245_v57 = vmul.f32 %v15852_v54, %v15852_v54  ;;  %v9251_v63 = vmul.f32 %v9247_v18, %v16365_v56 }
0x2582   : > { %v15854_v31 = vpop.eup %15853  ;;  %15049 = vmatpush3.msra.mxu1 %v15852_v54  ;;  %15056 = vmatprep.mubr.msk.f32.mxu1 %vm489_vm1, %v17918_v6 }
0x2583   : > { %v9244_v43 = vmul.f32 %v15854_v31, %v15854_v31  ;;  %15050 = vmatprep.subr.mxu1 %v15854_v31  ;;  %v9067_v59 = vadd.f32 %v9066_v40, %v9064_v27  ;;  %v9250_v58 = vmul.f32 %v9246_v3, %v16363_v52  ;;  %v9249_v19 = vsub.f32 1.0, %v9245_v57 }
0x2584   : > { %15051 = vmatpush3.msra.mxu1 %v15854_v31  ;;  %v9642_v3 = vmul.f32 2.0, %v18003_v12  ;;  %v9641_v27 = vmul.f32 2.0, %v18007_v36  ;;  %v9656_v12 = vmul.f32 2.0, %v18013_v51 }
0x2585   : > { %v9248_v23 = vsub.f32 1.0, %v9244_v43  ;;  %15052 = vmatprep.subr.mxu1 %v15848_v30  ;;  %v9068_v62 = vrot.slane %v9067_v59, 4  ;;  %v9254_v21 = vadd.f32 %v9251_v63, %v9250_v58  ;;  %v9253_v13 = vmul.f32 %v9249_v19, %v16377_v11 }
0x2586   : > { %15053 = vmatpush3.msra.mxu1 %v15848_v30  ;;  %v9644_v43 = vadd.f32 %v9642_v3, %v17935_v50  ;;  %v9643_v63 = vadd.f32 %v9641_v27, %v17939_v14  ;;  %v9655_v50 = vmul.f32 2.0, %v18017_v53 }
0x2587   : > { %15054 = vmatprep.subr.mxu1 %v15850_v9  ;;  %v9069_v4 = vadd.f32 %v9068_v62, %v9067_v59  ;;  %v9252_v45 = vmul.f32 %v9248_v23, %v16369_v2 }
0x2588   : > { %15055 = vmatpush3.msra.mxu1 %v15850_v9 }
0x2589   : > { %15057 = vmatmul.mubr.msk.f32.vlgmr.msra.gmra.mxu1 %vm489_vm1, %v17910_v0  ;;  %v9070_v41 = vrot.slane %v9069_v4, 2  ;;  %v9255_v44 = vadd.f32 %v9254_v21, %v9252_v45 }
0x258a   : > { %15077 = vmatprep.mubr.msk.f32.mxu1 %vm489_vm1, %v17918_v6 }
0x258b   : > { %v9071_v32 = vadd.f32 %v9070_v41, %v9069_v4  ;;  %v9256_v60 = vadd.f32 %v9255_v44, %v9253_v13  ;;  %v9658_v41 = vadd.f32 %v9656_v12, %v17945_v5 }
0x258d   : > { %v9072_v39 = vrot.slane %v9071_v32, 1  ;;  %v9257_v15 = vrot.slane %v9256_v60, 4 }
0x258f   : > { %v9073_v30 = vadd.f32 %v9072_v39, %v9071_v32  ;;  %v9258_v8 = vadd.f32 %v9257_v15, %v9256_v60  ;;  %v9657_v32 = vadd.f32 %v9655_v50, %v17949_v48 }
0x2591   : > { %v9259_v61 = vrot.slane %v9258_v8, 2  ;;  %v9671_v55 = vmul.f32 2.0, %v9073_v30 }
0x2593   : > { %v9260_v35 = vadd.f32 %v9259_v61, %v9258_v8  ;;  %v18063_v9 = vadd.f32 %v9671_v55, %v17998_v26 }
0x2595   : > { %v9261_v18 = vrot.slane %v9260_v35, 1 }
0x2597   : > { %v9262_v47 = vadd.f32 %v9261_v18, %v9260_v35 }
0x2599   : > { %v9678_v10 = vmul.f32 2.0, %v9262_v47 }
0x259b   : > { %v18066_v54 = vadd.f32 %v9678_v10, %v18000_v20 }
0x2641   : > { %v15037_v40 = vpop.f32.mrf.mxu1 }
0x2642   : > { %v9050_v57 = vadd.f32 %v15037_v40, %v16358_v42 }
0x2643   : > { %v9044_v31 = vpop.f32.mrf.mxu1 }
0x2644   : > { %v9264_v59 = vmul.f32 0.125, %v9050_v57  ;;  %v9646_v58 = vmul.f32 2.0, %v9050_v57  ;;  %v9045_v26 = vadd.f32 %v9044_v31, %v16361_v46 }
0x2646   : > { %v9263_v23 = vmul.f32 0.125, %v9045_v26  ;;  %v9645_v62 = vmul.f32 2.0, %v9045_v26  ;;  %v9266_v20 = vadd.f32 %v9264_v59, %v17837_v37  ;;  %v18075_v19 = vadd.f32 %v9646_v58, %v9644_v43 }
0x2648   : > { %15059 = vmatprep.subr.mxu0 %v9266_v20  ;;  %v9265_v36 = vadd.f32 %v9263_v23, %v17840_v49  ;;  %v18079_v21 = vadd.f32 %v9645_v62, %v9643_v63 }
0x2649   : > { %v15058_v4 = vpop.f32.mrf.mxu1  ;;  %15060 = vmatpush3.msra.mxu0 %v9266_v20 }
0x264a   : > { %v9239_v45 = vadd.f32 %v15058_v4, %v16358_v42  ;;  %15061 = vmatprep.subr.mxu0 %v9265_v36 }
0x264b   : > { %v9233_v14 = vpop.f32.mrf.mxu1  ;;  %15062 = vmatpush3.msra.mxu0 %v9265_v36 }
0x264c   : > { %v9453_v13 = vmul.f32 0.125, %v9239_v45  ;;  %v9660_v44 = vmul.f32 2.0, %v9239_v45  ;;  %v9234_v51 = vadd.f32 %v9233_v14, %v16361_v46  ;;  %15064 = vmatmul.mubr.msk.f32.vlgmr.msra.gmra.mxu0 %vm387_vm0, %v17853_v16 }
0x264d   : > { %15066 = vmatprep.mubr.msk.f32.mxu0 %vm387_vm0, %v17860_v34 }
0x264e   : > { %v9452_v53 = vmul.f32 0.125, %v9234_v51  ;;  %v9659_v60 = vmul.f32 2.0, %v9234_v51  ;;  %v9455_v39 = vadd.f32 %v9453_v13, %v17865_v38  ;;  %v18091_v15 = vadd.f32 %v9660_v44, %v9658_v41 }
0x2650   : > { %15067 = vmatmul.mubr.msk.f32.gmra.mxu0 %vm387_vm0, %v17873_v1  ;;  %15080 = vmatprep.subr.mxu0 %v9455_v39  ;;  %v9454_v5 = vadd.f32 %v9452_v53, %v17868_v22  ;;  %v18096_v30 = vadd.f32 %v9659_v60, %v9657_v32 }
0x2651   : > { %15081 = vmatpush3.msra.mxu0 %v9455_v39  ;;  %15084 = vmatprep.mubr.msk.f32.mxu0 %vm387_vm0, %v17882_v7 }
0x2652   : > { %15082 = vmatprep.subr.mxu0 %v9454_v5 }
0x2653   : > { %15083 = vmatpush3.msra.mxu0 %v9454_v5 }
0x2654   : > { %15085 = vmatmul.mubr.msk.f32.vlgmr.msra.gmra.mxu0 %vm387_vm0, %v17853_v16 }
0x2655   : > { %15087 = vmatprep.mubr.msk.f32.mxu0 %vm387_vm0, %v17860_v34 }
0x2658   : > { %15088 = vmatmul.mubr.msk.f32.gmra.mxu0 %vm387_vm0, %v17873_v1 }
0x2659   : > { %15105 = vmatprep.mubr.msk.f32.mxu0 %vm387_vm0, %v17882_v7 }
0x270c   : > { %v15065_v48 = vpop.f32.mrf.mxu0 }
0x270d   : > { %v9339_v8 = vadd.f32 %v15065_v48, %v16343_v24 }
0x270e   : > { %v9333_v61 = vpop.f32.mrf.mxu0 }
0x270f   : > { %15855 = vtanh.f32 %v9339_v8  ;;  %v9334_v55 = vadd.f32 %v9333_v61, %v16348_v28 }
0x2710   : > { %v15068_v35 = vpop.f32.mrf.mxu0 }
0x2711   : > { %15857 = vtanh.f32 %v9334_v55  ;;  %v9349_v16 = vadd.f32 %v15068_v35, %v16345_v25 }
0x2712   : > { %v9343_v18 = vpop.f32.mrf.mxu0 }
0x2713   : > { %15859 = vtanh.f32 %v9349_v16  ;;  %v9344_v34 = vadd.f32 %v9343_v18, %v16352_v33 }
0x2714   : > { %v15086_v47 = vpop.f32.mrf.mxu0 }
0x2715   : > { %15861 = vtanh.f32 %v9344_v34  ;;  %v9528_v1 = vadd.f32 %v15086_v47, %v16343_v24 }
0x2716   : > { %v9522_v7 = vpop.f32.mrf.mxu0 }
0x2717   : > { %15863 = vtanh.f32 %v9528_v1  ;;  %v9523_v10 = vadd.f32 %v9522_v7, %v16348_v28 }
0x2718   : > { %v15089_v3 = vpop.f32.mrf.mxu0 }
0x2719   : > { %15865 = vtanh.f32 %v9523_v10  ;;  %v9538_v27 = vadd.f32 %v15089_v3, %v16345_v25 }
0x271a   : > { %v9532_v40 = vpop.f32.mrf.mxu0 }
0x271b   : > { %15867 = vtanh.f32 %v9538_v27  ;;  %v9533_v57 = vadd.f32 %v9532_v40, %v16352_v33 }
0x271c   : > { %v15856_v31 = vpop.eup %15855 }
0x271d   : > { %v9432_v43 = vmul.f32 %v15856_v31, %v15856_v31  ;;  %15869 = vtanh.f32 %v9533_v57 }
0x271e   : > { %v15858_v59 = vpop.eup %15857 }
0x271f   : > { %v9436_v58 = vsub.f32 1.0, %v9432_v43  ;;  %v9431_v26 = vmul.f32 %v15858_v59, %v15858_v59 }
0x2720   : > { %v15860_v63 = vpop.eup %15859 }
0x2721   : > { %v9435_v23 = vsub.f32 1.0, %v9431_v26  ;;  %15069 = vmatprep.subr.mxu1 %v15860_v63  ;;  %v9434_v62 = vmul.f32 %v15860_v63, %v15860_v63  ;;  %v9440_v50 = vmul.f32 %v9436_v58, %v16365_v56 }
0x2722   : > { %v15862_v20 = vpop.eup %15861  ;;  %15070 = vmatpush3.msra.mxu1 %v15860_v63 }
0x2723   : > { %15071 = vmatprep.subr.mxu1 %v15862_v20  ;;  %v9433_v12 = vmul.f32 %v15862_v20, %v15862_v20  ;;  %v9439_v36 = vmul.f32 %v9435_v23, %v16363_v52  ;;  %v9438_v41 = vsub.f32 1.0, %v9434_v62 }
0x2724   : > { %v15864_v4 = vpop.eup %15863  ;;  %15072 = vmatpush3.msra.mxu1 %v15862_v20 }
0x2725   : > { %v9621_v45 = vmul.f32 %v15864_v4, %v15864_v4  ;;  %15073 = vmatprep.subr.mxu1 %v15856_v31  ;;  %v9437_v14 = vsub.f32 1.0, %v9433_v12  ;;  %v9443_v13 = vadd.f32 %v9440_v50, %v9439_v36  ;;  %v9442_v5 = vmul.f32 %v9438_v41, %v16377_v11 }
0x2726   : > { %v15866_v44 = vpop.eup %15865  ;;  %15074 = vmatpush3.msra.mxu1 %v15856_v31 }
0x2727   : > { %v9625_v51 = vsub.f32 1.0, %v9621_v45  ;;  %v9620_v32 = vmul.f32 %v15866_v44, %v15866_v44  ;;  %15075 = vmatprep.subr.mxu1 %v15858_v59  ;;  %v9441_v53 = vmul.f32 %v9437_v14, %v16369_v2 }
0x2728   : > { %v15868_v60 = vpop.eup %15867  ;;  %15076 = vmatpush3.msra.mxu1 %v15858_v59 }
0x2729   : > { %v9624_v39 = vsub.f32 1.0, %v9620_v32  ;;  %15078 = vmatmul.mubr.msk.f32.vlgmr.msra.gmra.mxu1 %vm489_vm1, %v17910_v0  ;;  %15090 = vmatprep.subr.mxu1 %v15868_v60  ;;  %v9444_v48 = vadd.f32 %v9443_v13, %v9441_v53  ;;  %v9623_v8 = vmul.f32 %v15868_v60, %v15868_v60  ;;  %v9629_v18 = vmul.f32 %v9625_v51, %v16365_v56 }
0x272a   : > { %v15870_v61 = vpop.eup %15869  ;;  %15091 = vmatpush3.msra.mxu1 %v15868_v60  ;;  %15098 = vmatprep.mubr.msk.f32.mxu1 %vm489_vm1, %v17918_v6 }
0x272b   : > { %15092 = vmatprep.subr.mxu1 %v15870_v61  ;;  %v9445_v55 = vadd.f32 %v9444_v48, %v9442_v5  ;;  %v9622_v35 = vmul.f32 %v15870_v61, %v15870_v61  ;;  %v9628_v16 = vmul.f32 %v9624_v39, %v16363_v52  ;;  %v9627_v1 = vsub.f32 1.0, %v9623_v8 }
0x272c   : > { %15093 = vmatpush3.msra.mxu1 %v15870_v61  ;;  %v18181_v61 = vld [vmem:[%s18830_s1 + $0x18] sm:$0xff] }
0x272d   : > { %15094 = vmatprep.subr.mxu1 %v15864_v4  ;;  %v9446_v34 = vrot.slane %v9445_v55, 4  ;;  %v9626_v47 = vsub.f32 1.0, %v9622_v35  ;;  %v9632_v7 = vadd.f32 %v9629_v18, %v9628_v16  ;;  %v9631_v40 = vmul.f32 %v9627_v1, %v16377_v11 }
0x272e   : > { %15095 = vmatpush3.msra.mxu1 %v15864_v4 }
0x272f   : > { %15096 = vmatprep.subr.mxu1 %v15866_v44  ;;  %v9447_v10 = vadd.f32 %v9446_v34, %v9445_v55  ;;  %v9630_v3 = vmul.f32 %v9626_v47, %v16369_v2 }
0x2730   : > { %15097 = vmatpush3.msra.mxu1 %v15866_v44 }
0x2731   : > { %15099 = vmatmul.mubr.msk.f32.vlgmr.msra.gmra.mxu1 %vm489_vm1, %v17910_v0  ;;  %v9448_v27 = vrot.slane %v9447_v10, 2  ;;  %v9633_v57 = vadd.f32 %v9632_v7, %v9630_v3 }
0x2732   : > { %15119 = vmatprep.mubr.msk.f32.mxu1 %vm489_vm1, %v17918_v6 }
0x2733   : > { %v9449_v31 = vadd.f32 %v9448_v27, %v9447_v10  ;;  %v9634_v43 = vadd.f32 %v9633_v57, %v9631_v40 }
0x2735   : > { %v9450_v59 = vrot.slane %v9449_v31, 1  ;;  %v9635_v58 = vrot.slane %v9634_v43, 4 }
0x2737   : > { %v9451_v26 = vadd.f32 %v9450_v59, %v9449_v31  ;;  %v9636_v63 = vadd.f32 %v9635_v58, %v9634_v43 }
0x2739   : > { %v9637_v23 = vrot.slane %v9636_v63, 2  ;;  %v9673_v62 = vadd.f32 %v18063_v9, %v9451_v26 }
0x273b   : > { %v9638_v20 = vadd.f32 %v9637_v23, %v9636_v63  ;;  %v9674_v12 = vmul.f32 0.020833334, %v9673_v62 }
0x273d   : > { %v9639_v36 = vrot.slane %v9638_v20, 1  ;;  %v18134_v0 = vadd.f32 %v9674_v12, %v17826_v29 }
0x273f   : > { %v9640_v50 = vadd.f32 %v9639_v36, %v9638_v20 }
0x2741   : > { %v9680_v4 = vadd.f32 %v18066_v54, %v9640_v50 }
0x2743   : > { %v9681_v45 = vmul.f32 0.020833334, %v9680_v4 }
0x2745   : > { %v18138_v6 = vadd.f32 %v9681_v45, %v17830_v17 }
0x27e9   : > { %v15079_v14 = vpop.f32.mrf.mxu1 }
0x27ea   : > { %v9428_v41 = vadd.f32 %v15079_v14, %v16358_v42 }
0x27eb   : > { %v9422_v13 = vpop.f32.mrf.mxu1 }
0x27ec   : > { %v9650_v44 = vadd.f32 %v18075_v19, %v9428_v41  ;;  %v9423_v9 = vadd.f32 %v9422_v13, %v16361_v46 }
0x27ee   : > { %v9652_v51 = vmul.f32 0.020833334, %v9650_v44  ;;  %v9649_v32 = vadd.f32 %v18079_v21, %v9423_v9 }
0x27f0   : > { %v18145_v29 = vadd.f32 %v9652_v51, %v17837_v37  ;;  %v9651_v53 = vmul.f32 0.020833334, %v9649_v32 }
0x27f1   : > { %v15100_v54 = vpop.f32.mrf.mxu1 }
0x27f2   : > { %v18148_v60 = vadd.f32 %v9651_v53, %v17840_v49  ;;  %v9617_v17 = vadd.f32 %v15100_v54, %v16358_v42  ;;  %15101 = vmatprep.subr.mxu0 %v18145_v29  ;;  %v18161_v49 = vld [vmem:[%s18830_s1 + $0x8] sm:$0xff] }
0x27f3   : > { %v9611_v39 = vpop.f32.mrf.mxu1  ;;  %15102 = vmatpush3.msra.mxu0 %v18145_v29 }
0x27f4   : > { %v9664_v19 = vadd.f32 %v18091_v15, %v9617_v17  ;;  %v9612_v5 = vadd.f32 %v9611_v39, %v16361_v46  ;;  %15103 = vmatprep.subr.mxu0 %v18148_v60  ;;  %v18168_v15 = vld [vmem:[%s18830_s1 + $0x10] sm:$0xff] }
0x27f5   : > { %15104 = vmatpush3.msra.mxu0 %v18148_v60 }
0x27f6   : > { %v9666_v37 = vmul.f32 0.020833334, %v9664_v19  ;;  %v9663_v21 = vadd.f32 %v18096_v30, %v9612_v5  ;;  %15106 = vmatmul.mubr.msk.f32.vlgmr.msra.gmra.mxu0 %vm387_vm0, %v18161_v49  ;;  %v18218_v19 = vld [vmem:[%s18832_s3 + $0x8] sm:$0xff] }
0x27f7   : > { %15108 = vmatprep.mubr.msk.f32.mxu0 %vm387_vm0, %v18168_v15 }
0x27f8   : > { %v18173_v48 = vadd.f32 %v9666_v37, %v17865_v38  ;;  %v9665_v30 = vmul.f32 0.020833334, %v9663_v21  ;;  %v18190_v38 = vld [vmem:[%s18830_s1] sm:$0xff] }
0x27fa   : > { %v18176_v8 = vadd.f32 %v9665_v30, %v17868_v22  ;;  %15109 = vmatmul.mubr.msk.f32.gmra.mxu0 %vm387_vm0, %v18181_v61  ;;  %15122 = vmatprep.subr.mxu0 %v18173_v48 }
0x27fb   : > { %15123 = vmatpush3.msra.mxu0 %v18173_v48  ;;  %15126 = vmatprep.mubr.msk.f32.mxu0 %vm387_vm0, %v18190_v38 }
0x27fc   : > { %15124 = vmatprep.subr.mxu0 %v18176_v8 }
0x27fd   : > { %15125 = vmatpush3.msra.mxu0 %v18176_v8 }
0x27fe   : > { %15127 = vmatmul.mubr.msk.f32.vlgmr.msra.gmra.mxu0 %vm387_vm0, %v18161_v49 }
0x27ff   : > { %15129 = vmatprep.mubr.msk.f32.mxu0 %vm387_vm0, %v18168_v15 }
0x2802   : > { %15130 = vmatmul.mubr.msk.f32.gmra.mxu0 %vm387_vm0, %v18181_v61 }
0x2803   : > { %15147 = vmatprep.mubr.msk.f32.mxu0 %vm387_vm0, %v18190_v38 }
0x28b6   : > { %v15107_v22 = vpop.f32.mrf.mxu0 }
0x28b7   : > { %v9755_v55 = vadd.f32 %v15107_v22, %v16343_v24  ;;  %v18226_v22 = vld [vmem:[%s18832_s3] sm:$0xff] }
0x28b8   : > { %v9749_v35 = vpop.f32.mrf.mxu0 }
0x28b9   : > { %15871 = vtanh.f32 %v9755_v55  ;;  %v9750_v16 = vadd.f32 %v9749_v35, %v16348_v28 }
0x28ba   : > { %v15110_v18 = vpop.f32.mrf.mxu0 }
0x28bb   : > { %15873 = vtanh.f32 %v9750_v16  ;;  %v9765_v34 = vadd.f32 %v15110_v18, %v16345_v25 }
0x28bc   : > { %v9759_v47 = vpop.f32.mrf.mxu0 }
0x28bd   : > { %15875 = vtanh.f32 %v9765_v34  ;;  %v9760_v1 = vadd.f32 %v9759_v47, %v16352_v33 }
0x28be   : > { %v15128_v7 = vpop.f32.mrf.mxu0 }
0x28bf   : > { %15877 = vtanh.f32 %v9760_v1  ;;  %v9940_v10 = vadd.f32 %v15128_v7, %v16343_v24 }
0x28c0   : > { %v9934_v3 = vpop.f32.mrf.mxu0 }
0x28c1   : > { %15879 = vtanh.f32 %v9940_v10  ;;  %v9935_v27 = vadd.f32 %v9934_v3, %v16348_v28 }
0x28c2   : > { %v15131_v40 = vpop.f32.mrf.mxu0 }
0x28c3   : > { %15881 = vtanh.f32 %v9935_v27  ;;  %v9950_v57 = vadd.f32 %v15131_v40, %v16345_v25 }
0x28c4   : > { %v9944_v31 = vpop.f32.mrf.mxu0 }
0x28c5   : > { %15883 = vtanh.f32 %v9950_v57  ;;  %v9945_v43 = vadd.f32 %v9944_v31, %v16352_v33 }
0x28c6   : > { %v15872_v59 = vpop.eup %15871 }
0x28c7   : > { %v9848_v58 = vmul.f32 %v15872_v59, %v15872_v59  ;;  %15885 = vtanh.f32 %v9945_v43 }
0x28c8   : > { %v15874_v26 = vpop.eup %15873 }
0x28c9   : > { %v9852_v63 = vsub.f32 1.0, %v9848_v58  ;;  %v9847_v23 = vmul.f32 %v15874_v26, %v15874_v26 }
0x28ca   : > { %v15876_v62 = vpop.eup %15875 }
0x28cb   : > { %v9851_v20 = vsub.f32 1.0, %v9847_v23  ;;  %15111 = vmatprep.subr.mxu1 %v15876_v62  ;;  %v9850_v12 = vmul.f32 %v15876_v62, %v15876_v62  ;;  %v9856_v45 = vmul.f32 %v9852_v63, %v16365_v56 }
0x28cc   : > { %v15878_v36 = vpop.eup %15877  ;;  %15112 = vmatpush3.msra.mxu1 %v15876_v62 }
0x28cd   : > { %v9849_v50 = vmul.f32 %v15878_v36, %v15878_v36  ;;  %15113 = vmatprep.subr.mxu1 %v15878_v36  ;;  %v9855_v4 = vmul.f32 %v9851_v20, %v16363_v52  ;;  %v9854_v44 = vsub.f32 1.0, %v9850_v12 }
0x28ce   : > { %v15880_v14 = vpop.eup %15879  ;;  %15114 = vmatpush3.msra.mxu1 %v15878_v36 }
0x28cf   : > { %v9853_v41 = vsub.f32 1.0, %v9849_v50  ;;  %v10033_v13 = vmul.f32 %v15880_v14, %v15880_v14  ;;  %15115 = vmatprep.subr.mxu1 %v15872_v59  ;;  %v9859_v9 = vadd.f32 %v9856_v45, %v9855_v4  ;;  %v9858_v5 = vmul.f32 %v9854_v44, %v16377_v11 }
0x28d0   : > { %v15882_v51 = vpop.eup %15881  ;;  %15116 = vmatpush3.msra.mxu1 %v15872_v59 }
0x28d1   : > { %v10037_v32 = vsub.f32 1.0, %v10033_v13  ;;  %v10032_v53 = vmul.f32 %v15882_v51, %v15882_v51  ;;  %15117 = vmatprep.subr.mxu1 %v15874_v26  ;;  %v9857_v54 = vmul.f32 %v9853_v41, %v16369_v2 }
0x28d2   : > { %v15884_v17 = vpop.eup %15883  ;;  %15118 = vmatpush3.msra.mxu1 %v15874_v26 }
0x28d3   : > { %v10036_v39 = vsub.f32 1.0, %v10032_v53  ;;  %15120 = vmatmul.mubr.msk.f32.vlgmr.msra.gmra.mxu1 %vm489_vm1, %v18218_v19  ;;  %15132 = vmatprep.subr.mxu1 %v15884_v17  ;;  %v9860_v37 = vadd.f32 %v9859_v9, %v9857_v54  ;;  %v10035_v21 = vmul.f32 %v15884_v17, %v15884_v17  ;;  %v10041_v18 = vmul.f32 %v10037_v32, %v16365_v56 }
0x28d4   : > { %v15886_v30 = vpop.eup %15885  ;;  %15133 = vmatpush3.msra.mxu1 %v15884_v17  ;;  %15140 = vmatprep.mubr.msk.f32.mxu1 %vm489_vm1, %v18226_v22 }
0x28d5   : > { %v10034_v55 = vmul.f32 %v15886_v30, %v15886_v30  ;;  %15134 = vmatprep.subr.mxu1 %v15886_v30  ;;  %v18230_v35 = vadd.f32 %v9860_v37, %v9858_v5  ;;  %v10040_v16 = vmul.f32 %v10036_v39, %v16363_v52  ;;  %v10039_v47 = vsub.f32 1.0, %v10035_v21 }
0x28d6   : > { %15135 = vmatpush3.msra.mxu1 %v15886_v30 }
0x28d7   : > { %v10038_v34 = vsub.f32 1.0, %v10034_v55  ;;  %15136 = vmatprep.subr.mxu1 %v15880_v14  ;;  %v10044_v1 = vadd.f32 %v10041_v18, %v10040_v16  ;;  %v10043_v10 = vmul.f32 %v10039_v47, %v16377_v11 }
0x28d8   : > { %15137 = vmatpush3.msra.mxu1 %v15880_v14 }
0x28d9   : > { %15138 = vmatprep.subr.mxu1 %v15882_v51  ;;  %v10042_v7 = vmul.f32 %v10038_v34, %v16369_v2 }
0x28da   : > { %15139 = vmatpush3.msra.mxu1 %v15882_v51 }
0x28db   : > { %15141 = vmatmul.mubr.msk.f32.vlgmr.msra.gmra.mxu1 %vm489_vm1, %v18218_v19  ;;  %v10045_v3 = vadd.f32 %v10044_v1, %v10042_v7 }
0x28dc   : > { %15161 = vmatprep.mubr.msk.f32.mxu1 %vm489_vm1, %v18226_v22 }
0x28dd   : > { %v18240_v27 = vadd.f32 %v10045_v3, %v10043_v10 }
0x2993   : > { %v15121_v40 = vpop.f32.mrf.mxu1 }
0x2994   : > { %v18243_v57 = vadd.f32 %v15121_v40, %v16358_v42 }
0x2995   : > { %v9838_v31 = vpop.f32.mrf.mxu1 }
0x2996   : > { %v10054_v43 = vmul.f32 0.0625, %v18243_v57  ;;  %v18247_v59 = vadd.f32 %v9838_v31, %v16361_v46 }
0x2998   : > { %v10053_v58 = vmul.f32 0.0625, %v18247_v59  ;;  %v10056_v26 = vadd.f32 %v10054_v43, %v18145_v29 }
0x299a   : > { %15143 = vmatprep.subr.mxu0 %v10056_v26  ;;  %v10055_v63 = vadd.f32 %v10053_v58, %v18148_v60 }
0x299b   : > { %v15142_v23 = vpop.f32.mrf.mxu1  ;;  %15144 = vmatpush3.msra.mxu0 %v10056_v26 }
0x299c   : > { %v18253_v62 = vadd.f32 %v15142_v23, %v16358_v42  ;;  %15145 = vmatprep.subr.mxu0 %v10055_v63 }
0x299d   : > { %v10023_v20 = vpop.f32.mrf.mxu1  ;;  %15146 = vmatpush3.msra.mxu0 %v10055_v63  ;;  %v9862_v63 = vrot.slane %v18230_v35, 4 }
0x299e   : > { %v10243_v12 = vmul.f32 0.0625, %v18253_v62  ;;  %v18257_v36 = vadd.f32 %v10023_v20, %v16361_v46  ;;  %15148 = vmatmul.mubr.msk.f32.vlgmr.msra.gmra.mxu0 %vm387_vm0, %v18161_v49 }
0x299f   : > { %15150 = vmatprep.mubr.msk.f32.mxu0 %vm387_vm0, %v18168_v15 }
0x29a0   : > { %v10242_v50 = vmul.f32 0.0625, %v18257_v36  ;;  %v10245_v4 = vadd.f32 %v10243_v12, %v18173_v48 }
0x29a2   : > { %15151 = vmatmul.mubr.msk.f32.gmra.mxu0 %vm387_vm0, %v18181_v61  ;;  %15164 = vmatprep.subr.mxu0 %v10245_v4  ;;  %v10244_v45 = vadd.f32 %v10242_v50, %v18176_v8 }
0x29a3   : > { %15165 = vmatpush3.msra.mxu0 %v10245_v4  ;;  %15168 = vmatprep.mubr.msk.f32.mxu0 %vm387_vm0, %v18190_v38 }
0x29a4   : > { %15166 = vmatprep.subr.mxu0 %v10244_v45 }
0x29a5   : > { %15167 = vmatpush3.msra.mxu0 %v10244_v45 }
0x29a6   : > { %15169 = vmatmul.mubr.msk.f32.vlgmr.msra.gmra.mxu0 %vm387_vm0, %v18161_v49 }
0x29a7   : > { %15171 = vmatprep.mubr.msk.f32.mxu0 %vm387_vm0, %v18168_v15 }
0x29aa   : > { %15172 = vmatmul.mubr.msk.f32.gmra.mxu0 %vm387_vm0, %v18181_v61 }
0x29ab   : > { %15189 = vmatprep.mubr.msk.f32.mxu0 %vm387_vm0, %v18190_v38 }
0x2a5e   : > { %v15149_v14 = vpop.f32.mrf.mxu0 }
0x2a5f   : > { %v10129_v41 = vadd.f32 %v15149_v14, %v16343_v24 }
0x2a60   : > { %v10123_v13 = vpop.f32.mrf.mxu0 }
0x2a61   : > { %15887 = vtanh.f32 %v10129_v41  ;;  %v10124_v44 = vadd.f32 %v10123_v13, %v16348_v28 }
0x2a62   : > { %v15152_v9 = vpop.f32.mrf.mxu0 }
0x2a63   : > { %15889 = vtanh.f32 %v10124_v44  ;;  %v10139_v51 = vadd.f32 %v15152_v9, %v16345_v25  ;;  %v9863_v44 = vadd.f32 %v9862_v63, %v18230_v35 }
0x2a64   : > { %v10133_v32 = vpop.f32.mrf.mxu0 }
0x2a65   : > { %15891 = vtanh.f32 %v10139_v51  ;;  %v10134_v53 = vadd.f32 %v10133_v32, %v16352_v33 }
0x2a66   : > { %v15170_v54 = vpop.f32.mrf.mxu0 }
0x2a67   : > { %15893 = vtanh.f32 %v10134_v53  ;;  %v10318_v17 = vadd.f32 %v15170_v54, %v16343_v24 }
0x2a68   : > { %v10312_v39 = vpop.f32.mrf.mxu0 }
0x2a69   : > { %15895 = vtanh.f32 %v10318_v17  ;;  %v10313_v5 = vadd.f32 %v10312_v39, %v16348_v28 }
0x2a6a   : > { %v15173_v37 = vpop.f32.mrf.mxu0 }
0x2a6b   : > { %15897 = vtanh.f32 %v10313_v5  ;;  %v10328_v21 = vadd.f32 %v15173_v37, %v16345_v25  ;;  %v9864_v37 = vrot.slane %v9863_v44, 2 }
0x2a6c   : > { %v10322_v30 = vpop.f32.mrf.mxu0 }
0x2a6d   : > { %15899 = vtanh.f32 %v10328_v21  ;;  %v10323_v55 = vadd.f32 %v10322_v30, %v16352_v33  ;;  %v10047_v21 = vrot.slane %v18240_v27, 4 }
0x2a6e   : > { %v15888_v16 = vpop.eup %15887 }
0x2a6f   : > { %v10222_v18 = vmul.f32 %v15888_v16, %v15888_v16  ;;  %15901 = vtanh.f32 %v10323_v55 }
0x2a70   : > { %v15890_v34 = vpop.eup %15889 }
0x2a71   : > { %v10226_v47 = vsub.f32 1.0, %v10222_v18  ;;  %v10221_v1 = vmul.f32 %v15890_v34, %v15890_v34 }
0x2a72   : > { %v15892_v7 = vpop.eup %15891 }
0x2a73   : > { %v10225_v10 = vsub.f32 1.0, %v10221_v1  ;;  %15153 = vmatprep.subr.mxu1 %v15892_v7  ;;  %v10224_v3 = vmul.f32 %v15892_v7, %v15892_v7  ;;  %v10230_v58 = vmul.f32 %v10226_v47, %v16365_v56  ;;  %v9865_v1 = vadd.f32 %v9864_v37, %v9863_v44 }
0x2a74   : > { %v15894_v40 = vpop.eup %15893  ;;  %15154 = vmatpush3.msra.mxu1 %v15892_v7  ;;  %v10048_v7 = vadd.f32 %v10047_v21, %v18240_v27 }
0x2a75   : > { %v10223_v31 = vmul.f32 %v15894_v40, %v15894_v40  ;;  %15155 = vmatprep.subr.mxu1 %v15894_v40  ;;  %v10229_v43 = vmul.f32 %v10225_v10, %v16363_v52  ;;  %v10228_v12 = vsub.f32 1.0, %v10224_v3 }
0x2a76   : > { %v15896_v26 = vpop.eup %15895  ;;  %15156 = vmatpush3.msra.mxu1 %v15894_v40 }
0x2a77   : > { %v10227_v23 = vsub.f32 1.0, %v10223_v31  ;;  %v10411_v20 = vmul.f32 %v15896_v26, %v15896_v26  ;;  %15157 = vmatprep.subr.mxu1 %v15888_v16  ;;  %v10233_v50 = vadd.f32 %v10230_v58, %v10229_v43  ;;  %v10232_v51 = vmul.f32 %v10228_v12, %v16377_v11 }
0x2a78   : > { %v15898_v4 = vpop.eup %15897  ;;  %15158 = vmatpush3.msra.mxu1 %v15888_v16  ;;  %v9866_v58 = vrot.slane %v9865_v1, 1 }
0x2a79   : > { %v10415_v45 = vsub.f32 1.0, %v10411_v20  ;;  %v10410_v14 = vmul.f32 %v15898_v4, %v15898_v4  ;;  %15159 = vmatprep.subr.mxu1 %v15890_v34  ;;  %v10231_v41 = vmul.f32 %v10227_v23, %v16369_v2 }
0x2a7a   : > { %v15900_v13 = vpop.eup %15899  ;;  %15160 = vmatpush3.msra.mxu1 %v15890_v34 }
0x2a7b   : > { %v10414_v9 = vsub.f32 1.0, %v10410_v14  ;;  %15162 = vmatmul.mubr.msk.f32.vlgmr.msra.gmra.mxu1 %vm489_vm1, %v18218_v19  ;;  %15174 = vmatprep.subr.mxu1 %v15900_v13  ;;  %v10234_v32 = vadd.f32 %v10233_v50, %v10231_v41  ;;  %v10413_v53 = vmul.f32 %v15900_v13, %v15900_v13  ;;  %v10419_v35 = vmul.f32 %v10415_v45, %v16365_v56 }
0x2a7c   : > { %v15902_v54 = vpop.eup %15901  ;;  %15175 = vmatpush3.msra.mxu1 %v15900_v13  ;;  %15182 = vmatprep.mubr.msk.f32.mxu1 %vm489_vm1, %v18226_v22  ;;  %v9867_v50 = vadd.f32 %v9866_v58, %v9865_v1 }
0x2a7d   : > { %v10412_v17 = vmul.f32 %v15902_v54, %v15902_v54  ;;  %15176 = vmatprep.subr.mxu1 %v15902_v54  ;;  %v10235_v39 = vadd.f32 %v10234_v32, %v10232_v51  ;;  %v10418_v5 = vmul.f32 %v10414_v9, %v16363_v52  ;;  %v10417_v16 = vsub.f32 1.0, %v10413_v53 }
0x2a7e   : > { %15177 = vmatpush3.msra.mxu1 %v15902_v54 }
0x2a7f   : > { %v10416_v30 = vsub.f32 1.0, %v10412_v17  ;;  %15178 = vmatprep.subr.mxu1 %v15896_v26  ;;  %v10236_v55 = vrot.slane %v10235_v39, 4  ;;  %v10422_v18 = vadd.f32 %v10419_v35, %v10418_v5  ;;  %v10421_v3 = vmul.f32 %v10417_v16, %v16377_v11 }
0x2a80   : > { %15179 = vmatpush3.msra.mxu1 %v15896_v26  ;;  %v10049_v26 = vrot.slane %v10048_v7, 2 }
0x2a81   : > { %15180 = vmatprep.subr.mxu1 %v15898_v4  ;;  %v10237_v34 = vadd.f32 %v10236_v55, %v10235_v39  ;;  %v10420_v47 = vmul.f32 %v10416_v30, %v16369_v2 }
0x2a82   : > { %15181 = vmatpush3.msra.mxu1 %v15898_v4  ;;  %v10050_v4 = vadd.f32 %v10049_v26, %v10048_v7 }
0x2a83   : > { %15183 = vmatmul.mubr.msk.f32.vlgmr.msra.gmra.mxu1 %vm489_vm1, %v18218_v19  ;;  %v10238_v10 = vrot.slane %v10237_v34, 2  ;;  %v10423_v40 = vadd.f32 %v10422_v18, %v10420_v47 }
0x2a84   : > { %15203 = vmatprep.mubr.msk.f32.mxu1 %vm489_vm1, %v18226_v22  ;;  %v10051_v13 = vrot.slane %v10050_v4, 1 }
0x2a85   : > { %v10239_v31 = vadd.f32 %v10238_v10, %v10237_v34  ;;  %v10424_v43 = vadd.f32 %v10423_v40, %v10421_v3 }
0x2a86   : > { %v10052_v51 = vadd.f32 %v10051_v13, %v10050_v4 }
0x2a87   : > { %v10240_v63 = vrot.slane %v10239_v31, 1  ;;  %v10425_v23 = vrot.slane %v10424_v43, 4 }
0x2a89   : > { %v10241_v20 = vadd.f32 %v10240_v63, %v10239_v31  ;;  %v10426_v12 = vadd.f32 %v10425_v23, %v10424_v43 }
0x2a8b   : > { %v10427_v45 = vrot.slane %v10426_v12, 2  ;;  %v11215_v14 = vmul.f32 2.0, %v10241_v20 }
0x2a8d   : > { %v10428_v27 = vadd.f32 %v10427_v45, %v10426_v12  ;;  %v18306_v41 = vadd.f32 %v11215_v14, %v9867_v50 }
0x2a8f   : > { %v10429_v44 = vrot.slane %v10428_v27, 1 }
0x2a91   : > { %v10430_v9 = vadd.f32 %v10429_v44, %v10428_v27 }
0x2a93   : > { %v11222_v32 = vmul.f32 2.0, %v10430_v9 }
0x2a95   : > { %v18308_v53 = vadd.f32 %v11222_v32, %v10052_v51 }
0x2b3b   : > { %v15163_v54 = vpop.f32.mrf.mxu1 }
0x2b3c   : > { %v18311_v17 = vadd.f32 %v15163_v54, %v16358_v42 }
0x2b3d   : > { %v10212_v39 = vpop.f32.mrf.mxu1 }
0x2b3e   : > { %v10432_v5 = vmul.f32 0.0625, %v18311_v17  ;;  %v18315_v35 = vadd.f32 %v10212_v39, %v16361_v46 }
0x2b40   : > { %v10431_v37 = vmul.f32 0.0625, %v18315_v35  ;;  %v10434_v21 = vadd.f32 %v10432_v5, %v18145_v29 }
0x2b42   : > { %15185 = vmatprep.subr.mxu0 %v10434_v21  ;;  %v10433_v30 = vadd.f32 %v10431_v37, %v18148_v60 }
0x2b43   : > { %v15184_v55 = vpop.f32.mrf.mxu1  ;;  %15186 = vmatpush3.msra.mxu0 %v10434_v21 }
0x2b44   : > { %v18321_v16 = vadd.f32 %v15184_v55, %v16358_v42  ;;  %15187 = vmatprep.subr.mxu0 %v10433_v30 }
0x2b45   : > { %v10401_v18 = vpop.f32.mrf.mxu1  ;;  %15188 = vmatpush3.msra.mxu0 %v10433_v30 }
0x2b46   : > { %v10621_v34 = vmul.f32 0.0625, %v18321_v16  ;;  %v18325_v47 = vadd.f32 %v10401_v18, %v16361_v46  ;;  %15190 = vmatmul.mubr.msk.f32.vlgmr.msra.gmra.mxu0 %vm387_vm0, %v18161_v49 }
0x2b47   : > { %15192 = vmatprep.mubr.msk.f32.mxu0 %vm387_vm0, %v18168_v15 }
0x2b48   : > { %v10620_v1 = vmul.f32 0.0625, %v18325_v47  ;;  %v10623_v7 = vadd.f32 %v10621_v34, %v18173_v48 }
0x2b4a   : > { %15193 = vmatmul.mubr.msk.f32.gmra.mxu0 %vm387_vm0, %v18181_v61  ;;  %15206 = vmatprep.subr.mxu0 %v10623_v7  ;;  %v10622_v10 = vadd.f32 %v10620_v1, %v18176_v8 }
0x2b4b   : > { %15207 = vmatpush3.msra.mxu0 %v10623_v7  ;;  %15210 = vmatprep.mubr.msk.f32.mxu0 %vm387_vm0, %v18190_v38 }
0x2b4c   : > { %15208 = vmatprep.subr.mxu0 %v10622_v10 }
0x2b4d   : > { %15209 = vmatpush3.msra.mxu0 %v10622_v10 }
0x2b4e   : > { %15211 = vmatmul.mubr.msk.f32.vlgmr.msra.gmra.mxu0 %vm387_vm0, %v18161_v49 }
0x2b4f   : > { %15213 = vmatprep.mubr.msk.f32.mxu0 %vm387_vm0, %v18168_v15 }
0x2b52   : > { %15214 = vmatmul.mubr.msk.f32.gmra.mxu0 %vm387_vm0, %v18181_v61 }
0x2b53   : > { %15231 = vmatprep.mubr.msk.f32.mxu0 %vm387_vm0, %v18190_v38 }
0x2c06   : > { %v15191_v3 = vpop.f32.mrf.mxu0 }
0x2c07   : > { %v10507_v40 = vadd.f32 %v15191_v3, %v16343_v24 }
0x2c08   : > { %v10501_v31 = vpop.f32.mrf.mxu0 }
0x2c09   : > { %15903 = vtanh.f32 %v10507_v40  ;;  %v10502_v43 = vadd.f32 %v10501_v31, %v16348_v28 }
0x2c0a   : > { %v15194_v58 = vpop.f32.mrf.mxu0 }
0x2c0b   : > { %15905 = vtanh.f32 %v10502_v43  ;;  %v10517_v26 = vadd.f32 %v15194_v58, %v16345_v25 }
0x2c0c   : > { %v10511_v63 = vpop.f32.mrf.mxu0 }
0x2c0d   : > { %15907 = vtanh.f32 %v10517_v26  ;;  %v10512_v23 = vadd.f32 %v10511_v63, %v16352_v33 }
0x2c0e   : > { %v15212_v20 = vpop.f32.mrf.mxu0 }
0x2c0f   : > { %15909 = vtanh.f32 %v10512_v23  ;;  %v10696_v12 = vadd.f32 %v15212_v20, %v16343_v24 }
0x2c10   : > { %v10690_v50 = vpop.f32.mrf.mxu0 }
0x2c11   : > { %15911 = vtanh.f32 %v10696_v12  ;;  %v10691_v4 = vadd.f32 %v10690_v50, %v16348_v28 }
0x2c12   : > { %v15215_v45 = vpop.f32.mrf.mxu0 }
0x2c13   : > { %15913 = vtanh.f32 %v10691_v4  ;;  %v10706_v14 = vadd.f32 %v15215_v45, %v16345_v25 }
0x2c14   : > { %v10700_v27 = vpop.f32.mrf.mxu0 }
0x2c15   : > { %15915 = vtanh.f32 %v10706_v14  ;;  %v10701_v13 = vadd.f32 %v10700_v27, %v16352_v33 }
0x2c16   : > { %v15904_v44 = vpop.eup %15903 }
0x2c17   : > { %v10600_v9 = vmul.f32 %v15904_v44, %v15904_v44  ;;  %15917 = vtanh.f32 %v10701_v13 }
0x2c18   : > { %v15906_v51 = vpop.eup %15905 }
0x2c19   : > { %v10604_v32 = vsub.f32 1.0, %v10600_v9  ;;  %v10599_v54 = vmul.f32 %v15906_v51, %v15906_v51 }
0x2c1a   : > { %v15908_v39 = vpop.eup %15907 }
0x2c1b   : > { %v10603_v5 = vsub.f32 1.0, %v10599_v54  ;;  %15195 = vmatprep.subr.mxu1 %v15908_v39  ;;  %v10602_v37 = vmul.f32 %v15908_v39, %v15908_v39  ;;  %v10608_v18 = vmul.f32 %v10604_v32, %v16365_v56 }
0x2c1c   : > { %v15910_v21 = vpop.eup %15909  ;;  %15196 = vmatpush3.msra.mxu1 %v15908_v39 }
0x2c1d   : > { %15197 = vmatprep.subr.mxu1 %v15910_v21  ;;  %v10601_v30 = vmul.f32 %v15910_v21, %v15910_v21  ;;  %v10607_v55 = vmul.f32 %v10603_v5, %v16363_v52  ;;  %v10606_v10 = vsub.f32 1.0, %v10602_v37 }
0x2c1e   : > { %v15912_v34 = vpop.eup %15911  ;;  %15198 = vmatpush3.msra.mxu1 %v15910_v21 }
0x2c1f   : > { %v10789_v1 = vmul.f32 %v15912_v34, %v15912_v34  ;;  %15199 = vmatprep.subr.mxu1 %v15904_v44  ;;  %v10605_v7 = vsub.f32 1.0, %v10601_v30  ;;  %v10611_v3 = vadd.f32 %v10608_v18, %v10607_v55  ;;  %v10610_v23 = vmul.f32 %v10606_v10, %v16377_v11 }
0x2c20   : > { %v15914_v40 = vpop.eup %15913  ;;  %15200 = vmatpush3.msra.mxu1 %v15904_v44 }
0x2c21   : > { %v10793_v31 = vsub.f32 1.0, %v10789_v1  ;;  %v10788_v43 = vmul.f32 %v15914_v40, %v15914_v40  ;;  %15201 = vmatprep.subr.mxu1 %v15906_v51  ;;  %v10609_v58 = vmul.f32 %v10605_v7, %v16369_v2 }
0x2c22   : > { %v15916_v26 = vpop.eup %15915  ;;  %15202 = vmatpush3.msra.mxu1 %v15906_v51 }
0x2c23   : > { %v10792_v63 = vsub.f32 1.0, %v10788_v43  ;;  %15204 = vmatmul.mubr.msk.f32.vlgmr.msra.gmra.mxu1 %vm489_vm1, %v18218_v19  ;;  %15216 = vmatprep.subr.mxu1 %v15916_v26  ;;  %v10612_v20 = vadd.f32 %v10611_v3, %v10609_v58  ;;  %v10791_v12 = vmul.f32 %v15916_v26, %v15916_v26  ;;  %v10797_v27 = vmul.f32 %v10793_v31, %v16365_v56 }
0x2c24   : > { %v15918_v50 = vpop.eup %15917  ;;  %15217 = vmatpush3.msra.mxu1 %v15916_v26  ;;  %15224 = vmatprep.mubr.msk.f32.mxu1 %vm489_vm1, %v18226_v22 }
0x2c25   : > { %15218 = vmatprep.subr.mxu1 %v15918_v50  ;;  %v10613_v4 = vadd.f32 %v10612_v20, %v10610_v23  ;;  %v10790_v45 = vmul.f32 %v15918_v50, %v15918_v50  ;;  %v10796_v14 = vmul.f32 %v10792_v63, %v16363_v52  ;;  %v10795_v9 = vsub.f32 1.0, %v10791_v12 }
0x2c26   : > { %15219 = vmatpush3.msra.mxu1 %v15918_v50  ;;  %v11188_v63 = vmul.f32 2.0, %v18311_v17  ;;  %v11187_v23 = vmul.f32 2.0, %v18315_v35  ;;  %v11202_v17 = vmul.f32 2.0, %v18321_v16 }
0x2c27   : > { %15220 = vmatprep.subr.mxu1 %v15912_v34  ;;  %v10614_v13 = vrot.slane %v10613_v4, 4  ;;  %v10794_v44 = vsub.f32 1.0, %v10790_v45  ;;  %v10800_v51 = vadd.f32 %v10797_v27, %v10796_v14  ;;  %v10799_v5 = vmul.f32 %v10795_v9, %v16377_v11 }
0x2c28   : > { %15221 = vmatpush3.msra.mxu1 %v15912_v34  ;;  %v11189_v27 = vadd.f32 %v11187_v23, %v18247_v59 }
0x2c29   : > { %15222 = vmatprep.subr.mxu1 %v15914_v40  ;;  %v10615_v32 = vadd.f32 %v10614_v13, %v10613_v4  ;;  %v10798_v54 = vmul.f32 %v10794_v44, %v16369_v2  ;;  %v11190_v4 = vadd.f32 %v11188_v63, %v18243_v57  ;;  %v11201_v57 = vmul.f32 2.0, %v18325_v47 }
0x2c2a   : > { %15223 = vmatpush3.msra.mxu1 %v15914_v40 }
0x2c2b   : > { %15225 = vmatmul.mubr.msk.f32.vlgmr.msra.gmra.mxu1 %vm489_vm1, %v18218_v19  ;;  %v10616_v39 = vrot.slane %v10615_v32, 2  ;;  %v10801_v37 = vadd.f32 %v10800_v51, %v10798_v54 }
0x2c2c   : > { %15245 = vmatprep.mubr.msk.f32.mxu1 %vm489_vm1, %v18226_v22 }
0x2c2d   : > { %v10617_v21 = vadd.f32 %v10616_v39, %v10615_v32  ;;  %v10802_v30 = vadd.f32 %v10801_v37, %v10799_v5  ;;  %v11204_v39 = vadd.f32 %v11202_v17, %v18253_v62 }
0x2c2f   : > { %v10618_v55 = vrot.slane %v10617_v21, 1  ;;  %v10803_v18 = vrot.slane %v10802_v30, 4 }
0x2c31   : > { %v10619_v34 = vadd.f32 %v10618_v55, %v10617_v21  ;;  %v10804_v1 = vadd.f32 %v10803_v18, %v10802_v30  ;;  %v11203_v21 = vadd.f32 %v11201_v57, %v18257_v36 }
0x2c33   : > { %v10805_v7 = vrot.slane %v10804_v1, 2  ;;  %v11217_v10 = vmul.f32 2.0, %v10619_v34 }
0x2c35   : > { %v10806_v3 = vadd.f32 %v10805_v7, %v10804_v1  ;;  %v18371_v40 = vadd.f32 %v11217_v10, %v18306_v41 }
0x2c37   : > { %v10807_v31 = vrot.slane %v10806_v3, 1 }
0x2c39   : > { %v10808_v43 = vadd.f32 %v10807_v31, %v10806_v3 }
0x2c3b   : > { %v11224_v58 = vmul.f32 2.0, %v10808_v43 }
0x2c3d   : > { %v18374_v26 = vadd.f32 %v11224_v58, %v18308_v53 }
0x2ce3   : > { %v15205_v20 = vpop.f32.mrf.mxu1 }
0x2ce4   : > { %v10596_v12 = vadd.f32 %v15205_v20, %v16358_v42 }
0x2ce5   : > { %v10590_v50 = vpop.f32.mrf.mxu1 }
0x2ce6   : > { %v10810_v45 = vmul.f32 0.125, %v10596_v12  ;;  %v11192_v14 = vmul.f32 2.0, %v10596_v12  ;;  %v10591_v41 = vadd.f32 %v10590_v50, %v16361_v46 }
0x2ce8   : > { %v10809_v13 = vmul.f32 0.125, %v10591_v41  ;;  %v11191_v44 = vmul.f32 2.0, %v10591_v41  ;;  %v10812_v53 = vadd.f32 %v10810_v45, %v18145_v29  ;;  %v18383_v9 = vadd.f32 %v11192_v14, %v11190_v4 }
0x2cea   : > { %15227 = vmatprep.subr.mxu0 %v10812_v53  ;;  %v10811_v35 = vadd.f32 %v10809_v13, %v18148_v60  ;;  %v18387_v51 = vadd.f32 %v11191_v44, %v11189_v27 }
0x2ceb   : > { %v15226_v32 = vpop.f32.mrf.mxu1  ;;  %15228 = vmatpush3.msra.mxu0 %v10812_v53 }
0x2cec   : > { %v10785_v54 = vadd.f32 %v15226_v32, %v16358_v42  ;;  %15229 = vmatprep.subr.mxu0 %v10811_v35 }
0x2ced   : > { %v10779_v59 = vpop.f32.mrf.mxu1  ;;  %15230 = vmatpush3.msra.mxu0 %v10811_v35 }
0x2cee   : > { %v10999_v5 = vmul.f32 0.125, %v10785_v54  ;;  %v11206_v37 = vmul.f32 2.0, %v10785_v54  ;;  %v10780_v16 = vadd.f32 %v10779_v59, %v16361_v46  ;;  %15232 = vmatmul.mubr.msk.f32.vlgmr.msra.gmra.mxu0 %vm387_vm0, %v18161_v49 }
0x2cef   : > { %15234 = vmatprep.mubr.msk.f32.mxu0 %vm387_vm0, %v18168_v15 }
0x2cf0   : > { %v10998_v47 = vmul.f32 0.125, %v10780_v16  ;;  %v11205_v30 = vmul.f32 2.0, %v10780_v16  ;;  %v11001_v55 = vadd.f32 %v10999_v5, %v18173_v48  ;;  %v18399_v18 = vadd.f32 %v11206_v37, %v11204_v39 }
0x2cf2   : > { %15235 = vmatmul.mubr.msk.f32.gmra.mxu0 %vm387_vm0, %v18181_v61  ;;  %15248 = vmatprep.subr.mxu0 %v11001_v55  ;;  %v11000_v62 = vadd.f32 %v10998_v47, %v18176_v8  ;;  %v18404_v34 = vadd.f32 %v11205_v30, %v11203_v21 }
0x2cf3   : > { %15249 = vmatpush3.msra.mxu0 %v11001_v55  ;;  %15252 = vmatprep.mubr.msk.f32.mxu0 %vm387_vm0, %v18190_v38 }
0x2cf4   : > { %15250 = vmatprep.subr.mxu0 %v11000_v62 }
0x2cf5   : > { %15251 = vmatpush3.msra.mxu0 %v11000_v62 }
0x2cf6   : > { %15253 = vmatmul.mubr.msk.f32.vlgmr.msra.gmra.mxu0 %vm387_vm0, %v18161_v49 }
0x2cf7   : > { %15255 = vmatprep.mubr.msk.f32.mxu0 %vm387_vm0, %v18168_v15 }
0x2cfa   : > { %15256 = vmatmul.mubr.msk.f32.gmra.mxu0 %vm387_vm0, %v18181_v61 }
0x2cfb   : > { %15273 = vmatprep.mubr.msk.f32.mxu0 %vm387_vm0, %v18190_v38 }
0x2dae   : > { %v15233_v36 = vpop.f32.mrf.mxu0 }
0x2daf   : > { %v10885_v1 = vadd.f32 %v15233_v36, %v16343_v24 }
0x2db0   : > { %v10879_v7 = vpop.f32.mrf.mxu0 }
0x2db1   : > { %15919 = vtanh.f32 %v10885_v1  ;;  %v10880_v10 = vadd.f32 %v10879_v7, %v16348_v28 }
0x2db2   : > { %v15236_v3 = vpop.f32.mrf.mxu0 }
0x2db3   : > { %15921 = vtanh.f32 %v10880_v10  ;;  %v10895_v49 = vadd.f32 %v15236_v3, %v16345_v25 }
0x2db4   : > { %v10889_v31 = vpop.f32.mrf.mxu0 }
0x2db5   : > { %15923 = vtanh.f32 %v10895_v49  ;;  %v10890_v15 = vadd.f32 %v10889_v31, %v16352_v33 }
0x2db6   : > { %v15254_v43 = vpop.f32.mrf.mxu0 }
0x2db7   : > { %15925 = vtanh.f32 %v10890_v15  ;;  %v11074_v61 = vadd.f32 %v15254_v43, %v16343_v24 }
0x2db8   : > { %v11068_v38 = vpop.f32.mrf.mxu0 }
0x2db9   : > { %15927 = vtanh.f32 %v11074_v61  ;;  %v11069_v58 = vadd.f32 %v11068_v38, %v16348_v28 }
0x2dba   : > { %v15257_v63 = vpop.f32.mrf.mxu0 }
0x2dbb   : > { %15929 = vtanh.f32 %v11069_v58  ;;  %v11084_v23 = vadd.f32 %v15257_v63, %v16345_v25 }
0x2dbc   : > { %v11078_v20 = vpop.f32.mrf.mxu0 }
0x2dbd   : > { %15931 = vtanh.f32 %v11084_v23  ;;  %v11079_v12 = vadd.f32 %v11078_v20, %v16352_v33 }
0x2dbe   : > { %v15920_v50 = vpop.eup %15919 }
0x2dbf   : > { %15933 = vtanh.f32 %v11079_v12  ;;  %v10978_v4 = vmul.f32 %v15920_v50, %v15920_v50 }
0x2dc0   : > { %v15922_v45 = vpop.eup %15921 }
0x2dc1   : > { %v10977_v14 = vmul.f32 %v15922_v45, %v15922_v45  ;;  %v10982_v41 = vsub.f32 1.0, %v10978_v4 }
0x2dc2   : > { %v15924_v27 = vpop.eup %15923 }
0x2dc3   : > { %15237 = vmatprep.subr.mxu1 %v15924_v27  ;;  %v10980_v13 = vmul.f32 %v15924_v27, %v15924_v27  ;;  %v10981_v44 = vsub.f32 1.0, %v10977_v14  ;;  %v10986_v57 = vmul.f32 %v10982_v41, %v16365_v56 }
0x2dc4   : > { %v15926_v53 = vpop.eup %15925  ;;  %15238 = vmatpush3.msra.mxu1 %v15924_v27 }
0x2dc5   : > { %15239 = vmatprep.subr.mxu1 %v15926_v53  ;;  %v10979_v17 = vmul.f32 %v15926_v53, %v15926_v53  ;;  %v10985_v35 = vmul.f32 %v10981_v44, %v16363_v52  ;;  %v10984_v59 = vsub.f32 1.0, %v10980_v13 }
0x2dc6   : > { %v15928_v32 = vpop.eup %15927  ;;  %15240 = vmatpush3.msra.mxu1 %v15926_v53 }
0x2dc7   : > { %15241 = vmatprep.subr.mxu1 %v15920_v50  ;;  %v10983_v54 = vsub.f32 1.0, %v10979_v17  ;;  %v10989_v39 = vadd.f32 %v10986_v57, %v10985_v35  ;;  %v11167_v5 = vmul.f32 %v15928_v32, %v15928_v32  ;;  %v10988_v55 = vmul.f32 %v10984_v59, %v16377_v11 }
0x2dc8   : > { %v15930_v37 = vpop.eup %15929  ;;  %15242 = vmatpush3.msra.mxu1 %v15920_v50 }
0x2dc9   : > { %15243 = vmatprep.subr.mxu1 %v15922_v45  ;;  %v10987_v16 = vmul.f32 %v10983_v54, %v16369_v2  ;;  %v11166_v21 = vmul.f32 %v15930_v37, %v15930_v37  ;;  %v11171_v47 = vsub.f32 1.0, %v11167_v5 }
0x2dca   : > { %v15932_v30 = vpop.eup %15931  ;;  %15244 = vmatpush3.msra.mxu1 %v15922_v45 }
0x2dcb   : > { %15246 = vmatmul.mubr.msk.f32.vlgmr.msra.gmra.mxu1 %vm489_vm1, %v18218_v19  ;;  %15258 = vmatprep.subr.mxu1 %v15932_v30  ;;  %v10990_v62 = vadd.f32 %v10989_v39, %v10987_v16  ;;  %v11169_v36 = vmul.f32 %v15932_v30, %v15932_v30  ;;  %v11170_v1 = vsub.f32 1.0, %v11166_v21  ;;  %v11175_v31 = vmul.f32 %v11171_v47, %v16365_v56 }
0x2dcc   : > { %v15934_v7 = vpop.eup %15933  ;;  %15259 = vmatpush3.msra.mxu1 %v15932_v30  ;;  %15266 = vmatprep.mubr.msk.f32.mxu1 %vm489_vm1, %v18226_v22 }
0x2dcd   : > { %15260 = vmatprep.subr.mxu1 %v15934_v7  ;;  %v10991_v10 = vadd.f32 %v10990_v62, %v10988_v55  ;;  %v11168_v3 = vmul.f32 %v15934_v7, %v15934_v7  ;;  %v11174_v49 = vmul.f32 %v11170_v1, %v16363_v52  ;;  %v11173_v61 = vsub.f32 1.0, %v11169_v36 }
0x2dce   : > { %15261 = vmatpush3.msra.mxu1 %v15934_v7  ;;  %v18489_v7 = vld [vmem:[%s18830_s1 + $0x18] sm:$0xff] }
0x2dcf   : > { %15262 = vmatprep.subr.mxu1 %v15928_v32  ;;  %v10992_v15 = vrot.slane %v10991_v10, 4  ;;  %v11172_v43 = vsub.f32 1.0, %v11168_v3  ;;  %v11178_v38 = vadd.f32 %v11175_v31, %v11174_v49  ;;  %v11177_v20 = vmul.f32 %v11173_v61, %v16377_v11 }
0x2dd0   : > { %15263 = vmatpush3.msra.mxu1 %v15928_v32 }
0x2dd1   : > { %15264 = vmatprep.subr.mxu1 %v15930_v37  ;;  %v10993_v58 = vadd.f32 %v10992_v15, %v10991_v10  ;;  %v11176_v63 = vmul.f32 %v11172_v43, %v16369_v2 }
0x2dd2   : > { %15265 = vmatpush3.msra.mxu1 %v15930_v37 }
0x2dd3   : > { %15267 = vmatmul.mubr.msk.f32.vlgmr.msra.gmra.mxu1 %vm489_vm1, %v18218_v19  ;;  %v10994_v23 = vrot.slane %v10993_v58, 2  ;;  %v11179_v12 = vadd.f32 %v11178_v38, %v11176_v63 }
0x2dd4   : > { %15287 = vmatprep.mubr.msk.f32.mxu1 %vm489_vm1, %v18226_v22 }
0x2dd5   : > { %v10995_v50 = vadd.f32 %v10994_v23, %v10993_v58  ;;  %v11180_v4 = vadd.f32 %v11179_v12, %v11177_v20 }
0x2dd7   : > { %v10996_v45 = vrot.slane %v10995_v50, 1  ;;  %v11181_v14 = vrot.slane %v11180_v4, 4 }
0x2dd9   : > { %v10997_v41 = vadd.f32 %v10996_v45, %v10995_v50  ;;  %v11182_v27 = vadd.f32 %v11181_v14, %v11180_v4 }
0x2ddb   : > { %v11183_v13 = vrot.slane %v11182_v27, 2  ;;  %v11219_v44 = vadd.f32 %v18371_v40, %v10997_v41 }
0x2ddd   : > { %v11184_v53 = vadd.f32 %v11183_v13, %v11182_v27  ;;  %v11220_v17 = vmul.f32 0.020833334, %v11219_v44 }
0x2ddf   : > { %v11185_v35 = vrot.slane %v11184_v53, 1  ;;  %v18442_v19 = vadd.f32 %v11220_v17, %v18134_v0 }
0x2de1   : > { %v11186_v57 = vadd.f32 %v11185_v35, %v11184_v53 }
0x2de3   : > { %v11226_v32 = vadd.f32 %v18374_v26, %v11186_v57 }
0x2de5   : > { %v11227_v54 = vmul.f32 0.020833334, %v11226_v32 }
0x2de7   : > { %v18446_v22 = vadd.f32 %v11227_v54, %v18138_v6 }
0x2e8b   : > { %v15247_v59 = vpop.f32.mrf.mxu1 }
0x2e8c   : > { %v10974_v39 = vadd.f32 %v15247_v59, %v16358_v42 }
0x2e8d   : > { %v10968_v5 = vpop.f32.mrf.mxu1 }
0x2e8e   : > { %v11196_v37 = vadd.f32 %v18383_v9, %v10974_v39  ;;  %v10969_v40 = vadd.f32 %v10968_v5, %v16361_v46 }
0x2e90   : > { %v11198_v16 = vmul.f32 0.020833334, %v11196_v37  ;;  %v11195_v21 = vadd.f32 %v18387_v51, %v10969_v40 }
0x2e92   : > { %v18453_v0 = vadd.f32 %v11198_v16, %v18145_v29  ;;  %v11197_v47 = vmul.f32 0.020833334, %v11195_v21 }
0x2e93   : > { %v15268_v26 = vpop.f32.mrf.mxu1 }
0x2e94   : > { %v18456_v30 = vadd.f32 %v11197_v47, %v18148_v60  ;;  %v11163_v6 = vadd.f32 %v15268_v26, %v16358_v42  ;;  %15269 = vmatprep.subr.mxu0 %v18453_v0  ;;  %v18469_v60 = vld [vmem:[%s18830_s1 + $0x8] sm:$0xff] }
0x2e95   : > { %v11157_v55 = vpop.f32.mrf.mxu1  ;;  %15270 = vmatpush3.msra.mxu0 %v18453_v0 }
0x2e96   : > { %v11210_v9 = vadd.f32 %v18399_v18, %v11163_v6  ;;  %v11158_v62 = vadd.f32 %v11157_v55, %v16361_v46  ;;  %15271 = vmatprep.subr.mxu0 %v18456_v30  ;;  %v18476_v18 = vld [vmem:[%s18830_s1 + $0x10] sm:$0xff] }
0x2e97   : > { %15272 = vmatpush3.msra.mxu0 %v18456_v30 }
0x2e98   : > { %v11212_v29 = vmul.f32 0.020833334, %v11210_v9  ;;  %v11209_v51 = vadd.f32 %v18404_v34, %v11158_v62  ;;  %15274 = vmatmul.mubr.msk.f32.vlgmr.msra.gmra.mxu0 %vm387_vm0, %v18469_v60  ;;  %v18526_v9 = vld [vmem:[%s18832_s3 + $0x8] sm:$0xff] }
0x2e99   : > { %15276 = vmatprep.mubr.msk.f32.mxu0 %vm387_vm0, %v18476_v18 }
0x2e9a   : > { %v18481_v36 = vadd.f32 %v11212_v29, %v18173_v48  ;;  %v11211_v34 = vmul.f32 0.020833334, %v11209_v51  ;;  %v18498_v48 = vld [vmem:[%s18830_s1] sm:$0xff] }
0x2e9c   : > { %v18484_v1 = vadd.f32 %v11211_v34, %v18176_v8  ;;  %15277 = vmatmul.mubr.msk.f32.gmra.mxu0 %vm387_vm0, %v18489_v7  ;;  %15290 = vmatprep.subr.mxu0 %v18481_v36 }
0x2e9d   : > { %15291 = vmatpush3.msra.mxu0 %v18481_v36  ;;  %15294 = vmatprep.mubr.msk.f32.mxu0 %vm387_vm0, %v18498_v48 }
0x2e9e   : > { %15292 = vmatprep.subr.mxu0 %v18484_v1 }
0x2e9f   : > { %15293 = vmatpush3.msra.mxu0 %v18484_v1 }
0x2ea0   : > { %15295 = vmatmul.mubr.msk.f32.vlgmr.msra.gmra.mxu0 %vm387_vm0, %v18469_v60 }
0x2ea1   : > { %15297 = vmatprep.mubr.msk.f32.mxu0 %vm387_vm0, %v18476_v18 }
0x2ea4   : > { %15298 = vmatmul.mubr.msk.f32.gmra.mxu0 %vm387_vm0, %v18489_v7 }
0x2ea5   : > { %15315 = vmatprep.mubr.msk.f32.mxu0 %vm387_vm0, %v18498_v48 }
0x2f58   : > { %v15275_v8 = vpop.f32.mrf.mxu0 }
0x2f59   : > { %v11301_v10 = vadd.f32 %v15275_v8, %v16343_v24  ;;  %v18534_v8 = vld [vmem:[%s18832_s3] sm:$0xff] }
0x2f5a   : > { %v11295_v3 = vpop.f32.mrf.mxu0 }
0x2f5b   : > { %15935 = vtanh.f32 %v11301_v10  ;;  %v11296_v49 = vadd.f32 %v11295_v3, %v16348_v28 }
0x2f5c   : > { %v15278_v31 = vpop.f32.mrf.mxu0 }
0x2f5d   : > { %15937 = vtanh.f32 %v11296_v49  ;;  %v11311_v15 = vadd.f32 %v15278_v31, %v16345_v25 }
0x2f5e   : > { %v11305_v43 = vpop.f32.mrf.mxu0 }
0x2f5f   : > { %15939 = vtanh.f32 %v11311_v15  ;;  %v11306_v61 = vadd.f32 %v11305_v43, %v16352_v33 }
0x2f60   : > { %v15296_v38 = vpop.f32.mrf.mxu0 }
0x2f61   : > { %15941 = vtanh.f32 %v11306_v61  ;;  %v11486_v58 = vadd.f32 %v15296_v38, %v16343_v24 }
0x2f62   : > { %v11480_v63 = vpop.f32.mrf.mxu0 }
0x2f63   : > { %15943 = vtanh.f32 %v11486_v58  ;;  %v11481_v23 = vadd.f32 %v11480_v63, %v16348_v28 }
0x2f64   : > { %v15299_v20 = vpop.f32.mrf.mxu0 }
0x2f65   : > { %15945 = vtanh.f32 %v11481_v23  ;;  %v11496_v12 = vadd.f32 %v15299_v20, %v16345_v25 }
0x2f66   : > { %v11490_v50 = vpop.f32.mrf.mxu0 }
0x2f67   : > { %15947 = vtanh.f32 %v11496_v12  ;;  %v11491_v4 = vadd.f32 %v11490_v50, %v16352_v33 }
0x2f68   : > { %v15936_v45 = vpop.eup %15935 }
0x2f69   : > { %v11394_v14 = vmul.f32 %v15936_v45, %v15936_v45  ;;  %15949 = vtanh.f32 %v11491_v4 }
0x2f6a   : > { %v15938_v41 = vpop.eup %15937 }
0x2f6b   : > { %v11398_v27 = vsub.f32 1.0, %v11394_v14  ;;  %v11393_v13 = vmul.f32 %v15938_v41, %v15938_v41 }
0x2f6c   : > { %v15940_v44 = vpop.eup %15939 }
0x2f6d   : > { %v11397_v53 = vsub.f32 1.0, %v11393_v13  ;;  %15279 = vmatprep.subr.mxu1 %v15940_v44  ;;  %v11396_v17 = vmul.f32 %v15940_v44, %v15940_v44  ;;  %v11402_v54 = vmul.f32 %v11398_v27, %v16365_v56 }
0x2f6e   : > { %v15942_v35 = vpop.eup %15941  ;;  %15280 = vmatpush3.msra.mxu1 %v15940_v44 }
0x2f6f   : > { %15281 = vmatprep.subr.mxu1 %v15942_v35  ;;  %v11395_v57 = vmul.f32 %v15942_v35, %v15942_v35  ;;  %v11401_v32 = vmul.f32 %v11397_v53, %v16363_v52  ;;  %v11400_v37 = vsub.f32 1.0, %v11396_v17 }
0x2f70   : > { %v15944_v59 = vpop.eup %15943  ;;  %15282 = vmatpush3.msra.mxu1 %v15942_v35 }
0x2f71   : > { %v11579_v39 = vmul.f32 %v15944_v59, %v15944_v59  ;;  %15283 = vmatprep.subr.mxu1 %v15936_v45  ;;  %v11399_v5 = vsub.f32 1.0, %v11395_v57  ;;  %v11405_v40 = vadd.f32 %v11402_v54, %v11401_v32  ;;  %v11404_v62 = vmul.f32 %v11400_v37, %v16377_v11 }
0x2f72   : > { %v15946_v16 = vpop.eup %15945  ;;  %15284 = vmatpush3.msra.mxu1 %v15936_v45 }
0x2f73   : > { %v11583_v21 = vsub.f32 1.0, %v11579_v39  ;;  %v11578_v47 = vmul.f32 %v15946_v16, %v15946_v16  ;;  %15285 = vmatprep.subr.mxu1 %v15938_v41  ;;  %v11403_v26 = vmul.f32 %v11399_v5, %v16369_v2 }
0x2f74   : > { %v15948_v6 = vpop.eup %15947  ;;  %15286 = vmatpush3.msra.mxu1 %v15938_v41 }
0x2f75   : > { %v11582_v55 = vsub.f32 1.0, %v11578_v47  ;;  %15288 = vmatmul.mubr.msk.f32.vlgmr.msra.gmra.mxu1 %vm489_vm1, %v18526_v9  ;;  %15300 = vmatprep.subr.mxu1 %v15948_v6  ;;  %v11406_v29 = vadd.f32 %v11405_v40, %v11403_v26  ;;  %v11581_v51 = vmul.f32 %v15948_v6, %v15948_v6  ;;  %v11587_v31 = vmul.f32 %v11583_v21, %v16365_v56 }
0x2f76   : > { %v15950_v34 = vpop.eup %15949  ;;  %15301 = vmatpush3.msra.mxu1 %v15948_v6  ;;  %15308 = vmatprep.mubr.msk.f32.mxu1 %vm489_vm1, %v18534_v8 }
0x2f77   : > { %15302 = vmatprep.subr.mxu1 %v15950_v34  ;;  %v18538_v10 = vadd.f32 %v11406_v29, %v11404_v62  ;;  %v11580_v3 = vmul.f32 %v15950_v34, %v15950_v34  ;;  %v11586_v49 = vmul.f32 %v11582_v55, %v16363_v52  ;;  %v11585_v43 = vsub.f32 1.0, %v11581_v51 }
0x2f78   : > { %15303 = vmatpush3.msra.mxu1 %v15950_v34 }
0x2f79   : > { %15304 = vmatprep.subr.mxu1 %v15944_v59  ;;  %v11584_v15 = vsub.f32 1.0, %v11580_v3  ;;  %v11590_v61 = vadd.f32 %v11587_v31, %v11586_v49  ;;  %v11589_v58 = vmul.f32 %v11585_v43, %v16377_v11 }
0x2f7a   : > { %15305 = vmatpush3.msra.mxu1 %v15944_v59 }
0x2f7b   : > { %15306 = vmatprep.subr.mxu1 %v15946_v16  ;;  %v11588_v38 = vmul.f32 %v11584_v15, %v16369_v2 }
0x2f7c   : > { %15307 = vmatpush3.msra.mxu1 %v15946_v16 }
0x2f7d   : > { %15309 = vmatmul.mubr.msk.f32.vlgmr.msra.gmra.mxu1 %vm489_vm1, %v18526_v9  ;;  %v11591_v63 = vadd.f32 %v11590_v61, %v11588_v38 }
0x2f7e   : > { %15329 = vmatprep.mubr.msk.f32.mxu1 %vm489_vm1, %v18534_v8 }
0x2f7f   : > { %v18548_v23 = vadd.f32 %v11591_v63, %v11589_v58 }
0x3035   : > { %v15289_v20 = vpop.f32.mrf.mxu1 }
0x3036   : > { %v18551_v12 = vadd.f32 %v15289_v20, %v16358_v42 }
0x3037   : > { %v11384_v50 = vpop.f32.mrf.mxu1 }
0x3038   : > { %v11600_v4 = vmul.f32 0.0625, %v18551_v12  ;;  %v18555_v45 = vadd.f32 %v11384_v50, %v16361_v46 }
0x303a   : > { %v11599_v14 = vmul.f32 0.0625, %v18555_v45  ;;  %v11602_v41 = vadd.f32 %v11600_v4, %v18453_v0 }
0x303c   : > { %15311 = vmatprep.subr.mxu0 %v11602_v41  ;;  %v11601_v27 = vadd.f32 %v11599_v14, %v18456_v30 }
0x303d   : > { %v15310_v13 = vpop.f32.mrf.mxu1  ;;  %15312 = vmatpush3.msra.mxu0 %v11602_v41 }
0x303e   : > { %v18561_v44 = vadd.f32 %v15310_v13, %v16358_v42  ;;  %15313 = vmatprep.subr.mxu0 %v11601_v27 }
0x303f   : > { %v11569_v53 = vpop.f32.mrf.mxu1  ;;  %15314 = vmatpush3.msra.mxu0 %v11601_v27  ;;  %v11408_v27 = vrot.slane %v18538_v10, 4 }
0x3040   : > { %v11789_v17 = vmul.f32 0.0625, %v18561_v44  ;;  %v18565_v35 = vadd.f32 %v11569_v53, %v16361_v46  ;;  %15316 = vmatmul.mubr.msk.f32.vlgmr.msra.gmra.mxu0 %vm387_vm0, %v18469_v60 }
0x3041   : > { %15318 = vmatprep.mubr.msk.f32.mxu0 %vm387_vm0, %v18476_v18 }
0x3042   : > { %v11788_v57 = vmul.f32 0.0625, %v18565_v35  ;;  %v11791_v32 = vadd.f32 %v11789_v17, %v18481_v36 }
0x3044   : > { %15319 = vmatmul.mubr.msk.f32.gmra.mxu0 %vm387_vm0, %v18489_v7  ;;  %15332 = vmatprep.subr.mxu0 %v11791_v32  ;;  %v11790_v54 = vadd.f32 %v11788_v57, %v18484_v1 }
0x3045   : > { %15333 = vmatpush3.msra.mxu0 %v11791_v32  ;;  %15336 = vmatprep.mubr.msk.f32.mxu0 %vm387_vm0, %v18498_v48 }
0x3046   : > { %15334 = vmatprep.subr.mxu0 %v11790_v54 }
0x3047   : > { %15335 = vmatpush3.msra.mxu0 %v11790_v54 }
0x3048   : > { %15337 = vmatmul.mubr.msk.f32.vlgmr.msra.gmra.mxu0 %vm387_vm0, %v18469_v60 }
0x3049   : > { %15339 = vmatprep.mubr.msk.f32.mxu0 %vm387_vm0, %v18476_v18 }
0x304c   : > { %15340 = vmatmul.mubr.msk.f32.gmra.mxu0 %vm387_vm0, %v18489_v7 }
0x304d   : > { %15357 = vmatprep.mubr.msk.f32.mxu0 %vm387_vm0, %v18498_v48 }
0x3100   : > { %v15317_v59 = vpop.f32.mrf.mxu0 }
0x3101   : > { %v11675_v39 = vadd.f32 %v15317_v59, %v16343_v24 }
0x3102   : > { %v11669_v5 = vpop.f32.mrf.mxu0 }
0x3103   : > { %15951 = vtanh.f32 %v11675_v39  ;;  %v11670_v37 = vadd.f32 %v11669_v5, %v16348_v28 }
0x3104   : > { %v15320_v40 = vpop.f32.mrf.mxu0 }
0x3105   : > { %15953 = vtanh.f32 %v11670_v37  ;;  %v11685_v16 = vadd.f32 %v15320_v40, %v16345_v25  ;;  %v11409_v37 = vadd.f32 %v11408_v27, %v18538_v10 }
0x3106   : > { %v11679_v21 = vpop.f32.mrf.mxu0 }
0x3107   : > { %15955 = vtanh.f32 %v11685_v16  ;;  %v11680_v47 = vadd.f32 %v11679_v21, %v16352_v33 }
0x3108   : > { %v15338_v26 = vpop.f32.mrf.mxu0 }
0x3109   : > { %15957 = vtanh.f32 %v11680_v47  ;;  %v11864_v6 = vadd.f32 %v15338_v26, %v16343_v24 }
0x310a   : > { %v11858_v55 = vpop.f32.mrf.mxu0 }
0x310b   : > { %15959 = vtanh.f32 %v11864_v6  ;;  %v11859_v62 = vadd.f32 %v11858_v55, %v16348_v28 }
0x310c   : > { %v15341_v29 = vpop.f32.mrf.mxu0 }
0x310d   : > { %15961 = vtanh.f32 %v11859_v62  ;;  %v11874_v51 = vadd.f32 %v15341_v29, %v16345_v25  ;;  %v11410_v29 = vrot.slane %v11409_v37, 2 }
0x310e   : > { %v11868_v34 = vpop.f32.mrf.mxu0 }
0x310f   : > { %15963 = vtanh.f32 %v11874_v51  ;;  %v11869_v3 = vadd.f32 %v11868_v34, %v16352_v33  ;;  %v11593_v51 = vrot.slane %v18548_v23, 4 }
0x3110   : > { %v15952_v49 = vpop.eup %15951 }
0x3111   : > { %v11768_v31 = vmul.f32 %v15952_v49, %v15952_v49  ;;  %15965 = vtanh.f32 %v11869_v3 }
0x3112   : > { %v15954_v15 = vpop.eup %15953 }
0x3113   : > { %v11772_v43 = vsub.f32 1.0, %v11768_v31  ;;  %v11767_v61 = vmul.f32 %v15954_v15, %v15954_v15 }
0x3114   : > { %v15956_v38 = vpop.eup %15955 }
0x3115   : > { %v11771_v58 = vsub.f32 1.0, %v11767_v61  ;;  %15321 = vmatprep.subr.mxu1 %v15956_v38  ;;  %v11770_v63 = vmul.f32 %v15956_v38, %v15956_v38  ;;  %v11776_v14 = vmul.f32 %v11772_v43, %v16365_v56  ;;  %v11411_v61 = vadd.f32 %v11410_v29, %v11409_v37 }
0x3116   : > { %v15958_v20 = vpop.eup %15957  ;;  %15322 = vmatpush3.msra.mxu1 %v15956_v38  ;;  %v11594_v38 = vadd.f32 %v11593_v51, %v18548_v23 }
0x3117   : > { %15323 = vmatprep.subr.mxu1 %v15958_v20  ;;  %v11769_v50 = vmul.f32 %v15958_v20, %v15958_v20  ;;  %v11775_v4 = vmul.f32 %v11771_v58, %v16363_v52  ;;  %v11774_v17 = vsub.f32 1.0, %v11770_v63 }
0x3118   : > { %v15960_v41 = vpop.eup %15959  ;;  %15324 = vmatpush3.msra.mxu1 %v15958_v20 }
0x3119   : > { %v11957_v13 = vmul.f32 %v15960_v41, %v15960_v41  ;;  %15325 = vmatprep.subr.mxu1 %v15952_v49  ;;  %v11773_v53 = vsub.f32 1.0, %v11769_v50  ;;  %v11779_v57 = vadd.f32 %v11776_v14, %v11775_v4  ;;  %v11778_v16 = vmul.f32 %v11774_v17, %v16377_v11 }
0x311a   : > { %v15962_v32 = vpop.eup %15961  ;;  %15326 = vmatpush3.msra.mxu1 %v15952_v49  ;;  %v11412_v14 = vrot.slane %v11411_v61, 1 }
0x311b   : > { %v11961_v54 = vsub.f32 1.0, %v11957_v13  ;;  %v11956_v59 = vmul.f32 %v15962_v32, %v15962_v32  ;;  %15327 = vmatprep.subr.mxu1 %v15954_v15  ;;  %v11777_v39 = vmul.f32 %v11773_v53, %v16369_v2 }
0x311c   : > { %v15964_v5 = vpop.eup %15963  ;;  %15328 = vmatpush3.msra.mxu1 %v15954_v15 }
0x311d   : > { %v11960_v40 = vsub.f32 1.0, %v11956_v59  ;;  %15330 = vmatmul.mubr.msk.f32.vlgmr.msra.gmra.mxu1 %vm489_vm1, %v18526_v9  ;;  %15342 = vmatprep.subr.mxu1 %v15964_v5  ;;  %v11780_v21 = vadd.f32 %v11779_v57, %v11777_v39  ;;  %v11959_v47 = vmul.f32 %v15964_v5, %v15964_v5  ;;  %v11965_v10 = vmul.f32 %v11961_v54, %v16365_v56 }
0x311e   : > { %v15966_v26 = vpop.eup %15965  ;;  %15343 = vmatpush3.msra.mxu1 %v15964_v5  ;;  %15350 = vmatprep.mubr.msk.f32.mxu1 %vm489_vm1, %v18534_v8  ;;  %v11413_v57 = vadd.f32 %v11412_v14, %v11411_v61 }
0x311f   : > { %15344 = vmatprep.subr.mxu1 %v15966_v26  ;;  %v11781_v6 = vadd.f32 %v11780_v21, %v11778_v16  ;;  %v11958_v55 = vmul.f32 %v15966_v26, %v15966_v26  ;;  %v11964_v62 = vmul.f32 %v11960_v40, %v16363_v52  ;;  %v11963_v49 = vsub.f32 1.0, %v11959_v47 }
0x3120   : > { %15345 = vmatpush3.msra.mxu1 %v15966_v26 }
0x3121   : > { %15346 = vmatprep.subr.mxu1 %v15960_v41  ;;  %v11782_v34 = vrot.slane %v11781_v6, 4  ;;  %v11962_v3 = vsub.f32 1.0, %v11958_v55  ;;  %v11968_v31 = vadd.f32 %v11965_v10, %v11964_v62  ;;  %v11967_v63 = vmul.f32 %v11963_v49, %v16377_v11 }
0x3122   : > { %15347 = vmatpush3.msra.mxu1 %v15960_v41  ;;  %v11595_v41 = vrot.slane %v11594_v38, 2 }
0x3123   : > { %15348 = vmatprep.subr.mxu1 %v15962_v32  ;;  %v11783_v15 = vadd.f32 %v11782_v34, %v11781_v6  ;;  %v11966_v43 = vmul.f32 %v11962_v3, %v16369_v2 }
0x3124   : > { %15349 = vmatpush3.msra.mxu1 %v15962_v32  ;;  %v11596_v32 = vadd.f32 %v11595_v41, %v11594_v38 }
0x3125   : > { %15351 = vmatmul.mubr.msk.f32.vlgmr.msra.gmra.mxu1 %vm489_vm1, %v18526_v9  ;;  %v11784_v58 = vrot.slane %v11783_v15, 2  ;;  %v11969_v20 = vadd.f32 %v11968_v31, %v11966_v43 }
0x3126   : > { %15371 = vmatprep.mubr.msk.f32.mxu1 %vm489_vm1, %v18534_v8  ;;  %v11597_v5 = vrot.slane %v11596_v32, 1 }
0x3127   : > { %v11785_v50 = vadd.f32 %v11784_v58, %v11783_v15  ;;  %v11970_v4 = vadd.f32 %v11969_v20, %v11967_v63 }
0x3128   : > { %v11598_v16 = vadd.f32 %v11597_v5, %v11596_v32 }
0x3129   : > { %v11786_v27 = vrot.slane %v11785_v50, 1  ;;  %v11971_v13 = vrot.slane %v11970_v4, 4 }
0x312b   : > { %v11787_v53 = vadd.f32 %v11786_v27, %v11785_v50  ;;  %v11972_v17 = vadd.f32 %v11971_v13, %v11970_v4 }
0x312d   : > { %v11973_v54 = vrot.slane %v11972_v17, 2  ;;  %v12761_v59 = vmul.f32 2.0, %v11787_v53 }
0x312f   : > { %v11974_v23 = vadd.f32 %v11973_v54, %v11972_v17  ;;  %v18614_v39 = vadd.f32 %v12761_v59, %v11413_v57 }
0x3131   : > { %v11975_v37 = vrot.slane %v11974_v23, 1 }
0x3133   : > { %v11976_v40 = vadd.f32 %v11975_v37, %v11974_v23 }
0x3135   : > { %v12768_v21 = vmul.f32 2.0, %v11976_v40 }
0x3137   : > { %v18616_v47 = vadd.f32 %v12768_v21, %v11598_v16 }
0x31dd   : > { %v15331_v26 = vpop.f32.mrf.mxu1 }
0x31de   : > { %v18619_v6 = vadd.f32 %v15331_v26, %v16358_v42 }
0x31df   : > { %v11758_v55 = vpop.f32.mrf.mxu1 }
0x31e0   : > { %v11978_v62 = vmul.f32 0.0625, %v18619_v6  ;;  %v18623_v10 = vadd.f32 %v11758_v55, %v16361_v46 }
0x31e2   : > { %v11977_v29 = vmul.f32 0.0625, %v18623_v10  ;;  %v11980_v51 = vadd.f32 %v11978_v62, %v18453_v0 }
0x31e4   : > { %15353 = vmatprep.subr.mxu0 %v11980_v51  ;;  %v11979_v34 = vadd.f32 %v11977_v29, %v18456_v30 }
0x31e5   : > { %v15352_v3 = vpop.f32.mrf.mxu1  ;;  %15354 = vmatpush3.msra.mxu0 %v11980_v51 }
0x31e6   : > { %v18629_v49 = vadd.f32 %v15352_v3, %v16358_v42  ;;  %15355 = vmatprep.subr.mxu0 %v11979_v34 }
0x31e7   : > { %v11947_v31 = vpop.f32.mrf.mxu1  ;;  %15356 = vmatpush3.msra.mxu0 %v11979_v34 }
0x31e8   : > { %v12167_v15 = vmul.f32 0.0625, %v18629_v49  ;;  %v18633_v43 = vadd.f32 %v11947_v31, %v16361_v46  ;;  %15358 = vmatmul.mubr.msk.f32.vlgmr.msra.gmra.mxu0 %vm387_vm0, %v18469_v60 }
0x31e9   : > { %15360 = vmatprep.mubr.msk.f32.mxu0 %vm387_vm0, %v18476_v18 }
0x31ea   : > { %v12166_v61 = vmul.f32 0.0625, %v18633_v43  ;;  %v12169_v38 = vadd.f32 %v12167_v15, %v18481_v36 }
0x31ec   : > { %15361 = vmatmul.mubr.msk.f32.gmra.mxu0 %vm387_vm0, %v18489_v7  ;;  %15374 = vmatprep.subr.mxu0 %v12169_v38  ;;  %v12168_v58 = vadd.f32 %v12166_v61, %v18484_v1 }
0x31ed   : > { %15375 = vmatpush3.msra.mxu0 %v12169_v38  ;;  %15378 = vmatprep.mubr.msk.f32.mxu0 %vm387_vm0, %v18498_v48 }
0x31ee   : > { %15376 = vmatprep.subr.mxu0 %v12168_v58 }
0x31ef   : > { %15377 = vmatpush3.msra.mxu0 %v12168_v58 }
0x31f0   : > { %15379 = vmatmul.mubr.msk.f32.vlgmr.msra.gmra.mxu0 %vm387_vm0, %v18469_v60 }
0x31f1   : > { %15381 = vmatprep.mubr.msk.f32.mxu0 %vm387_vm0, %v18476_v18 }
0x31f4   : > { %15382 = vmatmul.mubr.msk.f32.gmra.mxu0 %vm387_vm0, %v18489_v7 }
0x31f5   : > { %15399 = vmatprep.mubr.msk.f32.mxu0 %vm387_vm0, %v18498_v48 }
0x32a8   : > { %v15359_v63 = vpop.f32.mrf.mxu0 }
0x32a9   : > { %v12053_v20 = vadd.f32 %v15359_v63, %v16343_v24 }
0x32aa   : > { %v12047_v50 = vpop.f32.mrf.mxu0 }
0x32ab   : > { %15967 = vtanh.f32 %v12053_v20  ;;  %v12048_v4 = vadd.f32 %v12047_v50, %v16348_v28 }
0x32ac   : > { %v15362_v14 = vpop.f32.mrf.mxu0 }
0x32ad   : > { %15969 = vtanh.f32 %v12048_v4  ;;  %v12063_v41 = vadd.f32 %v15362_v14, %v16345_v25 }
0x32ae   : > { %v12057_v27 = vpop.f32.mrf.mxu0 }
0x32af   : > { %15971 = vtanh.f32 %v12063_v41  ;;  %v12058_v13 = vadd.f32 %v12057_v27, %v16352_v33 }
0x32b0   : > { %v15380_v53 = vpop.f32.mrf.mxu0 }
0x32b1   : > { %15973 = vtanh.f32 %v12058_v13  ;;  %v12242_v17 = vadd.f32 %v15380_v53, %v16343_v24 }
0x32b2   : > { %v12236_v57 = vpop.f32.mrf.mxu0 }
0x32b3   : > { %15975 = vtanh.f32 %v12242_v17  ;;  %v12237_v32 = vadd.f32 %v12236_v57, %v16348_v28 }
0x32b4   : > { %v15383_v54 = vpop.f32.mrf.mxu0 }
0x32b5   : > { %15977 = vtanh.f32 %v12237_v32  ;;  %v12252_v59 = vadd.f32 %v15383_v54, %v16345_v25 }
0x32b6   : > { %v12246_v23 = vpop.f32.mrf.mxu0 }
0x32b7   : > { %15979 = vtanh.f32 %v12252_v59  ;;  %v12247_v5 = vadd.f32 %v12246_v23, %v16352_v33 }
0x32b8   : > { %v15968_v37 = vpop.eup %15967 }
0x32b9   : > { %15981 = vtanh.f32 %v12247_v5  ;;  %v12146_v40 = vmul.f32 %v15968_v37, %v15968_v37 }
0x32ba   : > { %v15970_v16 = vpop.eup %15969 }
0x32bb   : > { %v12145_v21 = vmul.f32 %v15970_v16, %v15970_v16  ;;  %v12150_v26 = vsub.f32 1.0, %v12146_v40 }
0x32bc   : > { %v15972_v55 = vpop.eup %15971 }
0x32bd   : > { %15363 = vmatprep.subr.mxu1 %v15972_v55  ;;  %v12148_v62 = vmul.f32 %v15972_v55, %v15972_v55  ;;  %v12149_v29 = vsub.f32 1.0, %v12145_v21  ;;  %v12154_v31 = vmul.f32 %v12150_v26, %v16365_v56 }
0x32be   : > { %v15974_v51 = vpop.eup %15973  ;;  %15364 = vmatpush3.msra.mxu1 %v15972_v55 }
0x32bf   : > { %15365 = vmatprep.subr.mxu1 %v15974_v51  ;;  %v12147_v34 = vmul.f32 %v15974_v51, %v15974_v51  ;;  %v12153_v3 = vmul.f32 %v12149_v29, %v16363_v52  ;;  %v12152_v38 = vsub.f32 1.0, %v12148_v62 }
0x32c0   : > { %v15976_v15 = vpop.eup %15975  ;;  %15366 = vmatpush3.msra.mxu1 %v15974_v51 }
0x32c1   : > { %15367 = vmatprep.subr.mxu1 %v15968_v37  ;;  %v12151_v61 = vsub.f32 1.0, %v12147_v34  ;;  %v12157_v58 = vadd.f32 %v12154_v31, %v12153_v3  ;;  %v12335_v63 = vmul.f32 %v15976_v15, %v15976_v15  ;;  %v12156_v27 = vmul.f32 %v12152_v38, %v16377_v11 }
0x32c2   : > { %v15978_v20 = vpop.eup %15977  ;;  %15368 = vmatpush3.msra.mxu1 %v15968_v37 }
0x32c3   : > { %15369 = vmatprep.subr.mxu1 %v15970_v16  ;;  %v12155_v50 = vmul.f32 %v12151_v61, %v16369_v2  ;;  %v12334_v4 = vmul.f32 %v15978_v20, %v15978_v20  ;;  %v12339_v14 = vsub.f32 1.0, %v12335_v63 }
0x32c4   : > { %v15980_v41 = vpop.eup %15979  ;;  %15370 = vmatpush3.msra.mxu1 %v15970_v16 }
0x32c5   : > { %15372 = vmatmul.mubr.msk.f32.vlgmr.msra.gmra.mxu1 %vm489_vm1, %v18526_v9  ;;  %15384 = vmatprep.subr.mxu1 %v15980_v41  ;;  %v12158_v13 = vadd.f32 %v12157_v58, %v12155_v50  ;;  %v12337_v53 = vmul.f32 %v15980_v41, %v15980_v41  ;;  %v12338_v17 = vsub.f32 1.0, %v12334_v4  ;;  %v12343_v23 = vmul.f32 %v12339_v14, %v16365_v56 }
0x32c6   : > { %v15982_v57 = vpop.eup %15981  ;;  %15385 = vmatpush3.msra.mxu1 %v15980_v41  ;;  %15392 = vmatprep.mubr.msk.f32.mxu1 %vm489_vm1, %v18534_v8 }
0x32c7   : > { %15386 = vmatprep.subr.mxu1 %v15982_v57  ;;  %v12159_v32 = vadd.f32 %v12158_v13, %v12156_v27  ;;  %v12336_v54 = vmul.f32 %v15982_v57, %v15982_v57  ;;  %v12342_v59 = vmul.f32 %v12338_v17, %v16363_v52  ;;  %v12341_v40 = vsub.f32 1.0, %v12337_v53 }
0x32c8   : > { %15387 = vmatpush3.msra.mxu1 %v15982_v57  ;;  %v12734_v27 = vmul.f32 2.0, %v18619_v6  ;;  %v12733_v13 = vmul.f32 2.0, %v18623_v10  ;;  %v12748_v6 = vmul.f32 2.0, %v18629_v49 }
0x32c9   : > { %15388 = vmatprep.subr.mxu1 %v15976_v15  ;;  %v12160_v5 = vrot.slane %v12159_v32, 4  ;;  %v12340_v37 = vsub.f32 1.0, %v12336_v54  ;;  %v12346_v16 = vadd.f32 %v12343_v23, %v12342_v59  ;;  %v12345_v62 = vmul.f32 %v12341_v40, %v16377_v11 }
0x32ca   : > { %15389 = vmatpush3.msra.mxu1 %v15976_v15  ;;  %v12735_v23 = vadd.f32 %v12733_v13, %v18555_v45 }
0x32cb   : > { %15390 = vmatprep.subr.mxu1 %v15978_v20  ;;  %v12161_v21 = vadd.f32 %v12160_v5, %v12159_v32  ;;  %v12344_v26 = vmul.f32 %v12340_v37, %v16369_v2  ;;  %v12736_v32 = vadd.f32 %v12734_v27, %v18551_v12  ;;  %v12747_v12 = vmul.f32 2.0, %v18633_v43 }
0x32cc   : > { %15391 = vmatpush3.msra.mxu1 %v15978_v20 }
0x32cd   : > { %15393 = vmatmul.mubr.msk.f32.vlgmr.msra.gmra.mxu1 %vm489_vm1, %v18526_v9  ;;  %v12162_v55 = vrot.slane %v12161_v21, 2  ;;  %v12347_v29 = vadd.f32 %v12346_v16, %v12344_v26 }
0x32ce   : > { %15413 = vmatprep.mubr.msk.f32.mxu1 %vm489_vm1, %v18534_v8 }
0x32cf   : > { %v12163_v51 = vadd.f32 %v12162_v55, %v12161_v21  ;;  %v12348_v34 = vadd.f32 %v12347_v29, %v12345_v62  ;;  %v12750_v55 = vadd.f32 %v12748_v6, %v18561_v44 }
0x32d1   : > { %v12164_v3 = vrot.slane %v12163_v51, 1  ;;  %v12349_v31 = vrot.slane %v12348_v34, 4 }
0x32d3   : > { %v12165_v15 = vadd.f32 %v12164_v3, %v12163_v51  ;;  %v12350_v61 = vadd.f32 %v12349_v31, %v12348_v34  ;;  %v12749_v51 = vadd.f32 %v12747_v12, %v18565_v35 }
0x32d5   : > { %v12351_v38 = vrot.slane %v12350_v61, 2  ;;  %v12763_v58 = vmul.f32 2.0, %v12165_v15 }
0x32d7   : > { %v12352_v63 = vadd.f32 %v12351_v38, %v12350_v61  ;;  %v18679_v20 = vadd.f32 %v12763_v58, %v18614_v39 }
0x32d9   : > { %v12353_v50 = vrot.slane %v12352_v63, 1 }
0x32db   : > { %v12354_v4 = vadd.f32 %v12353_v50, %v12352_v63 }
0x32dd   : > { %v12770_v14 = vmul.f32 2.0, %v12354_v4 }
0x32df   : > { %v18682_v41 = vadd.f32 %v12770_v14, %v18616_v47 }
0x3385   : > { %v15373_v53 = vpop.f32.mrf.mxu1 }
0x3386   : > { %v12142_v17 = vadd.f32 %v15373_v53, %v16358_v42 }
0x3387   : > { %v12136_v57 = vpop.f32.mrf.mxu1 }
0x3388   : > { %v12356_v54 = vmul.f32 0.125, %v12142_v17  ;;  %v12738_v59 = vmul.f32 2.0, %v12142_v17  ;;  %v12137_v39 = vadd.f32 %v12136_v57, %v16361_v46 }
0x338a   : > { %v12355_v5 = vmul.f32 0.125, %v12137_v39  ;;  %v12737_v37 = vmul.f32 2.0, %v12137_v39  ;;  %v12358_v47 = vadd.f32 %v12356_v54, %v18453_v0  ;;  %v18691_v40 = vadd.f32 %v12738_v59, %v12736_v32 }
0x338c   : > { %15395 = vmatprep.subr.mxu0 %v12358_v47  ;;  %v12357_v10 = vadd.f32 %v12355_v5, %v18456_v30  ;;  %v18695_v16 = vadd.f32 %v12737_v37, %v12735_v23 }
0x338d   : > { %v15394_v21 = vpop.f32.mrf.mxu1  ;;  %15396 = vmatpush3.msra.mxu0 %v12358_v47 }
0x338e   : > { %v12331_v26 = vadd.f32 %v15394_v21, %v16358_v42  ;;  %15397 = vmatprep.subr.mxu0 %v12357_v10 }
0x338f   : > { %v12325_v45 = vpop.f32.mrf.mxu1  ;;  %15398 = vmatpush3.msra.mxu0 %v12357_v10 }
0x3390   : > { %v12545_v62 = vmul.f32 0.125, %v12331_v26  ;;  %v12752_v29 = vmul.f32 2.0, %v12331_v26  ;;  %v12326_v49 = vadd.f32 %v12325_v45, %v16361_v46  ;;  %15400 = vmatmul.mubr.msk.f32.vlgmr.msra.gmra.mxu0 %vm387_vm0, %v18469_v60 }
0x3391   : > { %15402 = vmatprep.mubr.msk.f32.mxu0 %vm387_vm0, %v18476_v18 }
0x3392   : > { %v12544_v43 = vmul.f32 0.125, %v12326_v49  ;;  %v12751_v34 = vmul.f32 2.0, %v12326_v49  ;;  %v12547_v3 = vadd.f32 %v12545_v62, %v18481_v36  ;;  %v18707_v31 = vadd.f32 %v12752_v29, %v12750_v55 }
0x3394   : > { %15403 = vmatmul.mubr.msk.f32.gmra.mxu0 %vm387_vm0, %v18489_v7  ;;  %15416 = vmatprep.subr.mxu0 %v12547_v3  ;;  %v12546_v44 = vadd.f32 %v12544_v43, %v18484_v1  ;;  %v18712_v15 = vadd.f32 %v12751_v34, %v12749_v51 }
0x3395   : > { %15417 = vmatpush3.msra.mxu0 %v12547_v3  ;;  %15420 = vmatprep.mubr.msk.f32.mxu0 %vm387_vm0, %v18498_v48 }
0x3396   : > { %15418 = vmatprep.subr.mxu0 %v12546_v44 }
0x3397   : > { %15419 = vmatpush3.msra.mxu0 %v12546_v44 }
0x3398   : > { %15421 = vmatmul.mubr.msk.f32.vlgmr.msra.gmra.mxu0 %vm387_vm0, %v18469_v60 }
0x3399   : > { %15423 = vmatprep.mubr.msk.f32.mxu0 %vm387_vm0, %v18476_v18 }
0x339c   : > { %15424 = vmatmul.mubr.msk.f32.gmra.mxu0 %vm387_vm0, %v18489_v7 }
0x3450   : > { %v15401_v35 = vpop.f32.mrf.mxu0 }
0x3451   : > { %v12431_v61 = vadd.f32 %v15401_v35, %v16343_v24 }
0x3452   : > { %v12425_v38 = vpop.f32.mrf.mxu0 }
0x3453   : > { %15983 = vtanh.f32 %v12431_v61  ;;  %v12426_v58 = vadd.f32 %v12425_v38, %v16348_v28 }
0x3454   : > { %v15404_v63 = vpop.f32.mrf.mxu0 }
0x3455   : > { %15985 = vtanh.f32 %v12426_v58  ;;  %v12441_v48 = vadd.f32 %v15404_v63, %v16345_v25 }
0x3456   : > { %v12435_v50 = vpop.f32.mrf.mxu0 }
0x3457   : > { %15987 = vtanh.f32 %v12441_v48  ;;  %v12436_v60 = vadd.f32 %v12435_v50, %v16352_v33 }
0x3458   : > { %v15422_v4 = vpop.f32.mrf.mxu0 }
0x3459   : > { %15989 = vtanh.f32 %v12436_v60  ;;  %v12620_v18 = vadd.f32 %v15422_v4, %v16343_v24 }
0x345a   : > { %v12614_v7 = vpop.f32.mrf.mxu0 }
0x345b   : > { %15991 = vtanh.f32 %v12620_v18  ;;  %v12615_v14 = vadd.f32 %v12614_v7, %v16348_v28 }
0x345c   : > { %v15425_v27 = vpop.f32.mrf.mxu0 }
0x345d   : > { %15993 = vtanh.f32 %v12615_v14  ;;  %v12630_v13 = vadd.f32 %v15425_v27, %v16345_v25 }
0x345e   : > { %v12624_v53 = vpop.f32.mrf.mxu0 }
0x345f   : > { %15995 = vtanh.f32 %v12630_v13  ;;  %v12625_v17 = vadd.f32 %v12624_v53, %v16352_v33 }
0x3460   : > { %v15984_v57 = vpop.eup %15983 }
0x3461   : > { %15997 = vtanh.f32 %v12625_v17  ;;  %v12524_v32 = vmul.f32 %v15984_v57, %v15984_v57 }
0x3462   : > { %v15986_v54 = vpop.eup %15985 }
0x3463   : > { %v12523_v59 = vmul.f32 %v15986_v54, %v15986_v54  ;;  %v12528_v5 = vsub.f32 1.0, %v12524_v32 }
0x3464   : > { %v15988_v39 = vpop.eup %15987 }
0x3465   : > { %15405 = vmatprep.subr.mxu1 %v15988_v39  ;;  %v12526_v24 = vmul.f32 %v15988_v39, %v15988_v39  ;;  %v12527_v23 = vsub.f32 1.0, %v12523_v59  ;;  %v12532_v10 = vmul.f32 %v12528_v5, %v16365_v56 }
0x3466   : > { %v15990_v37 = vpop.eup %15989  ;;  %15406 = vmatpush3.msra.mxu1 %v15988_v39 }
0x3467   : > { %15407 = vmatprep.subr.mxu1 %v15990_v37  ;;  %v12525_v28 = vmul.f32 %v15990_v37, %v15990_v37  ;;  %v12531_v25 = vmul.f32 %v12527_v23, %v16363_v52  ;;  %v12530_v6 = vsub.f32 1.0, %v12526_v24 }
0x3468   : > { %v15992_v47 = vpop.eup %15991  ;;  %15408 = vmatpush3.msra.mxu1 %v15990_v37 }
0x3469   : > { %15409 = vmatprep.subr.mxu1 %v15984_v57  ;;  %v12529_v33 = vsub.f32 1.0, %v12525_v28  ;;  %v12713_v12 = vmul.f32 %v15992_v47, %v15992_v47  ;;  %v12535_v45 = vadd.f32 %v12532_v10, %v12531_v25  ;;  %v12534_v29 = vmul.f32 %v12530_v6, %v16377_v11 }
0x346a   : > { %v15994_v21 = vpop.eup %15993  ;;  %15410 = vmatpush3.msra.mxu1 %v15984_v57 }
0x346b   : > { %15411 = vmatprep.subr.mxu1 %v15986_v54  ;;  %v12533_v26 = vmul.f32 %v12529_v33, %v16369_v2  ;;  %v12712_v55 = vmul.f32 %v15994_v21, %v15994_v21  ;;  %v12717_v34 = vsub.f32 1.0, %v12713_v12 }
0x346c   : > { %v15996_v62 = vpop.eup %15995  ;;  %15412 = vmatpush3.msra.mxu1 %v15986_v54 }
0x346d   : > { %15414 = vmatmul.mubr.msk.f32.vlgmr.msra.gmra.mxu1 %vm489_vm1, %v18526_v9  ;;  %15426 = vmatprep.subr.mxu1 %v15996_v62  ;;  %v12536_v49 = vadd.f32 %v12535_v45, %v12533_v26  ;;  %v12715_v51 = vmul.f32 %v15996_v62, %v15996_v62  ;;  %v12716_v43 = vsub.f32 1.0, %v12712_v55  ;;  %v12721_v48 = vmul.f32 %v12717_v34, %v16365_v56 }
0x346e   : > { %v15998_v3 = vpop.eup %15997  ;;  %15427 = vmatpush3.msra.mxu1 %v15996_v62  ;;  %15434 = vmatprep.mubr.msk.f32.mxu1 %vm489_vm1, %v18534_v8 }
0x346f   : > { %15428 = vmatprep.subr.mxu1 %v15998_v3  ;;  %v12537_v44 = vadd.f32 %v12536_v49, %v12534_v29  ;;  %v12714_v35 = vmul.f32 %v15998_v3, %v15998_v3  ;;  %v12720_v61 = vmul.f32 %v12716_v43, %v16363_v52  ;;  %v12719_v63 = vsub.f32 1.0, %v12715_v51 }
0x3470   : > { %15429 = vmatpush3.msra.mxu1 %v15998_v3 }
0x3471   : > { %15430 = vmatprep.subr.mxu1 %v15992_v47  ;;  %v12538_v38 = vrot.slane %v12537_v44, 4  ;;  %v12718_v58 = vsub.f32 1.0, %v12714_v35  ;;  %v12724_v4 = vadd.f32 %v12721_v48, %v12720_v61  ;;  %v12723_v52 = vmul.f32 %v12719_v63, %v16377_v11 }
0x3472   : > { %15431 = vmatpush3.msra.mxu1 %v15992_v47 }
0x3473   : > { %15432 = vmatprep.subr.mxu1 %v15994_v21  ;;  %v12539_v50 = vadd.f32 %v12538_v38, %v12537_v44  ;;  %v12722_v60 = vmul.f32 %v12718_v58, %v16369_v2  ;;  %v12778_v2 = vlaneseq }
0x3474   : > { %15433 = vmatpush3.msra.mxu1 %v15994_v21 }
0x3475   : > { %15435 = vmatmul.mubr.msk.f32.vlgmr.msra.gmra.mxu1 %vm489_vm1, %v18526_v9  ;;  %v12540_v8 = vrot.slane %v12539_v50, 2  ;;  %v12725_v18 = vadd.f32 %v12724_v4, %v12722_v60  ;;  %vm12780_vm2 = vcmp.lt.s32.totalorder %v12778_v2, 128 }
0x3477   : > { %v12541_v7 = vadd.f32 %v12540_v8, %v12539_v50  ;;  %v12726_v14 = vadd.f32 %v12725_v18, %v12723_v52 }
0x3479   : > { %v12542_v27 = vrot.slane %v12541_v7, 1  ;;  %v12727_v13 = vrot.slane %v12726_v14, 4 }
0x347b   : > { %v12543_v56 = vadd.f32 %v12542_v27, %v12541_v7  ;;  %v12728_v53 = vadd.f32 %v12727_v13, %v12726_v14 }
0x347d   : > { %v12729_v17 = vrot.slane %v12728_v53, 2  ;;  %v12765_v57 = vadd.f32 %v18679_v20, %v12543_v56 }
0x347f   : > { %v12730_v32 = vadd.f32 %v12729_v17, %v12728_v53  ;;  %v12766_v54 = vmul.f32 0.020833334, %v12765_v57 }
0x3481   : > { %v12731_v59 = vrot.slane %v12730_v32, 1  ;;  %v12767_v9 = vadd.f32 %v12766_v54, %v18442_v19 }
0x3483   : > { %v12732_v11 = vadd.f32 %v12731_v59, %v12730_v32  ;;  %v12777_v39 = vsub.f32 0.0, %v12767_v9 }
0x3485   : > { %v12772_v24 = vadd.f32 %v18682_v41, %v12732_v11  ;;  %12782 = vst.msk [vmem:[%s313_s21] sm:$0x1] %vm12780_vm2, %v12777_v39 }
0x3487   : > { %v12773_v23 = vmul.f32 0.020833334, %v12772_v24 }
0x3489   : > { %v12774_v20 = vadd.f32 %v12773_v23, %v18446_v22 }
0x348b   : > { %v12785_v5 = vsub.f32 0.0, %v12774_v20 }
0x348d   : > { %12786 = vst.msk [vmem:[%s313_s21 + $0x1] sm:$0x1] %vm12780_vm2, %v12785_v5 }
0x348e   : > { %16058 = shalt.err (!%p16055_p5)
}
0x348f   : > { %s16059_s19 = scalar_lea.hbm %s12821_s9, 32  ;;  %s16063_s29 = scalar_lea.hbm %s18836_s7, 64 }
0x3490   : > { %p16060_p7 = scmp.ne.s32.totalorder %s12821_s9, %s16059_s19  ;;  %p16064_p12 = scmp.lt.s32.totalorder %s12821_s9, %s18836_s7 }
0x3491   : > { %p16065_p13 = scmp.lt.s32.totalorder %s16063_s29, %s16059_s19 }
0x3492   : > { %p16061_p10 = pnand %p16060_p7, %p16222_p6 }
0x3493   : > { %p16066_p0 = por %p16065_p13, %p16064_p12 }
0x3494   : > { %p16062_p11 = pneg %p16061_p10 }
0x3496   : > { %p16067_p9 = pnand %p16066_p0, %p16062_p11 }
0x3498   : > { %16070 = shalt.err (!%p16067_p9)
}
0x3499   : > { %15438 = dma.vmem_to_hbm [thread:$0]  (%p16222_p6), %s12824_s13, 32, %s12821_s9, %s12793_s15  }
0x349a   : > { %s18841_s23 = sshll.u32 %s16241_s20, 5  ;;  %s13323_s13 = sshll.u32 %s16204_s28, 8 }
0x349b   : > { %s306_s14 = scalar_lea.vmem [#allocation3], %s18841_s23  ;;  %s18785_s17 = scalar_lea.hbm %s18835_s6, %s13323_s13 }
0x349c   : > { %s12806_s9 = sshll.u32 %s306_s14, 4  ;;  %s12788_s18 = scalar_lea.sflag [#allocation4], %s16241_s20  ;;  %s18779_s9 = int_to_ptr.vmem [resolvable:$true] %s12806_s9 }
0x349d   : > { %s16071_s19 = scalar_lea.vmem %s18779_s9, 512  ;;  %s16139_s28 = smov [#allocation3]  }
0x349e   : > { %p16072_p9 = scmp.ne.s32.totalorder %s18779_s9, %s16071_s19  ;;  %s16075_s21 = sshll.u32 %s16139_s28, 4  ;;  %s16076_s21 = int_to_ptr.vmem [resolvable:$false] %s16075_s21 }
0x349f   : > { %s16077_s22 = scalar_lea.vmem %s16076_s21, 1024  ;;  %p16078_p3 = scmp.lt.s32.totalorder %s18779_s9, %s16076_s21 }
0x34a0   : > { %p16073_p1 = pnand %p16072_p9, %p16222_p6  ;;  %p16079_p4 = scmp.lt.s32.totalorder %s16077_s22, %s16071_s19 }
0x34a2   : > { %p16074_p2 = pneg %p16073_p1  ;;  %p16080_p5 = por %p16079_p4, %p16078_p3 }
0x34a4   : > { %p16081_p7 = pnand %p16080_p5, %p16074_p2 }
0x352d   : > { %v15415_v19 = vpop.f32.mrf.mxu1 }
0x352e   : > { %v12520_v22 = vadd.f32 %v15415_v19, %v16358_v42 }
0x352f   : > { %v12514_v41 = vpop.f32.mrf.mxu1 }
0x3530   : > { %v12742_v37 = vadd.f32 %v18691_v40, %v12520_v22  ;;  %v12515_v28 = vadd.f32 %v12514_v41, %v16361_v46 }
0x3532   : > { %v12744_v25 = vmul.f32 0.020833334, %v12742_v37  ;;  %v12741_v47 = vadd.f32 %v18695_v16, %v12515_v28 }
0x3534   : > { %v12746_v6 = vadd.f32 %v12744_v25, %v18453_v0  ;;  %v12743_v33 = vmul.f32 0.020833334, %v12741_v47 }
0x3535   : > { %v15436_v10 = vpop.f32.mrf.mxu1 }
0x3536   : > { %12776 = vst [vmem:[%s306_s14 + $0x10] sm:$0xff] %v12746_v6  ;;  %v12745_v12 = vadd.f32 %v12743_v33, %v18456_v30  ;;  %v12709_v21 = vadd.f32 %v15436_v10, %v16358_v42 }
0x3537   : > { %v12703_v26 = vpop.f32.mrf.mxu1 }
0x3538   : > { %12775 = vst [vmem:[%s306_s14] sm:$0xff] %v12745_v12  ;;  %v12756_v40 = vadd.f32 %v18707_v31, %v12709_v21  ;;  %v12704_v45 = vadd.f32 %v12703_v26, %v16361_v46 }
0x353a   : > { %v12758_v16 = vmul.f32 0.020833334, %v12756_v40  ;;  %v12755_v0 = vadd.f32 %v18712_v15, %v12704_v45 }
0x353c   : > { %v12760_v42 = vadd.f32 %v12758_v16, %v18481_v36  ;;  %v12757_v30 = vmul.f32 0.020833334, %v12755_v0 }
0x353e   : > { %12784 = vst [vmem:[%s306_s14 + $0x18] sm:$0xff] %v12760_v42  ;;  %v12759_v46 = vadd.f32 %v12757_v30, %v18484_v1 }
0x3540   : > { %12783 = vst [vmem:[%s306_s14 + $0x8] sm:$0xff] %v12759_v46 }
0x3541   : > { %16084 = shalt.err (!%p16081_p7)
}
0x3542   : > { %s16085_s29 = scalar_lea.hbm %s18785_s17, 512  ;;  %s16089_s14 = scalar_lea.hbm %s18835_s6, 1024 }
0x3543   : > { %p16086_p10 = scmp.ne.s32.totalorder %s18785_s17, %s16085_s29  ;;  %p16090_p13 = scmp.lt.s32.totalorder %s18785_s17, %s18835_s6 }
0x3544   : > { %p16091_p0 = scmp.lt.s32.totalorder %s16089_s14, %s16085_s29 }
0x3545   : > { %p16087_p11 = pnand %p16086_p10, %p16222_p6 }
0x3546   : > { %p16092_p9 = por %p16091_p0, %p16090_p13 }
0x3547   : > { %p16088_p12 = pneg %p16087_p11 }
0x3549   : > { %p16093_p1 = pnand %p16092_p9, %p16088_p12 }
0x354b   : > { %16096 = shalt.err (!%p16093_p1)
}
0x354c   : > { %s16140_s16 = smov 256   ;;  %s16141_s19 = smov 512  }
0x354d   : > { %s16142_s28 = smov 16  }
0x354e   : > { %15437 = dma.vmem_to_hbm [thread:$0]  (%p16222_p6), %s18779_s9, 512, %s18785_s17, %s12788_s18, %s16140_s16, %s16141_s19, %s16142_s28  }
0x354f PF: > { %s12835_s21 = sand.u32 1, %s16123_s24   ;;  %p18842_p2 = scmp.ge.s32.totalorder %s16135_s27, 2 }
0x3550   : > { %s12836_s22 = scalar_lea.sflag [#allocation4], %s12835_s21 }
0x3551   : > { %p15442_p3 = pnand %p18842_p2, %p16226_p8 }
0x3553   : > { %p15443_p4 = pneg %p15442_p3 }
0x3555   : > { %16114 = dma.done.wait (%p15443_p4), %s12836_s22, 512  }
0x3556   : > { %16116 = vsyncadd (%p15443_p4), %s12836_s22, 4294966784  ;;  %s12845_s29 = scalar_lea.sflag [#allocation6], %s12835_s21 }
0x3557   : > { %16118 = dma.done.wait (%p15443_p4), %s12845_s29, 32  }
0x3558   : > { %16120 = vsyncadd (%p15443_p4), %s12845_s29, 4294967264  ;;  %p21_p6 = scmp.ge.s32.totalorder %s16208_s30, 4   ;;  %s18843_s24 = smov %s16127_s25 }
0x3559   : > { %s18844_s25 = smov %s16131_s26  ;;  %s18845_s26 = smov %s16220_s10 }
0x355a   : > { %s18846_s27 = smov %s16208_s30  ;;  %23 = sbr.rel (!%p21_p6) target bundleno = 5 (0x5), region = 124 }
0x355f   :  { %12850 = vsyncpa [#allocation4], 1 }
0x3560   :  { %12852 = vsyncpa [#allocation4 + $0x1], 1 }
0x3561   :  { %12853 = vsyncpa [#allocation6], 1 }
0x3562   :  { %12855 = vsyncpa [#allocation6 + $0x1], 1 }

</bundles_post_ra>
